<compile_context>
chip_gen: v6e
topology: v6e:2x2x1
jax: 0.10.0
libtpu: 0.0.40
codegen_flags: <defaults>
</compile_context>

<pallas_src>
import functools

import numpy as np
import jax
import jax.numpy as jnp
from jax.experimental import pallas as pl
from jax.experimental.pallas import tpu as pltpu

# Make the plain-JAX reference matmuls full f32 so they match the in-kernel
# (preferred_element_type=f32) MXU matmuls.
jax.config.update("jax_default_matmul_precision", "highest")


# ---------------------------------------------------------------------------
# Fused Pallas kernel
# ---------------------------------------------------------------------------

def channel_attention_kernel(win_ref, x_ref, wc_ref, bc_ref, w1_ref, b1_ref,
                             w2_ref, b2_ref, wtt_ref, bt_ref, kup_ref, out_ref):
    """Per-batch fused ChannelAttention.

    win_ref : (1, 9, C, (S//8)^2)  the 9 pooling-window taps for the pooled
              positions that survive the Conv2d stride-2 subsample.
    x_ref   : (1, C, S*S)          channel-major flattened input (lane-dense).
    kup_ref : (S2*S2, S*S)         0/1 scatter matrix for the stride-2 conv_t.
    out_ref : (1, C, S*S)          sigmoid(conv_t(...)) * x.
    """
    C, C8 = wtt_ref.shape
    hid = w1_ref.shape[0]
    S2sq, SS = kup_ref.shape

    # --- fused MaxPool2d(3,4) + AvgPool2d(3,4) (only the needed positions) ----
    w = win_ref[...]                                   # (1, 9, C, P4)
    mx = w[0, 0]
    sm = w[0, 0]
    for t in range(1, 9):
        blk = w[0, t]
        mx = jnp.maximum(mx, blk)
        sm = sm + blk
    av = sm * (1.0 / 9.0)

    # --- Conv2d(C, C//8, kernel=1, stride=2) ----------------------------------
    def conv1x1(z):                                    # (C, P4) -> (C8, P4)
        if C8 == 1:
            # K=C, M=1 dot: keep it on the VPU (broadcast-mult + sublane sum)
            # instead of paying MXU push/drain latency.  wc_ref is (C, 1) here.
            return jnp.sum(wc_ref[...] * z, axis=0, keepdims=True) + bc_ref[...]
        return jnp.dot(wc_ref[...], z, preferred_element_type=jnp.float32) + bc_ref[...]

    # --- shared MLP, both branches batched into one (2, hid) matmul pair ------
    vecs = jnp.concatenate([conv1x1(mx).reshape(1, hid),
                            conv1x1(av).reshape(1, hid)], axis=0)   # (2, hid)
    h1 = jnp.dot(vecs, w1_ref[...], preferred_element_type=jnp.float32) + b1_ref[...]
    h1 = jnp.maximum(h1, 0.0)                                       # ReLU
    m2r = jnp.dot(h1, w2_ref[...], preferred_element_type=jnp.float32) + b2_ref[...]
    mlp = m2r[0:1] + m2r[1:2]                                       # mlp_max + mlp_avg

    # --- ConvTranspose2d(C//8, C, 1, stride=2, output_padding=1) + sigmoid ----
    m2 = mlp.reshape(C8, S2sq)                                      # NCHW (c8, i, j) order
    if C8 == 1:
        vt = wtt_ref[...] * m2                                      # (C,1)*(1,S2sq) outer prod
    else:
        vt = jnp.dot(wtt_ref[...], m2, preferred_element_type=jnp.float32)
    # scatter the even (h, w) positions; zero columns of kup leave just the bias.
    z = jnp.dot(vt, kup_ref[...], preferred_element_type=jnp.float32) + bt_ref[...]
    sig = pl.reciprocal(1.0 + jnp.exp(-z), approx=True)             # sigmoid on EUP
    x2 = x_ref[...].reshape(C, SS)
    out_ref[...] = (sig * x2).reshape(1, C, SS)                     # lane-dense store


# ---------------------------------------------------------------------------
# pallas_call wrapper + pure-indexing glue
# ---------------------------------------------------------------------------

def _per_batch_spec(shape):
    nd = len(shape)
    return pl.BlockSpec((1,) + tuple(shape[1:]), lambda n: (n,) + (0,) * (nd - 1))


def _bcast_spec(arr):
    nd = arr.ndim
    return pl.BlockSpec(arr.shape, lambda n: (0,) * nd)


def make_scatter_matrix(S):
    """kup[p, q] = 1 iff flat output index q = (2i)*S + 2j for p = i*(S//2) + j.
    Expresses ConvTranspose2d(k=1, stride=2, output_padding=1) as a single matmul."""
    S2 = S // 2
    K = np.zeros((S2 * S2, S * S), dtype=np.float32)
    p = np.arange(S2 * S2)
    K[p, (2 * (p // S2)) * S + 2 * (p % S2)] = 1.0
    return jnp.asarray(K)


def channel_attention_forward(x_nchw, params, kup):
    N, C, S, _ = x_nchw.shape
    assert S % 8 == 0 and C % 8 == 0
    C8 = params['wt_t'].shape[1]
    B = S // 8

    # Pure-indexing glue: gather the 9 taps of each 3x3 pooling window, but only
    # for the B*B pooled positions kept by the Conv2d stride-2 subsample
    # (pooled coords (2i, 2j) -> spatial window origin (8i, 8j)).
    xw = x_nchw.reshape(N, C, B, 8, B, 8)[:, :, :, :3, :, :3]        # (N,C,i,r,j,co)
    win = jnp.transpose(xw, (0, 3, 5, 1, 2, 4)).reshape(N, 9, C, B * B)
    x_flat = x_nchw.reshape(N, C, S * S)                             # channel-major, lane-dense

    # Degenerate C//8 == 1 conv weight is passed pre-transposed for the VPU path.
    wc_k = params['wc'].T if C8 == 1 else params['wc']
    weights = (wc_k, params['bc'], params['w1'], params['b1'],
               params['w2'], params['b2'], params['wt_t'], params['bt'])

    out_flat = pl.pallas_call(
        channel_attention_kernel,
        out_shape=jax.ShapeDtypeStruct((N, C, S * S), jnp.float32),
        grid=(N,),
        in_specs=[_per_batch_spec(win.shape), _per_batch_spec(x_flat.shape)]
                 + [_bcast_spec(w) for w in weights] + [_bcast_spec(kup)],
        out_specs=_per_batch_spec((N, C, S * S)),
        compiler_params=pltpu.CompilerParams(dimension_semantics=("parallel",)),
    )(win, x_flat, *weights, kup)
    return out_flat.reshape(N, C, S, S)


# ---------------------------------------------------------------------------
# Parameters (deterministic synthetic, shapes follow the module __init__)
# ---------------------------------------------------------------------------

def init_params(key, S, C):
    C8 = C // 8
    hid = S // 8 * (S // 8) * C // 8                  # ChannelAttention.hidden_size
    out2 = S // 2 * S // 2 * C // 8                   # linear_2 output features
    ks = jax.random.split(key, 8)
    rnd = lambda k, shape, s: (s * jax.random.normal(k, shape)).astype(jnp.float32)
    return {
        # Conv2d(C, C//8, 1, stride=2): wc == weight[:, :, 0, 0], bc == bias[:, None]
        'wc': rnd(ks[0], (C8, C), 0.3), 'bc': rnd(ks[1], (C8, 1), 0.1),
        # Linear(hid, 2*hid): w1 == weight.T
        'w1': rnd(ks[2], (hid, 2 * hid), 0.3), 'b1': rnd(ks[3], (1, 2 * hid), 0.1),
        # Linear(2*hid, out2): w2 == weight.T
        'w2': rnd(ks[4], (2 * hid, out2), 0.1), 'b2': rnd(ks[5], (1, out2), 0.1),
        # ConvTranspose2d(C//8, C, 1, stride=2, output_padding=1):
        #   wt_t == weight[:, :, 0, 0].T, bt == bias[:, None]
        'wt_t': rnd(ks[6], (C, C8), 0.5), 'bt': rnd(ks[7], (C, 1), 0.2),
    }


# ---------------------------------------------------------------------------
# Pure-JAX reference (same math, no Pallas) -- correctness check
# ---------------------------------------------------------------------------

def reference_forward(x, p):
    N, C, S, _ = x.shape
    C8 = p['wc'].shape[0]
    S2 = S // 2
    maxP = jax.lax.reduce_window(x, -jnp.inf, jax.lax.max, (1, 1, 3, 3), (1, 1, 4, 4), 'VALID')
    avgP = jax.lax.reduce_window(x, 0.0, jax.lax.add, (1, 1, 3, 3), (1, 1, 4, 4), 'VALID') / 9.0

    def branch(t):
        ts = t[:, :, ::2, ::2]                                        # Conv2d stride 2
        cm = jnp.einsum('nchw,kc->nkhw', ts, p['wc']) + p['bc'][:, 0][None, :, None, None]
        vec = cm.reshape(N, -1)
        h1 = jnp.maximum(vec @ p['w1'] + p['b1'], 0.0)
        return h1 @ p['w2'] + p['b2']

    mlp = branch(maxP) + branch(avgP)
    m = mlp.reshape(N, C8, S2, S2)
    vt = jnp.einsum('nkij,ck->ncij', m, p['wt_t'])
    z = jnp.zeros((N, C, S, S), x.dtype).at[:, :, ::2, ::2].set(vt)   # conv_t even positions
    sig = jax.nn.sigmoid(z + p['bt'][:, 0][None, :, None, None])
    return sig * x


# ---------------------------------------------------------------------------

if __name__ == "__main__":
    # input_channels must be a multiple of 8 and input_size a multiple of 8 for
    # the module's internal reshapes to be consistent.
    N, C, S = 2, 8, 32
    key = jax.random.PRNGKey(0)
    kx, kp = jax.random.split(key)
    x = jax.random.normal(kx, (N, C, S, S), dtype=jnp.float32)
    params = init_params(kp, S, C)
    kup = make_scatter_matrix(S)

    fwd = jax.jit(functools.partial(channel_attention_forward, params=params, kup=kup))
    out = jax.block_until_ready(fwd(x))

    ref = jax.block_until_ready(jax.jit(functools.partial(reference_forward, p=params))(x))

    assert out.shape == (N, C, S, S), out.shape
    assert bool(jnp.all(jnp.isfinite(out)))
    max_err = float(np.max(np.abs(np.asarray(out) - np.asarray(ref))))
    assert np.allclose(np.asarray(out), np.asarray(ref), atol=5e-3, rtol=1e-2), max_err
    print("KERNEL_OK")
</pallas_src>

<mosaic_0001>
module attributes {stable_mosaic.version = 11 : i64} {
  func.func @channel_attention_kernel(%arg0: i32, %arg1: memref<1x9x8x16xf32, #tpu.memory_space<vmem>>, %arg2: memref<1x8x1024xf32, #tpu.memory_space<vmem>>, %arg3: memref<8x1xf32, #tpu.memory_space<vmem>>, %arg4: memref<1x1xf32, #tpu.memory_space<vmem>>, %arg5: memref<16x32xf32, #tpu.memory_space<vmem>>, %arg6: memref<1x32xf32, #tpu.memory_space<vmem>>, %arg7: memref<32x256xf32, #tpu.memory_space<vmem>>, %arg8: memref<1x256xf32, #tpu.memory_space<vmem>>, %arg9: memref<8x1xf32, #tpu.memory_space<vmem>>, %arg10: memref<8x1xf32, #tpu.memory_space<vmem>>, %arg11: memref<256x1024xf32, #tpu.memory_space<vmem>>, %arg12: memref<1x8x1024xf32, #tpu.memory_space<vmem>>) attributes {dimension_semantics = [#tpu.dimension_semantics<parallel>], iteration_bounds = array<i64: 2>, scalar_prefetch = 0 : i64, scratch_operands = 0 : i64, tpu.core_type = #tpu.core_type<tc>, window_params = [{transform_indices = @transform_0, window_bounds = array<i64: 1, 9, 8, 16>}, {transform_indices = @transform_1, window_bounds = array<i64: 1, 8, 1024>}, {pipeline_mode = #tpu.pipeline_mode<synchronous>, transform_indices = @transform_2, window_bounds = array<i64: 8, 1>}, {pipeline_mode = #tpu.pipeline_mode<synchronous>, transform_indices = @transform_3, window_bounds = array<i64: 1, 1>}, {pipeline_mode = #tpu.pipeline_mode<synchronous>, transform_indices = @transform_4, window_bounds = array<i64: 16, 32>}, {pipeline_mode = #tpu.pipeline_mode<synchronous>, transform_indices = @transform_5, window_bounds = array<i64: 1, 32>}, {pipeline_mode = #tpu.pipeline_mode<synchronous>, transform_indices = @transform_6, window_bounds = array<i64: 32, 256>}, {pipeline_mode = #tpu.pipeline_mode<synchronous>, transform_indices = @transform_7, window_bounds = array<i64: 1, 256>}, {pipeline_mode = #tpu.pipeline_mode<synchronous>, transform_indices = @transform_8, window_bounds = array<i64: 8, 1>}, {pipeline_mode = #tpu.pipeline_mode<synchronous>, transform_indices = @transform_9, window_bounds = array<i64: 8, 1>}, {pipeline_mode = #tpu.pipeline_mode<synchronous>, transform_indices = @transform_10, window_bounds = array<i64: 256, 1024>}, {transform_indices = @transform_11, window_bounds = array<i64: 1, 8, 1024>}]} {
    %c0 = arith.constant 0 : index
    %c0_0 = arith.constant 0 : index
    %c0_1 = arith.constant 0 : index
    %c0_2 = arith.constant 0 : index
    %0 = vector.load %arg1[%c0, %c0_0, %c0_1, %c0_2] : memref<1x9x8x16xf32, #tpu.memory_space<vmem>>, vector<1x9x8x16xf32>
    %1 = vector.extract_strided_slice %0 {offsets = [0, 0, 0, 0], sizes = [1, 1, 8, 16], strides = [1, 1, 1, 1]} : vector<1x9x8x16xf32> to vector<1x1x8x16xf32>
    %2 = vector.shape_cast %1 : vector<1x1x8x16xf32> to vector<8x16xf32>
    %3 = vector.extract_strided_slice %0 {offsets = [0, 0, 0, 0], sizes = [1, 1, 8, 16], strides = [1, 1, 1, 1]} : vector<1x9x8x16xf32> to vector<1x1x8x16xf32>
    %4 = vector.shape_cast %3 : vector<1x1x8x16xf32> to vector<8x16xf32>
    %5 = vector.extract_strided_slice %0 {offsets = [0, 1, 0, 0], sizes = [1, 1, 8, 16], strides = [1, 1, 1, 1]} : vector<1x9x8x16xf32> to vector<1x1x8x16xf32>
    %6 = vector.shape_cast %5 : vector<1x1x8x16xf32> to vector<8x16xf32>
    %7 = arith.maximumf %2, %6 : vector<8x16xf32>
    %8 = arith.addf %4, %6 : vector<8x16xf32>
    %9 = vector.extract_strided_slice %0 {offsets = [0, 2, 0, 0], sizes = [1, 1, 8, 16], strides = [1, 1, 1, 1]} : vector<1x9x8x16xf32> to vector<1x1x8x16xf32>
    %10 = vector.shape_cast %9 : vector<1x1x8x16xf32> to vector<8x16xf32>
    %11 = arith.maximumf %7, %10 : vector<8x16xf32>
    %12 = arith.addf %8, %10 : vector<8x16xf32>
    %13 = vector.extract_strided_slice %0 {offsets = [0, 3, 0, 0], sizes = [1, 1, 8, 16], strides = [1, 1, 1, 1]} : vector<1x9x8x16xf32> to vector<1x1x8x16xf32>
    %14 = vector.shape_cast %13 : vector<1x1x8x16xf32> to vector<8x16xf32>
    %15 = arith.maximumf %11, %14 : vector<8x16xf32>
    %16 = arith.addf %12, %14 : vector<8x16xf32>
    %17 = vector.extract_strided_slice %0 {offsets = [0, 4, 0, 0], sizes = [1, 1, 8, 16], strides = [1, 1, 1, 1]} : vector<1x9x8x16xf32> to vector<1x1x8x16xf32>
    %18 = vector.shape_cast %17 : vector<1x1x8x16xf32> to vector<8x16xf32>
    %19 = arith.maximumf %15, %18 : vector<8x16xf32>
    %20 = arith.addf %16, %18 : vector<8x16xf32>
    %21 = vector.extract_strided_slice %0 {offsets = [0, 5, 0, 0], sizes = [1, 1, 8, 16], strides = [1, 1, 1, 1]} : vector<1x9x8x16xf32> to vector<1x1x8x16xf32>
    %22 = vector.shape_cast %21 : vector<1x1x8x16xf32> to vector<8x16xf32>
    %23 = arith.maximumf %19, %22 : vector<8x16xf32>
    %24 = arith.addf %20, %22 : vector<8x16xf32>
    %25 = vector.extract_strided_slice %0 {offsets = [0, 6, 0, 0], sizes = [1, 1, 8, 16], strides = [1, 1, 1, 1]} : vector<1x9x8x16xf32> to vector<1x1x8x16xf32>
    %26 = vector.shape_cast %25 : vector<1x1x8x16xf32> to vector<8x16xf32>
    %27 = arith.maximumf %23, %26 : vector<8x16xf32>
    %28 = arith.addf %24, %26 : vector<8x16xf32>
    %29 = vector.extract_strided_slice %0 {offsets = [0, 7, 0, 0], sizes = [1, 1, 8, 16], strides = [1, 1, 1, 1]} : vector<1x9x8x16xf32> to vector<1x1x8x16xf32>
    %30 = vector.shape_cast %29 : vector<1x1x8x16xf32> to vector<8x16xf32>
    %31 = arith.maximumf %27, %30 : vector<8x16xf32>
    %32 = arith.addf %28, %30 : vector<8x16xf32>
    %33 = vector.extract_strided_slice %0 {offsets = [0, 8, 0, 0], sizes = [1, 1, 8, 16], strides = [1, 1, 1, 1]} : vector<1x9x8x16xf32> to vector<1x1x8x16xf32>
    %34 = vector.shape_cast %33 : vector<1x1x8x16xf32> to vector<8x16xf32>
    %35 = arith.maximumf %31, %34 : vector<8x16xf32>
    %36 = arith.addf %32, %34 : vector<8x16xf32>
    %cst = arith.constant 0.111111112 : f32
    %37 = vector.broadcast %cst : f32 to vector<8x16xf32>
    %38 = arith.mulf %36, %37 : vector<8x16xf32>
    %c0_3 = arith.constant 0 : index
    %c0_4 = arith.constant 0 : index
    %39 = vector.load %arg3[%c0_3, %c0_4] : memref<8x1xf32, #tpu.memory_space<vmem>>, vector<8x1xf32>
    %40 = vector.broadcast %39 : vector<8x1xf32> to vector<8x16xf32>
    %41 = arith.mulf %40, %35 : vector<8x16xf32>
    %cst_5 = arith.constant dense<0.000000e+00> : vector<16xf32>
    %42 = vector.multi_reduction <add>, %41, %cst_5 [0] : vector<8x16xf32> to vector<16xf32>
    %43 = vector.shape_cast %42 : vector<16xf32> to vector<1x16xf32>
    %c0_6 = arith.constant 0 : index
    %c0_7 = arith.constant 0 : index
    %44 = vector.load %arg4[%c0_6, %c0_7] : memref<1x1xf32, #tpu.memory_space<vmem>>, vector<1x1xf32>
    %45 = vector.broadcast %44 : vector<1x1xf32> to vector<1x16xf32>
    %46 = arith.addf %43, %45 : vector<1x16xf32>
    %c0_8 = arith.constant 0 : index
    %c0_9 = arith.constant 0 : index
    %47 = vector.load %arg3[%c0_8, %c0_9] : memref<8x1xf32, #tpu.memory_space<vmem>>, vector<8x1xf32>
    %48 = vector.broadcast %47 : vector<8x1xf32> to vector<8x16xf32>
    %49 = arith.mulf %48, %38 : vector<8x16xf32>
    %cst_10 = arith.constant dense<0.000000e+00> : vector<16xf32>
    %50 = vector.multi_reduction <add>, %49, %cst_10 [0] : vector<8x16xf32> to vector<16xf32>
    %51 = vector.shape_cast %50 : vector<16xf32> to vector<1x16xf32>
    %c0_11 = arith.constant 0 : index
    %c0_12 = arith.constant 0 : index
    %52 = vector.load %arg4[%c0_11, %c0_12] : memref<1x1xf32, #tpu.memory_space<vmem>>, vector<1x1xf32>
    %53 = vector.broadcast %52 : vector<1x1xf32> to vector<1x16xf32>
    %54 = arith.addf %51, %53 : vector<1x16xf32>
    %55 = tpu.concatenate %46, %54 in 0 : vector<1x16xf32>, vector<1x16xf32> -> vector<2x16xf32>
    %c0_13 = arith.constant 0 : index
    %c0_14 = arith.constant 0 : index
    %56 = vector.load %arg5[%c0_13, %c0_14] : memref<16x32xf32, #tpu.memory_space<vmem>>, vector<16x32xf32>
    %cst_15 = arith.constant dense<0.000000e+00> : vector<2x32xf32>
    %57 = tpu.matmul %55, %56, %cst_15 {dimension_numbers = #tpu.dot_dimension_numbers<[1], [0], [0], [1], [0, 0, 1, 1], [], []>, precision = #tpu.contract_precision<fp32>} : vector<2x16xf32>, vector<16x32xf32>, vector<2x32xf32> -> vector<2x32xf32>
    %c0_16 = arith.constant 0 : index
    %c0_17 = arith.constant 0 : index
    %58 = vector.load %arg6[%c0_16, %c0_17] : memref<1x32xf32, #tpu.memory_space<vmem>>, vector<1x32xf32>
    %59 = vector.broadcast %58 : vector<1x32xf32> to vector<2x32xf32>
    %60 = arith.addf %57, %59 : vector<2x32xf32>
    %cst_18 = arith.constant 0.000000e+00 : f32
    %61 = vector.broadcast %cst_18 : f32 to vector<2x32xf32>
    %62 = arith.maximumf %60, %61 : vector<2x32xf32>
    %c0_19 = arith.constant 0 : index
    %c0_20 = arith.constant 0 : index
    %63 = vector.load %arg7[%c0_19, %c0_20] : memref<32x256xf32, #tpu.memory_space<vmem>>, vector<32x256xf32>
    %cst_21 = arith.constant dense<0.000000e+00> : vector<2x256xf32>
    %64 = tpu.matmul %62, %63, %cst_21 {dimension_numbers = #tpu.dot_dimension_numbers<[1], [0], [0], [1], [0, 0, 1, 1], [], []>, precision = #tpu.contract_precision<fp32>} : vector<2x32xf32>, vector<32x256xf32>, vector<2x256xf32> -> vector<2x256xf32>
    %c0_22 = arith.constant 0 : index
    %c0_23 = arith.constant 0 : index
    %65 = vector.load %arg8[%c0_22, %c0_23] : memref<1x256xf32, #tpu.memory_space<vmem>>, vector<1x256xf32>
    %66 = vector.broadcast %65 : vector<1x256xf32> to vector<2x256xf32>
    %67 = arith.addf %64, %66 : vector<2x256xf32>
    %68 = vector.extract_strided_slice %67 {offsets = [0, 0], sizes = [1, 256], strides = [1, 1]} : vector<2x256xf32> to vector<1x256xf32>
    %69 = vector.extract_strided_slice %67 {offsets = [1, 0], sizes = [1, 256], strides = [1, 1]} : vector<2x256xf32> to vector<1x256xf32>
    %70 = arith.addf %68, %69 : vector<1x256xf32>
    %c0_24 = arith.constant 0 : index
    %c0_25 = arith.constant 0 : index
    %71 = vector.load %arg9[%c0_24, %c0_25] : memref<8x1xf32, #tpu.memory_space<vmem>>, vector<8x1xf32>
    %72 = vector.broadcast %71 : vector<8x1xf32> to vector<8x256xf32>
    %73 = vector.broadcast %70 : vector<1x256xf32> to vector<8x256xf32>
    %74 = arith.mulf %72, %73 : vector<8x256xf32>
    %c0_26 = arith.constant 0 : index
    %c0_27 = arith.constant 0 : index
    %75 = vector.load %arg11[%c0_26, %c0_27] : memref<256x1024xf32, #tpu.memory_space<vmem>>, vector<256x1024xf32>
    %cst_28 = arith.constant dense<0.000000e+00> : vector<8x1024xf32>
    %76 = tpu.matmul %74, %75, %cst_28 {dimension_numbers = #tpu.dot_dimension_numbers<[1], [0], [0], [1], [0, 0, 1, 1], [], []>, precision = #tpu.contract_precision<fp32>} : vector<8x256xf32>, vector<256x1024xf32>, vector<8x1024xf32> -> vector<8x1024xf32>
    %c0_29 = arith.constant 0 : index
    %c0_30 = arith.constant 0 : index
    %77 = vector.load %arg10[%c0_29, %c0_30] : memref<8x1xf32, #tpu.memory_space<vmem>>, vector<8x1xf32>
    %78 = vector.broadcast %77 : vector<8x1xf32> to vector<8x1024xf32>
    %79 = arith.addf %76, %78 : vector<8x1024xf32>
    %cst_31 = arith.constant 0.000000e+00 : f32
    %80 = vector.broadcast %cst_31 : f32 to vector<8x1024xf32>
    %81 = arith.subf %80, %79 : vector<8x1024xf32>
    %82 = math.exp %81 : vector<8x1024xf32>
    %cst_32 = arith.constant 1.000000e+00 : f32
    %83 = vector.broadcast %cst_32 : f32 to vector<8x1024xf32>
    %84 = arith.addf %83, %82 : vector<8x1024xf32>
    %85 = tpu.reciprocal %84 {approx = true} : vector<8x1024xf32> -> vector<8x1024xf32>
    %c0_33 = arith.constant 0 : index
    %c0_34 = arith.constant 0 : index
    %c0_35 = arith.constant 0 : index
    %86 = vector.load %arg2[%c0_33, %c0_34, %c0_35] : memref<1x8x1024xf32, #tpu.memory_space<vmem>>, vector<1x8x1024xf32>
    %87 = vector.shape_cast %86 : vector<1x8x1024xf32> to vector<8x1024xf32>
    %88 = arith.mulf %85, %87 : vector<8x1024xf32>
    %89 = vector.shape_cast %88 : vector<8x1024xf32> to vector<1x8x1024xf32>
    %c0_36 = arith.constant 0 : index
    %c0_37 = arith.constant 0 : index
    %c0_38 = arith.constant 0 : index
    %90 = vector.load %arg12[%c0_36, %c0_37, %c0_38] : memref<1x8x1024xf32, #tpu.memory_space<vmem>>, vector<1x8x1024xf32>
    tpu.vector_store %arg12[%c0_36, %c0_37, %c0_38], %89 {strides = array<i32>} : memref<1x8x1024xf32, #tpu.memory_space<vmem>>, vector<1x8x1024xf32>,
    return
  }
  func.func @transform_0(%arg0: i32) -> (i32, i32, i32, i32) {
    %c0_i32 = arith.constant 0 : i32
    %c0_i32_0 = arith.constant 0 : i32
    %c0_i32_1 = arith.constant 0 : i32
    %c0_i32_2 = arith.constant 0 : i32
    return %arg0, %c0_i32, %c0_i32_0, %c0_i32_1 : i32, i32, i32, i32
  }
  func.func @transform_1(%arg0: i32) -> (i32, i32, i32) {
    %c0_i32 = arith.constant 0 : i32
    %c0_i32_0 = arith.constant 0 : i32
    %c0_i32_1 = arith.constant 0 : i32
    return %arg0, %c0_i32, %c0_i32_0 : i32, i32, i32
  }
  func.func @transform_2(%arg0: i32) -> (i32, i32) {
    %c0_i32 = arith.constant 0 : i32
    %c0_i32_0 = arith.constant 0 : i32
    %c0_i32_1 = arith.constant 0 : i32
    return %c0_i32, %c0_i32_0 : i32, i32
  }
  func.func @transform_3(%arg0: i32) -> (i32, i32) {
    %c0_i32 = arith.constant 0 : i32
    %c0_i32_0 = arith.constant 0 : i32
    %c0_i32_1 = arith.constant 0 : i32
    return %c0_i32, %c0_i32_0 : i32, i32
  }
  func.func @transform_4(%arg0: i32) -> (i32, i32) {
    %c0_i32 = arith.constant 0 : i32
    %c0_i32_0 = arith.constant 0 : i32
    %c0_i32_1 = arith.constant 0 : i32
    return %c0_i32, %c0_i32_0 : i32, i32
  }
  func.func @transform_5(%arg0: i32) -> (i32, i32) {
    %c0_i32 = arith.constant 0 : i32
    %c0_i32_0 = arith.constant 0 : i32
    %c0_i32_1 = arith.constant 0 : i32
    return %c0_i32, %c0_i32_0 : i32, i32
  }
  func.func @transform_6(%arg0: i32) -> (i32, i32) {
    %c0_i32 = arith.constant 0 : i32
    %c0_i32_0 = arith.constant 0 : i32
    %c0_i32_1 = arith.constant 0 : i32
    return %c0_i32, %c0_i32_0 : i32, i32
  }
  func.func @transform_7(%arg0: i32) -> (i32, i32) {
    %c0_i32 = arith.constant 0 : i32
    %c0_i32_0 = arith.constant 0 : i32
    %c0_i32_1 = arith.constant 0 : i32
    return %c0_i32, %c0_i32_0 : i32, i32
  }
  func.func @transform_8(%arg0: i32) -> (i32, i32) {
    %c0_i32 = arith.constant 0 : i32
    %c0_i32_0 = arith.constant 0 : i32
    %c0_i32_1 = arith.constant 0 : i32
    return %c0_i32, %c0_i32_0 : i32, i32
  }
  func.func @transform_9(%arg0: i32) -> (i32, i32) {
    %c0_i32 = arith.constant 0 : i32
    %c0_i32_0 = arith.constant 0 : i32
    %c0_i32_1 = arith.constant 0 : i32
    return %c0_i32, %c0_i32_0 : i32, i32
  }
  func.func @transform_10(%arg0: i32) -> (i32, i32) {
    %c0_i32 = arith.constant 0 : i32
    %c0_i32_0 = arith.constant 0 : i32
    %c0_i32_1 = arith.constant 0 : i32
    return %c0_i32, %c0_i32_0 : i32, i32
  }
  func.func @transform_11(%arg0: i32) -> (i32, i32, i32) {
    %c0_i32 = arith.constant 0 : i32
    %c0_i32_0 = arith.constant 0 : i32
    %c0_i32_1 = arith.constant 0 : i32
    return %arg0, %c0_i32, %c0_i32_0 : i32, i32, i32
  }
}

</mosaic_0001>

<bundles_post_ra>
// kernel: channel_attention_forward.1
= control target key start
LH: loop header
LB: loop body
LE: loop exit
PB: predicated region body
PF: predicated region fallthrough
CT: control target
= control target key end

     0   :  { %s7259_s19 = smov 0   ;;  %s12936_s0 = inlined_call_operand.vmem [shape: f32[2,9,8,16], index: 0, kind: input, shape index: {}]   ;;  %s12937_s1 = inlined_call_operand.vmem [shape: f32[2,8,1024], index: 1, kind: input, shape index: {}]   ;;  %s12938_s2 = inlined_call_operand.vmem [shape: f32[8,1], index: 2, kind: input, shape index: {}]   ;;  %s12939_s3 = inlined_call_operand.<no memory space> [shape: f32[1,1], index: 3, kind: input, shape index: {}]   ;;  %s12940_s4 = inlined_call_operand.vmem [shape: f32[16,32], index: 4, kind: input, shape index: {}]   ;;  %s12941_s5 = inlined_call_operand.vmem [shape: f32[1,32], index: 5, kind: input, shape index: {}]   ;;  %s12942_s6 = inlined_call_operand.vmem [shape: f32[32,256], index: 6, kind: input, shape index: {}]   ;;  %s12943_s7 = inlined_call_operand.vmem [shape: f32[1,256], index: 7, kind: input, shape index: {}]   ;;  %s12944_s8 = inlined_call_operand.vmem [shape: f32[8,1], index: 8, kind: input, shape index: {}]   ;;  %s12945_s9 = inlined_call_operand.vmem [shape: f32[8,1], index: 9, kind: input, shape index: {}]   ;;  %s12946_s10 = inlined_call_operand.vmem [shape: f32[256,1024], index: 10, kind: input, shape index: {}]   ;;  %s12947_s11 = inlined_call_operand.vmem [shape: f32[2,8,1024], index: 11, kind: output, shape index: {}]  }
   0x1   :  { %v16_v0 = vstv %s12939_s3 }
   0x2   :  { %17 = vst [vmem:[#allocation2] sm:$0x1] %v16_v0 }
   0x3 LB: > { %s7064_s20 = sadd.s32 4294967295, %s7191_s19   ;;  %p7068_p0 = scmp.ge.s32.totalorder %s7191_s19, 1  ;;  %s7191_s19 = sphi %s7259_s19, %s23_s19  }
   0x4   : > { %p349_p1 = scmp.lt.s32.totalorder %s7191_s19, 3 }
   0x6   : > { %p350_p2 = pnand %p7068_p0, %p349_p1 }
   0x8   : > { %353 = sbr.rel (%p350_p2) target bundleno = 1620 (0x654), region = 64 }
   0xd   : > { %v435_v1 = vld [vmem:[%s12938_s2] sm:$0xff]  ;;  %v7193_v2 = vmov 0   ;;  %v473_v4 = vld [vmem:[%s12940_s4 + $0x8] sm:$0xff]  ;;  %v12963_v13 = vmov 0.0   ;;  %vm7195_vm0 = vmmov 0   ;;  %p394_p3 = scmp.lt.s32.totalorder %s7064_s20, 1  ;;  %v456_v46 = vlaneseq }
   0xe   : > { %7151 = vset.pattern.permute.xlu0 %v7193_v2  ;;  %7152 = vset.pattern.permute.xlu1 %v7193_v2  ;;  %v450_v3 = vld [vmem:[#allocation2] sm:$0x1]  ;;  %v7273_v5 = vand.u32 4294901760, %v473_v4  ;;  %vm442_vm1 = vcmask 130048   ;;  %vm470_vm2 = vcmask 1040384   ;;  %vm964_vm3 = vcmask 261120  }
   0xf   : > { %438 = vperm.xlu0 %7151, %v435_v1   ;;  %v472_v8 = vld [vmem:[%s12940_s4] sm:$0xff]  ;;  %7104 = vmatprep.subr.mxu1 %v12963_v13  ;;  %s15484_s20 = smov (!%p394_p3, %s7064_s20), 1  ;;  %v7318_v53 = vshrl.u32 %v456_v46, 7 }
  0x10   : > { %v7276_v6 = vsub.f32 %v473_v4, %v7273_v5  ;;  %v7282_v9 = vand.u32 4294901760, %v472_v8  ;;  %7097 = vmatprep.subr.mxu0 %v12963_v13  ;;  %7108 = vmatprep.mubr.msk.f32.mxu1 %vm7195_vm0, %v12963_v13  ;;  %s7139_s26 = smul.u32 72, %s15484_s20  ;;  %s7077_s21 = sshll.u32 %s15484_s20, 6 }
  0x11   : > { %7098 = vmatpush3.msra.mxu0 %v7273_v5  ;;  %7101 = vmatprep.mubr.msk.f32.mxu0 %vm7195_vm0, %v12963_v13  ;;  %v7321_v56 = vsub.s32 0, %v7318_v53  ;;  %s11036_s25 = scalar_lea.vmem %s12947_s11, %s7077_s21 }
  0x12   : > { %v592_v7 = vand.u32 4294901760, %v7276_v6  ;;  %v7288_v11 = vsub.f32 %v472_v8, %v7282_v9  ;;  %7099 = vmatprep.subr.mxu0 %v12963_v13  ;;  %s398_s29 = scalar_lea.vmem %s12936_s0, %s7139_s26 }
  0x13   : > { %453 = vperm.xlu0 %7151, %v450_v3   ;;  %7100 = vmatpush3.msra.mxu0 %v7282_v9  ;;  %v409_v17 = vld [vmem:[%s398_s29] sm:$0xff]  ;;  %v410_v18 = vld [vmem:[%s398_s29 + $0x8] sm:$0xff]  ;;  %v411_v20 = vld [vmem:[%s398_s29 + $0x10] sm:$0xff] }
  0x14   : > { %v593_v10 = vsub.f32 %v7276_v6, %v592_v7  ;;  %v599_v14 = vand.u32 4294901760, %v7288_v11  ;;  %7111 = vmatprep.subr.mxu0 %v12963_v13  ;;  %v419_v19 = vadd.f32 %v410_v18, %v409_v17  ;;  %v418_v21 = vmax.f32 %v409_v17, %v410_v18  ;;  %v412_v23 = vld [vmem:[%s398_s29 + $0x18] sm:$0xff]  ;;  %v413_v26 = vld [vmem:[%s398_s29 + $0x20] sm:$0xff]  ;;  %v414_v29 = vld [vmem:[%s398_s29 + $0x28] sm:$0xff] }
  0x15   : > { %v415_v32 = vld [vmem:[%s398_s29 + $0x30] sm:$0xff]  ;;  %v416_v35 = vld [vmem:[%s398_s29 + $0x38] sm:$0xff]  ;;  %v417_v38 = vld [vmem:[%s398_s29 + $0x40] sm:$0xff]  ;;  %s10963_s29 = scalar_lea.vmem %s12937_s1, %s7077_s21 }
  0x16   : > { %v594_v12 = vand.u32 4294901760, %v593_v10  ;;  %v600_v15 = vsub.f32 %v7288_v11, %v599_v14  ;;  %v421_v22 = vadd.f32 %v419_v19, %v411_v20  ;;  %v420_v24 = vmax.f32 %v418_v21, %v411_v20  ;;  %v948_v18 = vld [vmem:[%s12942_s6 + $0x20] sm:$0xff]  ;;  %v947_v21 = vld [vmem:[%s12942_s6 + $0x18] sm:$0xff] }
  0x17   : > { %v7376_v20 = vand.u32 4294901760, %v948_v18 }
  0x18   : > { %7105 = vmatpush3.msra.mxu1 %v594_v12  ;;  %v601_v16 = vand.u32 4294901760, %v600_v15  ;;  %v423_v25 = vadd.f32 %v421_v22, %v412_v23  ;;  %v422_v27 = vmax.f32 %v420_v24, %v412_v23  ;;  %v7386_v24 = vand.u32 4294901760, %v947_v21 }
  0x19   : > { %7106 = vmatprep.subr.mxu1 %v12963_v13 }
  0x1a   : > { %7107 = vmatpush3.msra.mxu1 %v601_v16  ;;  %v425_v28 = vadd.f32 %v423_v25, %v413_v26  ;;  %v424_v30 = vmax.f32 %v422_v27, %v413_v26  ;;  %v946_v25 = vld [vmem:[%s12942_s6 + $0x10] sm:$0xff]  ;;  %v7394_v27 = vsub.f32 %v948_v18, %v7376_v20 }
  0x1b   : > { %7118 = vmatprep.subr.mxu1 %v12963_v13 }
  0x1c   : > { %v427_v31 = vadd.f32 %v425_v28, %v414_v29  ;;  %v426_v33 = vmax.f32 %v424_v30, %v414_v29  ;;  %v7396_v28 = vand.u32 4294901760, %v946_v25  ;;  %v945_v29 = vld [vmem:[%s12942_s6 + $0x8] sm:$0xff] }
  0x1e   : > { %v429_v34 = vadd.f32 %v427_v31, %v415_v32  ;;  %v428_v36 = vmax.f32 %v426_v33, %v415_v32  ;;  %v7407_v32 = vsub.f32 %v947_v21, %v7386_v24  ;;  %v7409_v33 = vand.u32 4294901760, %v945_v29 }
  0x20   : > { %v431_v37 = vadd.f32 %v429_v34, %v416_v35  ;;  %v430_v39 = vmax.f32 %v428_v36, %v416_v35  ;;  %v944_v34 = vld [vmem:[%s12942_s6] sm:$0xff]  ;;  %v12959_v36 = vand.u32 4294901760, %v7394_v27 }
  0x22   : > { %v433_v40 = vadd.f32 %v431_v37, %v417_v38  ;;  %v432_v41 = vmax.f32 %v430_v39, %v417_v38  ;;  %v7420_v37 = vsub.f32 %v946_v25, %v7396_v28  ;;  %v7422_v38 = vand.u32 4294901760, %v944_v34 }
  0x24   : > { %v434_v42 = vmul.f32 0.11111111, %v433_v40  ;;  %v7438_v46 = vsub.f32 %v944_v34, %v7422_v38  ;;  %v1656_v34 = vld [vmem:[%s12946_s10 + $0x3c8] sm:$0xff] }
  0x8a   : > { %v439_v43 = vpop.permute.xlu0 %438 }
  0x8b   : > { %v441_v44 = vmul.f32 %v439_v43, %v432_v41  ;;  %v461_v45 = vmul.f32 %v439_v43, %v434_v42  ;;  %v12958_v41 = vand.u32 4294901760, %v7407_v32  ;;  %v7430_v42 = vsub.f32 %v945_v29, %v7409_v33 }
  0x8d   : > { %v443_v47 = vsel %vm442_vm1, %v441_v44, 0.0  ;;  %v462_v48 = vsel %vm442_vm1, %v461_v45, 0.0  ;;  %v1097_v44 = vsub.f32 %v7394_v27, %v12959_v36  ;;  %v12957_v45 = vand.u32 4294901760, %v7420_v37 }
  0x8e   : > { %v444_v49 = vrot.slane %v443_v47, 4  ;;  %v463_v50 = vrot.slane %v462_v48, 4  ;;  %v454_v59 = vpop.permute.xlu0 %453 }
  0x8f   : > { %v459_v63 = vrot.slane %v454_v59, %v7321_v56 }
  0x90   : > { %v445_v51 = vadd.f32 %v444_v49, %v443_v47  ;;  %v464_v52 = vadd.f32 %v463_v50, %v462_v48  ;;  %v1103_v48 = vsub.f32 %v7407_v32, %v12958_v41  ;;  %v12954_v49 = vand.u32 4294901760, %v7430_v42 }
  0x91   : > { %v1098_v50 = vand.u32 4294901760, %v1097_v44  ;;  %v1647_v44 = vld [vmem:[%s12946_s10 + $0x380] sm:$0xff] }
  0x92   : > { %v446_v54 = vrot.slane %v445_v51, 2  ;;  %v465_v55 = vrot.slane %v464_v52, 2 }
  0x94   : > { %v447_v57 = vadd.f32 %v446_v54, %v445_v51  ;;  %v466_v58 = vadd.f32 %v465_v55, %v464_v52  ;;  %v1109_v51 = vsub.f32 %v7420_v37, %v12957_v45  ;;  %v12952_v52 = vand.u32 4294901760, %v7438_v46 }
  0x95   : > { %v1104_v54 = vand.u32 4294901760, %v1103_v48  ;;  %v1115_v55 = vsub.f32 %v7430_v42, %v12954_v49  ;;  %v1640_v48 = vld [vmem:[%s12946_s10 + $0x348] sm:$0xff] }
  0x96   : > { %v448_v60 = vrot.slane %v447_v57, 1  ;;  %v467_v61 = vrot.slane %v466_v58, 1  ;;  %v1592_v49 = vld [vmem:[%s12946_s10 + $0x1c8] sm:$0xff] }
  0x97   : > { %v1116_v59 = vand.u32 4294901760, %v1115_v55  ;;  %v1639_v55 = vld [vmem:[%s12946_s10 + $0x340] sm:$0xff] }
  0x98   : > { %v449_v62 = vadd.f32 %v448_v60, %v447_v57  ;;  %v468_v0 = vadd.f32 %v467_v61, %v466_v58  ;;  %v1110_v57 = vand.u32 4294901760, %v1109_v51  ;;  %v1121_v58 = vsub.f32 %v7438_v46, %v12952_v52  ;;  %v1519_v61 = vld [vmem:[%s12944_s8] sm:$0xff] }
  0x99   : > { %1522 = vperm.xlu1 %7152, %v1519_v61   ;;  %v7504_v61 = vand.u32 4294901760, %v1640_v48  ;;  %v1599_v52 = vld [vmem:[%s12946_s10 + $0x200] sm:$0xff] }
  0x9a   : > { %v460_v1 = vadd.f32 %v459_v63, %v449_v62  ;;  %v469_v2 = vadd.f32 %v468_v0, %v459_v63  ;;  %v1122_v60 = vand.u32 4294901760, %v1121_v58  ;;  %v1791_v62 = vld [vmem:[%s12945_s9] sm:$0xff]  ;;  %v7495_v58 = vand.u32 4294901760, %v1647_v44 }
  0x9c   : > { %v471_v3 = vsel %vm470_vm2, %v460_v1, %v469_v2 }
  0x9d   : > { %v482_v4 = vsel %vm442_vm1, %v471_v3, 0  ;;  %1794 = vperm.xlu1 %7152, %v1791_v62   ;;  %v7074_v3 = vld [vmem:[%s12941_s5] ss:$0 sm:$0xff] }
  0x9e   : > { %v551_v8 = vand.u32 4294901760, %v482_v4  ;;  %v1631_v62 = vld [vmem:[%s12946_s10 + $0x300] sm:$0xff] }
  0xa0   : > { %7109 = vmatmul.mubr.f32.vlgmr.msra.gmra.mxu1 %v551_v8  ;;  %v552_v10 = vsub.f32 %v482_v4, %v551_v8 }
  0xa1   : > { %7119 = vmatpush3.msra.mxu1 %v7273_v5  ;;  %7122 = vmatprep.mubr.msk.f32.mxu1 %vm7195_vm0, %v12963_v13 }
  0xa2   : > { %7120 = vmatprep.subr.mxu1 %v12963_v13  ;;  %v553_v12 = vand.u32 4294901760, %v552_v10 }
  0xa3   : > { %7121 = vmatpush3.msra.mxu1 %v7282_v9 }
  0xa4   : > { %7123 = vmatmul.mubr.f32.vlgmr.msra.gmra.mxu1 %v553_v12  ;;  %7132 = vmatprep.subr.mxu1 %v12963_v13  ;;  %v554_v15 = vsub.f32 %v552_v10, %v553_v12 }
  0xa5   : > { %7133 = vmatpush3.msra.mxu1 %v7273_v5  ;;  %7136 = vmatprep.mubr.msk.f32.mxu1 %vm7195_vm0, %v12963_v13  ;;  %v951_v5 = vld [vmem:[%s12942_s6 + $0x38] sm:$0xff] }
  0xa6   : > { %7134 = vmatprep.subr.mxu1 %v12963_v13  ;;  %v555_v16 = vand.u32 4294901760, %v554_v15 }
  0xa7   : > { %7135 = vmatpush3.msra.mxu1 %v7282_v9  ;;  %v7354_v9 = vand.u32 4294901760, %v951_v5 }
  0xa8   : > { %7102 = vmatmul.mubr.f32.vlgmr.msra.gmra.mxu0 %v555_v16  ;;  %7137 = vmatmul.mubr.f32.vlgmr.msra.gmra.mxu1 %v551_v8 }
  0xa9   : > { %7112 = vmatpush3.msra.mxu0 %v7276_v6  ;;  %7115 = vmatprep.mubr.msk.f32.mxu0 %vm7195_vm0, %v12963_v13  ;;  %v950_v6 = vld [vmem:[%s12942_s6 + $0x30] sm:$0xff] }
  0xaa   : > { %7113 = vmatprep.subr.mxu0 %v12963_v13  ;;  %1156 = vmatprep.mubr.f32.mxu1 %v12963_v13 }
  0xab   : > { %7114 = vmatpush3.msra.mxu0 %v7288_v11  ;;  %v949_v11 = vld [vmem:[%s12942_s6 + $0x28] sm:$0xff] }
  0xac   : > { %7125 = vmatprep.subr.mxu0 %v12963_v13  ;;  %7116 = vmatmul.mubr.f32.vlgmr.msra.gmra.mxu0 %v552_v10  ;;  %v7367_v17 = vand.u32 4294901760, %v949_v11 }
  0xad   : > { %7126 = vmatpush3.msra.mxu0 %v592_v7  ;;  %7129 = vmatprep.mubr.msk.f32.mxu0 %vm7195_vm0, %v12963_v13  ;;  %v7359_v7 = vand.u32 4294901760, %v950_v6 }
  0xae   : > { %7127 = vmatprep.subr.mxu0 %v12963_v13  ;;  %v7384_v23 = vsub.f32 %v949_v11, %v7367_v17 }
  0xaf   : > { %7128 = vmatpush3.msra.mxu0 %v599_v14  ;;  %v7365_v14 = vsub.f32 %v951_v5, %v7354_v9  ;;  %v7374_v19 = vsub.f32 %v950_v6, %v7359_v7 }
  0xb0   : > { %7130 = vmatmul.mubr.f32.vlgmr.msra.gmra.mxu0 %v551_v8  ;;  %993 = vmatprep.subr.mxu0 %v7354_v9  ;;  %v12961_v31 = vand.u32 4294901760, %v7384_v23 }
  0xb1   : > { %1040 = vmatprep.mubr.f32.mxu0 %v12963_v13  ;;  %995 = vmatpush1.msra.mxu0 %v7359_v7  ;;  %v1078_v22 = vand.u32 4294901760, %v7365_v14  ;;  %v12962_v26 = vand.u32 4294901760, %v7374_v19 }
  0xb2   : > { %997 = vmatprep.subr.mxu0 %v7367_v17  ;;  %v1091_v40 = vsub.f32 %v7384_v23, %v12961_v31  ;;  %v7680_v31 = vand.u32 4294901760, %v1592_v49 }
  0xb3   : > { %999 = vmatpush1.msra.mxu0 %v7376_v20  ;;  %v1079_v30 = vsub.f32 %v7365_v14, %v1078_v22  ;;  %v1085_v35 = vsub.f32 %v7374_v19, %v12962_v26 }
  0xb4   : > { %1001 = vmatprep.subr.mxu0 %v7386_v24  ;;  %v1092_v47 = vand.u32 4294901760, %v1091_v40  ;;  %v1648_v40 = vld [vmem:[%s12946_s10 + $0x388] sm:$0xff] }
  0xb5   : > { %1003 = vmatpush1.msra.mxu0 %v7396_v28  ;;  %v1080_v39 = vand.u32 4294901760, %v1079_v30  ;;  %v1086_v43 = vand.u32 4294901760, %v1085_v35 }
  0xb6   : > { %1005 = vmatprep.subr.mxu0 %v7409_v33 }
  0xb7   : > { %1007 = vmatpush1.msra.mxu0 %v7422_v38  ;;  %1081 = vmatprep.subr.mxu1 %v1080_v39  ;;  %v1655_v39 = vld [vmem:[%s12946_s10 + $0x3c0] sm:$0xff] }
  0xb8   : > { %1190 = vmatprep.subr.mxu0 %v7365_v14  ;;  %1087 = vmatpush1.msra.mxu1 %v1086_v43  ;;  %v7475_v43 = vand.u32 4294901760, %v1656_v34  ;;  %v7485_v51 = vand.u32 4294901760, %v1655_v39  ;;  %v13810_v14 = vmov 0.0  }
  0xb9   : > { %1093 = vmatprep.subr.mxu1 %v1092_v47 }
  0xba   : > { %1099 = vmatpush1.msra.mxu1 %v1098_v50  ;;  %13801 = vst [vmem:[#allocation3_spill] sm:$0xff] %v7475_v43 }
  0xbb   : > { %1105 = vmatprep.subr.mxu1 %v1104_v54  ;;  %v7487_v54 = vand.u32 4294901760, %v1648_v40 }
  0xbc   : > { %1111 = vmatpush1.msra.mxu1 %v1110_v57  ;;  %v1632_v57 = vld [vmem:[%s12946_s10 + $0x308] sm:$0xff] }
  0xbd   : > { %1117 = vmatprep.subr.mxu1 %v1116_v59 }
  0xbe   : > { %1123 = vmatpush1.msra.mxu1 %v1122_v60  ;;  %v7502_v60 = vsub.f32 %v1656_v34, %v7475_v43  ;;  %v1616_v34 = vld [vmem:[%s12946_s10 + $0x288] sm:$0xff] }
  0xbf   : > { %1278 = vmatprep.subr.mxu1 %v7354_v9 }
  0xc0   : > { %13802 = vst [vmem:[#allocation4_spill] sm:$0xff] %v7502_v60 }
 0x160   : > { %v638_v63 = vpop.f32.mrf.mxu1 }
 0x162   : > { %v7110_v0 = vpop.f32.mrf.mxu1 }
 0x163   : > { %v7513_v0 = vand.u32 4294901760, %v1632_v57 }
 0x164   : > { %v789_v1 = vpop.f32.mrf.mxu1 }
 0x166   : > { %v7124_v2 = vpop.f32.mrf.mxu1 }
 0x167   : > { %v7518_v2 = vsub.f32 %v1655_v39, %v7485_v51 }
 0x168   : > { %v557_v4 = vpop.f32.mrf.mxu0  ;;  %v939_v8 = vpop.f32.mrf.mxu1 }
 0x169   : > { %v558_v10 = vadd.f32 %v7074_v3, %v557_v4  ;;  %v7521_v3 = vsub.f32 %v1648_v40, %v7487_v54  ;;  %v7525_v4 = vsub.f32 %v1647_v44, %v7495_v58  ;;  %v1615_v44 = vld [vmem:[%s12946_s10 + $0x280] sm:$0xff] }
 0x16a   : > { %v7103_v12 = vpop.f32.mrf.mxu0  ;;  %v7138_v15 = vpop.f32.mrf.mxu1 }
 0x16b   : > { %v639_v16 = vadd.f32 %v638_v63, %v558_v10  ;;  %v7511_v63 = vand.u32 4294901760, %v1639_v55  ;;  %v12951_v12 = vand.u32 4294901760, %v7502_v60  ;;  %v7533_v15 = vsub.f32 %v1640_v48, %v7504_v61 }
 0x16c   : > { %v714_v5 = vpop.f32.mrf.mxu0 }
 0x16d   : > { %v715_v6 = vadd.f32 %v714_v5, %v639_v16  ;;  %13803 = vst [vmem:[#allocation5_spill] sm:$0xff] %v7533_v15  ;;  %v7537_v16 = vsub.f32 %v1639_v55, %v7511_v63  ;;  %v7540_v5 = vsub.f32 %v1632_v57, %v7513_v0  ;;  %v12953_v39 = vand.u32 4294901760, %v7533_v15  ;;  %v1608_v55 = vld [vmem:[%s12946_s10 + $0x248] sm:$0xff] }
 0x16e   : > { %v7117_v11 = vpop.f32.mrf.mxu0 }
 0x16f   : > { %v790_v18 = vadd.f32 %v789_v1, %v715_v6  ;;  %13804 = vst [vmem:[#allocation6_spill] sm:$0xff] %v7537_v16  ;;  %13805 = vst [vmem:[#allocation7_spill] sm:$0xff] %v7540_v5  ;;  %v1624_v6 = vld [vmem:[%s12946_s10 + $0x2c8] sm:$0xff] }
 0x170   : > { %v866_v21 = vpop.f32.mrf.mxu0  ;;  %v7566_v40 = vand.u32 4294901760, %v1624_v6 }
 0x171   : > { %v867_v25 = vadd.f32 %v866_v21, %v790_v18  ;;  %v12949_v18 = vand.u32 4294901760, %v7518_v2  ;;  %v12948_v21 = vand.u32 4294901760, %v7521_v3 }
 0x172   : > { %v7131_v29 = vpop.f32.mrf.mxu0 }
 0x173   : > { %v940_v30 = vadd.f32 %v939_v8, %v867_v25  ;;  %v7527_v8 = vand.u32 4294901760, %v1631_v62  ;;  %v1623_v25 = vld [vmem:[%s12946_s10 + $0x2c0] sm:$0xff]  ;;  %v12950_v29 = vand.u32 4294901760, %v7525_v4  ;;  %v7584_v57 = vsub.f32 %v7518_v2, %v12949_v18 }
 0x174   : > { %v7574_v48 = vand.u32 4294901760, %v1623_v25 }
 0x175   : > { %v943_v35 = vmax.f32 %v940_v30, 0.0  ;;  %v7554_v30 = vsub.f32 %v1631_v62, %v7527_v8  ;;  %v7591_v62 = vand.u32 4294901760, %v1616_v34 }
 0x177   : > { %v966_v47 = vsel %vm964_vm3, %v943_v35, 0  ;;  %13806 = vst [vmem:[#allocation8_spill] sm:$0xff] %v7554_v30  ;;  %v7563_v35 = vsub.f32 %v7502_v60, %v12951_v12  ;;  %v7620_v12 = vand.u32 4294901760, %v1608_v55 }
 0x178   : > { %v7483_v50 = vand.u32 4294901760, %v966_v47 }
 0x179   : > { %v1946_v18 = vand.u32 4294901760, %v7563_v35  ;;  %v7638_v35 = vsub.f32 %v1623_v25, %v7574_v48  ;;  %v1591_v25 = vld [vmem:[%s12946_s10 + $0x1c0] sm:$0xff] }
 0x17a   : > { %v7498_v59 = vsub.f32 %v966_v47, %v7483_v50  ;;  %1158 = vmatmul.mubr.f32.vlgmr.msra.gmra.mxu1 %v7483_v50  ;;  %v12955_v47 = vand.u32 4294901760, %v7537_v16  ;;  %v7692_v36 = vand.u32 4294901760, %v1591_v25 }
 0x17b   : > { %1280 = vmatpush1.msra.mxu1 %v7359_v7  ;;  %1325 = vmatprep.mubr.f32.mxu1 %v12963_v13 }
 0x17c   : > { %1282 = vmatprep.subr.mxu1 %v7367_v17  ;;  %v1043_v1 = vand.u32 4294901760, %v7498_v59 }
 0x17d   : > { %1284 = vmatpush1.msra.mxu1 %v7376_v20 }
 0x17e   : > { %1286 = vmatprep.subr.mxu1 %v7386_v24  ;;  %v1044_v10 = vsub.f32 %v7498_v59, %v1043_v1 }
 0x17f   : > { %1288 = vmatpush1.msra.mxu1 %v7396_v28 }
 0x180   : > { %1290 = vmatprep.subr.mxu1 %v7409_v33  ;;  %v1045_v11 = vand.u32 4294901760, %v1044_v10  ;;  %v12960_v10 = vand.u32 4294901760, %v7554_v30 }
 0x181   : > { %1292 = vmatpush1.msra.mxu1 %v7422_v38 }
 0x182   : > { %1329 = vmatmul.mubr.f32.vlgmr.msra.gmra.mxu1 %v1043_v1  ;;  %1456 = vmatprep.subr.mxu1 %v7354_v9  ;;  %v12956_v9 = vand.u32 4294901760, %v7540_v5  ;;  %v1607_v1 = vld [vmem:[%s12946_s10 + $0x240] sm:$0xff] }
 0x183   : > { %1046 = vmatmul.mubr.f32.vlgmr.msra.gmra.mxu0 %v1045_v11  ;;  %1458 = vmatpush1.msra.mxu1 %v7359_v7  ;;  %v7589_v7 = vsub.f32 %v7521_v3, %v12948_v21  ;;  %v7604_v11 = vand.u32 4294901760, %v1615_v44  ;;  %v1600_v21 = vld [vmem:[%s12946_s10 + $0x208] sm:$0xff] }
 0x184   : > { %1193 = vmatpush1.msra.mxu0 %v7374_v19  ;;  %1460 = vmatprep.subr.mxu1 %v7367_v17  ;;  %v7601_v17 = vsub.f32 %v7525_v4, %v12950_v29  ;;  %v7618_v29 = vsub.f32 %v1624_v6, %v7566_v40  ;;  %v7635_v6 = vsub.f32 %v7540_v5, %v12956_v9  ;;  %v7652_v45 = vand.u32 4294901760, %v1600_v21  ;;  %v1568_v5 = vld [vmem:[%s12946_s10 + $0x108] sm:$0xff] }
 0x185   : > { %1196 = vmatprep.subr.mxu0 %v7384_v23  ;;  %1462 = vmatpush1.msra.mxu1 %v7376_v20  ;;  %v7615_v20 = vsub.f32 %v7533_v15, %v12953_v39  ;;  %v7640_v39 = vand.u32 4294901760, %v1607_v1  ;;  %v7650_v9 = vsub.f32 %v1616_v34, %v7591_v62  ;;  %v7666_v34 = vsub.f32 %v1615_v44, %v7604_v11  ;;  %v1583_v44 = vld [vmem:[%s12946_s10 + $0x180] sm:$0xff] }
 0x186   : > { %1199 = vmatpush1.msra.mxu0 %v7394_v27  ;;  %1464 = vmatprep.subr.mxu1 %v7386_v24  ;;  %13807 = vst [vmem:[#allocation9_spill] sm:$0xff] %v7618_v29  ;;  %v7630_v24 = vsub.f32 %v7537_v16, %v12955_v47  ;;  %v1958_v47 = vand.u32 4294901760, %v7589_v7  ;;  %v1964_v41 = vand.u32 4294901760, %v7601_v17  ;;  %v1584_v7 = vld [vmem:[%s12946_s10 + $0x188] sm:$0xff]  ;;  %v13811_v16 = vand.u32 4294901760, %v7384_v23 }
 0x187   : > { %1202 = vmatprep.subr.mxu0 %v7407_v32  ;;  %1466 = vmatpush1.msra.mxu1 %v7396_v28  ;;  %v1952_v28 = vand.u32 4294901760, %v7584_v57  ;;  %13808 = vst [vmem:[#allocation10_spill] sm:$0xff] %v7666_v34  ;;  %v7668_v57 = vand.u32 4294901760, %v1599_v52  ;;  %v1970_v17 = vand.u32 4294901760, %v7615_v20  ;;  %v7690_v20 = vsub.f32 %v1607_v1, %v7640_v39 }
 0x188   : > { %1205 = vmatpush1.msra.mxu0 %v7420_v37  ;;  %1468 = vmatprep.subr.mxu1 %v7409_v33  ;;  %v7663_v33 = vsub.f32 %v7554_v30, %v12960_v10  ;;  %v7678_v10 = vsub.f32 %v1608_v55, %v7620_v12  ;;  %v1976_v26 = vand.u32 4294901760, %v7630_v24  ;;  %v1576_v55 = vld [vmem:[%s12946_s10 + $0x148] sm:$0xff]  ;;  %v7705_v1 = vand.u32 4294901760, %v1584_v7 }
 0x189   : > { %1208 = vmatprep.subr.mxu0 %v7430_v42  ;;  %1244 = vmatprep.mubr.f32.mxu0 %v12963_v13  ;;  %v13809_v30 = vand.u32 4294901760, %v7374_v19  ;;  %v7716_v24 = vsub.f32 %v1599_v52, %v7668_v57  ;;  %v13812_v19 = vand.u32 4294901760, %v7618_v29  ;;  %v7732_v52 = vand.u32 4294901760, %v1576_v55 }
 0x18a   : > { %1211 = vmatpush1.msra.mxu0 %v7438_v46  ;;  %1470 = vmatpush1.msra.mxu1 %v7422_v38  ;;  %v7703_v38 = vsub.f32 %v1600_v21, %v7652_v45  ;;  %v7718_v21 = vand.u32 4294901760, %v1583_v44  ;;  %v13813_v15 = vand.u32 4294901760, %v7394_v27  ;;  %v13814_v23 = vand.u32 4294901760, %v7638_v35 }
 0x18b   : > { %1503 = vmatprep.mubr.f32.mxu1 %v12963_v13  ;;  %1247 = vmatmul.mubr.f32.vlgmr.msra.gmra.mxu0 %v7498_v59  ;;  %v1982_v59 = vand.u32 4294901760, %v7635_v6  ;;  %v1575_v13 = vld [vmem:[%s12946_s10 + $0x140] sm:$0xff] }
 0x18c   : > { %1362 = vmatprep.subr.mxu0 %v1078_v22  ;;  %1505 = vmatmul.mubr.f32.vlgmr.msra.gmra.mxu1 %v7483_v50  ;;  %v1988_v22 = vand.u32 4294901760, %v7663_v33  ;;  %v1567_v6 = vld [vmem:[%s12946_s10 + $0x100] sm:$0xff]  ;;  %v13815_v33 = vand.u32 4294901760, %v7407_v32 }
 0x18d   : > { %1366 = vmatpush1.msra.mxu0 %v13809_v30  ;;  %1423 = vmatprep.mubr.f32.mxu0 %v13810_v14  ;;  %v1993_v30 = vsub.f32 %v7618_v29, %v13812_v19  ;;  %v7730_v14 = vsub.f32 %v1592_v49, %v7680_v31  ;;  %v7744_v19 = vsub.f32 %v1591_v25, %v7692_v36  ;;  %v7746_v49 = vand.u32 4294901760, %v1575_v13 }
 0x18e   : > { %1370 = vmatprep.subr.mxu0 %v13811_v16  ;;  %1947 = vmatprep.subr.mxu1 %v1946_v18  ;;  %v1999_v16 = vsub.f32 %v7638_v35, %v13814_v23  ;;  %v13816_v29 = vand.u32 4294901760, %v7650_v9  ;;  %v7757_v23 = vand.u32 4294901760, %v1568_v5  ;;  %v13817_v25 = vand.u32 4294901760, %v7420_v37 }
 0x18f   : > { %1374 = vmatpush1.msra.mxu0 %v13813_v15  ;;  %1953 = vmatpush1.msra.mxu1 %v1952_v28  ;;  %v7755_v28 = vsub.f32 %v1584_v7, %v7705_v1  ;;  %v13818_v18 = vand.u32 4294901760, %v7666_v34  ;;  %v13820_v7 = vand.u32 4294901760, %v7430_v42  ;;  %v1994_v15 = vand.u32 4294901760, %v1993_v30 }
 0x190   : > { %1378 = vmatprep.subr.mxu0 %v13815_v33  ;;  %1959 = vmatprep.subr.mxu1 %v1958_v47  ;;  %v2005_v27 = vsub.f32 %v7650_v9, %v13816_v29  ;;  %v7766_v33 = vsub.f32 %v1583_v44, %v7718_v21  ;;  %v7768_v29 = vand.u32 4294901760, %v1567_v6  ;;  %v13821_v37 = vand.u32 4294901760, %v7678_v10 }
 0x191   : > { %1382 = vmatpush1.msra.mxu0 %v13817_v25  ;;  %1965 = vmatpush1.msra.mxu1 %v1964_v41  ;;  %v2011_v32 = vsub.f32 %v7666_v34, %v13818_v18  ;;  %v12983_v25 = vand.u32 4294901760, %v7730_v14  ;;  %v7777_v18 = vsub.f32 %v1576_v55, %v7732_v52  ;;  %v13823_v47 = vand.u32 4294901760, %v7438_v46 }
 0x192   : > { %13819 = vst [vmem:[#allocation11_spill] sm:$0xff] %v7766_v33  ;;  %1386 = vmatprep.subr.mxu0 %v13820_v7  ;;  %1971 = vmatprep.subr.mxu1 %v1970_v17  ;;  %v2017_v41 = vsub.f32 %v7678_v10, %v13821_v37  ;;  %v2000_v44 = vand.u32 4294901760, %v1999_v16  ;;  %v13824_v34 = vand.u32 4294901760, %v7690_v20  ;;  %v12982_v17 = vand.u32 4294901760, %v7744_v19 }
 0x193   : > { %13822 = vst [vmem:[#allocation12_spill] sm:$0xff] %v7777_v18  ;;  %1390 = vmatpush1.msra.mxu0 %v13823_v47  ;;  %1977 = vmatpush1.msra.mxu1 %v1976_v26  ;;  %v7786_v30 = vsub.f32 %v1575_v13, %v7746_v49  ;;  %v2006_v7 = vand.u32 4294901760, %v2005_v27  ;;  %v13826_v55 = vand.u32 4294901760, %v7703_v38  ;;  %v12981_v26 = vand.u32 4294901760, %v7755_v28 }
 0x194   : > { %v2023_v42 = vsub.f32 %v7690_v20, %v13824_v34  ;;  %1425 = vmatmul.mubr.f32.vlgmr.msra.gmra.mxu0 %v7483_v50  ;;  %1983 = vmatprep.subr.mxu1 %v1982_v59  ;;  %v7794_v16 = vsub.f32 %v1568_v5, %v7757_v23  ;;  %v2012_v34 = vand.u32 4294901760, %v2011_v32  ;;  %v13828_v13 = vand.u32 4294901760, %v7716_v24 }
 0x195   : > { %13825 = vst [vmem:[#allocation13_spill] sm:$0xff] %v7786_v30  ;;  %v2029_v46 = vsub.f32 %v7703_v38, %v13826_v55  ;;  %1989 = vmatpush1.msra.mxu1 %v1988_v22  ;;  %1798 = vmatprep.subr.mxu0 %v7475_v43  ;;  %v12976_v50 = vand.u32 4294901760, %v7766_v33  ;;  %v7802_v59 = vsub.f32 %v1567_v6, %v7768_v29  ;;  %v2018_v27 = vand.u32 4294901760, %v2017_v41 }
 0x196   : > { %13827 = vst [vmem:[#allocation14_spill] sm:$0xff] %v7794_v16  ;;  %v2035_v47 = vsub.f32 %v7716_v24, %v13828_v13  ;;  %1995 = vmatprep.subr.mxu1 %v1994_v15  ;;  %1800 = vmatpush1.msra.mxu0 %v7485_v51  ;;  %v2041_v5 = vsub.f32 %v7730_v14, %v12983_v25  ;;  %v12980_v22 = vand.u32 4294901760, %v7777_v18  ;;  %v2024_v32 = vand.u32 4294901760, %v2023_v42 }
 0x197   : > { %13829 = vst [vmem:[#allocation15_spill] sm:$0xff] %v7802_v59  ;;  %2001 = vmatpush1.msra.mxu1 %v2000_v44  ;;  %1802 = vmatprep.subr.mxu0 %v7487_v54  ;;  %v2047_v37 = vsub.f32 %v7744_v19, %v12982_v17  ;;  %v12979_v6 = vand.u32 4294901760, %v7786_v30  ;;  %v2030_v15 = vand.u32 4294901760, %v2029_v46  ;;  %v2053_v41 = vsub.f32 %v7755_v28, %v12981_v26 }
 0x198   : > { %2007 = vmatprep.subr.mxu1 %v2006_v7  ;;  %1804 = vmatpush1.msra.mxu0 %v7495_v58  ;;  %v12978_v55 = vand.u32 4294901760, %v7794_v16  ;;  %v2036_v44 = vand.u32 4294901760, %v2035_v47  ;;  %v2059_v42 = vsub.f32 %v7766_v33, %v12976_v50  ;;  %v12977_v13 = vand.u32 4294901760, %v7802_v59 }
 0x199   : > { %2013 = vmatpush1.msra.mxu1 %v2012_v34  ;;  %1806 = vmatprep.subr.mxu0 %v7504_v61  ;;  %v2042_v7 = vand.u32 4294901760, %v2041_v5  ;;  %v2065_v46 = vsub.f32 %v7777_v18, %v12980_v22  ;;  %v2048_v34 = vand.u32 4294901760, %v2047_v37  ;;  %v2071_v47 = vsub.f32 %v7786_v30, %v12979_v6 }
 0x19a   : > { %2019 = vmatprep.subr.mxu1 %v2018_v27  ;;  %1808 = vmatpush1.msra.mxu0 %v7511_v63  ;;  %v2054_v50 = vand.u32 4294901760, %v2053_v41  ;;  %v2077_v27 = vsub.f32 %v7794_v16, %v12978_v55  ;;  %v2060_v5 = vand.u32 4294901760, %v2059_v42 }
 0x19b   : > { %2025 = vmatpush1.msra.mxu1 %v2024_v32  ;;  %1810 = vmatprep.subr.mxu0 %v7513_v0  ;;  %v2083_v32 = vsub.f32 %v7802_v59, %v12977_v13  ;;  %v2066_v37 = vand.u32 4294901760, %v2065_v46 }
 0x19c   : > { %2031 = vmatprep.subr.mxu1 %v2030_v15  ;;  %1812 = vmatpush1.msra.mxu0 %v7527_v8  ;;  %v2072_v15 = vand.u32 4294901760, %v2071_v47  ;;  %v2078_v41 = vand.u32 4294901760, %v2077_v27 }
 0x19d   : > { %2037 = vmatpush1.msra.mxu1 %v2036_v44  ;;  %1814 = vmatprep.subr.mxu0 %v7566_v40  ;;  %v2084_v44 = vand.u32 4294901760, %v2083_v32 }
 0x19e   : > { %2043 = vmatprep.subr.mxu1 %v2042_v7  ;;  %1816 = vmatpush1.msra.mxu0 %v7574_v48  ;;  %v1559_v7 = vld [vmem:[%s12946_s10 + $0xc0] sm:$0xff] }
 0x19f   : > { %2049 = vmatpush1.msra.mxu1 %v2048_v34  ;;  %1818 = vmatprep.subr.mxu0 %v7591_v62  ;;  %v7863_v46 = vand.u32 4294901760, %v1559_v7  ;;  %v1552_v34 = vld [vmem:[%s12946_s10 + $0x88] sm:$0xff] }
 0x1a0   : > { %2055 = vmatprep.subr.mxu1 %v2054_v50  ;;  %1820 = vmatpush1.msra.mxu0 %v7604_v11  ;;  %v1560_v50 = vld [vmem:[%s12946_s10 + $0xc8] sm:$0xff]  ;;  %v7871_v27 = vand.u32 4294901760, %v1552_v34 }
 0x1a1   : > { %2061 = vmatpush1.msra.mxu1 %v2060_v5  ;;  %1822 = vmatprep.subr.mxu0 %v7620_v12  ;;  %v7858_v42 = vand.u32 4294901760, %v1560_v50  ;;  %v1551_v5 = vld [vmem:[%s12946_s10 + $0x80] sm:$0xff]  ;;  %v7878_v32 = vsub.f32 %v1559_v7, %v7863_v46 }
 0x1a2   : > { %2067 = vmatprep.subr.mxu1 %v2066_v37  ;;  %1824 = vmatpush1.msra.mxu0 %v7640_v39  ;;  %13831 = vst [vmem:[#allocation17_spill] sm:$0xff] %v7871_v27  ;;  %v7880_v37 = vand.u32 4294901760, %v1551_v5  ;;  %v1543_v7 = vld [vmem:[%s12946_s10 + $0x40] sm:$0xff] }
 0x1a3   : > { %2073 = vmatpush1.msra.mxu1 %v2072_v15  ;;  %1826 = vmatprep.subr.mxu0 %v7652_v45  ;;  %v7869_v47 = vsub.f32 %v1560_v50, %v7858_v42  ;;  %13832 = vst [vmem:[#allocation18_spill] sm:$0xff] %v7878_v32  ;;  %v1544_v15 = vld [vmem:[%s12946_s10 + $0x48] sm:$0xff]  ;;  %v12995_v13 = vand.u32 4294901760, %v7878_v32  ;;  %v7900_v6 = vand.u32 4294901760, %v1543_v7 }
 0x1a4   : > { %2079 = vmatprep.subr.mxu1 %v2078_v41  ;;  %1828 = vmatpush1.msra.mxu0 %v7668_v57  ;;  %13833 = vst [vmem:[#allocation19_spill] sm:$0xff] %v7880_v37  ;;  %v7890_v50 = vand.u32 4294901760, %v1544_v15  ;;  %v7898_v55 = vsub.f32 %v1551_v5, %v7880_v37  ;;  %v1535_v5 = vld [vmem:[%s12946_s10] sm:$0xff] }
 0x1a5   : > { %2085 = vmatpush1.msra.mxu1 %v2084_v44  ;;  %1830 = vmatprep.subr.mxu0 %v7680_v31  ;;  %13830 = vst [vmem:[#allocation16_spill] sm:$0xff] %v7869_v47  ;;  %v12988_v41 = vand.u32 4294901760, %v7869_v47  ;;  %v7888_v44 = vsub.f32 %v1552_v34, %v7871_v27  ;;  %13837 = vst [vmem:[#allocation23_spill] sm:$0xff] %v7900_v6  ;;  %v1536_v34 = vld [vmem:[%s12946_s10 + $0x8] sm:$0xff]  ;;  %v2095_v59 = vsub.f32 %v7878_v32, %v12995_v13 }
 0x1a6   : > { %1832 = vmatpush1.msra.mxu0 %v7692_v36  ;;  %13835 = vst [vmem:[#allocation21_spill] sm:$0xff] %v7890_v50  ;;  %13836 = vst [vmem:[#allocation22_spill] sm:$0xff] %v7898_v55  ;;  %v7911_v17 = vsub.f32 %v1544_v15, %v7890_v50  ;;  %v7913_v25 = vand.u32 4294901760, %v1536_v34  ;;  %v7926_v26 = vand.u32 4294901760, %v1535_v5  ;;  %v1784_v15 = vld [vmem:[%s12946_s10 + $0x7c8] sm:$0xff]  ;;  %v13844_v18 = vand.u32 4294901760, %v7898_v55 }
 0x1a7   : > { %1834 = vmatprep.subr.mxu0 %v7705_v1  ;;  %13834 = vst [vmem:[#allocation20_spill] sm:$0xff] %v7888_v44  ;;  %v2089_v22 = vsub.f32 %v7869_v47, %v12988_v41  ;;  %v7924_v41 = vsub.f32 %v1543_v7, %v7900_v6  ;;  %v13842_v30 = vand.u32 4294901760, %v7888_v44  ;;  %v1783_v7 = vld [vmem:[%s12946_s10 + $0x7c0] sm:$0xff]  ;;  %v2096_v32 = vand.u32 4294901760, %v2095_v59 }
 0x1a8   : > { %1836 = vmatpush1.msra.mxu0 %v7718_v21  ;;  %13838 = vst [vmem:[#allocation24_spill] sm:$0xff] %v7911_v17  ;;  %13839 = vst [vmem:[#allocation25_spill] sm:$0xff] %v7913_v25  ;;  %v7937_v16 = vsub.f32 %v1536_v34, %v7913_v25  ;;  %v1776_v34 = vld [vmem:[%s12946_s10 + $0x788] sm:$0xff] }
 0x1a9   : > { %1838 = vmatprep.subr.mxu0 %v7732_v52  ;;  %13840 = vst [vmem:[#allocation26_spill] sm:$0xff] %v7924_v41  ;;  %13841 = vst [vmem:[#allocation27_spill] sm:$0xff] %v7926_v26  ;;  %v2090_v47 = vand.u32 4294901760, %v2089_v22  ;;  %v2107_v22 = vsub.f32 %v7898_v55, %v13844_v18  ;;  %v7958_v18 = vand.u32 4294901760, %v1784_v15  ;;  %v13848_v55 = vand.u32 4294901760, %v7924_v41 }
 0x1aa   : > { %1840 = vmatpush1.msra.mxu0 %v7746_v49  ;;  %13843 = vst [vmem:[#allocation28_spill] sm:$0xff] %v7937_v16 }
 0x1ab   : > { %1842 = vmatprep.subr.mxu0 %v7757_v23  ;;  %2091 = vmatprep.subr.mxu1 %v2090_v47  ;;  %13847 = vst [vmem:[#allocation30_spill] sm:$0xff] %v7958_v18 }
 0x1ac   : > { %1844 = vmatpush1.msra.mxu0 %v7768_v29  ;;  %2097 = vmatpush1.msra.mxu1 %v2096_v32  ;;  %v7976_v32 = vsub.f32 %v1784_v15, %v7958_v18 }
 0x1ad   : > { %1846 = vmatprep.subr.mxu0 %v7858_v42 }
 0x1ae   : > { %1848 = vmatpush1.msra.mxu0 %v7863_v46  ;;  %13851 = vst [vmem:[#allocation32_spill] sm:$0xff] %v7976_v32 }
 0x1af   : > { %1850 = vmatprep.subr.mxu0 %v7871_v27 }
 0x1b0   : > { %1852 = vmatpush1.msra.mxu0 %v7880_v37 }
 0x1b1   : > { %1854 = vmatprep.subr.mxu0 %v7890_v50  ;;  %v2101_v50 = vsub.f32 %v7888_v44, %v13842_v30  ;;  %v7948_v30 = vsub.f32 %v1535_v5, %v7926_v26  ;;  %v13846_v44 = vand.u32 4294901760, %v7911_v17  ;;  %v1775_v5 = vld [vmem:[%s12946_s10 + $0x780] sm:$0xff] }
 0x1b2   : > { %1856 = vmatpush1.msra.mxu0 %v7900_v6  ;;  %v2108_v6 = vand.u32 4294901760, %v2107_v22  ;;  %v7978_v22 = vand.u32 4294901760, %v1776_v34 }
 0x1b3   : > { %1858 = vmatprep.subr.mxu0 %v7913_v25  ;;  %13845 = vst [vmem:[#allocation29_spill] sm:$0xff] %v7948_v30  ;;  %v2102_v13 = vand.u32 4294901760, %v2101_v50  ;;  %v2113_v59 = vsub.f32 %v7911_v17, %v13846_v44  ;;  %v7967_v50 = vand.u32 4294901760, %v1783_v7  ;;  %v1768_v44 = vld [vmem:[%s12946_s10 + $0x748] sm:$0xff]  ;;  %v13850_v17 = vand.u32 4294901760, %v7937_v16 }
 0x1b4   : > { %1860 = vmatpush1.msra.mxu0 %v7926_v26  ;;  %v2119_v26 = vsub.f32 %v7924_v41, %v13848_v55  ;;  %13852 = vst [vmem:[#allocation33_spill] sm:$0xff] %v7978_v22  ;;  %v1767_v55 = vld [vmem:[%s12946_s10 + $0x740] sm:$0xff]  ;;  %v7995_v33 = vsub.f32 %v1776_v34, %v7978_v22 }
 0x1b5   : > { %13849 = vst [vmem:[#allocation31_spill] sm:$0xff] %v7967_v50  ;;  %2103 = vmatprep.subr.mxu1 %v2102_v13  ;;  %v2114_v25 = vand.u32 4294901760, %v2113_v59  ;;  %v2125_v37 = vsub.f32 %v7937_v16, %v13850_v17  ;;  %1862 = vmatprep.subr.mxu0 %v7958_v18  ;;  %v13853_v13 = vand.u32 4294901760, %v7948_v30  ;;  %v7988_v41 = vsub.f32 %v1783_v7, %v7967_v50 }
 0x1b6   : > { %2109 = vmatpush1.msra.mxu1 %v2108_v6  ;;  %v2120_v47 = vand.u32 4294901760, %v2119_v26  ;;  %v7990_v17 = vand.u32 4294901760, %v1775_v5  ;;  %1864 = vmatpush2.msra.mxu0 %v7967_v50  ;;  %v13022_v16 = vand.u32 4294901760, %v7976_v32  ;;  %13856 = vst [vmem:[#allocation36_spill] sm:$0xff] %v7995_v33  ;;  %v7997_v6 = vand.u32 4294901760, %v1768_v44 }
 0x1b7   : > { %v2131_v59 = vsub.f32 %v7948_v30, %v13853_v13  ;;  %13854 = vst [vmem:[#allocation34_spill] sm:$0xff] %v7988_v41  ;;  %2115 = vmatprep.subr.mxu1 %v2114_v25  ;;  %v2126_v15 = vand.u32 4294901760, %v2125_v37  ;;  %1866 = vmatprep.subr.mxu0 %v7978_v22  ;;  %v13027_v7 = vand.u32 4294901760, %v7988_v41  ;;  %v8004_v30 = vand.u32 4294901760, %v1767_v55  ;;  %v1760_v25 = vld [vmem:[%s12946_s10 + $0x708] sm:$0xff] }
 0x1b8   : > { %13855 = vst [vmem:[#allocation35_spill] sm:$0xff] %v7990_v17  ;;  %13857 = vst [vmem:[#allocation37_spill] sm:$0xff] %v7997_v6  ;;  %2121 = vmatpush1.msra.mxu1 %v2120_v47  ;;  %v8002_v13 = vsub.f32 %v1775_v5, %v7990_v17  ;;  %1868 = vmatpush2.msra.mxu0 %v7990_v17  ;;  %v2137_v37 = vsub.f32 %v7976_v32, %v13022_v16  ;;  %v13032_v34 = vand.u32 4294901760, %v7995_v33  ;;  %v1759_v16 = vld [vmem:[%s12946_s10 + $0x700] sm:$0xff] }
 0x1b9   : > { %v2132_v26 = vand.u32 4294901760, %v2131_v59  ;;  %13859 = vst [vmem:[#allocation39_spill] sm:$0xff] %v8004_v30  ;;  %2127 = vmatprep.subr.mxu1 %v2126_v15  ;;  %v8015_v47 = vsub.f32 %v1768_v44, %v7997_v6  ;;  %1870 = vmatprep.subr.mxu0 %v7997_v6  ;;  %v2143_v5 = vsub.f32 %v7988_v41, %v13027_v7  ;;  %v8033_v6 = vand.u32 4294901760, %v1760_v25  ;;  %v1751_v7 = vld [vmem:[%s12946_s10 + $0x6c0] sm:$0xff] }
 0x1ba   : > { %13858 = vst [vmem:[#allocation38_spill] sm:$0xff] %v8002_v13  ;;  %v8023_v15 = vsub.f32 %v1767_v55, %v8004_v30  ;;  %1872 = vmatpush2.msra.mxu0 %v8004_v30  ;;  %v2138_v44 = vand.u32 4294901760, %v2137_v37  ;;  %v1752_v55 = vld [vmem:[%s12946_s10 + $0x6c8] sm:$0xff]  ;;  %v13863_v41 = vand.u32 4294901760, %v8002_v13 }
 0x1bb   : > { %13860 = vst [vmem:[#allocation40_spill] sm:$0xff] %v8015_v47  ;;  %2133 = vmatpush1.msra.mxu1 %v2132_v26  ;;  %v2149_v26 = vsub.f32 %v7995_v33, %v13032_v34  ;;  %13862 = vst [vmem:[#allocation42_spill] sm:$0xff] %v8033_v6  ;;  %v2144_v59 = vand.u32 4294901760, %v2143_v5  ;;  %v1744_v34 = vld [vmem:[%s12946_s10 + $0x688] sm:$0xff]  ;;  %v13864_v33 = vand.u32 4294901760, %v8015_v47  ;;  %v8052_v22 = vsub.f32 %v1760_v25, %v8033_v6 }
 0x1bc   : > { %13861 = vst [vmem:[#allocation41_spill] sm:$0xff] %v8023_v15  ;;  %v2155_v37 = vsub.f32 %v8002_v13, %v13863_v41  ;;  %2139 = vmatprep.subr.mxu1 %v2138_v44  ;;  %v8054_v5 = vand.u32 4294901760, %v1759_v16  ;;  %v1743_v41 = vld [vmem:[%s12946_s10 + $0x680] sm:$0xff]  ;;  %1874 = vmatprep.subr.mxu0 %v8033_v6  ;;  %v13867_v44 = vand.u32 4294901760, %v8023_v15  ;;  %v8063_v13 = vand.u32 4294901760, %v1752_v55  ;;  %v1736_v25 = vld [vmem:[%s12946_s10 + $0x648] sm:$0xff] }
 0x1bd   : > { %v2150_v32 = vand.u32 4294901760, %v2149_v26  ;;  %v2161_v17 = vsub.f32 %v8015_v47, %v13864_v33  ;;  %13865 = vst [vmem:[#allocation43_spill] sm:$0xff] %v8052_v22  ;;  %2145 = vmatpush2.msra.mxu1 %v2144_v59  ;;  %v8065_v33 = vand.u32 4294901760, %v1751_v7  ;;  %v13053_v50 = vand.u32 4294901760, %v8052_v22 }
 0x1be   : > { %13866 = vst [vmem:[#allocation44_spill] sm:$0xff] %v8054_v5  ;;  %v2156_v30 = vand.u32 4294901760, %v2155_v37  ;;  %v2167_v26 = vsub.f32 %v8023_v15, %v13867_v44  ;;  %13868 = vst [vmem:[#allocation45_spill] sm:$0xff] %v8063_v13  ;;  %v8072_v6 = vsub.f32 %v1759_v16, %v8054_v5  ;;  %v8074_v59 = vand.u32 4294901760, %v1744_v34  ;;  %v1735_v37 = vld [vmem:[%s12946_s10 + $0x640] sm:$0xff]  ;;  %1876 = vmatpush2.msra.mxu0 %v8054_v5 }
 0x1bf   : > { %13869 = vst [vmem:[#allocation46_spill] sm:$0xff] %v8065_v33  ;;  %2151 = vmatprep.subr.mxu1 %v2150_v32  ;;  %v2162_v47 = vand.u32 4294901760, %v2161_v17  ;;  %v8081_v15 = vsub.f32 %v1752_v55, %v8063_v13  ;;  %v8084_v32 = vsub.f32 %v1751_v7, %v8065_v33  ;;  %v8086_v17 = vand.u32 4294901760, %v1743_v41  ;;  %1878 = vmatprep.subr.mxu0 %v8063_v13 }
 0x1c0   : > { %13870 = vst [vmem:[#allocation47_spill] sm:$0xff] %v8072_v6  ;;  %13871 = vst [vmem:[#allocation48_spill] sm:$0xff] %v8074_v59  ;;  %2157 = vmatpush2.msra.mxu1 %v2156_v30  ;;  %v2168_v44 = vand.u32 4294901760, %v2167_v26  ;;  %v2173_v16 = vsub.f32 %v8052_v22, %v13053_v50  ;;  %v13062_v18 = vand.u32 4294901760, %v8072_v6  ;;  %v8094_v30 = vsub.f32 %v1744_v34, %v8074_v59  ;;  %v1728_v50 = vld [vmem:[%s12946_s10 + $0x608] sm:$0xff] }
 0x1c1   : > { %13872 = vst [vmem:[#allocation49_spill] sm:$0xff] %v8081_v15  ;;  %13873 = vst [vmem:[#allocation50_spill] sm:$0xff] %v8084_v32  ;;  %2163 = vmatprep.subr.mxu1 %v2162_v47  ;;  %v8096_v26 = vand.u32 4294901760, %v1736_v25  ;;  %1880 = vmatpush2.msra.mxu0 %v8065_v33  ;;  %v8102_v47 = vsub.f32 %v1743_v41, %v8086_v17  ;;  %v8104_v13 = vand.u32 4294901760, %v1735_v37  ;;  %v13880_v41 = vand.u32 4294901760, %v8081_v15 }
 0x1c2   : > { %13874 = vst [vmem:[#allocation51_spill] sm:$0xff] %v8086_v17  ;;  %13875 = vst [vmem:[#allocation52_spill] sm:$0xff] %v8094_v30  ;;  %2169 = vmatpush2.msra.mxu1 %v2168_v44  ;;  %1882 = vmatprep.subr.mxu0 %v8074_v59  ;;  %v2174_v34 = vand.u32 4294901760, %v2173_v16  ;;  %v2179_v44 = vsub.f32 %v8072_v6, %v13062_v18  ;;  %v13067_v7 = vand.u32 4294901760, %v8094_v30  ;;  %v13881_v33 = vand.u32 4294901760, %v8084_v32  ;;  %v1719_v16 = vld [vmem:[%s12946_s10 + $0x5c0] sm:$0xff] }
 0x1c3   : > { %13876 = vst [vmem:[#allocation53_spill] sm:$0xff] %v8096_v26  ;;  %13877 = vst [vmem:[#allocation54_spill] sm:$0xff] %v8102_v47  ;;  %v8115_v55 = vsub.f32 %v1736_v25, %v8096_v26  ;;  %1884 = vmatpush2.msra.mxu0 %v8086_v17  ;;  %v2185_v22 = vsub.f32 %v8081_v15, %v13880_v41  ;;  %v8126_v5 = vsub.f32 %v1735_v37, %v8104_v13  ;;  %v1727_v25 = vld [vmem:[%s12946_s10 + $0x600] sm:$0xff]  ;;  %v1720_v37 = vld [vmem:[%s12946_s10 + $0x5c8] sm:$0xff] }
 0x1c4   : > { %13878 = vst [vmem:[#allocation55_spill] sm:$0xff] %v8104_v13  ;;  %v2191_v59 = vsub.f32 %v8084_v32, %v13881_v33  ;;  %1886 = vmatprep.subr.mxu0 %v8096_v26  ;;  %2175 = vmatprep.subr.mxu1 %v2174_v34  ;;  %v2180_v18 = vand.u32 4294901760, %v2179_v44  ;;  %v2197_v41 = vsub.f32 %v8094_v30, %v13067_v7  ;;  %v8136_v33 = vand.u32 4294901760, %v1728_v50  ;;  %v1712_v30 = vld [vmem:[%s12946_s10 + $0x588] sm:$0xff] }
 0x1c5   : > { %13879 = vst [vmem:[#allocation56_spill] sm:$0xff] %v8115_v55  ;;  %13882 = vst [vmem:[#allocation57_spill] sm:$0xff] %v8126_v5  ;;  %1888 = vmatpush2.msra.mxu0 %v8104_v13  ;;  %v2186_v34 = vand.u32 4294901760, %v2185_v22  ;;  %v13884_v32 = vand.u32 4294901760, %v8102_v47  ;;  %v13084_v15 = vand.u32 4294901760, %v8126_v5  ;;  %v13885_v26 = vand.u32 4294901760, %v8115_v55 }
 0x1c6   : > { %13883 = vst [vmem:[#allocation58_spill] sm:$0xff] %v8136_v33  ;;  %v2192_v44 = vand.u32 4294901760, %v2191_v59  ;;  %2181 = vmatpush2.msra.mxu1 %v2180_v18  ;;  %v2198_v6 = vand.u32 4294901760, %v2197_v41  ;;  %v8156_v13 = vsub.f32 %v1728_v50, %v8136_v33  ;;  %v8158_v22 = vand.u32 4294901760, %v1727_v25  ;;  %v1711_v59 = vld [vmem:[%s12946_s10 + $0x580] sm:$0xff]  ;;  %1890 = vmatprep.subr.mxu0 %v8136_v33  ;;  %v1704_v50 = vld [vmem:[%s12946_s10 + $0x548] sm:$0xff] }
 0x1c7   : > { %v2203_v7 = vsub.f32 %v8102_v47, %v13884_v32  ;;  %v2209_v17 = vsub.f32 %v8115_v55, %v13885_v26  ;;  %2187 = vmatprep.subr.mxu1 %v2186_v34  ;;  %v2215_v18 = vsub.f32 %v8126_v5, %v13084_v15  ;;  %v8167_v41 = vand.u32 4294901760, %v1720_v37  ;;  %v1703_v34 = vld [vmem:[%s12946_s10 + $0x540] sm:$0xff] }
 0x1c8   : > { %13886 = vst [vmem:[#allocation59_spill] sm:$0xff] %v8156_v13  ;;  %13887 = vst [vmem:[#allocation60_spill] sm:$0xff] %v8158_v22  ;;  %v8169_v26 = vand.u32 4294901760, %v1719_v16  ;;  %2193 = vmatpush2.msra.mxu1 %v2192_v44  ;;  %v13091_v47 = vand.u32 4294901760, %v8156_v13  ;;  %v8176_v33 = vsub.f32 %v1727_v25, %v8158_v22  ;;  %1892 = vmatpush2.msra.mxu0 %v8158_v22  ;;  %v8190_v44 = vand.u32 4294901760, %v1711_v59 }
 0x1c9   : > { %v2204_v32 = vand.u32 4294901760, %v2203_v7  ;;  %13888 = vst [vmem:[#allocation61_spill] sm:$0xff] %v8167_v41  ;;  %v2210_v55 = vand.u32 4294901760, %v2209_v17  ;;  %v8178_v7 = vand.u32 4294901760, %v1712_v30  ;;  %2199 = vmatprep.subr.mxu1 %v2198_v6  ;;  %v2216_v15 = vand.u32 4294901760, %v2215_v18  ;;  %1894 = vmatprep.subr.mxu0 %v8167_v41 }
 0x1ca   : > { %13889 = vst [vmem:[#allocation62_spill] sm:$0xff] %v8169_v26  ;;  %13890 = vst [vmem:[#allocation63_spill] sm:$0xff] %v8176_v33  ;;  %v8185_v5 = vsub.f32 %v1720_v37, %v8167_v41  ;;  %v8188_v17 = vsub.f32 %v1719_v16, %v8169_v26  ;;  %v2221_v25 = vsub.f32 %v8156_v13, %v13091_v47  ;;  %v13098_v27 = vand.u32 4294901760, %v8176_v33  ;;  %v1696_v47 = vld [vmem:[%s12946_s10 + $0x508] sm:$0xff] }
 0x1cb   : > { %13891 = vst [vmem:[#allocation64_spill] sm:$0xff] %v8178_v7  ;;  %13894 = vst [vmem:[#allocation67_spill] sm:$0xff] %v8190_v44  ;;  %2205 = vmatpush2.msra.mxu1 %v2204_v32  ;;  %v8198_v6 = vsub.f32 %v1712_v30, %v8178_v7  ;;  %v8200_v18 = vand.u32 4294901760, %v1704_v50  ;;  %1896 = vmatpush2.msra.mxu0 %v8169_v26  ;;  %v8206_v32 = vsub.f32 %v1711_v59, %v8190_v44 }
 0x1cc   : > { %13892 = vst [vmem:[#allocation65_spill] sm:$0xff] %v8185_v5  ;;  %13893 = vst [vmem:[#allocation66_spill] sm:$0xff] %v8188_v17  ;;  %2211 = vmatprep.subr.mxu1 %v2210_v55  ;;  %v8208_v41 = vand.u32 4294901760, %v1703_v34  ;;  %1898 = vmatprep.subr.mxu0 %v8178_v7  ;;  %v2222_v30 = vand.u32 4294901760, %v2221_v25  ;;  %v2227_v55 = vsub.f32 %v8176_v33, %v13098_v27  ;;  %v13900_v59 = vand.u32 4294901760, %v8185_v5  ;;  %v1687_v25 = vld [vmem:[%s12946_s10 + $0x4c0] sm:$0xff] }
 0x1cd   : > { %13895 = vst [vmem:[#allocation68_spill] sm:$0xff] %v8198_v6  ;;  %13896 = vst [vmem:[#allocation69_spill] sm:$0xff] %v8200_v18  ;;  %2217 = vmatpush2.msra.mxu1 %v2216_v15  ;;  %v13103_v16 = vand.u32 4294901760, %v8198_v6  ;;  %v8219_v37 = vsub.f32 %v1704_v50, %v8200_v18  ;;  %1900 = vmatpush2.msra.mxu0 %v8190_v44  ;;  %v13901_v26 = vand.u32 4294901760, %v8188_v17  ;;  %v1695_v50 = vld [vmem:[%s12946_s10 + $0x500] sm:$0xff] }
 0x1ce   : > { %13897 = vst [vmem:[#allocation70_spill] sm:$0xff] %v8206_v32  ;;  %13898 = vst [vmem:[#allocation71_spill] sm:$0xff] %v8208_v41  ;;  %v2233_v13 = vsub.f32 %v8185_v5, %v13900_v59  ;;  %v8230_v7 = vsub.f32 %v1703_v34, %v8208_v41  ;;  %1902 = vmatprep.subr.mxu0 %v8200_v18  ;;  %2223 = vmatprep.subr.mxu1 %v2222_v30  ;;  %v2228_v27 = vand.u32 4294901760, %v2227_v55  ;;  %v1688_v34 = vld [vmem:[%s12946_s10 + $0x4c8] sm:$0xff] }
 0x1cf   : > { %13899 = vst [vmem:[#allocation72_spill] sm:$0xff] %v8219_v37  ;;  %v2239_v15 = vsub.f32 %v8188_v17, %v13901_v26  ;;  %v2245_v59 = vsub.f32 %v8198_v6, %v13103_v16  ;;  %v8240_v26 = vand.u32 4294901760, %v1696_v47  ;;  %1904 = vmatpush2.msra.mxu0 %v8208_v41  ;;  %v13904_v17 = vand.u32 4294901760, %v8206_v32  ;;  %v1680_v6 = vld [vmem:[%s12946_s10 + $0x488] sm:$0xff] }
 0x1d0   : > { %13902 = vst [vmem:[#allocation73_spill] sm:$0xff] %v8230_v7  ;;  %v2234_v30 = vand.u32 4294901760, %v2233_v13  ;;  %v13120_v5 = vand.u32 4294901760, %v8230_v7  ;;  %2229 = vmatpush2.msra.mxu1 %v2228_v27  ;;  %v13905_v18 = vand.u32 4294901760, %v8219_v37  ;;  %v8262_v13 = vand.u32 4294901760, %v1695_v50 }
 0x1d1   : > { %13903 = vst [vmem:[#allocation74_spill] sm:$0xff] %v8240_v26  ;;  %v2240_v55 = vand.u32 4294901760, %v2239_v15  ;;  %v2251_v16 = vsub.f32 %v8206_v32, %v13904_v17  ;;  %v2246_v33 = vand.u32 4294901760, %v2245_v59  ;;  %v8260_v41 = vsub.f32 %v1696_v47, %v8240_v26  ;;  %v1679_v17 = vld [vmem:[%s12946_s10 + $0x480] sm:$0xff]  ;;  %1906 = vmatprep.subr.mxu0 %v8240_v26  ;;  %v1672_v47 = vld [vmem:[%s12946_s10 + $0x448] sm:$0xff] }
 0x1d2   : > { %v2257_v44 = vsub.f32 %v8219_v37, %v13905_v18  ;;  %13907 = vst [vmem:[#allocation76_spill] sm:$0xff] %v8262_v13  ;;  %2235 = vmatprep.subr.mxu1 %v2234_v30  ;;  %v2263_v27 = vsub.f32 %v8230_v7, %v13120_v5  ;;  %v8271_v59 = vand.u32 4294901760, %v1688_v34  ;;  %v8273_v18 = vand.u32 4294901760, %v1687_v25  ;;  %v1671_v30 = vld [vmem:[%s12946_s10 + $0x440] sm:$0xff]  ;;  %1908 = vmatpush2.msra.mxu0 %v8262_v13 }
 0x1d3   : > { %13906 = vst [vmem:[#allocation75_spill] sm:$0xff] %v8260_v41  ;;  %v2252_v15 = vand.u32 4294901760, %v2251_v16  ;;  %2241 = vmatpush2.msra.mxu1 %v2240_v55  ;;  %v13127_v32 = vand.u32 4294901760, %v8260_v41  ;;  %v8280_v26 = vsub.f32 %v1695_v50, %v8262_v13  ;;  %v8282_v16 = vand.u32 4294901760, %v1680_v6 }
 0x1d4   : > { %13908 = vst [vmem:[#allocation77_spill] sm:$0xff] %v8271_v59  ;;  %13909 = vst [vmem:[#allocation78_spill] sm:$0xff] %v8273_v18  ;;  %v2258_v37 = vand.u32 4294901760, %v2257_v44  ;;  %2247 = vmatprep.subr.mxu1 %v2246_v33  ;;  %v2264_v5 = vand.u32 4294901760, %v2263_v27  ;;  %v8289_v7 = vsub.f32 %v1688_v34, %v8271_v59  ;;  %v8292_v44 = vsub.f32 %v1687_v25, %v8273_v18 }
 0x1d5   : > { %13910 = vst [vmem:[#allocation79_spill] sm:$0xff] %v8280_v26  ;;  %13911 = vst [vmem:[#allocation80_spill] sm:$0xff] %v8282_v16  ;;  %v8294_v55 = vand.u32 4294901760, %v1679_v17  ;;  %1910 = vmatprep.subr.mxu0 %v8271_v59  ;;  %2253 = vmatpush2.msra.mxu1 %v2252_v15  ;;  %v2269_v50 = vsub.f32 %v8260_v41, %v13127_v32  ;;  %v13134_v22 = vand.u32 4294901760, %v8280_v26  ;;  %v8304_v27 = vand.u32 4294901760, %v1672_v47  ;;  %v1664_v32 = vld [vmem:[%s12946_s10 + $0x408] sm:$0xff] }
 0x1d6   : > { %13912 = vst [vmem:[#allocation81_spill] sm:$0xff] %v8289_v7  ;;  %13913 = vst [vmem:[#allocation82_spill] sm:$0xff] %v8292_v44  ;;  %v8302_v33 = vsub.f32 %v1680_v6, %v8282_v16  ;;  %1912 = vmatpush2.msra.mxu0 %v8273_v18  ;;  %2259 = vmatprep.subr.mxu1 %v2258_v37  ;;  %v8312_v59 = vand.u32 4294901760, %v1671_v30  ;;  %v13921_v18 = vand.u32 4294901760, %v8292_v44 }
 0x1d7   : > { %13914 = vst [vmem:[#allocation83_spill] sm:$0xff] %v8294_v55  ;;  %13916 = vst [vmem:[#allocation85_spill] sm:$0xff] %v8304_v27  ;;  %v8310_v15 = vsub.f32 %v1679_v17, %v8294_v55  ;;  %1914 = vmatprep.subr.mxu0 %v8282_v16  ;;  %2265 = vmatpush2.msra.mxu1 %v2264_v5  ;;  %v2270_v6 = vand.u32 4294901760, %v2269_v50  ;;  %v2275_v37 = vsub.f32 %v8280_v26, %v13134_v22 }
 0x1d8   : > { %13915 = vst [vmem:[#allocation84_spill] sm:$0xff] %v8302_v33  ;;  %13918 = vst [vmem:[#allocation87_spill] sm:$0xff] %v8312_v59  ;;  %v13143_v25 = vand.u32 4294901760, %v8302_v33  ;;  %v8323_v34 = vsub.f32 %v1672_v47, %v8304_v27  ;;  %1916 = vmatpush2.msra.mxu0 %v8294_v55  ;;  %v13920_v17 = vand.u32 4294901760, %v8289_v7  ;;  %v2287_v5 = vsub.f32 %v8292_v44, %v13921_v18  ;;  %v1663_v47 = vld [vmem:[%s12946_s10 + $0x400] sm:$0xff] }
 0x1d9   : > { %13917 = vst [vmem:[#allocation86_spill] sm:$0xff] %v8310_v15  ;;  %v8334_v16 = vsub.f32 %v1671_v30, %v8312_v59  ;;  %1918 = vmatprep.subr.mxu0 %v8304_v27  ;;  %2271 = vmatprep.subr.mxu1 %v2270_v6  ;;  %v2276_v22 = vand.u32 4294901760, %v2275_v37  ;;  %v8344_v18 = vand.u32 4294901760, %v1664_v32  ;;  %v13924_v44 = vand.u32 4294901760, %v8310_v15 }
 0x1da   : > { %13919 = vst [vmem:[#allocation88_spill] sm:$0xff] %v8323_v34  ;;  %v2281_v41 = vsub.f32 %v8289_v7, %v13920_v17  ;;  %v2293_v17 = vsub.f32 %v8302_v33, %v13143_v25  ;;  %v13148_v7 = vand.u32 4294901760, %v8323_v34  ;;  %1920 = vmatpush2.msra.mxu0 %v8312_v59  ;;  %v2288_v50 = vand.u32 4294901760, %v2287_v5 }
 0x1db   : > { %13922 = vst [vmem:[#allocation89_spill] sm:$0xff] %v8334_v16  ;;  %13923 = vst [vmem:[#allocation90_spill] sm:$0xff] %v8344_v18  ;;  %v2299_v26 = vsub.f32 %v8310_v15, %v13924_v44  ;;  %v13147_v27 = vand.u32 4294901760, %v8334_v16  ;;  %2277 = vmatpush2.msra.mxu1 %v2276_v22  ;;  %v8355_v25 = vsub.f32 %v1664_v32, %v8344_v18  ;;  %v8357_v33 = vand.u32 4294901760, %v1663_v47 }
 0x1dc   : > { %v2282_v30 = vand.u32 4294901760, %v2281_v41  ;;  %v2294_v6 = vand.u32 4294901760, %v2293_v17  ;;  %v2305_v37 = vsub.f32 %v8323_v34, %v13148_v7  ;;  %1922 = vmatprep.subr.mxu0 %v8344_v18 }
 0x1dd   : > { %13925 = vst [vmem:[#allocation91_spill] sm:$0xff] %v8355_v25  ;;  %13926 = vst [vmem:[#allocation92_spill] sm:$0xff] %v8357_v33  ;;  %v2300_v41 = vand.u32 4294901760, %v2299_v26  ;;  %v2311_v44 = vsub.f32 %v8334_v16, %v13147_v27  ;;  %v13146_v5 = vand.u32 4294901760, %v8355_v25  ;;  %v8365_v17 = vsub.f32 %v1663_v47, %v8357_v33  ;;  %1924 = vmatpush2.msra.mxu0 %v8357_v33 }
 0x1de   : > { %2283 = vmatprep.subr.mxu1 %v2282_v30  ;;  %v2306_v22 = vand.u32 4294901760, %v2305_v37  ;;  %2337 = vmatprep.subr.mxu0 %v7502_v60 }
 0x1df   : > { %2289 = vmatpush2.msra.mxu1 %v2288_v50  ;;  %13927 = vst [vmem:[#allocation93_spill] sm:$0xff] %v8365_v17  ;;  %v2312_v32 = vand.u32 4294901760, %v2311_v44  ;;  %v2317_v26 = vsub.f32 %v8355_v25, %v13146_v5  ;;  %v13149_v30 = vand.u32 4294901760, %v8365_v17 }
 0x1e0   : > { %2295 = vmatprep.subr.mxu1 %v2294_v6  ;;  %v952_v6 = vld [vmem:[%s12943_s7] sm:$0x3] }
 0x1e1   : > { %2301 = vmatpush2.msra.mxu1 %v2300_v41  ;;  %v2318_v50 = vand.u32 4294901760, %v2317_v26  ;;  %v2323_v47 = vsub.f32 %v8365_v17, %v13149_v30  ;;  %v960_v41 = vsub.s32 1, %v7318_v53 }
 0x1e2   : > { %2307 = vmatprep.subr.mxu1 %v2306_v22  ;;  %v957_v22 = vrot.slane %v952_v6, %v7321_v56 }
 0x1e3   : > { %2313 = vmatpush2.msra.mxu1 %v2312_v32  ;;  %v2324_v37 = vand.u32 4294901760, %v2323_v47  ;;  %v961_v32 = vrot.slane %v952_v6, %v960_v41 }
 0x1e4   : > { %2319 = vmatprep.subr.mxu1 %v2318_v50 }
 0x1e5   : > { %2325 = vmatpush2.msra.mxu1 %v2324_v37 }
 0x1e6   : > { %2539 = vmatprep.subr.mxu1 %v7475_v43 }
 0x23a   : > { %v1159_v26 = vpop.f32.mrf.mxu1 }
 0x23c   : > { %v1161_v50 = vpop.f32.mrf.mxu1 }
 0x242   : > { %v1330_v37 = vpop.f32.mrf.mxu1 }
 0x243   : > { %v1047_v44 = vpop.f32.mrf.mxu0 }
 0x244   : > { %v1048_v27 = vadd.f32 %v1047_v44, %v957_v22  ;;  %v1332_v34 = vpop.f32.mrf.mxu1 }
 0x245   : > { %v1049_v5 = vpop.f32.mrf.mxu0 }
 0x246   : > { %v1050_v7 = vadd.f32 %v1049_v5, %v961_v32  ;;  %v1160_v47 = vadd.f32 %v1159_v26, %v1048_v27 }
 0x248   : > { %v1162_v25 = vadd.f32 %v1161_v50, %v1050_v7  ;;  %v13936_v50 = vld [vmem:[#allocation5_spill] sm:$0xff] }
 0x24b   : > { %v1248_v30 = vpop.f32.mrf.mxu0 }
 0x24c   : > { %v1249_v17 = vadd.f32 %v1248_v30, %v1160_v47  ;;  %v1506_v43 = vpop.f32.mrf.mxu1  ;;  %v1523_v30 = vpop.permute.xlu1 %1522  ;;  %v13937_v47 = vld [vmem:[#allocation6_spill] sm:$0xff] }
 0x24d   : > { %v1250_v60 = vpop.f32.mrf.mxu0 }
 0x24e   : > { %v1251_v16 = vadd.f32 %v1250_v60, %v1162_v25  ;;  %v1331_v15 = vadd.f32 %v1330_v37, %v1249_v17  ;;  %v1508_v55 = vpop.f32.mrf.mxu1  ;;  %v13938_v37 = vld [vmem:[#allocation7_spill] sm:$0xff] }
 0x250   : > { %v1333_v18 = vadd.f32 %v1332_v34, %v1251_v16 }
 0x254   : > { %v1426_v53 = vpop.f32.mrf.mxu0 }
 0x255   : > { %v1427_v33 = vadd.f32 %v1426_v53, %v1331_v15  ;;  %v13939_v53 = vld [vmem:[#allocation8_spill] sm:$0xff] }
 0x256   : > { %v1428_v59 = vpop.f32.mrf.mxu0 }
 0x257   : > { %v1507_v6 = vadd.f32 %v1506_v43, %v1427_v33  ;;  %v1429_v41 = vadd.f32 %v1428_v59, %v1333_v18 }
 0x259   : > { %v1513_v44 = vrot.slane %v1507_v6, 1  ;;  %v1509_v5 = vadd.f32 %v1508_v55, %v1429_v41  ;;  %v13941_v41 = vld [vmem:[#allocation10_spill] sm:$0xff] }
 0x25b   : > { %v1517_v22 = vadd.f32 %v1513_v44, %v1507_v6  ;;  %v1514_v32 = vrot.slane %v1509_v5, 1  ;;  %v13940_v6 = vld [vmem:[#allocation9_spill] sm:$0xff] }
 0x25c   : > { %v13942_v44 = vld [vmem:[#allocation17_spill] sm:$0xff] }
 0x25d   : > { %v1518_v27 = vadd.f32 %v1514_v32, %v1509_v5  ;;  %v1528_v26 = vrot.slane %v1517_v22, %v7321_v56  ;;  %v13943_v5 = vld [vmem:[#allocation11_spill] sm:$0xff]  ;;  %v13945_v32 = vld [vmem:[#allocation12_spill] sm:$0xff] }
 0x25e   : > { %v13944_v22 = vld [vmem:[#allocation19_spill] sm:$0xff] }
 0x25f   : > { %v1532_v60 = vrot.slane %v1518_v27, %v7321_v56  ;;  %v1533_v7 = vmul.f32 %v1528_v26, %v1523_v30  ;;  %v13946_v27 = vld [vmem:[#allocation21_spill] sm:$0xff] }
 0x260   : > { %v13947_v26 = vld [vmem:[#allocation13_spill] sm:$0xff] }
 0x261   : > { %v1534_v25 = vmul.f32 %v1532_v60, %v1523_v30  ;;  %v8384_v17 = vand.u32 4294901760, %v1533_v7  ;;  %v13948_v30 = vld [vmem:[#allocation23_spill] sm:$0xff]  ;;  %v13949_v60 = vld [vmem:[#allocation14_spill] sm:$0xff] }
 0x263   : > { %13928 = vst [vmem:[#allocation94_spill] sm:$0xff] %v8384_v17  ;;  %v8386_v15 = vand.u32 4294901760, %v1534_v25  ;;  %v8389_v43 = vsub.f32 %v1533_v7, %v8384_v17  ;;  %v13950_v7 = vld [vmem:[#allocation25_spill] sm:$0xff] }
 0x265   : > { %13929 = vst [vmem:[#allocation95_spill] sm:$0xff] %v8386_v15  ;;  %13930 = vst [vmem:[#allocation96_spill] sm:$0xff] %v8389_v43  ;;  %v8392_v59 = vsub.f32 %v1534_v25, %v8386_v15  ;;  %2327 = vmatprep.mubr.f32.mxu1 %v8386_v15  ;;  %v8396_v16 = vand.u32 4294901760, %v8389_v43  ;;  %v13951_v25 = vld [vmem:[#allocation15_spill] sm:$0xff] }
 0x266   : > { %2329 = vmatmul.mubr.f32.vlgmr.msra.gmra.mxu1 %v8384_v17  ;;  %v13958_v17 = vld [vmem:[#allocation33_spill] sm:$0xff] }
 0x267   : > { %13931 = vst [vmem:[#allocation97_spill] sm:$0xff] %v8392_v59  ;;  %13932 = vst [vmem:[#allocation98_spill] sm:$0xff] %v8396_v16  ;;  %2541 = vmatpush1.msra.mxu1 %v7485_v51  ;;  %v8401_v56 = vand.u32 4294901760, %v8392_v59  ;;  %v1934_v55 = vsub.f32 %v8389_v43, %v8396_v16 }
 0x268   : > { %2543 = vmatprep.subr.mxu1 %v7487_v54 }
 0x269   : > { %13933 = vst [vmem:[#allocation99_spill] sm:$0xff] %v8401_v56  ;;  %2545 = vmatpush1.msra.mxu1 %v7495_v58  ;;  %2669 = vmatprep.mubr.f32.mxu1 %v8401_v56  ;;  %v1928_v33 = vsub.f32 %v8392_v59, %v8401_v56  ;;  %v8415_v18 = vand.u32 4294901760, %v1934_v55  ;;  %v13952_v55 = vld [vmem:[#allocation27_spill] sm:$0xff] }
 0x26a   : > { %2547 = vmatprep.subr.mxu1 %v7504_v61  ;;  %v13956_v56 = vld [vmem:[#allocation31_spill] sm:$0xff] }
 0x26b   : > { %2549 = vmatpush1.msra.mxu1 %v7511_v63  ;;  %v8412_v34 = vand.u32 4294901760, %v1928_v33  ;;  %13935 = vst [vmem:[#allocation101_spill] sm:$0xff] %v8415_v18  ;;  %v13953_v33 = vld [vmem:[#allocation16_spill] sm:$0xff] }
 0x26c   : > { %2551 = vmatprep.subr.mxu1 %v7513_v0 }
 0x26d   : > { %13934 = vst [vmem:[#allocation100_spill] sm:$0xff] %v8412_v34  ;;  %2553 = vmatpush1.msra.mxu1 %v7527_v8  ;;  %1930 = vmatprep.mubr.f32.mxu0 %v8412_v34  ;;  %v13957_v34 = vld [vmem:[#allocation20_spill] sm:$0xff] }
 0x26e   : > { %2555 = vmatprep.subr.mxu1 %v7566_v40  ;;  %1936 = vmatmul.mubr.f32.vlgmr.msra.gmra.mxu0 %v8415_v18  ;;  %v13955_v18 = vld [vmem:[#allocation18_spill] sm:$0xff] }
 0x26f   : > { %2340 = vmatpush1.msra.mxu0 %v7518_v2  ;;  %2557 = vmatpush1.msra.mxu1 %v7574_v48 }
 0x270   : > { %2343 = vmatprep.subr.mxu0 %v7521_v3  ;;  %2529 = vmatprep.mubr.f32.mxu0 %v8392_v59  ;;  %v13954_v59 = vld [vmem:[#allocation30_spill] sm:$0xff] }
 0x271   : > { %2559 = vmatprep.subr.mxu1 %v7591_v62  ;;  %2346 = vmatpush1.msra.mxu0 %v7525_v4 }
 0x272   : > { %2561 = vmatpush1.msra.mxu1 %v7604_v11  ;;  %2349 = vmatprep.subr.mxu0 %v13936_v50 }
 0x273   : > { %2563 = vmatprep.subr.mxu1 %v7620_v12  ;;  %2352 = vmatpush1.msra.mxu0 %v13937_v47 }
 0x274   : > { %2565 = vmatpush1.msra.mxu1 %v7640_v39  ;;  %2355 = vmatprep.subr.mxu0 %v13938_v37 }
 0x275   : > { %2567 = vmatprep.subr.mxu1 %v7652_v45  ;;  %2358 = vmatpush1.msra.mxu0 %v13939_v53 }
 0x276   : > { %2569 = vmatpush1.msra.mxu1 %v7668_v57  ;;  %2361 = vmatprep.subr.mxu0 %v13940_v6 }
 0x277   : > { %2571 = vmatprep.subr.mxu1 %v7680_v31  ;;  %2364 = vmatpush1.msra.mxu0 %v7638_v35 }
 0x278   : > { %2573 = vmatpush1.msra.mxu1 %v7692_v36  ;;  %2367 = vmatprep.subr.mxu0 %v7650_v9 }
 0x279   : > { %2575 = vmatprep.subr.mxu1 %v7705_v1  ;;  %2370 = vmatpush1.msra.mxu0 %v13941_v41 }
 0x27a   : > { %2577 = vmatpush1.msra.mxu1 %v7718_v21  ;;  %2373 = vmatprep.subr.mxu0 %v7678_v10 }
 0x27b   : > { %2579 = vmatprep.subr.mxu1 %v7732_v52  ;;  %2376 = vmatpush1.msra.mxu0 %v7690_v20 }
 0x27c   : > { %2581 = vmatpush1.msra.mxu1 %v7746_v49  ;;  %2379 = vmatprep.subr.mxu0 %v7703_v38 }
 0x27d   : > { %2583 = vmatprep.subr.mxu1 %v7757_v23  ;;  %2382 = vmatpush1.msra.mxu0 %v7716_v24 }
 0x27e   : > { %2585 = vmatpush1.msra.mxu1 %v7768_v29  ;;  %2385 = vmatprep.subr.mxu0 %v7730_v14 }
 0x27f   : > { %2587 = vmatprep.subr.mxu1 %v7858_v42  ;;  %2388 = vmatpush1.msra.mxu0 %v7744_v19 }
 0x280   : > { %2589 = vmatpush1.msra.mxu1 %v7863_v46  ;;  %2391 = vmatprep.subr.mxu0 %v7755_v28 }
 0x281   : > { %2591 = vmatprep.subr.mxu1 %v13942_v44  ;;  %2394 = vmatpush1.msra.mxu0 %v13943_v5 }
 0x282   : > { %2593 = vmatpush1.msra.mxu1 %v13944_v22  ;;  %2397 = vmatprep.subr.mxu0 %v13945_v32 }
 0x283   : > { %2595 = vmatprep.subr.mxu1 %v13946_v27  ;;  %2400 = vmatpush1.msra.mxu0 %v13947_v26 }
 0x284   : > { %2597 = vmatpush1.msra.mxu1 %v13948_v30  ;;  %2403 = vmatprep.subr.mxu0 %v13949_v60  ;;  %v13959_v30 = vld [vmem:[#allocation22_spill] sm:$0xff]  ;;  %v13960_v60 = vld [vmem:[#allocation35_spill] sm:$0xff] }
 0x285   : > { %2599 = vmatprep.subr.mxu1 %v13950_v7  ;;  %2406 = vmatpush1.msra.mxu0 %v13951_v25  ;;  %v13961_v7 = vld [vmem:[#allocation24_spill] sm:$0xff]  ;;  %v13962_v25 = vld [vmem:[#allocation37_spill] sm:$0xff] }
 0x286   : > { %2601 = vmatpush1.msra.mxu1 %v13952_v55  ;;  %2409 = vmatprep.subr.mxu0 %v13953_v33  ;;  %v13963_v55 = vld [vmem:[#allocation26_spill] sm:$0xff]  ;;  %v13964_v33 = vld [vmem:[#allocation39_spill] sm:$0xff] }
 0x287   : > { %2603 = vmatprep.subr.mxu1 %v13954_v59  ;;  %2412 = vmatpush1.msra.mxu0 %v13955_v18  ;;  %v13965_v59 = vld [vmem:[#allocation28_spill] sm:$0xff]  ;;  %v13966_v18 = vld [vmem:[#allocation42_spill] sm:$0xff] }
 0x288   : > { %2605 = vmatpush2.msra.mxu1 %v13956_v56  ;;  %2415 = vmatprep.subr.mxu0 %v13957_v34  ;;  %v13967_v56 = vld [vmem:[#allocation29_spill] sm:$0xff]  ;;  %v13968_v34 = vld [vmem:[#allocation44_spill] sm:$0xff] }
 0x289   : > { %2607 = vmatprep.subr.mxu1 %v13958_v17  ;;  %2418 = vmatpush1.msra.mxu0 %v13959_v30  ;;  %v13969_v17 = vld [vmem:[#allocation32_spill] sm:$0xff]  ;;  %v13970_v30 = vld [vmem:[#allocation45_spill] sm:$0xff] }
 0x28a   : > { %2609 = vmatpush2.msra.mxu1 %v13960_v60  ;;  %2421 = vmatprep.subr.mxu0 %v13961_v7  ;;  %v13971_v60 = vld [vmem:[#allocation34_spill] sm:$0xff] }
 0x28b   : > { %2611 = vmatprep.subr.mxu1 %v13962_v25  ;;  %2424 = vmatpush1.msra.mxu0 %v13963_v55  ;;  %v13972_v7 = vld [vmem:[#allocation46_spill] sm:$0xff]  ;;  %v13973_v25 = vld [vmem:[#allocation36_spill] sm:$0xff] }
 0x28c   : > { %2613 = vmatpush2.msra.mxu1 %v13964_v33  ;;  %2427 = vmatprep.subr.mxu0 %v13965_v59  ;;  %v13974_v55 = vld [vmem:[#allocation48_spill] sm:$0xff]  ;;  %v13975_v33 = vld [vmem:[#allocation38_spill] sm:$0xff]  ;;  %v13976_v59 = vld [vmem:[#allocation51_spill] sm:$0xff] }
 0x28d   : > { %2615 = vmatprep.subr.mxu1 %v13966_v18  ;;  %2430 = vmatpush1.msra.mxu0 %v13967_v56  ;;  %v13977_v18 = vld [vmem:[#allocation40_spill] sm:$0xff]  ;;  %v13978_v56 = vld [vmem:[#allocation53_spill] sm:$0xff] }
 0x28e   : > { %2617 = vmatpush2.msra.mxu1 %v13968_v34  ;;  %2433 = vmatprep.subr.mxu0 %v13969_v17  ;;  %v13979_v34 = vld [vmem:[#allocation41_spill] sm:$0xff]  ;;  %v13980_v17 = vld [vmem:[#allocation55_spill] sm:$0xff] }
 0x28f   : > { %2619 = vmatprep.subr.mxu1 %v13970_v30  ;;  %2436 = vmatpush2.msra.mxu0 %v13971_v60  ;;  %v13981_v30 = vld [vmem:[#allocation43_spill] sm:$0xff]  ;;  %v13982_v60 = vld [vmem:[#allocation58_spill] sm:$0xff] }
 0x290   : > { %2621 = vmatpush2.msra.mxu1 %v13972_v7  ;;  %2439 = vmatprep.subr.mxu0 %v13973_v25  ;;  %v13983_v7 = vld [vmem:[#allocation47_spill] sm:$0xff]  ;;  %v13984_v25 = vld [vmem:[#allocation60_spill] sm:$0xff] }
 0x291   : > { %2623 = vmatprep.subr.mxu1 %v13974_v55  ;;  %2442 = vmatpush2.msra.mxu0 %v13975_v33  ;;  %v13985_v55 = vld [vmem:[#allocation49_spill] sm:$0xff] }
 0x292   : > { %2625 = vmatpush2.msra.mxu1 %v13976_v59  ;;  %2445 = vmatprep.subr.mxu0 %v13977_v18  ;;  %v13986_v33 = vld [vmem:[#allocation61_spill] sm:$0xff]  ;;  %v13987_v59 = vld [vmem:[#allocation50_spill] sm:$0xff] }
 0x293   : > { %2627 = vmatprep.subr.mxu1 %v13978_v56  ;;  %2448 = vmatpush2.msra.mxu0 %v13979_v34  ;;  %v13988_v18 = vld [vmem:[#allocation62_spill] sm:$0xff]  ;;  %v13989_v56 = vld [vmem:[#allocation52_spill] sm:$0xff] }
 0x294   : > { %2629 = vmatpush2.msra.mxu1 %v13980_v17  ;;  %2451 = vmatprep.subr.mxu0 %v13981_v30  ;;  %v13990_v34 = vld [vmem:[#allocation64_spill] sm:$0xff]  ;;  %v13991_v17 = vld [vmem:[#allocation54_spill] sm:$0xff]  ;;  %v13992_v30 = vld [vmem:[#allocation67_spill] sm:$0xff] }
 0x295   : > { %2631 = vmatprep.subr.mxu1 %v13982_v60  ;;  %2454 = vmatpush2.msra.mxu0 %v13983_v7  ;;  %v13993_v60 = vld [vmem:[#allocation56_spill] sm:$0xff]  ;;  %v13994_v7 = vld [vmem:[#allocation69_spill] sm:$0xff] }
 0x296   : > { %2633 = vmatpush2.msra.mxu1 %v13984_v25  ;;  %2457 = vmatprep.subr.mxu0 %v13985_v55  ;;  %v13995_v25 = vld [vmem:[#allocation57_spill] sm:$0xff]  ;;  %v13996_v55 = vld [vmem:[#allocation71_spill] sm:$0xff] }
 0x297   : > { %2635 = vmatprep.subr.mxu1 %v13986_v33  ;;  %2460 = vmatpush2.msra.mxu0 %v13987_v59  ;;  %v13997_v33 = vld [vmem:[#allocation59_spill] sm:$0xff]  ;;  %v13998_v59 = vld [vmem:[#allocation74_spill] sm:$0xff] }
 0x298   : > { %2637 = vmatpush2.msra.mxu1 %v13988_v18  ;;  %2463 = vmatprep.subr.mxu0 %v13989_v56  ;;  %v13999_v18 = vld [vmem:[#allocation63_spill] sm:$0xff] }
 0x299   : > { %2639 = vmatprep.subr.mxu1 %v13990_v34  ;;  %2466 = vmatpush2.msra.mxu0 %v13991_v17  ;;  %v14000_v34 = vld [vmem:[#allocation65_spill] sm:$0xff] }
 0x29a   : > { %2641 = vmatpush2.msra.mxu1 %v13992_v30  ;;  %2469 = vmatprep.subr.mxu0 %v13993_v60  ;;  %v14001_v17 = vld [vmem:[#allocation77_spill] sm:$0xff]  ;;  %v14002_v30 = vld [vmem:[#allocation66_spill] sm:$0xff] }
 0x29b   : > { %2643 = vmatprep.subr.mxu1 %v13994_v7  ;;  %2472 = vmatpush2.msra.mxu0 %v13995_v25  ;;  %v14003_v60 = vld [vmem:[#allocation78_spill] sm:$0xff]  ;;  %v14004_v7 = vld [vmem:[#allocation68_spill] sm:$0xff] }
 0x29c   : > { %2645 = vmatpush2.msra.mxu1 %v13996_v55  ;;  %2475 = vmatprep.subr.mxu0 %v13997_v33  ;;  %v14005_v25 = vld [vmem:[#allocation80_spill] sm:$0xff]  ;;  %v14006_v55 = vld [vmem:[#allocation70_spill] sm:$0xff]  ;;  %v14007_v33 = vld [vmem:[#allocation83_spill] sm:$0xff] }
 0x29d   : > { %2647 = vmatprep.subr.mxu1 %v13998_v59  ;;  %2478 = vmatpush2.msra.mxu0 %v13999_v18  ;;  %v14008_v59 = vld [vmem:[#allocation72_spill] sm:$0xff]  ;;  %v14009_v18 = vld [vmem:[#allocation85_spill] sm:$0xff] }
 0x29e   : > { %2649 = vmatpush2.msra.mxu1 %v8262_v13  ;;  %2481 = vmatprep.subr.mxu0 %v14000_v34  ;;  %v14010_v13 = vld [vmem:[#allocation73_spill] sm:$0xff]  ;;  %v14011_v34 = vld [vmem:[#allocation87_spill] sm:$0xff] }
 0x29f   : > { %2651 = vmatprep.subr.mxu1 %v14001_v17  ;;  %2484 = vmatpush2.msra.mxu0 %v14002_v30  ;;  %v14012_v17 = vld [vmem:[#allocation75_spill] sm:$0xff]  ;;  %v14013_v30 = vld [vmem:[#allocation90_spill] sm:$0xff] }
 0x2a0   : > { %2653 = vmatpush2.msra.mxu1 %v14003_v60  ;;  %2487 = vmatprep.subr.mxu0 %v14004_v7  ;;  %v14014_v60 = vld [vmem:[#allocation79_spill] sm:$0xff]  ;;  %v14015_v7 = vld [vmem:[#allocation92_spill] sm:$0xff] }
 0x2a1   : > { %2655 = vmatprep.subr.mxu1 %v14005_v25  ;;  %2490 = vmatpush2.msra.mxu0 %v14006_v55  ;;  %v14016_v25 = vld [vmem:[#allocation81_spill] sm:$0xff] }
 0x2a2   : > { %2657 = vmatpush2.msra.mxu1 %v14007_v33  ;;  %2493 = vmatprep.subr.mxu0 %v14008_v59  ;;  %v14017_v33 = vld [vmem:[#allocation3_spill] sm:$0xff]  ;;  %v14018_v59 = vld [vmem:[#allocation82_spill] sm:$0xff] }
 0x2a3   : > { %2659 = vmatprep.subr.mxu1 %v14009_v18  ;;  %2496 = vmatpush2.msra.mxu0 %v14010_v13 }
 0x2a4   : > { %2661 = vmatpush2.msra.mxu1 %v14011_v34  ;;  %2499 = vmatprep.subr.mxu0 %v14012_v17  ;;  %v14019_v34 = vld [vmem:[#allocation84_spill] sm:$0xff] }
 0x2a5   : > { %2663 = vmatprep.subr.mxu1 %v14013_v30  ;;  %2502 = vmatpush2.msra.mxu0 %v14014_v60  ;;  %v14020_v30 = vld [vmem:[#allocation86_spill] sm:$0xff] }
 0x2a6   : > { %2665 = vmatpush2.msra.mxu1 %v14015_v7  ;;  %2505 = vmatprep.subr.mxu0 %v14016_v25  ;;  %v14021_v7 = vld [vmem:[#allocation88_spill] sm:$0xff] }
 0x2a7   : > { %2673 = vmatmul.mubr.f32.vlgmr.msra.gmra.mxu1 %v8396_v16  ;;  %2945 = vmatprep.subr.mxu1 %v14017_v33  ;;  %v14022_v16 = vld [vmem:[#allocation89_spill] sm:$0xff]  ;;  %v14023_v33 = vld [vmem:[#allocation91_spill] sm:$0xff] }
 0x2a8   : > { %2508 = vmatpush2.msra.mxu0 %v14018_v59  ;;  %2947 = vmatpush1.msra.mxu1 %v7485_v51  ;;  %v14024_v51 = vld [vmem:[#allocation93_spill] sm:$0xff] }
 0x2a9   : > { %3073 = vmatprep.mubr.f32.mxu1 %v8386_v15  ;;  %2511 = vmatprep.subr.mxu0 %v14019_v34 }
 0x2aa   : > { %2949 = vmatprep.subr.mxu1 %v7487_v54  ;;  %2514 = vmatpush2.msra.mxu0 %v14020_v30  ;;  %v14025_v54 = vld [vmem:[#allocation4_spill] sm:$0xff] }
 0x2ab   : > { %2951 = vmatpush1.msra.mxu1 %v7495_v58  ;;  %2517 = vmatprep.subr.mxu0 %v14021_v7  ;;  %v14026_v58 = vand.u32 4294901760, %v14025_v54 }
 0x2ac   : > { %2953 = vmatprep.subr.mxu1 %v7504_v61  ;;  %2520 = vmatpush2.msra.mxu0 %v14022_v16  ;;  %v14027_v61 = vand.u32 4294901760, %v7518_v2  ;;  %v14031_v2 = vand.u32 4294901760, %v13937_v47  ;;  %v14060_v47 = vld [vmem:[#allocation31_spill] sm:$0xff] }
 0x2ad   : > { %2955 = vmatpush1.msra.mxu1 %v7511_v63  ;;  %2523 = vmatprep.subr.mxu0 %v14023_v33  ;;  %v14028_v63 = vand.u32 4294901760, %v7521_v3  ;;  %v14032_v3 = vand.u32 4294901760, %v13938_v37  ;;  %v14061_v37 = vld [vmem:[#allocation20_spill] sm:$0xff] }
 0x2ae   : > { %2957 = vmatprep.subr.mxu1 %v7513_v0  ;;  %2526 = vmatpush2.msra.mxu0 %v14024_v51  ;;  %v14029_v0 = vand.u32 4294901760, %v7525_v4  ;;  %v14033_v4 = vand.u32 4294901760, %v13939_v53  ;;  %v14062_v53 = vand.u32 4294901760, %v14061_v37  ;;  %v14095_v37 = vld [vmem:[#allocation48_spill] sm:$0xff] }
 0x2af   : > { %2959 = vmatpush1.msra.mxu1 %v7527_v8  ;;  %2532 = vmatmul.mubr.f32.vlgmr.msra.gmra.mxu0 %v8389_v43  ;;  %v14030_v8 = vand.u32 4294901760, %v13936_v50  ;;  %v1657_v50 = vld [vmem:[%s12946_s10 + $0x3d0] sm:$0xff]  ;;  %v1586_v43 = vld [vmem:[%s12946_s10 + $0x198] sm:$0xff] }
 0x2b0   : > { %2682 = vmatprep.subr.mxu0 %v14026_v58  ;;  %2961 = vmatprep.subr.mxu1 %v7566_v40  ;;  %v14034_v40 = vand.u32 4294901760, %v13940_v6  ;;  %v8652_v58 = vand.u32 4294901760, %v1657_v50 }
 0x2b1   : > { %2686 = vmatpush1.msra.mxu0 %v14027_v61  ;;  %2936 = vmatprep.mubr.f32.mxu0 %v8386_v15  ;;  %v1642_v61 = vld [vmem:[%s12946_s10 + $0x358] sm:$0xff] }
 0x2b2   : > { %2963 = vmatpush1.msra.mxu1 %v7574_v48  ;;  %2690 = vmatprep.subr.mxu0 %v14028_v63  ;;  %v14038_v48 = vand.u32 4294901760, %v7678_v10  ;;  %v14043_v10 = vand.u32 4294901760, %v7744_v19  ;;  %v1658_v19 = vld [vmem:[%s12946_s10 + $0x3d8] sm:$0xff] }
 0x2b3   : > { %2965 = vmatprep.subr.mxu1 %v7591_v62  ;;  %2694 = vmatpush1.msra.mxu0 %v14029_v0  ;;  %v14042_v62 = vand.u32 4294901760, %v7730_v14  ;;  %v14052_v14 = vld [vmem:[#allocation15_spill] sm:$0xff]  ;;  %v8638_v6 = vand.u32 4294901760, %v1658_v19  ;;  %v14069_v63 = vld [vmem:[#allocation37_spill] sm:$0xff]  ;;  %v14070_v0 = vld [vmem:[#allocation26_spill] sm:$0xff] }
 0x2b4   : > { %2967 = vmatpush1.msra.mxu1 %v7604_v11  ;;  %2698 = vmatprep.subr.mxu0 %v14030_v8  ;;  %v14044_v11 = vand.u32 4294901760, %v7755_v28  ;;  %v14055_v28 = vld [vmem:[#allocation16_spill] sm:$0xff]  ;;  %v14071_v8 = vand.u32 4294901760, %v14070_v0 }
 0x2b5   : > { %2969 = vmatprep.subr.mxu1 %v7620_v12  ;;  %2702 = vmatpush1.msra.mxu0 %v14031_v2  ;;  %v14035_v12 = vand.u32 4294901760, %v7638_v35  ;;  %v14045_v35 = vand.u32 4294901760, %v13943_v5  ;;  %v14064_v5 = vld [vmem:[#allocation22_spill] sm:$0xff] }
 0x2b6   : > { %2971 = vmatpush1.msra.mxu1 %v7640_v39  ;;  %2706 = vmatprep.subr.mxu0 %v14032_v3  ;;  %v14036_v39 = vand.u32 4294901760, %v7650_v9  ;;  %v14041_v9 = vand.u32 4294901760, %v7716_v24  ;;  %v14049_v24 = vld [vmem:[#allocation14_spill] sm:$0xff]  ;;  %v1641_v3 = vld [vmem:[%s12946_s10 + $0x350] sm:$0xff] }
 0x2b7   : > { %2973 = vmatprep.subr.mxu1 %v7652_v45  ;;  %2710 = vmatpush1.msra.mxu0 %v14033_v4  ;;  %v14037_v45 = vand.u32 4294901760, %v13941_v41  ;;  %v1650_v41 = vld [vmem:[%s12946_s10 + $0x398] sm:$0xff]  ;;  %v14072_v4 = vld [vmem:[#allocation39_spill] sm:$0xff] }
 0x2b8   : > { %2975 = vmatpush1.msra.mxu1 %v7668_v57  ;;  %2714 = vmatprep.subr.mxu0 %v14034_v40  ;;  %v14046_v57 = vand.u32 4294901760, %v13945_v32  ;;  %v1649_v32 = vld [vmem:[%s12946_s10 + $0x390] sm:$0xff]  ;;  %v8660_v2 = vand.u32 4294901760, %v1650_v41 }
 0x2b9   : > { %2977 = vmatprep.subr.mxu1 %v7680_v31  ;;  %2718 = vmatpush1.msra.mxu0 %v14035_v12  ;;  %v14039_v31 = vand.u32 4294901760, %v7690_v20  ;;  %v14048_v20 = vld [vmem:[#allocation23_spill] sm:$0xff]  ;;  %v14073_v40 = vld [vmem:[#allocation28_spill] sm:$0xff] }
 0x2ba   : > { %2979 = vmatpush1.msra.mxu1 %v7692_v36  ;;  %2722 = vmatprep.subr.mxu0 %v14036_v39  ;;  %v14040_v36 = vand.u32 4294901760, %v7703_v38  ;;  %v14047_v38 = vand.u32 4294901760, %v13947_v26  ;;  %v14067_v26 = vld [vmem:[#allocation24_spill] sm:$0xff]  ;;  %v14074_v12 = vand.u32 4294901760, %v14073_v40  ;;  %v8669_v39 = vsub.f32 %v1658_v19, %v8638_v6 }
 0x2bb   : > { %2981 = vmatprep.subr.mxu1 %v7705_v1  ;;  %2726 = vmatpush1.msra.mxu0 %v14037_v45  ;;  %v14050_v1 = vand.u32 4294901760, %v14049_v24  ;;  %v14068_v54 = vand.u32 4294901760, %v14067_v26  ;;  %v8671_v45 = vand.u32 4294901760, %v1649_v32  ;;  %v1626_v24 = vld [vmem:[%s12946_s10 + $0x2d8] sm:$0xff] }
 0x2bc   : > { %2983 = vmatpush1.msra.mxu1 %v7718_v21  ;;  %2730 = vmatprep.subr.mxu0 %v14038_v48  ;;  %v14051_v21 = vld [vmem:[#allocation25_spill] sm:$0xff]  ;;  %14075 = vst [vmem:[#allocation5_spill] sm:$0xff] %v8669_v39 }
 0x2bd   : > { %2985 = vmatprep.subr.mxu1 %v7732_v52  ;;  %2734 = vmatpush1.msra.mxu0 %v14039_v31  ;;  %v14053_v52 = vand.u32 4294901760, %v14052_v14  ;;  %v1634_v48 = vld [vmem:[%s12946_s10 + $0x318] sm:$0xff] }
 0x2be   : > { %2987 = vmatpush1.msra.mxu1 %v7746_v49  ;;  %2738 = vmatprep.subr.mxu0 %v14040_v36  ;;  %v14054_v49 = vld [vmem:[#allocation27_spill] sm:$0xff]  ;;  %v14076_v31 = vld [vmem:[#allocation42_spill] sm:$0xff]  ;;  %v14077_v36 = vld [vmem:[#allocation29_spill] sm:$0xff]  ;;  %v8701_v19 = vand.u32 4294901760, %v1634_v48 }
 0x2bf   : > { %2989 = vmatprep.subr.mxu1 %v7757_v23  ;;  %2742 = vmatpush1.msra.mxu0 %v14041_v9  ;;  %v14056_v23 = vand.u32 4294901760, %v14055_v28  ;;  %v14078_v9 = vand.u32 4294901760, %v14077_v36  ;;  %v14090_v28 = vld [vmem:[#allocation46_spill] sm:$0xff] }
 0x2c0   : > { %2991 = vmatpush1.msra.mxu1 %v7768_v29  ;;  %2746 = vmatprep.subr.mxu0 %v14042_v62  ;;  %v14057_v29 = vld [vmem:[#allocation30_spill] sm:$0xff]  ;;  %v8679_v62 = vand.u32 4294901760, %v1642_v61  ;;  %14089 = vst [vmem:[#allocation10_spill] sm:$0xff] %v8701_v19 }
 0x2c1   : > { %2993 = vmatprep.subr.mxu1 %v7858_v42  ;;  %2750 = vmatpush1.msra.mxu0 %v14043_v10  ;;  %v14058_v42 = vld [vmem:[#allocation18_spill] sm:$0xff]  ;;  %v1633_v10 = vld [vmem:[%s12946_s10 + $0x310] sm:$0xff] }
 0x2c2   : > { %2995 = vmatpush1.msra.mxu1 %v7863_v46  ;;  %2754 = vmatprep.subr.mxu0 %v14044_v11  ;;  %v14059_v46 = vand.u32 4294901760, %v14058_v42  ;;  %14079 = vst [vmem:[#allocation6_spill] sm:$0xff] %v8679_v62  ;;  %v14080_v11 = vld [vmem:[#allocation44_spill] sm:$0xff]  ;;  %v13186_v42 = vand.u32 4294901760, %v8669_v39 }
 0x2c3   : > { %2997 = vmatprep.subr.mxu1 %v13942_v44  ;;  %2758 = vmatpush1.msra.mxu0 %v14045_v35  ;;  %v14063_v44 = vld [vmem:[#allocation33_spill] sm:$0xff]  ;;  %v14081_v35 = vld [vmem:[#allocation32_spill] sm:$0xff] }
 0x2c4   : > { %2999 = vmatpush1.msra.mxu1 %v13944_v22  ;;  %2762 = vmatprep.subr.mxu0 %v14046_v57  ;;  %v14065_v22 = vand.u32 4294901760, %v14064_v5  ;;  %v14082_v57 = vand.u32 4294901760, %v14081_v35  ;;  %v8724_v5 = vand.u32 4294901760, %v1626_v24 }
 0x2c5   : > { %3001 = vmatprep.subr.mxu1 %v13946_v27  ;;  %2766 = vmatpush1.msra.mxu0 %v14047_v38  ;;  %v14066_v27 = vld [vmem:[#allocation35_spill] sm:$0xff]  ;;  %v8688_v38 = vsub.f32 %v1657_v50, %v8652_v58  ;;  %v8713_v50 = vand.u32 4294901760, %v1633_v10 }
 0x2c6   : > { %3003 = vmatpush1.msra.mxu1 %v14048_v20  ;;  %2770 = vmatprep.subr.mxu0 %v14050_v1  ;;  %v8690_v20 = vand.u32 4294901760, %v1641_v3  ;;  %v14085_v1 = vld [vmem:[#allocation45_spill] sm:$0xff]  ;;  %14099 = vst [vmem:[#allocation12_spill] sm:$0xff] %v8724_v5 }
 0x2c7   : > { %3005 = vmatprep.subr.mxu1 %v14051_v21  ;;  %2774 = vmatpush1.msra.mxu0 %v14053_v52  ;;  %14083 = vst [vmem:[#allocation7_spill] sm:$0xff] %v8688_v38  ;;  %v14086_v21 = vld [vmem:[#allocation34_spill] sm:$0xff]  ;;  %v8699_v52 = vsub.f32 %v1650_v41, %v8660_v2  ;;  %14094 = vst [vmem:[#allocation11_spill] sm:$0xff] %v8713_v50 }
 0x2c8   : > { %3007 = vmatpush1.msra.mxu1 %v14054_v49  ;;  %2778 = vmatprep.subr.mxu0 %v14056_v23  ;;  %14084 = vst [vmem:[#allocation8_spill] sm:$0xff] %v8690_v20  ;;  %v14087_v14 = vand.u32 4294901760, %v14086_v21  ;;  %v1625_v49 = vld [vmem:[%s12946_s10 + $0x2d0] sm:$0xff] }
 0x2c9   : > { %3009 = vmatprep.subr.mxu1 %v14057_v29  ;;  %2782 = vmatpush1.msra.mxu0 %v14059_v46  ;;  %14088 = vst [vmem:[#allocation9_spill] sm:$0xff] %v8699_v52  ;;  %v14091_v23 = vld [vmem:[#allocation36_spill] sm:$0xff]  ;;  %v8711_v46 = vsub.f32 %v1649_v32, %v8671_v45  ;;  %v14100_v32 = vld [vmem:[#allocation51_spill] sm:$0xff]  ;;  %v8736_v0 = vand.u32 4294901760, %v1625_v49 }
 0x2ca   : > { %3011 = vmatpush2.msra.mxu1 %v14060_v47  ;;  %2786 = vmatprep.subr.mxu0 %v14062_v53  ;;  %v14092_v29 = vand.u32 4294901760, %v14091_v23  ;;  %v1618_v47 = vld [vmem:[%s12946_s10 + $0x298] sm:$0xff]  ;;  %v14116_v23 = vld [vmem:[#allocation47_spill] sm:$0xff] }
 0x2cb   : > { %3013 = vmatprep.subr.mxu1 %v14063_v44  ;;  %2790 = vmatpush1.msra.mxu0 %v14065_v22  ;;  %14093 = vst [vmem:[#allocation17_spill] sm:$0xff] %v8711_v46  ;;  %v14096_v53 = vld [vmem:[#allocation38_spill] sm:$0xff]  ;;  %v8722_v44 = vsub.f32 %v1642_v61, %v8679_v62  ;;  %v1617_v22 = vld [vmem:[%s12946_s10 + $0x290] sm:$0xff]  ;;  %14104 = vst [vmem:[#allocation13_spill] sm:$0xff] %v8736_v0  ;;  %v8748_v36 = vand.u32 4294901760, %v1618_v47 }
 0x2cc   : > { %3015 = vmatpush2.msra.mxu1 %v14066_v27  ;;  %2794 = vmatprep.subr.mxu0 %v14068_v54  ;;  %v14097_v41 = vand.u32 4294901760, %v14096_v53  ;;  %v14101_v27 = vld [vmem:[#allocation40_spill] sm:$0xff]  ;;  %v13184_v54 = vand.u32 4294901760, %v8688_v38  ;;  %v1610_v61 = vld [vmem:[%s12946_s10 + $0x258] sm:$0xff]  ;;  %v8765_v21 = vand.u32 4294901760, %v1617_v22  ;;  %v8775_v53 = vsub.f32 %v1626_v24, %v8724_v5 }
 0x2cd   : > { %3017 = vmatprep.subr.mxu1 %v14069_v63  ;;  %2798 = vmatpush1.msra.mxu0 %v14071_v8  ;;  %14098 = vst [vmem:[#allocation19_spill] sm:$0xff] %v8722_v44  ;;  %v14102_v26 = vand.u32 4294901760, %v14101_v27  ;;  %v8734_v63 = vsub.f32 %v1641_v3, %v8690_v20  ;;  %v14105_v8 = vld [vmem:[#allocation53_spill] sm:$0xff]  ;;  %14109 = vst [vmem:[#allocation70_spill] sm:$0xff] %v8748_v36 }
 0x2ce   : > { %3019 = vmatpush2.msra.mxu1 %v14072_v4  ;;  %2802 = vmatprep.subr.mxu0 %v14074_v12  ;;  %v14106_v4 = vld [vmem:[#allocation41_spill] sm:$0xff]  ;;  %v13183_v12 = vand.u32 4294901760, %v8699_v52  ;;  %14114 = vst [vmem:[#allocation73_spill] sm:$0xff] %v8765_v21  ;;  %14118 = vst [vmem:[#allocation75_spill] sm:$0xff] %v8775_v53 }
 0x2cf   : > { %3021 = vmatprep.subr.mxu1 %v14076_v31  ;;  %2806 = vmatpush1.msra.mxu0 %v14078_v9  ;;  %14103 = vst [vmem:[#allocation21_spill] sm:$0xff] %v8734_v63  ;;  %v14107_v40 = vand.u32 4294901760, %v14106_v4  ;;  %v8746_v31 = vsub.f32 %v1634_v48, %v8701_v19  ;;  %v1609_v3 = vld [vmem:[%s12946_s10 + $0x250] sm:$0xff]  ;;  %v14110_v9 = vld [vmem:[#allocation55_spill] sm:$0xff]  ;;  %v8763_v48 = vsub.f32 %v1633_v10, %v8713_v50 }
 0x2d0   : > { %3023 = vmatpush2.msra.mxu1 %v14080_v11  ;;  %2810 = vmatprep.subr.mxu0 %v14082_v57  ;;  %v14111_v11 = vld [vmem:[#allocation43_spill] sm:$0xff]  ;;  %v8759_v57 = vsub.f32 %v8669_v39, %v13186_v42  ;;  %v14120_v10 = vld [vmem:[#allocation60_spill] sm:$0xff]  ;;  %v8789_v4 = vsub.f32 %v1625_v49, %v8736_v0  ;;  %v8806_v49 = vsub.f32 %v1618_v47, %v8748_v36  ;;  %v1570_v39 = vld [vmem:[%s12946_s10 + $0x118] sm:$0xff] }
 0x2d1   : > { %3025 = vmatprep.subr.mxu1 %v14085_v1  ;;  %2814 = vmatpush2.msra.mxu0 %v14087_v14  ;;  %14108 = vst [vmem:[#allocation52_spill] sm:$0xff] %v8746_v31  ;;  %v14112_v35 = vand.u32 4294901760, %v14111_v11  ;;  %v13185_v1 = vand.u32 4294901760, %v8711_v46  ;;  %14113 = vst [vmem:[#allocation85_spill] sm:$0xff] %v8763_v48  ;;  %v1602_v14 = vld [vmem:[%s12946_s10 + $0x218] sm:$0xff]  ;;  %v1601_v24 = vld [vmem:[%s12946_s10 + $0x210] sm:$0xff] }
 0x2d2   : > { %3027 = vmatpush2.msra.mxu1 %v14090_v28  ;;  %2818 = vmatprep.subr.mxu0 %v14092_v29  ;;  %v14115_v28 = vld [vmem:[#allocation58_spill] sm:$0xff]  ;;  %v14117_v29 = vand.u32 4294901760, %v14116_v23  ;;  %14123 = vst [vmem:[#allocation81_spill] sm:$0xff] %v8789_v4  ;;  %14128 = vst [vmem:[#allocation82_spill] sm:$0xff] %v8806_v49  ;;  %v14133_v47 = vld [vmem:[#allocation64_spill] sm:$0xff] }
 0x2d3   : > { %3029 = vmatprep.subr.mxu1 %v14095_v37  ;;  %2822 = vmatpush2.msra.mxu0 %v14097_v41  ;;  %v13187_v37 = vand.u32 4294901760, %v8722_v44  ;;  %v8777_v41 = vand.u32 4294901760, %v1610_v61  ;;  %v14126_v11 = vld [vmem:[#allocation50_spill] sm:$0xff] }
 0x2d4   : > { %3031 = vmatpush2.msra.mxu1 %v14100_v32  ;;  %2826 = vmatprep.subr.mxu0 %v14102_v26  ;;  %v14121_v32 = vld [vmem:[#allocation49_spill] sm:$0xff]  ;;  %v8785_v26 = vsub.f32 %v8688_v38, %v13184_v54  ;;  %v14167_v38 = vld [vmem:[#allocation78_spill] sm:$0xff] }
 0x2d5   : > { %3033 = vmatprep.subr.mxu1 %v14105_v8  ;;  %2830 = vmatpush2.msra.mxu0 %v14107_v40  ;;  %14119 = vst [vmem:[#allocation79_spill] sm:$0xff] %v8777_v41  ;;  %v14122_v27 = vand.u32 4294901760, %v14121_v32  ;;  %v13188_v8 = vand.u32 4294901760, %v8734_v63  ;;  %v8791_v40 = vand.u32 4294901760, %v1609_v3  ;;  %v14131_v32 = vand.u32 4294901760, %v13989_v56 }
 0x2d6   : > { %3035 = vmatpush2.msra.mxu1 %v14110_v9  ;;  %2834 = vmatprep.subr.mxu0 %v14112_v35  ;;  %v14125_v9 = vld [vmem:[#allocation61_spill] sm:$0xff]  ;;  %v14127_v35 = vand.u32 4294901760, %v14126_v11  ;;  %v8829_v56 = vsub.f32 %v8722_v44, %v13187_v37  ;;  %v14160_v44 = vand.u32 4294901760, %v8789_v4 }
 0x2d7   : > { %3037 = vmatprep.subr.mxu1 %v14115_v28  ;;  %2838 = vmatpush2.msra.mxu0 %v14117_v29  ;;  %14124 = vst [vmem:[#allocation3_spill] sm:$0xff] %v8791_v40  ;;  %v8802_v28 = vsub.f32 %v8699_v52, %v13183_v12  ;;  %v8808_v29 = vand.u32 4294901760, %v1602_v14  ;;  %v14134_v12 = vld [vmem:[#allocation54_spill] sm:$0xff]  ;;  %v8847_v37 = vsub.f32 %v8734_v63, %v13188_v8  ;;  %v14143_v11 = vld [vmem:[#allocation57_spill] sm:$0xff] }
 0x2d8   : > { %3039 = vmatpush2.msra.mxu1 %v14120_v10  ;;  %2842 = vmatprep.subr.mxu0 %v14122_v27  ;;  %v14130_v10 = vld [vmem:[#allocation62_spill] sm:$0xff]  ;;  %v14135_v54 = vand.u32 4294901760, %v14134_v12  ;;  %v14139_v12 = vld [vmem:[#allocation56_spill] sm:$0xff]  ;;  %v8851_v27 = vsub.f32 %v1609_v3, %v8791_v40  ;;  %v14144_v23 = vand.u32 4294901760, %v14143_v11  ;;  %v14148_v11 = vld [vmem:[#allocation59_spill] sm:$0xff] }
 0x2d9   : > { %3041 = vmatprep.subr.mxu1 %v14125_v9  ;;  %2846 = vmatpush2.msra.mxu0 %v14127_v35  ;;  %14129 = vst [vmem:[#allocation84_spill] sm:$0xff] %v8808_v29  ;;  %v8817_v9 = vsub.f32 %v8711_v46, %v13185_v1  ;;  %v8821_v35 = vsub.f32 %v1617_v22, %v8765_v21  ;;  %v8835_v1 = vand.u32 4294901760, %v1601_v24  ;;  %v1594_v22 = vld [vmem:[%s12946_s10 + $0x1d8] sm:$0xff]  ;;  %v1593_v3 = vld [vmem:[%s12946_s10 + $0x1d0] sm:$0xff] }
 0x2da   : > { %3043 = vmatpush2.msra.mxu1 %v14130_v10  ;;  %2850 = vmatprep.subr.mxu0 %v14131_v32  ;;  %v8833_v32 = vsub.f32 %v1610_v61, %v8777_v41  ;;  %14141 = vst [vmem:[#allocation91_spill] sm:$0xff] %v8851_v27  ;;  %v14142_v10 = vld [vmem:[#allocation69_spill] sm:$0xff]  ;;  %v8864_v42 = vsub.f32 %v1602_v14, %v8808_v29  ;;  %v14150_v61 = vand.u32 4294901760, %v8763_v48  ;;  %v8879_v14 = vand.u32 4294901760, %v1594_v22 }
 0x2db   : > { %14132 = vst [vmem:[#allocation86_spill] sm:$0xff] %v8821_v35  ;;  %3045 = vmatprep.subr.mxu1 %v14133_v47  ;;  %2854 = vmatpush2.msra.mxu0 %v14135_v54  ;;  %14137 = vst [vmem:[#allocation89_spill] sm:$0xff] %v8835_v1  ;;  %v14138_v47 = vld [vmem:[#allocation67_spill] sm:$0xff]  ;;  %v14140_v54 = vand.u32 4294901760, %v14139_v12  ;;  %v14145_v12 = vand.u32 4294901760, %v8746_v31  ;;  %v1585_v63 = vld [vmem:[%s12946_s10 + $0x190] sm:$0xff] }
 0x2dc   : > { %14136 = vst [vmem:[#allocation88_spill] sm:$0xff] %v8833_v32  ;;  %3047 = vmatpush2.msra.mxu1 %v14138_v47  ;;  %14146 = vst [vmem:[#allocation93_spill] sm:$0xff] %v8864_v42  ;;  %v14155_v47 = vand.u32 4294901760, %v8775_v53  ;;  %v14162_v46 = vld [vmem:[#allocation77_spill] sm:$0xff]  ;;  %v8940_v8 = vsub.f32 %v1594_v22, %v8879_v14 }
 0x2dd   : > { %2858 = vmatprep.subr.mxu0 %v14140_v54  ;;  %3049 = vmatprep.subr.mxu1 %v14142_v10  ;;  %v8860_v54 = vsub.f32 %v8746_v31, %v14145_v12  ;;  %v14147_v10 = vld [vmem:[#allocation71_spill] sm:$0xff]  ;;  %v8876_v12 = vsub.f32 %v8763_v48, %v14150_v61  ;;  %14151 = vst [vmem:[#allocation4_spill] sm:$0xff] %v8879_v14  ;;  %v14152_v31 = vld [vmem:[#allocation74_spill] sm:$0xff]  ;;  %v1577_v52 = vld [vmem:[%s12946_s10 + $0x150] sm:$0xff] }
 0x2de   : > { %2862 = vmatpush2.msra.mxu0 %v14144_v23  ;;  %3051 = vmatpush2.msra.mxu1 %v14147_v10  ;;  %v14149_v23 = vand.u32 4294901760, %v14148_v11  ;;  %v14153_v10 = vld [vmem:[#allocation63_spill] sm:$0xff]  ;;  %v8891_v61 = vsub.f32 %v8775_v53, %v14155_v47  ;;  %v8895_v48 = vsub.f32 %v1601_v24, %v8835_v1  ;;  %v8907_v47 = vsub.f32 %v8789_v4, %v14160_v44  ;;  %v1578_v53 = vld [vmem:[%s12946_s10 + $0x158] sm:$0xff]  ;;  %v1569_v14 = vld [vmem:[%s12946_s10 + $0x110] sm:$0xff] }
 0x2df   : > { %3053 = vmatprep.subr.mxu1 %v14152_v31  ;;  %v14154_v11 = vand.u32 4294901760, %v14153_v10  ;;  %v14157_v31 = vld [vmem:[#allocation76_spill] sm:$0xff]  ;;  %v14158_v10 = vld [vmem:[#allocation65_spill] sm:$0xff]  ;;  %v8910_v24 = vand.u32 4294901760, %v1593_v3  ;;  %v8925_v4 = vand.u32 4294901760, %v1586_v43  ;;  %14171 = vst [vmem:[#allocation15_spill] sm:$0xff] %v8940_v8 }
 0x2e0   : > { %2866 = vmatprep.subr.mxu0 %v14149_v23  ;;  %14156 = vst [vmem:[#allocation23_spill] sm:$0xff] %v8895_v48  ;;  %3055 = vmatpush2.msra.mxu1 %v14157_v31  ;;  %v14163_v31 = vld [vmem:[#allocation66_spill] sm:$0xff]  ;;  %v14165_v23 = vand.u32 4294901760, %v8806_v49  ;;  %v14177_v1 = vld [vmem:[#allocation83_spill] sm:$0xff] }
 0x2e1   : > { %2870 = vmatpush2.msra.mxu0 %v14154_v11  ;;  %v14159_v11 = vand.u32 4294901760, %v14158_v10  ;;  %14161 = vst [vmem:[#allocation14_spill] sm:$0xff] %v8910_v24  ;;  %3057 = vmatprep.subr.mxu1 %v14162_v46  ;;  %v14164_v10 = vand.u32 4294901760, %v14163_v31  ;;  %14166 = vst [vmem:[#allocation25_spill] sm:$0xff] %v8925_v4  ;;  %v14168_v46 = vld [vmem:[#allocation68_spill] sm:$0xff]  ;;  %v8972_v22 = vsub.f32 %v1593_v3, %v8910_v24  ;;  %v1562_v29 = vld [vmem:[%s12946_s10 + $0xd8] sm:$0xff] }
 0x2e2   : > { %v8922_v44 = vsub.f32 %v8806_v49, %v14165_v23  ;;  %3059 = vmatpush2.msra.mxu1 %v14167_v38  ;;  %v14169_v31 = vand.u32 4294901760, %v14168_v46  ;;  %v8942_v49 = vand.u32 4294901760, %v1585_v63  ;;  %v14173_v38 = vld [vmem:[#allocation80_spill] sm:$0xff]  ;;  %v14174_v46 = vand.u32 4294901760, %v14006_v55 }
 0x2e3   : > { %2874 = vmatprep.subr.mxu0 %v14159_v11  ;;  %v14170_v11 = vand.u32 4294901760, %v8821_v35  ;;  %3061 = vmatprep.subr.mxu1 %v14173_v38  ;;  %v14178_v38 = vld [vmem:[#allocation72_spill] sm:$0xff]  ;;  %14181 = vst [vmem:[#allocation30_spill] sm:$0xff] %v8972_v22  ;;  %v8989_v3 = vsub.f32 %v1586_v43, %v8925_v4  ;;  %v9004_v43 = vand.u32 4294901760, %v1569_v14  ;;  %v14191_v4 = vld [vmem:[#allocation90_spill] sm:$0xff]  ;;  %v14205_v24 = vand.u32 4294901760, %v8785_v26 }
 0x2e4   : > { %2878 = vmatpush2.msra.mxu0 %v14164_v10  ;;  %14172 = vst [vmem:[#allocation27_spill] sm:$0xff] %v8942_v49  ;;  %v14175_v10 = vand.u32 4294901760, %v8833_v32  ;;  %3063 = vmatpush2.msra.mxu1 %v14177_v1  ;;  %v14179_v55 = vand.u32 4294901760, %v14178_v38  ;;  %v14183_v1 = vand.u32 4294901760, %v14010_v13  ;;  %v14188_v13 = vand.u32 4294901760, %v14012_v17  ;;  %v1545_v17 = vld [vmem:[%s12946_s10 + $0x50] sm:$0xff] }
 0x2e5   : > { %2882 = vmatprep.subr.mxu0 %v14169_v31  ;;  %v8937_v23 = vsub.f32 %v8821_v35, %v14170_v11  ;;  %v8957_v35 = vand.u32 4294901760, %v1578_v53  ;;  %v14180_v31 = vand.u32 4294901760, %v8851_v27  ;;  %3065 = vmatprep.subr.mxu1 %v14009_v18  ;;  %14185 = vst [vmem:[#allocation31_spill] sm:$0xff] %v8989_v3  ;;  %v14187_v18 = vld [vmem:[#allocation87_spill] sm:$0xff]  ;;  %14190 = vst [vmem:[#allocation22_spill] sm:$0xff] %v9004_v43  ;;  %v9021_v38 = vand.u32 4294901760, %v1562_v29 }
 0x2e6   : > { %2886 = vmatpush2.msra.mxu0 %v14174_v46  ;;  %v8954_v11 = vsub.f32 %v8833_v32, %v14175_v10  ;;  %v8974_v32 = vand.u32 4294901760, %v1577_v52  ;;  %v8991_v46 = vand.u32 4294901760, %v1570_v39  ;;  %3067 = vmatpush2.msra.mxu1 %v14187_v18  ;;  %v14192_v18 = vand.u32 4294901760, %v14014_v60 }
 0x2e7   : > { %14176 = vst [vmem:[#allocation16_spill] sm:$0xff] %v8957_v35  ;;  %2890 = vmatprep.subr.mxu0 %v14179_v55  ;;  %v8969_v10 = vsub.f32 %v8851_v27, %v14180_v31  ;;  %v14184_v55 = vand.u32 4294901760, %v8864_v42  ;;  %v1561_v27 = vld [vmem:[%s12946_s10 + $0xd0] sm:$0xff]  ;;  %3069 = vmatprep.subr.mxu1 %v14191_v4  ;;  %14195 = vst [vmem:[#allocation24_spill] sm:$0xff] %v9021_v38  ;;  %v14197_v60 = vand.u32 4294901760, %v14016_v25  ;;  %v14209_v26 = vand.u32 4294901760, %v14019_v34 }
 0x2e8   : > { %14182 = vst [vmem:[#allocation18_spill] sm:$0xff] %v8974_v32  ;;  %2894 = vmatpush2.msra.mxu0 %v14183_v1  ;;  %14186 = vst [vmem:[#allocation20_spill] sm:$0xff] %v8991_v46  ;;  %v14196_v4 = vld [vmem:[#allocation92_spill] sm:$0xff]  ;;  %v9063_v25 = vsub.f32 %v1569_v14, %v9004_v43 }
 0x2e9   : > { %v8986_v31 = vsub.f32 %v8864_v42, %v14184_v55  ;;  %2898 = vmatprep.subr.mxu0 %v14188_v13  ;;  %v9002_v55 = vsub.f32 %v1585_v63, %v8942_v49  ;;  %v1554_v42 = vld [vmem:[%s12946_s10 + $0x98] sm:$0xff]  ;;  %v14193_v13 = vand.u32 4294901760, %v8895_v48  ;;  %v9019_v63 = vsub.f32 %v1578_v53, %v8957_v35  ;;  %v1553_v49 = vld [vmem:[%s12946_s10 + $0x90] sm:$0xff]  ;;  %3071 = vmatpush2.msra.mxu1 %v14196_v4 }
 0x2ea   : > { %2902 = vmatpush2.msra.mxu0 %v14192_v18  ;;  %v9034_v53 = vand.u32 4294901760, %v1561_v27  ;;  %v14200_v35 = vld [vmem:[#allocation94_spill] sm:$0xff]  ;;  %v14201_v4 = vand.u32 4294901760, %v8759_v57  ;;  %v9045_v18 = vsub.f32 %v1570_v39, %v8991_v46  ;;  %v14206_v57 = vand.u32 4294901760, %v8940_v8  ;;  %14207 = vst [vmem:[#allocation42_spill] sm:$0xff] %v9063_v25 }
 0x2eb   : > { %14189 = vst [vmem:[#allocation33_spill] sm:$0xff] %v9002_v55  ;;  %v9016_v1 = vsub.f32 %v8895_v48, %v14193_v13  ;;  %14194 = vst [vmem:[#allocation35_spill] sm:$0xff] %v9019_v63  ;;  %2906 = vmatprep.subr.mxu0 %v14197_v60  ;;  %v9032_v13 = vsub.f32 %v1577_v52, %v8974_v32  ;;  %v1546_v48 = vld [vmem:[%s12946_s10 + $0x58] sm:$0xff]  ;;  %3075 = vmatmul.mubr.f32.vlgmr.msra.gmra.mxu1 %v14200_v35  ;;  %v9047_v52 = vand.u32 4294901760, %v1554_v42 }
 0x2ec   : > { %14199 = vst [vmem:[#allocation26_spill] sm:$0xff] %v9034_v53  ;;  %3231 = vmatprep.subr.mxu1 %v14201_v4  ;;  %14202 = vst [vmem:[#allocation39_spill] sm:$0xff] %v9045_v18  ;;  %v14204_v32 = vand.u32 4294901760, %v14018_v59  ;;  %v9059_v4 = vsub.f32 %v8940_v8, %v14206_v57  ;;  %v9065_v60 = vand.u32 4294901760, %v1553_v49  ;;  %v1538_v59 = vld [vmem:[%s12946_s10 + $0x18] sm:$0xff]  ;;  %3611 = vmatprep.mubr.f32.mxu1 %v8386_v15  ;;  %v9078_v14 = vand.u32 4294901760, %v1546_v48 }
 0x2ed   : > { %14198 = vst [vmem:[#allocation37_spill] sm:$0xff] %v9032_v13  ;;  %14203 = vst [vmem:[#allocation28_spill] sm:$0xff] %v9047_v52  ;;  %3237 = vmatpush1.msra.mxu1 %v14205_v24  ;;  %v9076_v57 = vsub.f32 %v1562_v29, %v9021_v38  ;;  %v14212_v39 = vand.u32 4294901760, %v8802_v28  ;;  %v14213_v8 = vand.u32 4294901760, %v14020_v30  ;;  %v14214_v15 = vand.u32 4294901760, %v8972_v22  ;;  %v1537_v28 = vld [vmem:[%s12946_s10 + $0x10] sm:$0xff] }
 0x2ee   : > { %2910 = vmatpush2.msra.mxu0 %v14204_v32  ;;  %14208 = vst [vmem:[#allocation29_spill] sm:$0xff] %v9065_v60  ;;  %14211 = vst [vmem:[#allocation32_spill] sm:$0xff] %v9078_v14  ;;  %v9091_v32 = vsub.f32 %v1561_v27, %v9034_v53  ;;  %v9093_v29 = vand.u32 4294901760, %v1545_v17  ;;  %v14218_v30 = vand.u32 4294901760, %v14021_v7  ;;  %v9111_v24 = vand.u32 4294901760, %v1538_v59 }
 0x2ef   : > { %2914 = vmatprep.subr.mxu0 %v14209_v26  ;;  %14210 = vst [vmem:[#allocation44_spill] sm:$0xff] %v9076_v57  ;;  %3243 = vmatprep.subr.mxu1 %v14212_v39  ;;  %v9087_v34 = vsub.f32 %v8972_v22, %v14214_v15  ;;  %v14217_v39 = vand.u32 4294901760, %v8817_v9  ;;  %v14219_v15 = vand.u32 4294901760, %v8989_v3  ;;  %v9109_v26 = vsub.f32 %v1554_v42, %v9047_v52 }
 0x2f0   : > { %2918 = vmatpush2.msra.mxu0 %v14213_v8  ;;  %14215 = vst [vmem:[#allocation45_spill] sm:$0xff] %v9091_v32  ;;  %14216 = vst [vmem:[#allocation34_spill] sm:$0xff] %v9093_v29  ;;  %v14222_v22 = vand.u32 4294901760, %v8829_v56  ;;  %v14223_v9 = vand.u32 4294901760, %v14022_v16  ;;  %v9125_v42 = vsub.f32 %v1553_v49, %v9065_v60  ;;  %v14226_v27 = vand.u32 4294901760, %v8847_v37  ;;  %v1786_v37 = vld [vmem:[%s12946_s10 + $0x7d8] sm:$0xff] }
 0x2f1   : > { %3249 = vmatpush1.msra.mxu1 %v14217_v39  ;;  %2922 = vmatprep.subr.mxu0 %v14218_v30  ;;  %v9105_v8 = vsub.f32 %v8989_v3, %v14219_v15  ;;  %14220 = vst [vmem:[#allocation46_spill] sm:$0xff] %v9109_v26  ;;  %14221 = vst [vmem:[#allocation36_spill] sm:$0xff] %v9111_v24  ;;  %v14224_v39 = vand.u32 4294901760, %v9002_v55  ;;  %v14227_v56 = vand.u32 4294901760, %v14023_v33  ;;  %v14228_v16 = vand.u32 4294901760, %v9019_v63  ;;  %v1754_v3 = vld [vmem:[%s12946_s10 + $0x6d8] sm:$0xff] }
 0x2f2   : > { %3255 = vmatprep.subr.mxu1 %v14222_v22  ;;  %2926 = vmatpush2.msra.mxu0 %v14223_v9  ;;  %14225 = vst [vmem:[#allocation48_spill] sm:$0xff] %v9125_v42  ;;  %v9140_v7 = vand.u32 4294901760, %v1537_v28  ;;  %v14231_v49 = vand.u32 4294901760, %v8860_v54  ;;  %v14232_v33 = vand.u32 4294901760, %v14024_v51  ;;  %v9157_v9 = vsub.f32 %v1545_v17, %v9093_v29  ;;  %v1785_v17 = vld [vmem:[%s12946_s10 + $0x7d0] sm:$0xff] }
 0x2f3   : > { %v9121_v30 = vsub.f32 %v9002_v55, %v14224_v39  ;;  %3261 = vmatpush1.msra.mxu1 %v14226_v27  ;;  %2930 = vmatprep.subr.mxu0 %v14227_v56  ;;  %v9134_v22 = vsub.f32 %v9019_v63, %v14228_v16  ;;  %v9138_v39 = vsub.f32 %v1546_v48, %v9078_v14  ;;  %v14233_v56 = vand.u32 4294901760, %v9032_v13  ;;  %v14241_v48 = vld [vmem:[#allocation100_spill] sm:$0xff]  ;;  %v1762_v63 = vld [vmem:[%s12946_s10 + $0x718] sm:$0xff] }
 0x2f4   : > { %14230 = vst [vmem:[#allocation51_spill] sm:$0xff] %v9140_v7  ;;  %3267 = vmatprep.subr.mxu1 %v14231_v49  ;;  %2934 = vmatpush2.msra.mxu0 %v14232_v33  ;;  %14234 = vst [vmem:[#allocation40_spill] sm:$0xff] %v9157_v9  ;;  %v14235_v15 = vand.u32 4294901760, %v8876_v12  ;;  %v14236_v54 = vand.u32 4294901760, %v9045_v18  ;;  %v14238_v12 = vand.u32 4294901760, %v8891_v61  ;;  %v14239_v51 = vand.u32 4294901760, %v9063_v25 }
 0x2f5   : > { %14229 = vst [vmem:[#allocation38_spill] sm:$0xff] %v9138_v39  ;;  %v9153_v16 = vsub.f32 %v9032_v13, %v14233_v56  ;;  %2938 = vmatmul.mubr.f32.vlgmr.msra.gmra.mxu0 %v14200_v35  ;;  %v9170_v56 = vsub.f32 %v1538_v59, %v9111_v24  ;;  %3082 = vmatprep.subr.mxu0 %v8638_v6  ;;  %v9185_v59 = vand.u32 4294901760, %v1786_v37  ;;  %v1778_v33 = vld [vmem:[%s12946_s10 + $0x798] sm:$0xff]  ;;  %v14248_v61 = vand.u32 4294901760, %v9109_v26  ;;  %v1769_v13 = vld [vmem:[%s12946_s10 + $0x750] sm:$0xff] }
 0x2f6   : > { %3273 = vmatpush1.msra.mxu1 %v14235_v15  ;;  %v9166_v49 = vsub.f32 %v9045_v18, %v14236_v54  ;;  %v9182_v54 = vsub.f32 %v9063_v25, %v14239_v51  ;;  %3084 = vmatpush1.msra.mxu0 %v8652_v58  ;;  %v9200_v27 = vsub.f32 %v1537_v28, %v9140_v7  ;;  %v1777_v25 = vld [vmem:[%s12946_s10 + $0x790] sm:$0xff]  ;;  %v14244_v18 = vand.u32 4294901760, %v8907_v47 }
 0x2f7   : > { %14237 = vst [vmem:[#allocation53_spill] sm:$0xff] %v9170_v56  ;;  %3279 = vmatprep.subr.mxu1 %v14238_v12  ;;  %14240 = vst [vmem:[#allocation41_spill] sm:$0xff] %v9185_v59  ;;  %3214 = vmatprep.mubr.f32.mxu0 %v14241_v48  ;;  %v14242_v12 = vand.u32 4294901760, %v9076_v57  ;;  %v14245_v48 = vand.u32 4294901760, %v9091_v32  ;;  %v9215_v28 = vand.u32 4294901760, %v1785_v17  ;;  %v14247_v47 = vand.u32 4294901760, %v8922_v44 }
 0x2f8   : > { %14243 = vst [vmem:[#allocation55_spill] sm:$0xff] %v9200_v27  ;;  %3285 = vmatpush1.msra.mxu1 %v14244_v18  ;;  %3086 = vmatprep.subr.mxu0 %v8660_v2  ;;  %v14250_v44 = vand.u32 4294901760, %v8937_v23  ;;  %v14251_v18 = vand.u32 4294901760, %v9125_v42  ;;  %v9245_v51 = vsub.f32 %v1786_v37, %v9185_v59  ;;  %v14254_v23 = vand.u32 4294901760, %v8954_v11  ;;  %v1761_v55 = vld [vmem:[%s12946_s10 + $0x710] sm:$0xff] }
 0x2f9   : > { %v9196_v15 = vsub.f32 %v9076_v57, %v14242_v12  ;;  %v9212_v12 = vsub.f32 %v9091_v32, %v14245_v48  ;;  %14246 = vst [vmem:[#allocation43_spill] sm:$0xff] %v9215_v28  ;;  %v1770_v57 = vld [vmem:[%s12946_s10 + $0x758] sm:$0xff]  ;;  %3291 = vmatprep.subr.mxu1 %v14247_v47  ;;  %3088 = vmatpush1.msra.mxu0 %v8671_v45  ;;  %v9230_v32 = vand.u32 4294901760, %v1778_v33  ;;  %v14255_v47 = vand.u32 4294901760, %v9138_v39 }
 0x2fa   : > { %v9227_v48 = vsub.f32 %v9109_v26, %v14248_v61  ;;  %3297 = vmatpush1.msra.mxu1 %v14250_v44  ;;  %3090 = vmatprep.subr.mxu0 %v8679_v62  ;;  %v9242_v61 = vsub.f32 %v9125_v42, %v14251_v18  ;;  %14252 = vst [vmem:[#allocation47_spill] sm:$0xff] %v9245_v51  ;;  %v9247_v26 = vand.u32 4294901760, %v1777_v25  ;;  %v9262_v42 = vand.u32 4294901760, %v1770_v57  ;;  %v14296_v62 = vld [vmem:[#allocation4_spill] sm:$0xff] }
 0x2fb   : > { %14249 = vst [vmem:[#allocation58_spill] sm:$0xff] %v9230_v32  ;;  %3303 = vmatprep.subr.mxu1 %v14254_v23  ;;  %3092 = vmatpush1.msra.mxu0 %v8690_v20  ;;  %v9259_v18 = vsub.f32 %v9138_v39, %v14255_v47  ;;  %v14257_v11 = vand.u32 4294901760, %v8969_v10  ;;  %v14258_v44 = vand.u32 4294901760, %v9157_v9  ;;  %v9277_v37 = vsub.f32 %v1785_v17, %v9215_v28 }
 0x2fc   : > { %14253 = vst [vmem:[#allocation60_spill] sm:$0xff] %v9247_v26  ;;  %14256 = vst [vmem:[#allocation49_spill] sm:$0xff] %v9262_v42  ;;  %3094 = vmatprep.subr.mxu0 %v8701_v19  ;;  %v9279_v39 = vand.u32 4294901760, %v1769_v13  ;;  %v14261_v10 = vand.u32 4294901760, %v8986_v31  ;;  %v14262_v23 = vand.u32 4294901760, %v9170_v56  ;;  %v9294_v17 = vsub.f32 %v1778_v33, %v9230_v32  ;;  %v1753_v19 = vld [vmem:[%s12946_s10 + $0x6d0] sm:$0xff] }
 0x2fd   : > { %3309 = vmatpush1.msra.mxu1 %v14257_v11  ;;  %v9274_v47 = vsub.f32 %v9157_v9, %v14258_v44  ;;  %14259 = vst [vmem:[#allocation61_spill] sm:$0xff] %v9277_v37  ;;  %3096 = vmatpush1.msra.mxu0 %v8713_v50  ;;  %v9296_v9 = vand.u32 4294901760, %v1762_v63  ;;  %v14265_v31 = vand.u32 4294901760, %v9016_v1  ;;  %v9309_v33 = vand.u32 4294901760, %v1761_v55  ;;  %v1737_v1 = vld [vmem:[%s12946_s10 + $0x650] sm:$0xff] }
 0x2fe   : > { %14260 = vst [vmem:[#allocation50_spill] sm:$0xff] %v9279_v39  ;;  %3315 = vmatprep.subr.mxu1 %v14261_v10  ;;  %v9291_v44 = vsub.f32 %v9170_v56, %v14262_v23  ;;  %14263 = vst [vmem:[#allocation62_spill] sm:$0xff] %v9294_v17  ;;  %3098 = vmatprep.subr.mxu0 %v8724_v5  ;;  %v9307_v23 = vsub.f32 %v1777_v25, %v9247_v26  ;;  %v1746_v56 = vld [vmem:[%s12946_s10 + $0x698] sm:$0xff]  ;;  %v14268_v50 = vand.u32 4294901760, %v9059_v4  ;;  %v1745_v5 = vld [vmem:[%s12946_s10 + $0x690] sm:$0xff] }
 0x2ff   : > { %14264 = vst [vmem:[#allocation64_spill] sm:$0xff] %v9296_v9  ;;  %3321 = vmatpush1.msra.mxu1 %v14265_v31  ;;  %14267 = vst [vmem:[#allocation67_spill] sm:$0xff] %v9309_v33  ;;  %3100 = vmatpush1.msra.mxu0 %v8736_v0  ;;  %v14269_v31 = vand.u32 4294901760, %v9200_v27  ;;  %v9324_v25 = vsub.f32 %v1770_v57, %v9262_v42  ;;  %v9326_v11 = vand.u32 4294901760, %v1754_v3  ;;  %v9339_v57 = vand.u32 4294901760, %v1753_v19 }
 0x300   : > { %14266 = vst [vmem:[#allocation54_spill] sm:$0xff] %v9307_v23  ;;  %3327 = vmatprep.subr.mxu1 %v14268_v50  ;;  %v14272_v50 = vand.u32 4294901760, %v9087_v34  ;;  %3102 = vmatprep.subr.mxu0 %v8748_v36  ;;  %v14275_v0 = vand.u32 4294901760, %v9105_v8  ;;  %v9350_v4 = vsub.f32 %v1762_v63, %v9296_v9  ;;  %v14278_v36 = vand.u32 4294901760, %v9121_v30 }
 0x301   : > { %v9321_v10 = vsub.f32 %v9200_v27, %v14269_v31  ;;  %14270 = vst [vmem:[#allocation56_spill] sm:$0xff] %v9324_v25  ;;  %14271 = vst [vmem:[#allocation69_spill] sm:$0xff] %v9326_v11  ;;  %v9337_v31 = vsub.f32 %v1769_v13, %v9279_v39  ;;  %v1738_v27 = vld [vmem:[%s12946_s10 + $0x658] sm:$0xff]  ;;  %3104 = vmatpush1.msra.mxu0 %v8765_v21  ;;  %v9352_v13 = vand.u32 4294901760, %v1746_v56  ;;  %v14287_v20 = vand.u32 4294901760, %v9277_v37 }
 0x302   : > { %3333 = vmatpush1.msra.mxu1 %v14272_v50  ;;  %14274 = vst [vmem:[#allocation71_spill] sm:$0xff] %v9339_v57  ;;  %14276 = vst [vmem:[#allocation59_spill] sm:$0xff] %v9350_v4  ;;  %3106 = vmatprep.subr.mxu0 %v8777_v41  ;;  %v9367_v63 = vsub.f32 %v1761_v55, %v9309_v33  ;;  %v9369_v50 = vand.u32 4294901760, %v1745_v5  ;;  %v1730_v21 = vld [vmem:[%s12946_s10 + $0x618] sm:$0xff]  ;;  %v9380_v34 = vsub.f32 %v1754_v3, %v9326_v11  ;;  %v14286_v41 = vld [vmem:[#allocation84_spill] sm:$0xff] }
 0x303   : > { %14273 = vst [vmem:[#allocation57_spill] sm:$0xff] %v9337_v31  ;;  %3339 = vmatprep.subr.mxu1 %v14275_v0  ;;  %14277 = vst [vmem:[#allocation74_spill] sm:$0xff] %v9352_v13  ;;  %v14279_v0 = vand.u32 4294901760, %v9245_v51  ;;  %3108 = vmatpush1.msra.mxu0 %v8791_v40  ;;  %v9382_v55 = vand.u32 4294901760, %v1738_v27  ;;  %v9394_v30 = vsub.f32 %v1753_v19, %v9339_v57  ;;  %v1729_v3 = vld [vmem:[%s12946_s10 + $0x610] sm:$0xff]  ;;  %v14295_v40 = vand.u32 4294901760, %v9182_v54 }
 0x304   : > { %3345 = vmatpush1.msra.mxu1 %v14278_v36  ;;  %14280 = vst [vmem:[#allocation63_spill] sm:$0xff] %v9367_v63  ;;  %14281 = vst [vmem:[#allocation76_spill] sm:$0xff] %v9369_v50  ;;  %v14282_v36 = vand.u32 4294901760, %v9134_v22  ;;  %3110 = vmatprep.subr.mxu0 %v14286_v41  ;;  %v9390_v22 = vsub.f32 %v9277_v37, %v14287_v20  ;;  %v14292_v41 = vand.u32 4294901760, %v9294_v17  ;;  %v9413_v37 = vand.u32 4294901760, %v1730_v21 }
 0x305   : > { %v9363_v8 = vsub.f32 %v9245_v51, %v14279_v0  ;;  %14283 = vst [vmem:[#allocation65_spill] sm:$0xff] %v9380_v34  ;;  %14284 = vst [vmem:[#allocation77_spill] sm:$0xff] %v9382_v55  ;;  %v14285_v51 = vand.u32 4294901760, %v9153_v16  ;;  %v9396_v0 = vand.u32 4294901760, %v1737_v1  ;;  %v14290_v16 = vand.u32 4294901760, %v9166_v49 }
 0x306   : > { %3351 = vmatprep.subr.mxu1 %v14282_v36  ;;  %14288 = vst [vmem:[#allocation66_spill] sm:$0xff] %v9394_v30  ;;  %v9407_v20 = vsub.f32 %v9294_v17, %v14292_v41  ;;  %v9411_v19 = vsub.f32 %v1746_v56, %v9352_v13  ;;  %14294 = vst [vmem:[#allocation80_spill] sm:$0xff] %v9413_v37  ;;  %v9426_v36 = vsub.f32 %v1745_v5, %v9369_v50  ;;  %v14300_v17 = vld [vmem:[#allocation14_spill] sm:$0xff] }
 0x307   : > { %3357 = vmatpush1.msra.mxu1 %v14285_v51  ;;  %14289 = vst [vmem:[#allocation78_spill] sm:$0xff] %v9396_v0  ;;  %v14291_v51 = vld [vmem:[#allocation89_spill] sm:$0xff]  ;;  %v3422_v49 = vand.u32 4294901760, %v9363_v8  ;;  %v14299_v56 = vand.u32 4294901760, %v9196_v15  ;;  %v14304_v15 = vand.u32 4294901760, %v9212_v12  ;;  %v3428_v41 = vand.u32 4294901760, %v9390_v22 }
 0x308   : > { %3363 = vmatprep.subr.mxu1 %v14290_v16  ;;  %3112 = vmatpush1.msra.mxu0 %v14291_v51  ;;  %14293 = vst [vmem:[#allocation68_spill] sm:$0xff] %v9411_v19  ;;  %v14297_v16 = vand.u32 4294901760, %v9307_v23  ;;  %14298 = vst [vmem:[#allocation83_spill] sm:$0xff] %v9426_v36  ;;  %v1722_v5 = vld [vmem:[%s12946_s10 + $0x5d8] sm:$0xff]  ;;  %v3434_v12 = vand.u32 4294901760, %v9407_v20 }
 0x309   : > { %3369 = vmatpush1.msra.mxu1 %v14295_v40  ;;  %3114 = vmatprep.subr.mxu0 %v14296_v62  ;;  %v14301_v40 = vand.u32 4294901760, %v9324_v25  ;;  %v14309_v62 = vld [vmem:[#allocation27_spill] sm:$0xff] }
 0x30a   : > { %v9422_v51 = vsub.f32 %v9307_v23, %v14297_v16  ;;  %3375 = vmatprep.subr.mxu1 %v14299_v56  ;;  %3116 = vmatpush1.msra.mxu0 %v14300_v17  ;;  %v9438_v16 = vsub.f32 %v1738_v27, %v9382_v55  ;;  %v9440_v23 = vand.u32 4294901760, %v1729_v3  ;;  %v14305_v56 = vld [vmem:[#allocation25_spill] sm:$0xff]  ;;  %v14308_v17 = vand.u32 4294901760, %v9227_v48 }
 0x30b   : > { %v9434_v54 = vsub.f32 %v9324_v25, %v14301_v40  ;;  %3381 = vmatpush1.msra.mxu1 %v14304_v15  ;;  %3118 = vmatprep.subr.mxu0 %v14305_v56  ;;  %v14306_v40 = vand.u32 4294901760, %v9337_v31  ;;  %v9456_v25 = vsub.f32 %v1737_v1, %v9396_v0  ;;  %v14310_v15 = vand.u32 4294901760, %v9350_v4  ;;  %v1721_v1 = vld [vmem:[%s12946_s10 + $0x5d0] sm:$0xff] }
 0x30c   : > { %14302 = vst [vmem:[#allocation72_spill] sm:$0xff] %v9438_v16  ;;  %14303 = vst [vmem:[#allocation87_spill] sm:$0xff] %v9440_v23  ;;  %3387 = vmatprep.subr.mxu1 %v14308_v17  ;;  %3120 = vmatpush1.msra.mxu0 %v14309_v62  ;;  %v14312_v48 = vand.u32 4294901760, %v9242_v61  ;;  %v14313_v17 = vld [vmem:[#allocation16_spill] sm:$0xff]  ;;  %v3440_v20 = vand.u32 4294901760, %v9422_v51  ;;  %v14314_v27 = vand.u32 4294901760, %v9367_v63 }
 0x30d   : > { %v9452_v8 = vsub.f32 %v9337_v31, %v14306_v40  ;;  %14307 = vst [vmem:[#allocation90_spill] sm:$0xff] %v9456_v25  ;;  %v9465_v22 = vsub.f32 %v9350_v4, %v14310_v15  ;;  %v9469_v31 = vsub.f32 %v1730_v21, %v9413_v37  ;;  %3122 = vmatprep.subr.mxu0 %v14313_v17  ;;  %v9484_v21 = vand.u32 4294901760, %v1722_v5  ;;  %v1714_v4 = vld [vmem:[%s12946_s10 + $0x598] sm:$0xff]  ;;  %v1713_v62 = vld [vmem:[%s12946_s10 + $0x590] sm:$0xff] }
 0x30e   : > { %3393 = vmatpush1.msra.mxu1 %v14312_v48  ;;  %v9481_v15 = vsub.f32 %v9367_v63, %v14314_v27  ;;  %v14316_v61 = vand.u32 4294901760, %v9259_v18  ;;  %v14317_v48 = vld [vmem:[#allocation18_spill] sm:$0xff]  ;;  %v3446_v51 = vand.u32 4294901760, %v9434_v54  ;;  %v14318_v17 = vand.u32 4294901760, %v9380_v34 }
 0x30f   : > { %14311 = vst [vmem:[#allocation92_spill] sm:$0xff] %v9469_v31  ;;  %14315 = vst [vmem:[#allocation102_spill] sm:$0xff] %v9484_v21  ;;  %3124 = vmatpush1.msra.mxu0 %v14317_v48  ;;  %v9500_v63 = vsub.f32 %v1729_v3, %v9440_v23  ;;  %v14320_v18 = vand.u32 4294901760, %v9274_v47  ;;  %v3452_v54 = vand.u32 4294901760, %v9452_v8  ;;  %v9515_v3 = vand.u32 4294901760, %v1721_v1 }
 0x310   : > { %3399 = vmatprep.subr.mxu1 %v14316_v61  ;;  %v9496_v27 = vsub.f32 %v9380_v34, %v14318_v17  ;;  %3126 = vmatprep.subr.mxu0 %v8991_v46  ;;  %v14321_v61 = vand.u32 4294901760, %v9394_v30  ;;  %v1706_v34 = vld [vmem:[%s12946_s10 + $0x558] sm:$0xff]  ;;  %v14323_v47 = vand.u32 4294901760, %v9291_v44  ;;  %v3458_v8 = vand.u32 4294901760, %v9465_v22  ;;  %v1705_v46 = vld [vmem:[%s12946_s10 + $0x550] sm:$0xff] }
 0x311   : > { %14319 = vst [vmem:[#allocation103_spill] sm:$0xff] %v9500_v63  ;;  %3405 = vmatpush1.msra.mxu1 %v14320_v18  ;;  %14322 = vst [vmem:[#allocation104_spill] sm:$0xff] %v9515_v3  ;;  %3128 = vmatpush1.msra.mxu0 %v9004_v43  ;;  %v14324_v18 = vand.u32 4294901760, %v9411_v19  ;;  %v14326_v44 = vand.u32 4294901760, %v9321_v10  ;;  %v3464_v22 = vand.u32 4294901760, %v9481_v15  ;;  %v9545_v40 = vsub.f32 %v1722_v5, %v9484_v21  ;;  %v1698_v43 = vld [vmem:[%s12946_s10 + $0x518] sm:$0xff] }
 0x312   : > { %v9512_v17 = vsub.f32 %v9394_v30, %v14321_v61  ;;  %3411 = vmatprep.subr.mxu1 %v14323_v47  ;;  %v9530_v30 = vand.u32 4294901760, %v1714_v4  ;;  %3130 = vmatprep.subr.mxu0 %v9021_v38  ;;  %v14327_v47 = vand.u32 4294901760, %v9426_v36  ;;  %v3470_v10 = vand.u32 4294901760, %v9496_v27 }
 0x313   : > { %v9527_v61 = vsub.f32 %v9411_v19, %v14324_v18  ;;  %3417 = vmatpush1.msra.mxu1 %v14326_v44  ;;  %14328 = vst [vmem:[#allocation106_spill] sm:$0xff] %v9545_v40  ;;  %v9547_v19 = vand.u32 4294901760, %v1713_v62  ;;  %3132 = vmatpush1.msra.mxu0 %v9034_v53  ;;  %v14330_v15 = vand.u32 4294901760, %v9438_v16  ;;  %v9560_v5 = vand.u32 4294901760, %v1706_v34 }
 0x314   : > { %14325 = vst [vmem:[#allocation105_spill] sm:$0xff] %v9530_v30  ;;  %v9542_v18 = vsub.f32 %v9426_v36, %v14327_v47  ;;  %3423 = vmatprep.subr.mxu1 %v3422_v49  ;;  %v1697_v36 = vld [vmem:[%s12946_s10 + $0x510] sm:$0xff]  ;;  %3134 = vmatprep.subr.mxu0 %v9047_v52  ;;  %v3476_v49 = vand.u32 4294901760, %v9512_v17  ;;  %v14332_v27 = vand.u32 4294901760, %v9456_v25  ;;  %v9575_v47 = vand.u32 4294901760, %v1705_v46 }
 0x315   : > { %14329 = vst [vmem:[#allocation107_spill] sm:$0xff] %v9547_v19  ;;  %v9557_v44 = vsub.f32 %v9438_v16, %v14330_v15  ;;  %14331 = vst [vmem:[#allocation108_spill] sm:$0xff] %v9560_v5  ;;  %3429 = vmatpush2.msra.mxu1 %v3428_v41  ;;  %v9573_v15 = vsub.f32 %v1721_v1, %v9515_v3  ;;  %v1690_v16 = vld [vmem:[%s12946_s10 + $0x4d8] sm:$0xff]  ;;  %3136 = vmatpush1.msra.mxu0 %v9065_v60  ;;  %v3482_v41 = vand.u32 4294901760, %v9527_v61 }
 0x316   : > { %v9570_v53 = vsub.f32 %v9456_v25, %v14332_v27  ;;  %3435 = vmatprep.subr.mxu1 %v3434_v12  ;;  %v14334_v17 = vand.u32 4294901760, %v9469_v31  ;;  %v9588_v27 = vsub.f32 %v1714_v4, %v9530_v30  ;;  %v9590_v1 = vand.u32 4294901760, %v1698_v43  ;;  %v1689_v25 = vld [vmem:[%s12946_s10 + $0x4d0] sm:$0xff]  ;;  %3138 = vmatprep.subr.mxu0 %v9078_v14  ;;  %v1682_v4 = vld [vmem:[%s12946_s10 + $0x498] sm:$0xff] }
 0x317   : > { %14333 = vst [vmem:[#allocation109_spill] sm:$0xff] %v9573_v15  ;;  %3441 = vmatpush2.msra.mxu1 %v3440_v20  ;;  %v3488_v12 = vand.u32 4294901760, %v9542_v18  ;;  %v9599_v60 = vsub.f32 %v1713_v62, %v9547_v19  ;;  %3140 = vmatpush1.msra.mxu0 %v9093_v29  ;;  %v3494_v20 = vand.u32 4294901760, %v9557_v44  ;;  %v9614_v61 = vsub.f32 %v1706_v34, %v9560_v5  ;;  %v1681_v14 = vld [vmem:[%s12946_s10 + $0x490] sm:$0xff]  ;;  %v1674_v34 = vld [vmem:[%s12946_s10 + $0x458] sm:$0xff] }
 0x318   : > { %v9585_v52 = vsub.f32 %v9469_v31, %v14334_v17  ;;  %14335 = vst [vmem:[#allocation110_spill] sm:$0xff] %v9588_v27  ;;  %v9601_v17 = vand.u32 4294901760, %v1697_v36  ;;  %3447 = vmatprep.subr.mxu1 %v3446_v51  ;;  %v14337_v31 = vand.u32 4294901760, %v9500_v63  ;;  %v9616_v62 = vand.u32 4294901760, %v1690_v16  ;;  %3142 = vmatprep.subr.mxu0 %v9111_v24  ;;  %v1666_v24 = vld [vmem:[%s12946_s10 + $0x418] sm:$0xff] }
 0x319   : > { %14336 = vst [vmem:[#allocation111_spill] sm:$0xff] %v9599_v60  ;;  %3453 = vmatpush2.msra.mxu1 %v3452_v54  ;;  %v3500_v51 = vand.u32 4294901760, %v9570_v53  ;;  %v9625_v29 = vsub.f32 %v1705_v46, %v9575_v47  ;;  %3144 = vmatpush1.msra.mxu0 %v9140_v7  ;;  %v9636_v53 = vsub.f32 %v1698_v43, %v9590_v1  ;;  %v9638_v44 = vand.u32 4294901760, %v1682_v4  ;;  %v1673_v46 = vld [vmem:[%s12946_s10 + $0x450] sm:$0xff] }
 0x31a   : > { %v9611_v18 = vsub.f32 %v9500_v63, %v14337_v31  ;;  %v9627_v31 = vand.u32 4294901760, %v1689_v25  ;;  %3459 = vmatprep.subr.mxu1 %v3458_v8  ;;  %v3506_v54 = vand.u32 4294901760, %v9585_v52  ;;  %3146 = vmatprep.subr.mxu0 %v9185_v59  ;;  %v14339_v8 = vand.u32 4294901760, %v9545_v40 }
 0x31b   : > { %14338 = vst [vmem:[#allocation112_spill] sm:$0xff] %v9625_v29  ;;  %3465 = vmatpush2.msra.mxu1 %v3464_v22  ;;  %v9649_v63 = vsub.f32 %v1697_v36, %v9601_v17  ;;  %v9651_v43 = vand.u32 4294901760, %v1681_v14  ;;  %3148 = vmatpush2.msra.mxu0 %v9215_v28  ;;  %v9662_v52 = vand.u32 4294901760, %v1674_v34  ;;  %v1665_v36 = vld [vmem:[%s12946_s10 + $0x410] sm:$0xff]  ;;  %v14341_v28 = vand.u32 4294901760, %v9588_v27 }
 0x31c   : > { %v3517_v7 = vsub.f32 %v9545_v40, %v14339_v8  ;;  %3471 = vmatprep.subr.mxu1 %v3470_v10  ;;  %v3512_v22 = vand.u32 4294901760, %v9611_v18  ;;  %v9660_v8 = vsub.f32 %v1690_v16, %v9616_v62  ;;  %3150 = vmatprep.subr.mxu0 %v9230_v32  ;;  %v14340_v10 = vand.u32 4294901760, %v9573_v15 }
 0x31d   : > { %3477 = vmatpush2.msra.mxu1 %v3476_v49  ;;  %v9673_v59 = vsub.f32 %v1689_v25, %v9627_v31  ;;  %v9675_v16 = vand.u32 4294901760, %v1673_v46  ;;  %3152 = vmatpush2.msra.mxu0 %v9247_v26  ;;  %v3529_v49 = vsub.f32 %v9588_v27, %v14341_v28  ;;  %v9683_v38 = vsub.f32 %v1682_v4, %v9638_v44 }
 0x31e   : > { %v3523_v40 = vsub.f32 %v9573_v15, %v14340_v10  ;;  %3483 = vmatprep.subr.mxu1 %v3482_v41  ;;  %v9685_v10 = vand.u32 4294901760, %v1666_v24  ;;  %3154 = vmatprep.subr.mxu0 %v9262_v42  ;;  %v14343_v25 = vand.u32 4294901760, %v9599_v60  ;;  %v9693_v15 = vsub.f32 %v1681_v14, %v9651_v43 }
 0x31f   : > { %14342 = vst [vmem:[#allocation113_spill] sm:$0xff] %v9683_v38  ;;  %3489 = vmatpush2.msra.mxu1 %v3488_v12  ;;  %v9695_v28 = vand.u32 4294901760, %v1665_v36  ;;  %3156 = vmatpush2.msra.mxu0 %v9279_v39  ;;  %v3518_v4 = vand.u32 4294901760, %v3517_v7  ;;  %v14345_v32 = vand.u32 4294901760, %v9614_v61  ;;  %v9703_v42 = vsub.f32 %v1674_v34, %v9662_v52 }
 0x320   : > { %v3535_v41 = vsub.f32 %v9599_v60, %v14343_v25  ;;  %14344 = vst [vmem:[#allocation114_spill] sm:$0xff] %v9693_v15  ;;  %3495 = vmatprep.subr.mxu1 %v3494_v20  ;;  %3158 = vmatprep.subr.mxu0 %v9296_v9  ;;  %v3524_v14 = vand.u32 4294901760, %v3523_v40  ;;  %v14347_v25 = vand.u32 4294901760, %v9625_v29  ;;  %v9711_v7 = vsub.f32 %v1673_v46, %v9675_v16 }
 0x321   : > { %v3541_v12 = vsub.f32 %v9614_v61, %v14345_v32  ;;  %14346 = vst [vmem:[#allocation115_spill] sm:$0xff] %v9703_v42  ;;  %3501 = vmatpush2.msra.mxu1 %v3500_v51  ;;  %3160 = vmatpush2.msra.mxu0 %v9309_v33  ;;  %v3530_v32 = vand.u32 4294901760, %v3529_v49  ;;  %v14349_v34 = vand.u32 4294901760, %v9636_v53  ;;  %v9719_v40 = vsub.f32 %v1666_v24, %v9685_v10 }
 0x322   : > { %v3547_v20 = vsub.f32 %v9625_v29, %v14347_v25  ;;  %14348 = vst [vmem:[#allocation116_spill] sm:$0xff] %v9711_v7  ;;  %3507 = vmatprep.subr.mxu1 %v3506_v54  ;;  %3162 = vmatprep.subr.mxu0 %v9326_v11  ;;  %v3536_v25 = vand.u32 4294901760, %v3535_v41  ;;  %v14351_v46 = vand.u32 4294901760, %v9649_v63  ;;  %v9727_v49 = vsub.f32 %v1665_v36, %v9695_v28 }
 0x323   : > { %v3553_v51 = vsub.f32 %v9636_v53, %v14349_v34  ;;  %14350 = vst [vmem:[#allocation117_spill] sm:$0xff] %v9719_v40  ;;  %3513 = vmatpush2.msra.mxu1 %v3512_v22  ;;  %3164 = vmatpush2.msra.mxu0 %v9339_v57  ;;  %v3542_v34 = vand.u32 4294901760, %v3541_v12  ;;  %v14353_v24 = vand.u32 4294901760, %v9660_v8  ;;  %v14355_v12 = vand.u32 4294901760, %v9683_v38 }
 0x324   : > { %v3559_v54 = vsub.f32 %v9649_v63, %v14351_v46  ;;  %14352 = vst [vmem:[#allocation118_spill] sm:$0xff] %v9727_v49  ;;  %3519 = vmatprep.subr.mxu1 %v3518_v4  ;;  %3166 = vmatprep.subr.mxu0 %v9352_v13  ;;  %v3548_v41 = vand.u32 4294901760, %v3547_v20  ;;  %v14354_v46 = vand.u32 4294901760, %v9673_v59  ;;  %v14356_v20 = vand.u32 4294901760, %v9693_v15 }
 0x325   : > { %v3565_v22 = vsub.f32 %v9660_v8, %v14353_v24  ;;  %3525 = vmatpush2.msra.mxu1 %v3524_v14  ;;  %3168 = vmatpush2.msra.mxu0 %v9369_v50  ;;  %v3554_v4 = vand.u32 4294901760, %v3553_v51  ;;  %v3577_v24 = vsub.f32 %v9683_v38, %v14355_v12  ;;  %v13359_v36 = vand.u32 4294901760, %v9727_v49 }
 0x326   : > { %v3571_v18 = vsub.f32 %v9673_v59, %v14354_v46  ;;  %3531 = vmatprep.subr.mxu1 %v3530_v32  ;;  %3170 = vmatprep.subr.mxu0 %v9382_v55  ;;  %v3560_v14 = vand.u32 4294901760, %v3559_v54  ;;  %v3583_v46 = vsub.f32 %v9693_v15, %v14356_v20  ;;  %v14357_v51 = vand.u32 4294901760, %v9703_v42 }
 0x327   : > { %3537 = vmatpush2.msra.mxu1 %v3536_v25  ;;  %3172 = vmatpush2.msra.mxu0 %v9396_v0  ;;  %v3566_v32 = vand.u32 4294901760, %v3565_v22  ;;  %v14358_v54 = vand.u32 4294901760, %v9711_v7  ;;  %v3578_v20 = vand.u32 4294901760, %v3577_v24 }
 0x328   : > { %3543 = vmatprep.subr.mxu1 %v3542_v34  ;;  %v3589_v12 = vsub.f32 %v9703_v42, %v14357_v51  ;;  %3174 = vmatprep.subr.mxu0 %v9413_v37  ;;  %v3572_v25 = vand.u32 4294901760, %v3571_v18  ;;  %v14359_v34 = vand.u32 4294901760, %v9719_v40  ;;  %v3584_v51 = vand.u32 4294901760, %v3583_v46  ;;  %v14361_v46 = vld [vmem:[#allocation6_spill] sm:$0xff] }
 0x329   : > { %3549 = vmatpush2.msra.mxu1 %v3548_v41  ;;  %v3595_v27 = vsub.f32 %v9711_v7, %v14358_v54  ;;  %3176 = vmatpush2.msra.mxu0 %v9440_v23  ;;  %v3607_v18 = vsub.f32 %v9727_v49, %v13359_v36  ;;  %v14365_v54 = vld [vmem:[#allocation101_spill] sm:$0xff]  ;;  %v14375_v36 = vld [vmem:[#allocation19_spill] sm:$0xff] }
 0x32a   : > { %3555 = vmatprep.subr.mxu1 %v3554_v4  ;;  %v3601_v22 = vsub.f32 %v9719_v40, %v14359_v34  ;;  %3178 = vmatprep.subr.mxu0 %v9484_v21  ;;  %v3590_v41 = vand.u32 4294901760, %v3589_v12  ;;  %v14363_v12 = vld [vmem:[#allocation10_spill] sm:$0xff]  ;;  %v14367_v34 = vld [vmem:[#allocation12_spill] sm:$0xff] }
 0x32b   : > { %3561 = vmatpush2.msra.mxu1 %v3560_v14  ;;  %3180 = vmatpush2.msra.mxu0 %v9515_v3  ;;  %v3596_v4 = vand.u32 4294901760, %v3595_v27  ;;  %v3608_v14 = vand.u32 4294901760, %v3607_v18  ;;  %v14360_v27 = vld [vmem:[#allocation99_spill] sm:$0xff]  ;;  %v14370_v18 = vld [vmem:[#allocation13_spill] sm:$0xff] }
 0x32c   : > { %3567 = vmatprep.subr.mxu1 %v3566_v32  ;;  %3182 = vmatprep.subr.mxu0 %v9530_v30  ;;  %v3602_v24 = vand.u32 4294901760, %v3601_v22  ;;  %v14362_v32 = vld [vmem:[#allocation8_spill] sm:$0xff]  ;;  %v14368_v22 = vld [vmem:[#allocation7_spill] sm:$0xff] }
 0x32d   : > { %3573 = vmatpush2.msra.mxu1 %v3572_v25  ;;  %3184 = vmatpush2.msra.mxu0 %v9547_v19  ;;  %v14364_v25 = vld [vmem:[#allocation11_spill] sm:$0xff] }
 0x32e   : > { %3579 = vmatprep.subr.mxu1 %v3578_v20  ;;  %3186 = vmatprep.subr.mxu0 %v9560_v5  ;;  %v14366_v20 = vld [vmem:[#allocation5_spill] sm:$0xff] }
 0x32f   : > { %3585 = vmatpush2.msra.mxu1 %v3584_v51  ;;  %3188 = vmatpush2.msra.mxu0 %v9575_v47  ;;  %v14369_v51 = vld [vmem:[#allocation97_spill] sm:$0xff] }
 0x330   : > { %3591 = vmatprep.subr.mxu1 %v3590_v41  ;;  %3190 = vmatprep.subr.mxu0 %v9590_v1  ;;  %v14371_v41 = vld [vmem:[#allocation9_spill] sm:$0xff] }
 0x331   : > { %3597 = vmatpush2.msra.mxu1 %v3596_v4  ;;  %3192 = vmatpush2.msra.mxu0 %v9601_v17  ;;  %v14372_v4 = vld [vmem:[#allocation70_spill] sm:$0xff] }
 0x332   : > { %3603 = vmatprep.subr.mxu1 %v3602_v24  ;;  %3194 = vmatprep.subr.mxu0 %v9616_v62  ;;  %v14373_v24 = vld [vmem:[#allocation17_spill] sm:$0xff] }
 0x333   : > { %3609 = vmatpush2.msra.mxu1 %v3608_v14  ;;  %3196 = vmatpush2.msra.mxu0 %v9627_v31  ;;  %v14374_v14 = vld [vmem:[#allocation73_spill] sm:$0xff] }
 0x334   : > { %3613 = vmatmul.mubr.f32.vlgmr.msra.gmra.mxu1 %v14200_v35  ;;  %3823 = vmatprep.subr.mxu1 %v8638_v6  ;;  %v14378_v35 = vld [vmem:[#allocation3_spill] sm:$0xff] }
 0x335   : > { %3825 = vmatpush1.msra.mxu1 %v8652_v58  ;;  %3953 = vmatprep.mubr.f32.mxu1 %v14360_v27  ;;  %v14377_v27 = vld [vmem:[#allocation21_spill] sm:$0xff] }
 0x336   : > { %3198 = vmatprep.subr.mxu0 %v9638_v44  ;;  %3827 = vmatprep.subr.mxu1 %v8660_v2 }
 0x337   : > { %3200 = vmatpush2.msra.mxu0 %v9651_v43  ;;  %3829 = vmatpush1.msra.mxu1 %v8671_v45 }
 0x338   : > { %3202 = vmatprep.subr.mxu0 %v9662_v52  ;;  %3831 = vmatprep.subr.mxu1 %v14361_v46 }
 0x339   : > { %3204 = vmatpush2.msra.mxu0 %v9675_v16  ;;  %3833 = vmatpush1.msra.mxu1 %v14362_v32 }
 0x33a   : > { %3206 = vmatprep.subr.mxu0 %v9685_v10  ;;  %3835 = vmatprep.subr.mxu1 %v14363_v12 }
 0x33b   : > { %3208 = vmatpush2.msra.mxu0 %v9695_v28  ;;  %3837 = vmatpush1.msra.mxu1 %v14364_v25 }
 0x33c   : > { %3220 = vmatmul.mubr.f32.vlgmr.msra.gmra.mxu0 %v14365_v54  ;;  %3621 = vmatprep.subr.mxu0 %v14366_v20  ;;  %v14376_v54 = vld [vmem:[#allocation79_spill] sm:$0xff] }
 0x33d   : > { %3839 = vmatprep.subr.mxu1 %v14367_v34  ;;  %3624 = vmatpush1.msra.mxu0 %v14368_v22  ;;  %v14379_v22 = vld [vmem:[#allocation52_spill] sm:$0xff] }
 0x33e   : > { %3813 = vmatprep.mubr.f32.mxu0 %v14369_v51  ;;  %3841 = vmatpush1.msra.mxu1 %v14370_v18  ;;  %v14380_v51 = vld [vmem:[#allocation84_spill] sm:$0xff]  ;;  %v14381_v18 = vld [vmem:[#allocation85_spill] sm:$0xff] }
 0x33f   : > { %3627 = vmatprep.subr.mxu0 %v14371_v41  ;;  %3843 = vmatprep.subr.mxu1 %v14372_v4  ;;  %v14382_v41 = vld [vmem:[#allocation89_spill] sm:$0xff]  ;;  %v14383_v4 = vld [vmem:[#allocation75_spill] sm:$0xff] }
 0x340   : > { %3630 = vmatpush1.msra.mxu0 %v14373_v24  ;;  %3845 = vmatpush1.msra.mxu1 %v14374_v14  ;;  %v14384_v24 = vld [vmem:[#allocation4_spill] sm:$0xff]  ;;  %v14385_v14 = vld [vmem:[#allocation81_spill] sm:$0xff] }
 0x341   : > { %3633 = vmatprep.subr.mxu0 %v14375_v36  ;;  %3847 = vmatprep.subr.mxu1 %v14376_v54  ;;  %v14386_v36 = vld [vmem:[#allocation14_spill] sm:$0xff] }
 0x342   : > { %3636 = vmatpush1.msra.mxu0 %v14377_v27  ;;  %3849 = vmatpush1.msra.mxu1 %v14378_v35  ;;  %v14387_v54 = vld [vmem:[#allocation82_spill] sm:$0xff] }
 0x343   : > { %3639 = vmatprep.subr.mxu0 %v14379_v22  ;;  %3851 = vmatprep.subr.mxu1 %v14380_v51  ;;  %v14388_v35 = vld [vmem:[#allocation86_spill] sm:$0xff]  ;;  %v14389_v22 = vld [vmem:[#allocation27_spill] sm:$0xff]  ;;  %v14390_v51 = vld [vmem:[#allocation88_spill] sm:$0xff] }
 0x344   : > { %3642 = vmatpush1.msra.mxu0 %v14381_v18  ;;  %3853 = vmatpush1.msra.mxu1 %v14382_v41  ;;  %v14391_v18 = vld [vmem:[#allocation16_spill] sm:$0xff]  ;;  %v14392_v41 = vld [vmem:[#allocation91_spill] sm:$0xff] }
 0x345   : > { %3645 = vmatprep.subr.mxu0 %v14383_v4  ;;  %3855 = vmatprep.subr.mxu1 %v14384_v24  ;;  %v14393_v24 = vld [vmem:[#allocation93_spill] sm:$0xff] }
 0x346   : > { %3648 = vmatpush1.msra.mxu0 %v14385_v14  ;;  %3857 = vmatpush1.msra.mxu1 %v14386_v36  ;;  %v14394_v14 = vld [vmem:[#allocation20_spill] sm:$0xff]  ;;  %v14395_v36 = vld [vmem:[#allocation23_spill] sm:$0xff] }
 0x347   : > { %3651 = vmatprep.subr.mxu0 %v14387_v54  ;;  %3859 = vmatprep.subr.mxu1 %v14305_v56  ;;  %v14396_v54 = vld [vmem:[#allocation22_spill] sm:$0xff]  ;;  %v14397_v56 = vld [vmem:[#allocation15_spill] sm:$0xff] }
 0x348   : > { %3654 = vmatpush1.msra.mxu0 %v14388_v35  ;;  %3861 = vmatpush1.msra.mxu1 %v14389_v22  ;;  %v14398_v35 = vld [vmem:[#allocation24_spill] sm:$0xff]  ;;  %v14399_v22 = vld [vmem:[#allocation30_spill] sm:$0xff] }
 0x349   : > { %3657 = vmatprep.subr.mxu0 %v14390_v51  ;;  %3863 = vmatprep.subr.mxu1 %v14391_v18  ;;  %v14400_v51 = vld [vmem:[#allocation26_spill] sm:$0xff]  ;;  %v14401_v18 = vld [vmem:[#allocation31_spill] sm:$0xff] }
 0x34a   : > { %3660 = vmatpush1.msra.mxu0 %v14392_v41  ;;  %3865 = vmatpush1.msra.mxu1 %v14317_v48  ;;  %v14402_v41 = vld [vmem:[#allocation28_spill] sm:$0xff]  ;;  %v14403_v48 = vld [vmem:[#allocation33_spill] sm:$0xff] }
 0x34b   : > { %3663 = vmatprep.subr.mxu0 %v14393_v24  ;;  %3867 = vmatprep.subr.mxu1 %v14394_v14  ;;  %v14404_v24 = vld [vmem:[#allocation29_spill] sm:$0xff]  ;;  %v14405_v14 = vld [vmem:[#allocation35_spill] sm:$0xff] }
 0x34c   : > { %3666 = vmatpush1.msra.mxu0 %v14395_v36  ;;  %3869 = vmatpush1.msra.mxu1 %v14396_v54  ;;  %v14406_v36 = vld [vmem:[#allocation32_spill] sm:$0xff]  ;;  %v14407_v54 = vld [vmem:[#allocation37_spill] sm:$0xff] }
 0x34d   : > { %3669 = vmatprep.subr.mxu0 %v14397_v56  ;;  %3871 = vmatprep.subr.mxu1 %v14398_v35  ;;  %v14408_v56 = vld [vmem:[#allocation34_spill] sm:$0xff]  ;;  %v14409_v35 = vld [vmem:[#allocation39_spill] sm:$0xff] }
 0x34e   : > { %3672 = vmatpush1.msra.mxu0 %v14399_v22  ;;  %3873 = vmatpush1.msra.mxu1 %v14400_v51  ;;  %v14410_v22 = vld [vmem:[#allocation36_spill] sm:$0xff]  ;;  %v14411_v51 = vld [vmem:[#allocation42_spill] sm:$0xff] }
 0x34f   : > { %3675 = vmatprep.subr.mxu0 %v14401_v18  ;;  %3875 = vmatprep.subr.mxu1 %v14402_v41  ;;  %v14412_v18 = vld [vmem:[#allocation51_spill] sm:$0xff]  ;;  %v14413_v41 = vld [vmem:[#allocation44_spill] sm:$0xff] }
 0x350   : > { %3678 = vmatpush1.msra.mxu0 %v14403_v48  ;;  %3877 = vmatpush1.msra.mxu1 %v14404_v24  ;;  %v14414_v48 = vld [vmem:[#allocation41_spill] sm:$0xff] }
 0x351   : > { %3681 = vmatprep.subr.mxu0 %v14405_v14  ;;  %3879 = vmatprep.subr.mxu1 %v14406_v36  ;;  %v14415_v24 = vld [vmem:[#allocation45_spill] sm:$0xff]  ;;  %v14416_v14 = vld [vmem:[#allocation43_spill] sm:$0xff]  ;;  %v14417_v36 = vld [vmem:[#allocation46_spill] sm:$0xff] }
 0x352   : > { %3684 = vmatpush1.msra.mxu0 %v14407_v54  ;;  %3881 = vmatpush1.msra.mxu1 %v14408_v56  ;;  %v14418_v54 = vld [vmem:[#allocation58_spill] sm:$0xff]  ;;  %v14419_v56 = vld [vmem:[#allocation48_spill] sm:$0xff] }
 0x353   : > { %3687 = vmatprep.subr.mxu0 %v14409_v35  ;;  %3883 = vmatprep.subr.mxu1 %v14410_v22  ;;  %v14420_v22 = vld [vmem:[#allocation38_spill] sm:$0xff] }
 0x354   : > { %3690 = vmatpush1.msra.mxu0 %v14411_v51  ;;  %3885 = vmatpush1.msra.mxu1 %v14412_v18  ;;  %v14421_v51 = vld [vmem:[#allocation49_spill] sm:$0xff]  ;;  %v14422_v18 = vld [vmem:[#allocation40_spill] sm:$0xff] }
 0x355   : > { %3693 = vmatprep.subr.mxu0 %v14413_v41  ;;  %3887 = vmatprep.subr.mxu1 %v14414_v48  ;;  %v14423_v48 = vld [vmem:[#allocation53_spill] sm:$0xff] }
 0x356   : > { %3696 = vmatpush1.msra.mxu0 %v14415_v24  ;;  %3889 = vmatpush2.msra.mxu1 %v14416_v14  ;;  %v14424_v14 = vld [vmem:[#allocation55_spill] sm:$0xff] }
 0x357   : > { %3699 = vmatprep.subr.mxu0 %v14417_v36  ;;  %3891 = vmatprep.subr.mxu1 %v14418_v54  ;;  %v14425_v54 = vld [vmem:[#allocation47_spill] sm:$0xff] }
 0x358   : > { %3702 = vmatpush1.msra.mxu0 %v14419_v56  ;;  %3893 = vmatpush2.msra.mxu1 %v9247_v26  ;;  %v14426_v26 = vld [vmem:[#allocation61_spill] sm:$0xff] }
 0x359   : > { %3705 = vmatprep.subr.mxu0 %v14420_v22  ;;  %3895 = vmatprep.subr.mxu1 %v14421_v51  ;;  %v14427_v51 = vld [vmem:[#allocation62_spill] sm:$0xff] }
 0x35a   : > { %3708 = vmatpush1.msra.mxu0 %v14422_v18  ;;  %3897 = vmatpush2.msra.mxu1 %v9279_v39  ;;  %v14428_v39 = vld [vmem:[#allocation54_spill] sm:$0xff] }
 0x35b   : > { %3711 = vmatprep.subr.mxu0 %v14423_v48  ;;  %3899 = vmatprep.subr.mxu1 %v9296_v9  ;;  %v14429_v9 = vld [vmem:[#allocation56_spill] sm:$0xff] }
 0x35c   : > { %3714 = vmatpush1.msra.mxu0 %v14424_v14  ;;  %3901 = vmatpush2.msra.mxu1 %v9309_v33  ;;  %v14430_v33 = vld [vmem:[#allocation57_spill] sm:$0xff] }
 0x35d   : > { %3717 = vmatprep.subr.mxu0 %v14425_v54  ;;  %3903 = vmatprep.subr.mxu1 %v9326_v11  ;;  %v14431_v11 = vld [vmem:[#allocation59_spill] sm:$0xff] }
 0x35e   : > { %3720 = vmatpush2.msra.mxu0 %v14426_v26  ;;  %3905 = vmatpush2.msra.mxu1 %v9339_v57  ;;  %v14432_v57 = vld [vmem:[#allocation63_spill] sm:$0xff] }
 0x35f   : > { %3723 = vmatprep.subr.mxu0 %v14427_v51  ;;  %3907 = vmatprep.subr.mxu1 %v9352_v13  ;;  %v14433_v13 = vld [vmem:[#allocation65_spill] sm:$0xff] }
 0x360   : > { %3726 = vmatpush2.msra.mxu0 %v14428_v39  ;;  %3909 = vmatpush2.msra.mxu1 %v9369_v50  ;;  %v14434_v50 = vld [vmem:[#allocation66_spill] sm:$0xff] }
 0x361   : > { %3729 = vmatprep.subr.mxu0 %v14429_v9  ;;  %3911 = vmatprep.subr.mxu1 %v9382_v55  ;;  %v14435_v55 = vld [vmem:[#allocation68_spill] sm:$0xff] }
 0x362   : > { %3732 = vmatpush2.msra.mxu0 %v14430_v33  ;;  %3913 = vmatpush2.msra.mxu1 %v9396_v0  ;;  %v14436_v0 = vld [vmem:[#allocation83_spill] sm:$0xff] }
 0x363   : > { %3735 = vmatprep.subr.mxu0 %v14431_v11  ;;  %3915 = vmatprep.subr.mxu1 %v9413_v37  ;;  %v14437_v37 = vld [vmem:[#allocation72_spill] sm:$0xff] }
 0x364   : > { %3738 = vmatpush2.msra.mxu0 %v14432_v57  ;;  %3917 = vmatpush2.msra.mxu1 %v9440_v23  ;;  %v14438_v23 = vld [vmem:[#allocation90_spill] sm:$0xff] }
 0x365   : > { %3741 = vmatprep.subr.mxu0 %v14433_v13  ;;  %3919 = vmatprep.subr.mxu1 %v9484_v21  ;;  %v14439_v21 = vld [vmem:[#allocation92_spill] sm:$0xff] }
 0x366   : > { %3744 = vmatpush2.msra.mxu0 %v14434_v50  ;;  %3921 = vmatpush2.msra.mxu1 %v9515_v3  ;;  %v14440_v3 = vld [vmem:[#allocation103_spill] sm:$0xff] }
 0x367   : > { %3747 = vmatprep.subr.mxu0 %v14435_v55  ;;  %3923 = vmatprep.subr.mxu1 %v9530_v30  ;;  %v14441_v30 = vld [vmem:[#allocation106_spill] sm:$0xff] }
 0x368   : > { %3750 = vmatpush2.msra.mxu0 %v14436_v0  ;;  %3925 = vmatpush2.msra.mxu1 %v9547_v19  ;;  %v14442_v19 = vld [vmem:[#allocation109_spill] sm:$0xff] }
 0x369   : > { %3753 = vmatprep.subr.mxu0 %v14437_v37  ;;  %3927 = vmatprep.subr.mxu1 %v9560_v5  ;;  %v14443_v5 = vld [vmem:[#allocation110_spill] sm:$0xff] }
 0x36a   : > { %3756 = vmatpush2.msra.mxu0 %v14438_v23  ;;  %3929 = vmatpush2.msra.mxu1 %v9575_v47 }
 0x36b   : > { %3759 = vmatprep.subr.mxu0 %v14439_v21  ;;  %3931 = vmatprep.subr.mxu1 %v9590_v1 }
 0x36c   : > { %3762 = vmatpush2.msra.mxu0 %v14440_v3  ;;  %3933 = vmatpush2.msra.mxu1 %v9601_v17 }
 0x36d   : > { %3765 = vmatprep.subr.mxu0 %v14441_v30  ;;  %3935 = vmatprep.subr.mxu1 %v9616_v62 }
 0x36e   : > { %3768 = vmatpush2.msra.mxu0 %v14442_v19  ;;  %3937 = vmatpush2.msra.mxu1 %v9627_v31 }
 0x36f   : > { %3771 = vmatprep.subr.mxu0 %v14443_v5  ;;  %3939 = vmatprep.subr.mxu1 %v9638_v44 }
 0x370   : > { %3774 = vmatpush2.msra.mxu0 %v9599_v60  ;;  %3941 = vmatpush2.msra.mxu1 %v9651_v43  ;;  %v14444_v60 = vld [vmem:[#allocation98_spill] sm:$0xff] }
 0x371   : > { %3777 = vmatprep.subr.mxu0 %v9614_v61  ;;  %3943 = vmatprep.subr.mxu1 %v9662_v52 }
 0x372   : > { %3780 = vmatpush2.msra.mxu0 %v9625_v29  ;;  %3945 = vmatpush2.msra.mxu1 %v9675_v16  ;;  %v14445_v29 = vld [vmem:[#allocation95_spill] sm:$0xff] }
 0x373   : > { %3783 = vmatprep.subr.mxu0 %v9636_v53  ;;  %3947 = vmatprep.subr.mxu1 %v9685_v10 }
 0x374   : > { %3786 = vmatpush2.msra.mxu0 %v9649_v63  ;;  %3949 = vmatpush2.msra.mxu1 %v9695_v28 }
 0x375   : > { %3789 = vmatprep.subr.mxu0 %v9660_v8  ;;  %3957 = vmatmul.mubr.f32.vlgmr.msra.gmra.mxu1 %v14444_v60  ;;  %v14453_v60 = vld [vmem:[#allocation70_spill] sm:$0xff] }
 0x376   : > { %4229 = vmatprep.subr.mxu1 %v8638_v6  ;;  %3792 = vmatpush2.msra.mxu0 %v9673_v59  ;;  %v14446_v6 = vld [vmem:[#allocation96_spill] sm:$0xff] }
 0x377   : > { %4231 = vmatpush1.msra.mxu1 %v8652_v58  ;;  %4357 = vmatprep.mubr.f32.mxu1 %v14445_v29  ;;  %v14447_v58 = vand.u32 4294901760, %v14366_v20  ;;  %v14457_v20 = vld [vmem:[#allocation19_spill] sm:$0xff] }
 0x378   : > { %3795 = vmatprep.subr.mxu0 %v9683_v38  ;;  %4233 = vmatprep.subr.mxu1 %v8660_v2  ;;  %v14448_v2 = vld [vmem:[#allocation7_spill] sm:$0xff] }
 0x379   : > { %3798 = vmatpush2.msra.mxu0 %v9693_v15  ;;  %4235 = vmatpush1.msra.mxu1 %v8671_v45  ;;  %v14449_v45 = vand.u32 4294901760, %v14448_v2  ;;  %v14460_v2 = vand.u32 4294901760, %v14377_v27 }
 0x37a   : > { %3801 = vmatprep.subr.mxu0 %v9703_v42  ;;  %4237 = vmatprep.subr.mxu1 %v14361_v46  ;;  %v14450_v46 = vld [vmem:[#allocation13_spill] sm:$0xff]  ;;  %v14513_v42 = vand.u32 4294901760, %v14409_v35 }
 0x37b   : > { %3804 = vmatpush2.msra.mxu0 %v9711_v7  ;;  %4239 = vmatpush1.msra.mxu1 %v14362_v32  ;;  %v14451_v32 = vld [vmem:[#allocation9_spill] sm:$0xff]  ;;  %v14509_v7 = vld [vmem:[#allocation32_spill] sm:$0xff] }
 0x37c   : > { %3807 = vmatprep.subr.mxu0 %v9719_v40  ;;  %4241 = vmatprep.subr.mxu1 %v14363_v12  ;;  %v14452_v12 = vand.u32 4294901760, %v14451_v32  ;;  %v14505_v40 = vld [vmem:[#allocation29_spill] sm:$0xff] }
 0x37d   : > { %3810 = vmatpush2.msra.mxu0 %v9727_v49  ;;  %4243 = vmatpush1.msra.mxu1 %v14364_v25  ;;  %v14454_v25 = vld [vmem:[#allocation17_spill] sm:$0xff] }
 0x37e   : > { %3816 = vmatmul.mubr.f32.vlgmr.msra.gmra.mxu0 %v14446_v6  ;;  %3966 = vmatprep.subr.mxu0 %v14447_v58  ;;  %v14455_v49 = vand.u32 4294901760, %v14454_v25  ;;  %v14456_v6 = vld [vmem:[#allocation73_spill] sm:$0xff]  ;;  %v14458_v58 = vand.u32 4294901760, %v14457_v20  ;;  %v14469_v20 = vld [vmem:[#allocation4_spill] sm:$0xff] }
 0x37f   : > { %4245 = vmatprep.subr.mxu1 %v14367_v34  ;;  %3970 = vmatpush1.msra.mxu0 %v14449_v45  ;;  %v14459_v34 = vld [vmem:[#allocation79_spill] sm:$0xff] }
 0x380   : > { %4220 = vmatprep.mubr.f32.mxu0 %v14445_v29  ;;  %4247 = vmatpush1.msra.mxu1 %v14450_v46  ;;  %v14461_v45 = vld [vmem:[#allocation3_spill] sm:$0xff]  ;;  %v14462_v46 = vld [vmem:[#allocation52_spill] sm:$0xff] }
 0x381   : > { %3974 = vmatprep.subr.mxu0 %v14452_v12  ;;  %4249 = vmatprep.subr.mxu1 %v14453_v60  ;;  %v14463_v32 = vand.u32 4294901760, %v14462_v46  ;;  %v14464_v12 = vld [vmem:[#allocation84_spill] sm:$0xff]  ;;  %v14465_v60 = vld [vmem:[#allocation85_spill] sm:$0xff] }
 0x382   : > { %3978 = vmatpush1.msra.mxu0 %v14455_v49  ;;  %4251 = vmatpush1.msra.mxu1 %v14456_v6  ;;  %v14466_v25 = vand.u32 4294901760, %v14465_v60  ;;  %v14467_v49 = vld [vmem:[#allocation89_spill] sm:$0xff]  ;;  %v14468_v6 = vand.u32 4294901760, %v14383_v4  ;;  %v14478_v60 = vld [vmem:[#allocation27_spill] sm:$0xff] }
 0x383   : > { %3982 = vmatprep.subr.mxu0 %v14458_v58  ;;  %4253 = vmatprep.subr.mxu1 %v14459_v34  ;;  %v14470_v58 = vld [vmem:[#allocation81_spill] sm:$0xff]  ;;  %v14472_v34 = vld [vmem:[#allocation14_spill] sm:$0xff] }
 0x384   : > { %3986 = vmatpush1.msra.mxu0 %v14460_v2  ;;  %4255 = vmatpush1.msra.mxu1 %v14461_v45  ;;  %v14471_v27 = vand.u32 4294901760, %v14470_v58  ;;  %v14473_v2 = vld [vmem:[#allocation82_spill] sm:$0xff]  ;;  %v14475_v46 = vld [vmem:[#allocation25_spill] sm:$0xff] }
 0x385   : > { %3990 = vmatprep.subr.mxu0 %v14463_v32  ;;  %4257 = vmatprep.subr.mxu1 %v14464_v12  ;;  %v14474_v45 = vand.u32 4294901760, %v14473_v2  ;;  %v14476_v32 = vld [vmem:[#allocation86_spill] sm:$0xff]  ;;  %v14487_v2 = vld [vmem:[#allocation20_spill] sm:$0xff] }
 0x386   : > { %3994 = vmatpush1.msra.mxu0 %v14466_v25  ;;  %4259 = vmatpush1.msra.mxu1 %v14467_v49  ;;  %v14477_v12 = vand.u32 4294901760, %v14476_v32  ;;  %v14479_v25 = vld [vmem:[#allocation88_spill] sm:$0xff]  ;;  %v14484_v58 = vld [vmem:[#allocation18_spill] sm:$0xff] }
 0x387   : > { %3998 = vmatprep.subr.mxu0 %v14468_v6  ;;  %4261 = vmatprep.subr.mxu1 %v14469_v20  ;;  %v14480_v4 = vand.u32 4294901760, %v14479_v25  ;;  %v14481_v49 = vld [vmem:[#allocation16_spill] sm:$0xff]  ;;  %v14482_v6 = vld [vmem:[#allocation91_spill] sm:$0xff] }
 0x388   : > { %4002 = vmatpush1.msra.mxu0 %v14471_v27  ;;  %4263 = vmatpush1.msra.mxu1 %v14472_v34  ;;  %v14483_v20 = vand.u32 4294901760, %v14482_v6  ;;  %v14485_v27 = vld [vmem:[#allocation93_spill] sm:$0xff]  ;;  %v1660_v32 = vld [vmem:[%s12946_s10 + $0x3e8] sm:$0xff] }
 0x389   : > { %4006 = vmatprep.subr.mxu0 %v14474_v45  ;;  %4265 = vmatprep.subr.mxu1 %v14475_v46  ;;  %v14486_v34 = vand.u32 4294901760, %v14485_v27  ;;  %v14488_v45 = vld [vmem:[#allocation23_spill] sm:$0xff]  ;;  %v14493_v6 = vld [vmem:[#allocation24_spill] sm:$0xff] }
 0x38a   : > { %4010 = vmatpush1.msra.mxu0 %v14477_v12  ;;  %4267 = vmatpush1.msra.mxu1 %v14478_v60  ;;  %v14489_v46 = vand.u32 4294901760, %v14488_v45  ;;  %v14490_v12 = vld [vmem:[#allocation22_spill] sm:$0xff]  ;;  %v14491_v60 = vld [vmem:[#allocation15_spill] sm:$0xff] }
 0x38b   : > { %4014 = vmatprep.subr.mxu0 %v14480_v4  ;;  %4269 = vmatprep.subr.mxu1 %v14481_v49  ;;  %v14492_v25 = vand.u32 4294901760, %v14491_v60  ;;  %v1659_v4 = vld [vmem:[%s12946_s10 + $0x3e0] sm:$0xff]  ;;  %v1652_v49 = vld [vmem:[%s12946_s10 + $0x3a8] sm:$0xff]  ;;  %v14501_v60 = vld [vmem:[#allocation33_spill] sm:$0xff] }
 0x38c   : > { %4018 = vmatpush1.msra.mxu0 %v14483_v20  ;;  %4271 = vmatpush1.msra.mxu1 %v14484_v58  ;;  %v14494_v20 = vld [vmem:[#allocation30_spill] sm:$0xff] }
 0x38d   : > { %4022 = vmatprep.subr.mxu0 %v14486_v34  ;;  %4273 = vmatprep.subr.mxu1 %v14487_v2  ;;  %v14495_v58 = vand.u32 4294901760, %v14494_v20  ;;  %v1651_v27 = vld [vmem:[%s12946_s10 + $0x3a0] sm:$0xff]  ;;  %v9999_v20 = vand.u32 4294901760, %v1652_v49 }
 0x38e   : > { %4026 = vmatpush1.msra.mxu0 %v14489_v46  ;;  %4275 = vmatpush1.msra.mxu1 %v14490_v12  ;;  %v14496_v34 = vld [vmem:[#allocation26_spill] sm:$0xff]  ;;  %v14497_v2 = vld [vmem:[#allocation31_spill] sm:$0xff]  ;;  %v9992_v46 = vand.u32 4294901760, %v1660_v32  ;;  %v14500_v12 = vld [vmem:[#allocation28_spill] sm:$0xff] }
 0x38f   : > { %4030 = vmatprep.subr.mxu0 %v14492_v25  ;;  %4277 = vmatprep.subr.mxu1 %v14493_v6  ;;  %v14498_v45 = vand.u32 4294901760, %v14497_v2  ;;  %v14502_v25 = vand.u32 4294901760, %v14501_v60  ;;  %v9997_v6 = vand.u32 4294901760, %v1659_v4  ;;  %14504 = vst [vmem:[#allocation10_spill] sm:$0xff] %v9999_v20 }
 0x390   : > { %4034 = vmatpush1.msra.mxu0 %v14495_v58  ;;  %4279 = vmatpush1.msra.mxu1 %v14496_v34  ;;  %14499 = vst [vmem:[#allocation6_spill] sm:$0xff] %v9992_v46  ;;  %v1644_v58 = vld [vmem:[%s12946_s10 + $0x368] sm:$0xff]  ;;  %v10016_v15 = vsub.f32 %v1660_v32, %v9992_v46  ;;  %v14524_v46 = vld [vmem:[#allocation41_spill] sm:$0xff] }
 0x391   : > { %4038 = vmatprep.subr.mxu0 %v14498_v45  ;;  %4281 = vmatprep.subr.mxu1 %v14500_v12  ;;  %14503 = vst [vmem:[#allocation8_spill] sm:$0xff] %v9997_v6  ;;  %v14506_v34 = vld [vmem:[#allocation35_spill] sm:$0xff]  ;;  %v10007_v45 = vand.u32 4294901760, %v1651_v27  ;;  %v14510_v12 = vld [vmem:[#allocation37_spill] sm:$0xff]  ;;  %v10018_v38 = vand.u32 4294901760, %v1644_v58  ;;  %v10030_v35 = vsub.f32 %v1659_v4, %v9997_v6 }
 0x392   : > { %4042 = vmatpush1.msra.mxu0 %v14502_v25  ;;  %4283 = vmatpush1.msra.mxu1 %v14505_v40  ;;  %v14507_v2 = vand.u32 4294901760, %v14506_v34  ;;  %v14511_v60 = vand.u32 4294901760, %v14510_v12  ;;  %v14512_v25 = vld [vmem:[#allocation34_spill] sm:$0xff]  ;;  %14514 = vst [vmem:[#allocation5_spill] sm:$0xff] %v10016_v15  ;;  %v14516_v34 = vld [vmem:[#allocation36_spill] sm:$0xff]  ;;  %v14521_v32 = vld [vmem:[#allocation51_spill] sm:$0xff] }
 0x393   : > { %14508 = vst [vmem:[#allocation11_spill] sm:$0xff] %v10007_v45  ;;  %4285 = vmatprep.subr.mxu1 %v14509_v7  ;;  %14515 = vst [vmem:[#allocation12_spill] sm:$0xff] %v10018_v38  ;;  %v1643_v40 = vld [vmem:[%s12946_s10 + $0x360] sm:$0xff]  ;;  %v1636_v7 = vld [vmem:[%s12946_s10 + $0x328] sm:$0xff] }
 0x394   : > { %4046 = vmatprep.subr.mxu0 %v14507_v2  ;;  %4287 = vmatpush1.msra.mxu1 %v14512_v25  ;;  %v14517_v2 = vld [vmem:[#allocation42_spill] sm:$0xff]  ;;  %14519 = vst [vmem:[#allocation21_spill] sm:$0xff] %v10030_v35  ;;  %v10039_v25 = vsub.f32 %v1651_v27, %v10007_v45  ;;  %v10046_v4 = vand.u32 4294901760, %v1636_v7  ;;  %v1604_v45 = vld [vmem:[%s12946_s10 + $0x228] sm:$0xff] }
 0x395   : > { %4050 = vmatpush1.msra.mxu0 %v14511_v60  ;;  %4289 = vmatprep.subr.mxu1 %v14516_v34  ;;  %v14518_v12 = vand.u32 4294901760, %v14517_v2  ;;  %v14522_v60 = vand.u32 4294901760, %v14413_v41  ;;  %v14525_v34 = vand.u32 4294901760, %v14415_v24  ;;  %v10044_v2 = vand.u32 4294901760, %v1643_v40  ;;  %v14531_v27 = vld [vmem:[#allocation58_spill] sm:$0xff] }
 0x396   : > { %4054 = vmatprep.subr.mxu0 %v14513_v42  ;;  %v10033_v42 = vsub.f32 %v1652_v49, %v9999_v20  ;;  %4291 = vmatpush1.msra.mxu1 %v14521_v32  ;;  %14523 = vst [vmem:[#allocation39_spill] sm:$0xff] %v10039_v25  ;;  %14527 = vst [vmem:[#allocation45_spill] sm:$0xff] %v10046_v4  ;;  %v14529_v49 = vand.u32 4294901760, %v14417_v36  ;;  %v13390_v41 = vand.u32 4294901760, %v10016_v15  ;;  %v13391_v24 = vand.u32 4294901760, %v10030_v35 }
 0x397   : > { %4058 = vmatpush1.msra.mxu0 %v14518_v12  ;;  %4293 = vmatprep.subr.mxu1 %v14524_v46  ;;  %14526 = vst [vmem:[#allocation44_spill] sm:$0xff] %v10044_v2  ;;  %v14528_v12 = vld [vmem:[#allocation43_spill] sm:$0xff]  ;;  %v10053_v32 = vsub.f32 %v1644_v58, %v10018_v38  ;;  %v14532_v46 = vand.u32 4294901760, %v14419_v56  ;;  %v14536_v56 = vand.u32 4294901760, %v14422_v18  ;;  %v2330_v38 = vpop.f32.mrf.mxu1 }
 0x398   : > { %14520 = vst [vmem:[#allocation75_spill] sm:$0xff] %v10033_v42  ;;  %4062 = vmatprep.subr.mxu0 %v14522_v60  ;;  %4295 = vmatpush2.msra.mxu1 %v14528_v12  ;;  %v13392_v60 = vand.u32 4294901760, %v10033_v42  ;;  %v14534_v12 = vand.u32 4294901760, %v14420_v22  ;;  %v1635_v58 = vld [vmem:[%s12946_s10 + $0x320] sm:$0xff]  ;;  %v10082_v36 = vsub.f32 %v10016_v15, %v13390_v41  ;;  %v1628_v18 = vld [vmem:[%s12946_s10 + $0x2e8] sm:$0xff]  ;;  %v14549_v15 = vld [vmem:[#allocation69_spill] sm:$0xff] }
 0x399   : > { %4066 = vmatpush1.msra.mxu0 %v14525_v34  ;;  %14530 = vst [vmem:[#allocation46_spill] sm:$0xff] %v10053_v32  ;;  %4297 = vmatprep.subr.mxu1 %v14531_v27  ;;  %v14533_v34 = vld [vmem:[#allocation60_spill] sm:$0xff]  ;;  %v14535_v27 = vld [vmem:[#allocation49_spill] sm:$0xff]  ;;  %v14539_v22 = vld [vmem:[#allocation50_spill] sm:$0xff] }
 0x39a   : > { %4070 = vmatprep.subr.mxu0 %v14529_v49  ;;  %4299 = vmatpush2.msra.mxu1 %v14533_v34  ;;  %v1937_v49 = vpop.f32.mrf.mxu0  ;;  %v10074_v34 = vsub.f32 %v1636_v7, %v10046_v4  ;;  %v14542_v7 = vld [vmem:[#allocation64_spill] sm:$0xff]  ;;  %v1627_v41 = vld [vmem:[%s12946_s10 + $0x2e0] sm:$0xff]  ;;  %v14550_v4 = vand.u32 4294901760, %v14426_v26  ;;  %v14554_v26 = vand.u32 4294901760, %v10053_v32 }
 0x39b   : > { %4074 = vmatpush1.msra.mxu0 %v14532_v46  ;;  %4301 = vmatprep.subr.mxu1 %v14535_v27  ;;  %v10071_v46 = vsub.f32 %v1643_v40, %v10044_v2  ;;  %v10088_v40 = vpop.permute.xlu1 %1794  ;;  %v1611_v2 = vld [vmem:[%s12946_s10 + $0x260] sm:$0xff] }
 0x39c   : > { %4078 = vmatprep.subr.mxu0 %v14534_v12  ;;  %14538 = vst [vmem:[#allocation38_spill] sm:$0xff] %v10074_v34  ;;  %4303 = vmatpush2.msra.mxu1 %v14539_v22  ;;  %v14540_v12 = vand.u32 4294901760, %v14423_v48  ;;  %14541 = vst [vmem:[#allocation40_spill] sm:$0xff] %v10088_v40  ;;  %v10096_v48 = vsub.f32 %v10030_v35, %v13391_v24  ;;  %v10101_v22 = vsub.f32 %v10033_v42, %v13392_v60  ;;  %v1619_v42 = vld [vmem:[%s12946_s10 + $0x2a0] sm:$0xff]  ;;  %v1939_v35 = vpop.f32.mrf.mxu0 }
 0x39d   : > { %4082 = vmatpush1.msra.mxu0 %v14536_v56  ;;  %14537 = vst [vmem:[#allocation48_spill] sm:$0xff] %v10071_v46  ;;  %4305 = vmatprep.subr.mxu1 %v14542_v7  ;;  %v14543_v56 = vand.u32 4294901760, %v14424_v14  ;;  %v1620_v14 = vld [vmem:[%s12946_s10 + $0x2a8] sm:$0xff]  ;;  %v1938_v7 = vadd.f32 %v1937_v49, %v10088_v40  ;;  %v14546_v24 = vand.u32 4294901760, %v14425_v54  ;;  %v14547_v60 = vand.u32 4294901760, %v10039_v25 }
 0x39e   : > { %4086 = vmatprep.subr.mxu0 %v14540_v12  ;;  %v10103_v12 = vand.u32 4294901760, %v1635_v58  ;;  %v10142_v49 = vand.u32 4294901760, %v1627_v41  ;;  %v10144_v54 = vand.u32 4294901760, %v1620_v14  ;;  %v1940_v20 = vadd.f32 %v1939_v35, %v10088_v40  ;;  %v14564_v35 = vld [vmem:[#allocation77_spill] sm:$0xff] }
 0x39f   : > { %4090 = vmatpush1.msra.mxu0 %v14543_v56  ;;  %v14545_v56 = vld [vmem:[#allocation67_spill] sm:$0xff]  ;;  %v10118_v27 = vsub.f32 %v10039_v25, %v14547_v60  ;;  %v14553_v25 = vand.u32 4294901760, %v14427_v51  ;;  %v14558_v51 = vand.u32 4294901760, %v14428_v39  ;;  %v10163_v6 = vadd.f32 %v2330_v38, %v1938_v7 }
 0x3a0   : > { %14544 = vst [vmem:[#allocation53_spill] sm:$0xff] %v10103_v12  ;;  %4307 = vmatpush2.msra.mxu1 %v14545_v56  ;;  %4094 = vmatprep.subr.mxu0 %v14546_v24  ;;  %v10128_v24 = vand.u32 4294901760, %v1628_v18  ;;  %v1612_v60 = vld [vmem:[%s12946_s10 + $0x268] sm:$0xff]  ;;  %14555 = vst [vmem:[#allocation61_spill] sm:$0xff] %v10142_v49  ;;  %v14562_v39 = vand.u32 4294901760, %v14429_v9  ;;  %v14565_v38 = vand.u32 4294901760, %v14430_v33 }
 0x3a1   : > { %14548 = vst [vmem:[#allocation55_spill] sm:$0xff] %v10118_v27  ;;  %4309 = vmatprep.subr.mxu1 %v14549_v15  ;;  %4098 = vmatpush2.msra.mxu0 %v14550_v4  ;;  %v14552_v56 = vld [vmem:[#allocation71_spill] sm:$0xff]  ;;  %v10140_v4 = vsub.f32 %v10053_v32, %v14554_v26  ;;  %14556 = vst [vmem:[#allocation62_spill] sm:$0xff] %v10144_v54  ;;  %v10155_v26 = vsub.f32 %v1635_v58, %v10103_v12  ;;  %v10157_v32 = vand.u32 4294901760, %v1619_v42  ;;  %v14575_v12 = vld [vmem:[#allocation80_spill] sm:$0xff] }
 0x3a2   : > { %14551 = vst [vmem:[#allocation47_spill] sm:$0xff] %v10128_v24  ;;  %4311 = vmatpush2.msra.mxu1 %v14552_v56  ;;  %4102 = vmatprep.subr.mxu0 %v14553_v25  ;;  %v14557_v56 = vld [vmem:[#allocation74_spill] sm:$0xff]  ;;  %v10169_v15 = vand.u32 4294901760, %v1612_v60  ;;  %v1596_v25 = vld [vmem:[%s12946_s10 + $0x1e8] sm:$0xff]  ;;  %v14566_v9 = vand.u32 4294901760, %v10071_v46  ;;  %v10193_v40 = vand.u32 4294901760, %v1611_v2 }
 0x3a3   : > { %4313 = vmatprep.subr.mxu1 %v14557_v56  ;;  %4106 = vmatpush2.msra.mxu0 %v14558_v51  ;;  %14559 = vst [vmem:[#allocation54_spill] sm:$0xff] %v10155_v26  ;;  %14560 = vst [vmem:[#allocation56_spill] sm:$0xff] %v10157_v32  ;;  %v14561_v56 = vld [vmem:[#allocation76_spill] sm:$0xff]  ;;  %v1603_v58 = vld [vmem:[%s12946_s10 + $0x220] sm:$0xff]  ;;  %v10191_v51 = vsub.f32 %v1628_v18, %v10128_v24  ;;  %v10206_v18 = vsub.f32 %v1627_v41, %v10142_v49  ;;  %v2332_v24 = vpop.f32.mrf.mxu1  ;;  %v14576_v27 = vand.u32 4294901760, %v14432_v57 }
 0x3a4   : > { %4315 = vmatpush2.msra.mxu1 %v14561_v56  ;;  %4110 = vmatprep.subr.mxu0 %v14562_v39  ;;  %14563 = vst [vmem:[#allocation57_spill] sm:$0xff] %v10169_v15  ;;  %v10183_v7 = vsub.f32 %v10071_v46, %v14566_v9  ;;  %v14567_v56 = vand.u32 4294901760, %v10074_v34  ;;  %14569 = vst [vmem:[#allocation63_spill] sm:$0xff] %v10193_v40  ;;  %v1595_v33 = vld [vmem:[%s12946_s10 + $0x1e0] sm:$0xff]  ;;  %v14571_v9 = vand.u32 4294901760, %v14431_v11  ;;  %v10211_v46 = vand.u32 4294901760, %v1604_v45 }
 0x3a5   : > { %4317 = vmatprep.subr.mxu1 %v14564_v35  ;;  %4114 = vmatpush2.msra.mxu0 %v14565_v38  ;;  %14568 = vst [vmem:[#allocation59_spill] sm:$0xff] %v10191_v51  ;;  %v1588_v35 = vld [vmem:[%s12946_s10 + $0x1a8] sm:$0xff]  ;;  %v14570_v38 = vld [vmem:[#allocation78_spill] sm:$0xff]  ;;  %14572 = vst [vmem:[#allocation65_spill] sm:$0xff] %v10206_v18  ;;  %v10218_v11 = vsub.f32 %v1619_v42, %v10157_v32  ;;  %v10222_v41 = vand.u32 4294901760, %v1596_v25  ;;  %v14581_v57 = vand.u32 4294901760, %v14433_v13 }
 0x3a6   : > { %v10188_v39 = vsub.f32 %v10074_v34, %v14567_v56  ;;  %4319 = vmatpush2.msra.mxu1 %v14570_v38  ;;  %4118 = vmatprep.subr.mxu0 %v14571_v9  ;;  %v10209_v34 = vsub.f32 %v1620_v14, %v10144_v54  ;;  %14574 = vst [vmem:[#allocation68_spill] sm:$0xff] %v10211_v46  ;;  %v10220_v9 = vand.u32 4294901760, %v1603_v58  ;;  %v1587_v14 = vld [vmem:[%s12946_s10 + $0x1a0] sm:$0xff]  ;;  %v10235_v42 = vand.u32 4294901760, %v1595_v33  ;;  %v1580_v38 = vld [vmem:[%s12946_s10 + $0x168] sm:$0xff] }
 0x3a7   : > { %4321 = vmatprep.subr.mxu1 %v14575_v12  ;;  %4122 = vmatpush2.msra.mxu0 %v14576_v27  ;;  %14577 = vst [vmem:[#allocation83_spill] sm:$0xff] %v10218_v11  ;;  %14579 = vst [vmem:[#allocation90_spill] sm:$0xff] %v10222_v41  ;;  %v10227_v56 = vadd.f32 %v2332_v24, %v1940_v20  ;;  %v14580_v54 = vld [vmem:[#allocation87_spill] sm:$0xff]  ;;  %v10233_v27 = vsub.f32 %v1612_v60, %v10169_v15  ;;  %v10237_v12 = vand.u32 4294901760, %v1588_v35  ;;  %v14585_v32 = vld [vmem:[#allocation102_spill] sm:$0xff] }
 0x3a8   : > { %14573 = vst [vmem:[#allocation66_spill] sm:$0xff] %v10209_v34  ;;  %14578 = vst [vmem:[#allocation72_spill] sm:$0xff] %v10220_v9  ;;  %4323 = vmatpush2.msra.mxu1 %v14580_v54  ;;  %4126 = vmatprep.subr.mxu0 %v14581_v57  ;;  %v14586_v20 = vand.u32 4294901760, %v14434_v50  ;;  %v10249_v60 = vsub.f32 %v1611_v2, %v10193_v40  ;;  %v14588_v57 = vld [vmem:[#allocation104_spill] sm:$0xff]  ;;  %v14589_v15 = vand.u32 4294901760, %v14435_v55  ;;  %v1579_v13 = vld [vmem:[%s12946_s10 + $0x160] sm:$0xff] }
 0x3a9   : > { %14582 = vst [vmem:[#allocation92_spill] sm:$0xff] %v10233_v27  ;;  %14583 = vst [vmem:[#allocation103_spill] sm:$0xff] %v10235_v42  ;;  %4325 = vmatprep.subr.mxu1 %v14585_v32  ;;  %v10257_v50 = vsub.f32 %v1604_v45, %v10211_v46  ;;  %v1572_v2 = vld [vmem:[%s12946_s10 + $0x128] sm:$0xff]  ;;  %v14593_v55 = vand.u32 4294901760, %v14436_v0  ;;  %v10272_v45 = vsub.f32 %v1603_v58, %v10220_v9  ;;  %v10277_v32 = vand.u32 4294901760, %v1580_v38 }
 0x3aa   : > { %14584 = vst [vmem:[#allocation106_spill] sm:$0xff] %v10237_v12  ;;  %4130 = vmatpush2.msra.mxu0 %v14586_v20  ;;  %14587 = vst [vmem:[#allocation109_spill] sm:$0xff] %v10249_v60  ;;  %4327 = vmatpush2.msra.mxu1 %v14588_v57  ;;  %v10259_v20 = vand.u32 4294901760, %v1587_v14  ;;  %v14592_v57 = vld [vmem:[#allocation105_spill] sm:$0xff]  ;;  %v10275_v54 = vsub.f32 %v1596_v25, %v10222_v41  ;;  %v14597_v49 = vld [vmem:[#allocation107_spill] sm:$0xff]  ;;  %v14598_v24 = vand.u32 4294901760, %v14437_v37 }
 0x3ab   : > { %4134 = vmatprep.subr.mxu0 %v14589_v15  ;;  %14590 = vst [vmem:[#allocation110_spill] sm:$0xff] %v10257_v50  ;;  %4329 = vmatprep.subr.mxu1 %v14592_v57  ;;  %14594 = vst [vmem:[#allocation13_spill] sm:$0xff] %v10272_v45  ;;  %v14599_v57 = vand.u32 4294901760, %v10155_v26  ;;  %v10289_v58 = vsub.f32 %v1595_v33, %v10235_v42  ;;  %v10292_v25 = vsub.f32 %v1588_v35, %v10237_v12  ;;  %v14602_v15 = vld [vmem:[#allocation108_spill] sm:$0xff]  ;;  %v1571_v33 = vld [vmem:[%s12946_s10 + $0x120] sm:$0xff] }
 0x3ac   : > { %14591 = vst [vmem:[#allocation7_spill] sm:$0xff] %v10259_v20  ;;  %4138 = vmatpush2.msra.mxu0 %v14593_v55  ;;  %14595 = vst [vmem:[#allocation9_spill] sm:$0xff] %v10275_v54  ;;  %4331 = vmatpush2.msra.mxu1 %v14597_v49  ;;  %v14603_v49 = vand.u32 4294901760, %v14438_v23  ;;  %v14604_v37 = vand.u32 4294901760, %v10191_v51  ;;  %v10305_v55 = vand.u32 4294901760, %v1572_v2  ;;  %v14607_v23 = vand.u32 4294901760, %v14439_v21 }
 0x3ad   : > { %14596 = vst [vmem:[#allocation70_spill] sm:$0xff] %v10277_v32  ;;  %4142 = vmatprep.subr.mxu0 %v14598_v24  ;;  %v10285_v0 = vsub.f32 %v10155_v26, %v14599_v57  ;;  %14600 = vst [vmem:[#allocation17_spill] sm:$0xff] %v10289_v58  ;;  %4333 = vmatprep.subr.mxu1 %v14602_v15  ;;  %v10303_v26 = vand.u32 4294901760, %v1579_v13  ;;  %v14608_v35 = vand.u32 4294901760, %v10206_v18  ;;  %v13440_v57 = vand.u32 4294901760, %v10257_v50 }
 0x3ae   : > { %14601 = vst [vmem:[#allocation73_spill] sm:$0xff] %v10292_v25  ;;  %4146 = vmatpush2.msra.mxu0 %v14603_v49  ;;  %v10300_v24 = vsub.f32 %v10191_v51, %v14604_v37  ;;  %14606 = vst [vmem:[#allocation79_spill] sm:$0xff] %v10305_v55  ;;  %4335 = vmatpush2.msra.mxu1 %v9575_v47  ;;  %v14609_v49 = vand.u32 4294901760, %v10209_v34  ;;  %v10325_v51 = vsub.f32 %v1587_v14, %v10259_v20 }
 0x3af   : > { %14605 = vst [vmem:[#allocation19_spill] sm:$0xff] %v10303_v26  ;;  %4150 = vmatprep.subr.mxu0 %v14607_v23  ;;  %v10316_v15 = vsub.f32 %v10206_v18, %v14608_v35  ;;  %4337 = vmatprep.subr.mxu1 %v9590_v1  ;;  %v14611_v21 = vand.u32 4294901760, %v14440_v3  ;;  %v14612_v47 = vand.u32 4294901760, %v10218_v11  ;;  %v14614_v14 = vand.u32 4294901760, %v14441_v30 }
 0x3b0   : > { %v10321_v37 = vsub.f32 %v10209_v34, %v14609_v49  ;;  %14610 = vst [vmem:[#allocation3_spill] sm:$0xff] %v10325_v51  ;;  %v10338_v34 = vsub.f32 %v1580_v38, %v10277_v32  ;;  %4339 = vmatpush2.msra.mxu1 %v9601_v17  ;;  %v14615_v3 = vand.u32 4294901760, %v10233_v27  ;;  %v10350_v35 = vand.u32 4294901760, %v1571_v33  ;;  %v2533_v49 = vpop.f32.mrf.mxu0 }
 0x3b1   : > { %4154 = vmatpush2.msra.mxu0 %v14611_v21  ;;  %v10333_v23 = vsub.f32 %v10218_v11, %v14612_v47  ;;  %v13441_v21 = vand.u32 4294901760, %v10289_v58  ;;  %4341 = vmatprep.subr.mxu1 %v9616_v62  ;;  %v14617_v38 = vand.u32 4294901760, %v14442_v19  ;;  %v14618_v17 = vand.u32 4294901760, %v10249_v60  ;;  %v14658_v11 = vld [vmem:[#allocation55_spill] sm:$0xff] }
 0x3b2   : > { %14613 = vst [vmem:[#allocation52_spill] sm:$0xff] %v10338_v34  ;;  %4158 = vmatprep.subr.mxu0 %v14614_v14  ;;  %v10346_v1 = vsub.f32 %v10233_v27, %v14615_v3  ;;  %14616 = vst [vmem:[#allocation84_spill] sm:$0xff] %v10350_v35  ;;  %v10362_v3 = vsub.f32 %v1579_v13, %v10303_v26  ;;  %v10365_v47 = vsub.f32 %v1572_v2, %v10305_v55  ;;  %v14622_v2 = vld [vmem:[#allocation111_spill] sm:$0xff] }
 0x3b3   : > { %4162 = vmatpush2.msra.mxu0 %v14617_v38  ;;  %v10359_v14 = vsub.f32 %v10249_v60, %v14618_v17  ;;  %4343 = vmatpush2.msra.mxu1 %v9627_v31  ;;  %v14621_v62 = vand.u32 4294901760, %v14443_v5  ;;  %v10375_v17 = vsub.f32 %v10257_v50, %v13440_v57  ;;  %v14623_v30 = vand.u32 4294901760, %v14622_v2  ;;  %v14629_v2 = vld [vmem:[#allocation112_spill] sm:$0xff]  ;;  %v14648_v50 = vld [vmem:[#allocation113_spill] sm:$0xff] }
 0x3b4   : > { %14619 = vst [vmem:[#allocation85_spill] sm:$0xff] %v10362_v3  ;;  %14620 = vst [vmem:[#allocation89_spill] sm:$0xff] %v10365_v47  ;;  %4345 = vmatprep.subr.mxu1 %v9638_v44  ;;  %v14624_v5 = vand.u32 4294901760, %v10272_v45  ;;  %v14625_v38 = vand.u32 4294901760, %v10275_v54  ;;  %v1564_v44 = vld [vmem:[%s12946_s10 + $0xe8] sm:$0xff]  ;;  %v10411_v57 = vsub.f32 %v1571_v33, %v10350_v35  ;;  %v14630_v13 = vand.u32 4294901760, %v14629_v2 }
 0x3b5   : > { %4166 = vmatprep.subr.mxu0 %v14621_v62  ;;  %4347 = vmatpush2.msra.mxu1 %v9651_v43  ;;  %v2674_v43 = vpop.f32.mrf.mxu1  ;;  %v14632_v2 = vand.u32 4294901760, %v10325_v51  ;;  %v1548_v33 = vld [vmem:[%s12946_s10 + $0x68] sm:$0xff]  ;;  %v14649_v60 = vand.u32 4294901760, %v14648_v50  ;;  %v14659_v18 = vand.u32 4294901760, %v14658_v11 }
 0x3b6   : > { %4170 = vmatpush2.msra.mxu0 %v14623_v30  ;;  %v10385_v62 = vsub.f32 %v10272_v45, %v14624_v5  ;;  %v10390_v19 = vsub.f32 %v10275_v54, %v14625_v38  ;;  %v14626_v30 = vand.u32 4294901760, %v9614_v61  ;;  %v10403_v5 = vsub.f32 %v10289_v58, %v13441_v21  ;;  %14628 = vst [vmem:[#allocation4_spill] sm:$0xff] %v10411_v57  ;;  %v1563_v61 = vld [vmem:[%s12946_s10 + $0xe0] sm:$0xff]  ;;  %v1556_v58 = vld [vmem:[%s12946_s10 + $0xa8] sm:$0xff] }
 0x3b7   : > { %v14627_v38 = vand.u32 4294901760, %v10292_v25  ;;  %4349 = vmatprep.subr.mxu1 %v9662_v52  ;;  %v14631_v54 = vand.u32 4294901760, %v9636_v53  ;;  %v10433_v21 = vand.u32 4294901760, %v1564_v44  ;;  %v14634_v53 = vand.u32 4294901760, %v9649_v63 }
 0x3b8   : > { %4174 = vmatprep.subr.mxu0 %v14626_v30  ;;  %v2535_v30 = vpop.f32.mrf.mxu0  ;;  %4351 = vmatpush2.msra.mxu1 %v9675_v16  ;;  %v1555_v16 = vld [vmem:[%s12946_s10 + $0xa0] sm:$0xff]  ;;  %v10451_v52 = vand.u32 4294901760, %v1563_v61  ;;  %v14637_v63 = vand.u32 4294901760, %v9660_v8  ;;  %v14639_v8 = vand.u32 4294901760, %v10082_v36  ;;  %v14644_v36 = vand.u32 4294901760, %v9673_v59 }
 0x3b9   : > { %v10408_v31 = vsub.f32 %v10292_v25, %v14627_v38  ;;  %4178 = vmatpush2.msra.mxu0 %v14630_v13  ;;  %v2534_v25 = vadd.f32 %v2533_v49, %v10163_v6  ;;  %v10431_v13 = vsub.f32 %v10325_v51, %v14632_v2  ;;  %14633 = vst [vmem:[#allocation81_spill] sm:$0xff] %v10433_v21  ;;  %v14635_v49 = vand.u32 4294901760, %v10338_v34  ;;  %v1547_v6 = vld [vmem:[%s12946_s10 + $0x60] sm:$0xff]  ;;  %v1540_v38 = vld [vmem:[%s12946_s10 + $0x28] sm:$0xff] }
 0x3ba   : > { %4182 = vmatprep.subr.mxu0 %v14631_v54  ;;  %4353 = vmatprep.subr.mxu1 %v9685_v10  ;;  %14636 = vst [vmem:[#allocation14_spill] sm:$0xff] %v10451_v52  ;;  %v2536_v10 = vadd.f32 %v2535_v30, %v10227_v56  ;;  %v2676_v56 = vpop.f32.mrf.mxu1  ;;  %v14638_v30 = vld [vmem:[#allocation94_spill] sm:$0xff]  ;;  %v14641_v54 = vand.u32 4294901760, %v10365_v47  ;;  %v2939_v27 = vpop.f32.mrf.mxu0  ;;  %v14656_v59 = vand.u32 4294901760, %v10411_v57 }
 0x3bb   : > { %4186 = vmatpush2.msra.mxu0 %v14634_v53  ;;  %v10449_v2 = vsub.f32 %v10338_v34, %v14635_v49  ;;  %4355 = vmatpush2.msra.mxu1 %v9695_v28  ;;  %v14640_v28 = vand.u32 4294901760, %v10362_v3  ;;  %v10482_v49 = vand.u32 4294901760, %v1556_v58  ;;  %v10484_v34 = vand.u32 4294901760, %v1555_v16  ;;  %v1539_v51 = vld [vmem:[%s12946_s10 + $0x20] sm:$0xff] }
 0x3bc   : > { %4190 = vmatprep.subr.mxu0 %v14637_v63  ;;  %4359 = vmatmul.mubr.f32.vlgmr.msra.gmra.mxu1 %v14638_v30  ;;  %v10480_v53 = vsub.f32 %v10365_v47, %v14641_v54  ;;  %v10495_v54 = vsub.f32 %v1564_v44, %v10433_v21  ;;  %v10497_v47 = vand.u32 4294901760, %v1548_v33  ;;  %v3076_v45 = vpop.f32.mrf.mxu1  ;;  %v1788_v44 = vld [vmem:[%s12946_s10 + $0x7e8] sm:$0xff] }
 0x3bd   : > { %4515 = vmatprep.subr.mxu1 %v14639_v8  ;;  %v10475_v63 = vsub.f32 %v10362_v3, %v14640_v28  ;;  %14642 = vst [vmem:[#allocation82_spill] sm:$0xff] %v10482_v49  ;;  %14643 = vst [vmem:[#allocation25_spill] sm:$0xff] %v10484_v34  ;;  %4194 = vmatpush2.msra.mxu0 %v14644_v36  ;;  %v14645_v8 = vand.u32 4294901760, %v10096_v48  ;;  %v2675_v28 = vadd.f32 %v2674_v43, %v2534_v25 }
 0x3be   : > { %14646 = vst [vmem:[#allocation86_spill] sm:$0xff] %v10495_v54  ;;  %14647 = vst [vmem:[#allocation27_spill] sm:$0xff] %v10497_v47  ;;  %4895 = vmatprep.mubr.f32.mxu1 %v14445_v29  ;;  %4198 = vmatprep.subr.mxu0 %v14649_v60  ;;  %v10504_v48 = vsub.f32 %v1563_v61, %v10451_v52  ;;  %v10506_v25 = vand.u32 4294901760, %v1547_v6  ;;  %v10508_v43 = vand.u32 4294901760, %v1540_v38  ;;  %v14653_v36 = vand.u32 4294901760, %v10101_v22  ;;  %v14660_v52 = vld [vmem:[#allocation115_spill] sm:$0xff]  ;;  %v2941_v22 = vpop.f32.mrf.mxu0 }
 0x3bf   : > { %4521 = vmatpush1.msra.mxu1 %v14645_v8  ;;  %v14654_v8 = vld [vmem:[#allocation114_spill] sm:$0xff]  ;;  %v2940_v60 = vadd.f32 %v2939_v27, %v2675_v28  ;;  %v2677_v3 = vadd.f32 %v2676_v56, %v2536_v10  ;;  %v10520_v61 = vsub.f32 %v10411_v57, %v14656_v59  ;;  %v10522_v29 = vand.u32 4294901760, %v1539_v51  ;;  %v14665_v28 = vld [vmem:[#allocation116_spill] sm:$0xff] }
 0x3c0   : > { %14650 = vst [vmem:[#allocation88_spill] sm:$0xff] %v10504_v48  ;;  %14651 = vst [vmem:[#allocation16_spill] sm:$0xff] %v10506_v25  ;;  %4527 = vmatprep.subr.mxu1 %v14653_v36  ;;  %v14655_v50 = vand.u32 4294901760, %v14654_v8  ;;  %v14661_v21 = vand.u32 4294901760, %v14660_v52  ;;  %v10531_v27 = vsub.f32 %v1556_v58, %v10482_v49  ;;  %v10534_v10 = vsub.f32 %v1555_v16, %v10484_v34  ;;  %v1787_v58 = vld [vmem:[%s12946_s10 + $0x7e0] sm:$0xff]  ;;  %v1780_v16 = vld [vmem:[%s12946_s10 + $0x7a8] sm:$0xff] }
 0x3c1   : > { %14652 = vst [vmem:[#allocation91_spill] sm:$0xff] %v10508_v43  ;;  %14657 = vst [vmem:[#allocation18_spill] sm:$0xff] %v10522_v29  ;;  %4533 = vmatpush1.msra.mxu1 %v14659_v18  ;;  %v14664_v56 = vand.u32 4294901760, %v10140_v4  ;;  %v14666_v11 = vand.u32 4294901760, %v14665_v28  ;;  %v3077_v18 = vadd.f32 %v3076_v45, %v2940_v60  ;;  %v2942_v52 = vadd.f32 %v2941_v22, %v2677_v3  ;;  %v3078_v4 = vpop.f32.mrf.mxu1 }
 0x3c2   : > { %4202 = vmatpush2.msra.mxu0 %v14655_v50  ;;  %14662 = vst [vmem:[#allocation93_spill] sm:$0xff] %v10531_v27  ;;  %14663 = vst [vmem:[#allocation20_spill] sm:$0xff] %v10534_v10  ;;  %v10543_v59 = vand.u32 4294901760, %v1788_v44  ;;  %v14669_v50 = vand.u32 4294901760, %v10183_v7  ;;  %v13473_v3 = vand.u32 4294901760, %v10495_v54  ;;  %v10558_v60 = vsub.f32 %v1547_v6, %v10506_v25 }
 0x3c3   : > { %4206 = vmatprep.subr.mxu0 %v14661_v21  ;;  %4539 = vmatprep.subr.mxu1 %v14664_v56  ;;  %v10541_v21 = vsub.f32 %v1548_v33, %v10497_v47  ;;  %v14670_v56 = vld [vmem:[#allocation117_spill] sm:$0xff]  ;;  %v13474_v33 = vand.u32 4294901760, %v10504_v48  ;;  %v10561_v22 = vsub.f32 %v1540_v38, %v10508_v43  ;;  %v14674_v28 = vand.u32 4294901760, %v10188_v39  ;;  %v14685_v39 = vld [vmem:[#allocation100_spill] sm:$0xff]  ;;  %v14687_v38 = vld [vmem:[#allocation10_spill] sm:$0xff] }
 0x3c4   : > { %4210 = vmatpush2.msra.mxu0 %v14666_v11  ;;  %14668 = vst [vmem:[#allocation22_spill] sm:$0xff] %v10543_v59  ;;  %4545 = vmatpush1.msra.mxu1 %v14669_v50  ;;  %v14671_v45 = vand.u32 4294901760, %v14670_v56  ;;  %14672 = vst [vmem:[#allocation15_spill] sm:$0xff] %v10558_v60  ;;  %v14675_v11 = vld [vmem:[#allocation118_spill] sm:$0xff]  ;;  %v6933_v7 = vsub.f32 0.0, %v3077_v18  ;;  %v3079_v50 = vadd.f32 %v3078_v4, %v2942_v52  ;;  %v14678_v36 = vand.u32 4294901760, %v10285_v0 }
 0x3c5   : > { %14667 = vst [vmem:[#allocation23_spill] sm:$0xff] %v10541_v21  ;;  %14673 = vst [vmem:[#allocation24_spill] sm:$0xff] %v10561_v22  ;;  %4551 = vmatprep.subr.mxu1 %v14674_v28  ;;  %v14676_v8 = vand.u32 4294901760, %v14675_v11  ;;  %v10576_v6 = vand.u32 4294901760, %v1787_v58  ;;  %v10578_v28 = vand.u32 4294901760, %v1780_v16  ;;  %v14682_v0 = vand.u32 4294901760, %v10300_v24 }
 0x3c6   : > { %4214 = vmatprep.subr.mxu0 %v14671_v45  ;;  %v10569_v45 = vsub.f32 %v1539_v51, %v10522_v29  ;;  %4557 = vmatpush1.msra.mxu1 %v14678_v36  ;;  %v6941_v18 = vmul.f32 1.442695, %v6933_v7  ;;  %v14681_v51 = vld [vmem:[#allocation6_spill] sm:$0xff]  ;;  %v6934_v36 = vsub.f32 0.0, %v3079_v50  ;;  %v10588_v4 = vsub.f32 %v1788_v44, %v10543_v59  ;;  %v1772_v11 = vld [vmem:[%s12946_s10 + $0x768] sm:$0xff] }
 0x3c7   : > { %4218 = vmatpush2.msra.mxu0 %v14676_v8  ;;  %14679 = vst [vmem:[#allocation26_spill] sm:$0xff] %v10576_v6  ;;  %14680 = vst [vmem:[#allocation31_spill] sm:$0xff] %v10578_v28  ;;  %v1779_v8 = vld [vmem:[%s12946_s10 + $0x7a0] sm:$0xff]  ;;  %4563 = vmatprep.subr.mxu1 %v14682_v0  ;;  %v14684_v56 = vld [vmem:[#allocation8_spill] sm:$0xff]  ;;  %v10598_v7 = vsub.f32 %v10495_v54, %v13473_v3  ;;  %v10603_v24 = vsub.f32 %v10504_v48, %v13474_v33  ;;  %v14686_v0 = vand.u32 4294901760, %v10316_v15 }
 0x3c8   : > { %14677 = vst [vmem:[#allocation30_spill] sm:$0xff] %v10569_v45  ;;  %4222 = vmatmul.mubr.f32.vlgmr.msra.gmra.mxu0 %v14638_v30  ;;  %4366 = vmatprep.subr.mxu0 %v14681_v51  ;;  %14683 = vst [vmem:[#allocation28_spill] sm:$0xff] %v10588_v4  ;;  %7153 = vpow2.f32 %v6941_v18  ;;  %v6943_v52 = vmul.f32 1.442695, %v6934_v36  ;;  %v10611_v3 = vand.u32 4294901760, %v1779_v8  ;;  %v1771_v33 = vld [vmem:[%s12946_s10 + $0x760] sm:$0xff]  ;;  %v10625_v36 = vsub.f32 %v1787_v58, %v10576_v6 }
 0x3c9   : > { %4368 = vmatpush1.msra.mxu0 %v14684_v56  ;;  %4498 = vmatprep.mubr.f32.mxu0 %v14685_v39  ;;  %v14689_v48 = vand.u32 4294901760, %v10321_v37  ;;  %v14690_v44 = vld [vmem:[#allocation11_spill] sm:$0xff]  ;;  %v14691_v18 = vand.u32 4294901760, %v10531_v27  ;;  %v10630_v39 = vand.u32 4294901760, %v1772_v11  ;;  %v14696_v50 = vld [vmem:[#allocation12_spill] sm:$0xff]  ;;  %v14699_v57 = vand.u32 4294901760, %v10346_v1 }
 0x3ca   : > { %4569 = vmatpush1.msra.mxu1 %v14686_v0  ;;  %4370 = vmatprep.subr.mxu0 %v14687_v38  ;;  %14688 = vst [vmem:[#allocation33_spill] sm:$0xff] %v10611_v3  ;;  %14692 = vst [vmem:[#allocation29_spill] sm:$0xff] %v10625_v36  ;;  %v10628_v0 = vsub.f32 %v1780_v16, %v10578_v28  ;;  %v1764_v37 = vld [vmem:[%s12946_s10 + $0x728] sm:$0xff]  ;;  %7155 = vpow2.f32 %v6943_v52  ;;  %v14698_v16 = vand.u32 4294901760, %v10541_v21  ;;  %v14703_v1 = vand.u32 4294901760, %v10359_v14  ;;  %v1739_v56 = vld [vmem:[%s12946_s10 + $0x660] sm:$0xff] }
 0x3cb   : > { %4575 = vmatprep.subr.mxu1 %v14689_v48  ;;  %4372 = vmatpush1.msra.mxu0 %v14690_v44  ;;  %v10622_v15 = vsub.f32 %v10531_v27, %v14691_v18  ;;  %14694 = vst [vmem:[#allocation32_spill] sm:$0xff] %v10630_v39  ;;  %v14695_v48 = vand.u32 4294901760, %v10333_v23  ;;  %v14697_v18 = vand.u32 4294901760, %v10534_v10  ;;  %v14700_v52 = vld [vmem:[#allocation44_spill] sm:$0xff]  ;;  %v14705_v23 = vand.u32 4294901760, %v10561_v22  ;;  %v14713_v44 = vld [vmem:[#allocation47_spill] sm:$0xff] }
 0x3cc   : > { %14693 = vst [vmem:[#allocation35_spill] sm:$0xff] %v10628_v0  ;;  %4374 = vmatprep.subr.mxu0 %v14696_v50  ;;  %v10646_v27 = vsub.f32 %v10541_v21, %v14698_v16  ;;  %v14701_v50 = vand.u32 4294901760, %v10558_v60  ;;  %v1763_v16 = vld [vmem:[%s12946_s10 + $0x720] sm:$0xff]  ;;  %v14706_v54 = vand.u32 4294901760, %v10569_v45  ;;  %v10680_v21 = vand.u32 4294901760, %v1764_v37  ;;  %v1756_v14 = vld [vmem:[%s12946_s10 + $0x6e8] sm:$0xff] }
 0x3cd   : > { %4581 = vmatpush1.msra.mxu1 %v14695_v48  ;;  %v10641_v58 = vsub.f32 %v10534_v10, %v14697_v18  ;;  %4376 = vmatpush1.msra.mxu0 %v14700_v52  ;;  %v10659_v10 = vand.u32 4294901760, %v1771_v33  ;;  %v10670_v48 = vsub.f32 %v10561_v22, %v14705_v23  ;;  %v14709_v23 = vand.u32 4294901760, %v10375_v17  ;;  %v14710_v22 = vld [vmem:[#allocation53_spill] sm:$0xff] }
 0x3ce   : > { %4587 = vmatprep.subr.mxu1 %v14699_v57  ;;  %v10657_v18 = vsub.f32 %v10558_v60, %v14701_v50  ;;  %v14704_v57 = vld [vmem:[#allocation45_spill] sm:$0xff]  ;;  %v10675_v50 = vsub.f32 %v10569_v45, %v14706_v54  ;;  %v10678_v60 = vsub.f32 %v1779_v8, %v10611_v3  ;;  %14708 = vst [vmem:[#allocation36_spill] sm:$0xff] %v10680_v21  ;;  %v14712_v52 = vand.u32 4294901760, %v10385_v62 }
 0x3cf   : > { %14702 = vst [vmem:[#allocation37_spill] sm:$0xff] %v10659_v10  ;;  %4593 = vmatpush1.msra.mxu1 %v14703_v1  ;;  %4378 = vmatprep.subr.mxu0 %v14704_v57  ;;  %v1755_v1 = vld [vmem:[%s12946_s10 + $0x6e0] sm:$0xff]  ;;  %v10695_v57 = vsub.f32 %v1772_v11, %v10630_v39  ;;  %v10707_v8 = vand.u32 4294901760, %v1763_v16  ;;  %v1748_v11 = vld [vmem:[%s12946_s10 + $0x6a8] sm:$0xff]  ;;  %v14716_v62 = vand.u32 4294901760, %v10390_v19  ;;  %v10717_v17 = vsub.f32 %v1771_v33, %v10659_v10 }
 0x3d0   : > { %14707 = vst [vmem:[#allocation34_spill] sm:$0xff] %v10678_v60  ;;  %4599 = vmatprep.subr.mxu1 %v14709_v23  ;;  %4380 = vmatpush1.msra.mxu0 %v14710_v22  ;;  %v14714_v23 = vand.u32 4294901760, %v10588_v4  ;;  %v10719_v45 = vand.u32 4294901760, %v1756_v14  ;;  %v1740_v19 = vld [vmem:[%s12946_s10 + $0x668] sm:$0xff]  ;;  %v10736_v22 = vsub.f32 %v1764_v37, %v10680_v21  ;;  %v14724_v51 = vand.u32 4294901760, %v10408_v31 }
 0x3d1   : > { %14711 = vst [vmem:[#allocation42_spill] sm:$0xff] %v10695_v57  ;;  %4605 = vmatpush1.msra.mxu1 %v14712_v52  ;;  %4382 = vmatprep.subr.mxu0 %v14713_v44  ;;  %14715 = vst [vmem:[#allocation51_spill] sm:$0xff] %v10707_v8  ;;  %v14717_v52 = vld [vmem:[#allocation61_spill] sm:$0xff]  ;;  %v14727_v38 = vand.u32 4294901760, %v10628_v0  ;;  %v1732_v31 = vld [vmem:[%s12946_s10 + $0x628] sm:$0xff]  ;;  %v14734_v30 = vand.u32 4294901760, %v10449_v2 }
 0x3d2   : > { %v10705_v54 = vsub.f32 %v10588_v4, %v14714_v23  ;;  %4611 = vmatprep.subr.mxu1 %v14716_v62  ;;  %4384 = vmatpush1.msra.mxu0 %v14717_v52  ;;  %14718 = vst [vmem:[#allocation41_spill] sm:$0xff] %v10717_v17  ;;  %14719 = vst [vmem:[#allocation43_spill] sm:$0xff] %v10719_v45  ;;  %v10721_v23 = vand.u32 4294901760, %v1755_v1  ;;  %v1747_v4 = vld [vmem:[%s12946_s10 + $0x6a0] sm:$0xff]  ;;  %v14721_v62 = vand.u32 4294901760, %v10403_v5  ;;  %v14725_v5 = vld [vmem:[#allocation56_spill] sm:$0xff] }
 0x3d3   : > { %v14722_v52 = vld [vmem:[#allocation62_spill] sm:$0xff]  ;;  %14723 = vst [vmem:[#allocation60_spill] sm:$0xff] %v10736_v22  ;;  %v10752_v44 = vsub.f32 %v10628_v0, %v14727_v38  ;;  %v10768_v0 = vsub.f32 %v1763_v16, %v10707_v8  ;;  %v10770_v37 = vand.u32 4294901760, %v1747_v4  ;;  %v10784_v38 = vand.u32 4294901760, %v1739_v56 }
 0x3d4   : > { %14720 = vst [vmem:[#allocation58_spill] sm:$0xff] %v10721_v23  ;;  %4617 = vmatpush1.msra.mxu1 %v14721_v62  ;;  %4386 = vmatprep.subr.mxu0 %v14722_v52  ;;  %v14726_v62 = vand.u32 4294901760, %v10625_v36  ;;  %v10755_v52 = vand.u32 4294901760, %v1748_v11  ;;  %v14738_v16 = vand.u32 4294901760, %v10475_v63  ;;  %v14739_v2 = vand.u32 4294901760, %v10678_v60 }
 0x3d5   : > { %4623 = vmatprep.subr.mxu1 %v14724_v51  ;;  %4388 = vmatpush1.msra.mxu0 %v14725_v5  ;;  %v1731_v51 = vld [vmem:[%s12946_s10 + $0x620] sm:$0xff]  ;;  %14731 = vst [vmem:[#allocation50_spill] sm:$0xff] %v10768_v0  ;;  %14732 = vst [vmem:[#allocation64_spill] sm:$0xff] %v10770_v37  ;;  %v10772_v5 = vand.u32 4294901760, %v1740_v19  ;;  %v10836_v63 = vsub.f32 %v1739_v56, %v10784_v38  ;;  %v14754_v56 = vand.u32 4294901760, %v10622_v15  ;;  %v14758_v15 = vand.u32 4294901760, %v10768_v0 }
 0x3d6   : > { %v10747_v33 = vsub.f32 %v10625_v36, %v14726_v62  ;;  %14728 = vst [vmem:[#allocation49_spill] sm:$0xff] %v10755_v52  ;;  %v14729_v62 = vand.u32 4294901760, %v10431_v13  ;;  %v14730_v36 = vld [vmem:[#allocation57_spill] sm:$0xff]  ;;  %v10779_v13 = vsub.f32 %v1756_v14, %v10719_v45  ;;  %14737 = vst [vmem:[#allocation74_spill] sm:$0xff] %v10784_v38  ;;  %v10797_v14 = vand.u32 4294901760, %v1731_v51 }
 0x3d7   : > { %4390 = vmatprep.subr.mxu0 %v14730_v36  ;;  %14733 = vst [vmem:[#allocation67_spill] sm:$0xff] %v10772_v5  ;;  %v14742_v36 = vand.u32 4294901760, %v10480_v53  ;;  %v10810_v21 = vsub.f32 %v1748_v11, %v10755_v52  ;;  %14750 = vst [vmem:[#allocation102_spill] sm:$0xff] %v10836_v63 }
 0x3d8   : > { %4629 = vmatpush1.msra.mxu1 %v14729_v62  ;;  %4392 = vmatpush1.msra.mxu0 %v10193_v40  ;;  %14735 = vst [vmem:[#allocation69_spill] sm:$0xff] %v10779_v13  ;;  %v10782_v62 = vsub.f32 %v1755_v1, %v10721_v23  ;;  %v10795_v40 = vand.u32 4294901760, %v1732_v31  ;;  %14741 = vst [vmem:[#allocation77_spill] sm:$0xff] %v10797_v14  ;;  %v7154_v1 = vpop.eup %7153  ;;  %v14745_v23 = vand.u32 4294901760, %v10520_v61  ;;  %v14749_v61 = vand.u32 4294901760, %v10717_v17 }
 0x3d9   : > { %4635 = vmatprep.subr.mxu1 %v14734_v30  ;;  %4394 = vmatprep.subr.mxu0 %v10211_v46  ;;  %v10792_v30 = vsub.f32 %v10678_v60, %v14739_v2  ;;  %v14743_v46 = vand.u32 4294901760, %v10695_v57  ;;  %14744 = vst [vmem:[#allocation78_spill] sm:$0xff] %v10810_v21  ;;  %v6957_v60 = vadd.f32 1.0, %v7154_v1  ;;  %v7156_v11 = vpop.eup %7155  ;;  %v14748_v1 = vand.u32 4294901760, %v10598_v7 }
 0x3da   : > { %14736 = vst [vmem:[#allocation71_spill] sm:$0xff] %v10782_v62  ;;  %4641 = vmatpush1.msra.mxu1 %v14738_v16  ;;  %14740 = vst [vmem:[#allocation76_spill] sm:$0xff] %v10795_v40  ;;  %4396 = vmatpush1.msra.mxu0 %v10220_v9  ;;  %v10820_v16 = vsub.f32 %v1740_v19, %v10772_v5  ;;  %v13515_v19 = vand.u32 4294901760, %v10782_v62  ;;  %v6958_v53 = vadd.f32 1.0, %v7156_v11  ;;  %v14757_v11 = vand.u32 4294901760, %v10641_v58 }
 0x3db   : > { %4647 = vmatprep.subr.mxu1 %v14742_v36  ;;  %v10807_v2 = vsub.f32 %v10695_v57, %v14743_v46  ;;  %4398 = vmatprep.subr.mxu0 %v10222_v41  ;;  %v10817_v36 = vsub.f32 %v1747_v4, %v10770_v37  ;;  %v1724_v46 = vld [vmem:[%s12946_s10 + $0x5e8] sm:$0xff]  ;;  %v13512_v4 = vand.u32 4294901760, %v10779_v13  ;;  %7157 = vrcp.f32 %v6957_v60 }
 0x3dc   : > { %4653 = vmatpush1.msra.mxu1 %v14745_v23  ;;  %14747 = vst [vmem:[#allocation87_spill] sm:$0xff] %v10820_v16  ;;  %4400 = vmatpush1.msra.mxu0 %v10235_v42  ;;  %v10831_v23 = vsub.f32 %v10717_v17, %v14749_v61  ;;  %v14751_v57 = vand.u32 4294901760, %v10603_v24  ;;  %v10842_v7 = vsub.f32 %v1732_v31, %v10795_v40  ;;  %v1723_v61 = vld [vmem:[%s12946_s10 + $0x5e0] sm:$0xff]  ;;  %v4724_v60 = vand.u32 4294901760, %v10792_v30  ;;  %v1716_v31 = vld [vmem:[%s12946_s10 + $0x5a8] sm:$0xff] }
 0x3dd   : > { %14746 = vst [vmem:[#allocation80_spill] sm:$0xff] %v10817_v36  ;;  %4659 = vmatprep.subr.mxu1 %v14748_v1  ;;  %4402 = vmatprep.subr.mxu0 %v10237_v12  ;;  %v10845_v1 = vsub.f32 %v1731_v51, %v10797_v14  ;;  %v14755_v24 = vand.u32 4294901760, %v10736_v22  ;;  %v10860_v51 = vand.u32 4294901760, %v1724_v46  ;;  %7159 = vrcp.f32 %v6958_v53  ;;  %v1715_v30 = vld [vmem:[%s12946_s10 + $0x5a0] sm:$0xff] }
 0x3de   : > { %4665 = vmatpush1.msra.mxu1 %v14751_v57  ;;  %14752 = vst [vmem:[#allocation104_spill] sm:$0xff] %v10842_v7  ;;  %4404 = vmatpush1.msra.mxu0 %v10259_v20  ;;  %v14759_v53 = vand.u32 4294901760, %v10646_v27  ;;  %v4730_v58 = vand.u32 4294901760, %v10807_v2  ;;  %v14761_v27 = vand.u32 4294901760, %v10657_v18  ;;  %v4736_v2 = vand.u32 4294901760, %v10831_v23 }
 0x3df   : > { %14753 = vst [vmem:[#allocation105_spill] sm:$0xff] %v10845_v1  ;;  %4671 = vmatprep.subr.mxu1 %v14754_v56  ;;  %v10857_v57 = vsub.f32 %v10736_v22, %v14755_v24  ;;  %14756 = vst [vmem:[#allocation107_spill] sm:$0xff] %v10860_v51  ;;  %4406 = vmatprep.subr.mxu0 %v10277_v32  ;;  %v10868_v56 = vsub.f32 %v10768_v0, %v14758_v15  ;;  %v10885_v24 = vand.u32 4294901760, %v1723_v61 }
 0x3e0   : > { %4677 = vmatpush1.msra.mxu1 %v14757_v11  ;;  %4408 = vmatpush1.msra.mxu0 %v10303_v26  ;;  %v10882_v11 = vsub.f32 %v10779_v13, %v13512_v4  ;;  %v1708_v13 = vld [vmem:[%s12946_s10 + $0x568] sm:$0xff]  ;;  %v14762_v18 = vand.u32 4294901760, %v10670_v48  ;;  %v10915_v4 = vsub.f32 %v1724_v46, %v10860_v51  ;;  %v10917_v15 = vand.u32 4294901760, %v1716_v31  ;;  %v1707_v48 = vld [vmem:[%s12946_s10 + $0x560] sm:$0xff] }
 0x3e1   : > { %4683 = vmatprep.subr.mxu1 %v14759_v53  ;;  %14760 = vst [vmem:[#allocation108_spill] sm:$0xff] %v10885_v24  ;;  %4410 = vmatprep.subr.mxu0 %v10305_v55  ;;  %v10897_v53 = vsub.f32 %v10782_v62, %v13515_v19  ;;  %v4742_v23 = vand.u32 4294901760, %v10857_v57  ;;  %v14767_v62 = vld [vmem:[#allocation81_spill] sm:$0xff]  ;;  %v4748_v57 = vand.u32 4294901760, %v10868_v56  ;;  %v14769_v46 = vand.u32 4294901760, %v10820_v16  ;;  %v14772_v56 = vld [vmem:[#allocation14_spill] sm:$0xff] }
 0x3e2   : > { %4689 = vmatpush1.msra.mxu1 %v14761_v27  ;;  %4412 = vmatpush1.msra.mxu0 %v10350_v35  ;;  %v14763_v27 = vand.u32 4294901760, %v10810_v21  ;;  %14764 = vst [vmem:[#allocation111_spill] sm:$0xff] %v10915_v4  ;;  %14765 = vst [vmem:[#allocation112_spill] sm:$0xff] %v10917_v15  ;;  %v10936_v22 = vand.u32 4294901760, %v1715_v30  ;;  %v4754_v17 = vand.u32 4294901760, %v10882_v11  ;;  %v14777_v11 = vand.u32 4294901760, %v10842_v7 }
 0x3e3   : > { %4695 = vmatprep.subr.mxu1 %v14762_v18  ;;  %v14766_v18 = vand.u32 4294901760, %v10675_v50  ;;  %4414 = vmatprep.subr.mxu0 %v14767_v62  ;;  %v10934_v0 = vsub.f32 %v10820_v16, %v14769_v46  ;;  %v1700_v50 = vld [vmem:[%s12946_s10 + $0x528] sm:$0xff]  ;;  %v10951_v46 = vsub.f32 %v1723_v61, %v10885_v24  ;;  %v10953_v16 = vand.u32 4294901760, %v1708_v13  ;;  %v1699_v62 = vld [vmem:[%s12946_s10 + $0x520] sm:$0xff] }
 0x3e4   : > { %v10912_v19 = vsub.f32 %v10810_v21, %v14763_v27  ;;  %v14768_v27 = vand.u32 4294901760, %v10817_v36  ;;  %14770 = vst [vmem:[#allocation113_spill] sm:$0xff] %v10936_v22  ;;  %4416 = vmatpush1.msra.mxu0 %v14772_v56  ;;  %v4760_v61 = vand.u32 4294901760, %v10897_v53  ;;  %v10979_v56 = vand.u32 4294901760, %v1707_v48  ;;  %v1675_v55 = vld [vmem:[%s12946_s10 + $0x460] sm:$0xff] }
 0x3e5   : > { %4701 = vmatpush1.msra.mxu1 %v14766_v18  ;;  %v14771_v18 = vand.u32 4294901760, %v10705_v54  ;;  %14774 = vst [vmem:[#allocation114_spill] sm:$0xff] %v10951_v46  ;;  %14775 = vst [vmem:[#allocation55_spill] sm:$0xff] %v10953_v16  ;;  %v14776_v54 = vand.u32 4294901760, %v10747_v33  ;;  %4418 = vmatprep.subr.mxu0 %v10482_v49  ;;  %v1692_v33 = vld [vmem:[%s12946_s10 + $0x4e8] sm:$0xff] }
 0x3e6   : > { %v10929_v21 = vsub.f32 %v10817_v36, %v14768_v27  ;;  %v14773_v27 = vand.u32 4294901760, %v10836_v63  ;;  %14779 = vst [vmem:[#allocation115_spill] sm:$0xff] %v10979_v56  ;;  %4420 = vmatpush1.msra.mxu0 %v10484_v34  ;;  %v4766_v53 = vand.u32 4294901760, %v10912_v19  ;;  %v11001_v19 = vsub.f32 %v1715_v30, %v10936_v22  ;;  %v6973_v34 = vld [vmem:[%s10963_s29] sm:$0xff] }
 0x3e7   : > { %4707 = vmatprep.subr.mxu1 %v14771_v18  ;;  %v10972_v18 = vsub.f32 %v10842_v7, %v14777_v11  ;;  %v10990_v7 = vsub.f32 %v1716_v31, %v10917_v15  ;;  %4422 = vmatprep.subr.mxu0 %v10497_v47  ;;  %v11003_v11 = vand.u32 4294901760, %v1699_v62  ;;  %v1684_v31 = vld [vmem:[%s12946_s10 + $0x4a8] sm:$0xff]  ;;  %v11015_v30 = vand.u32 4294901760, %v1692_v33  ;;  %v1683_v47 = vld [vmem:[%s12946_s10 + $0x4a0] sm:$0xff] }
 0x3e8   : > { %v10948_v36 = vsub.f32 %v10836_v63, %v14773_v27  ;;  %4713 = vmatpush2.msra.mxu1 %v14776_v54  ;;  %v14778_v27 = vand.u32 4294901760, %v10845_v1  ;;  %v14780_v54 = vand.u32 4294901760, %v10752_v44  ;;  %v4772_v44 = vand.u32 4294901760, %v10929_v21  ;;  %14782 = vst [vmem:[#allocation117_spill] sm:$0xff] %v11001_v19  ;;  %4424 = vmatpush1.msra.mxu0 %v10506_v25  ;;  %v7158_v49 = vpop.eup %7157 }
 0x3e9   : > { %14781 = vst [vmem:[#allocation116_spill] sm:$0xff] %v10990_v7  ;;  %4426 = vmatprep.subr.mxu0 %v10508_v43  ;;  %v11049_v35 = vand.u32 4294901760, %v1684_v31  ;;  %v11059_v25 = vand.u32 4294901760, %v1683_v47 }
 0x3ea   : > { %v10977_v63 = vsub.f32 %v10845_v1, %v14778_v27  ;;  %4719 = vmatprep.subr.mxu1 %v14780_v54  ;;  %v10992_v27 = vand.u32 4294901760, %v1700_v50  ;;  %v1691_v1 = vld [vmem:[%s12946_s10 + $0x4e0] sm:$0xff]  ;;  %v11013_v54 = vsub.f32 %v1708_v13, %v10953_v16  ;;  %v1676_v13 = vld [vmem:[%s12946_s10 + $0x468] sm:$0xff]  ;;  %4428 = vmatpush1.msra.mxu0 %v10522_v29  ;;  %v11070_v29 = vsub.f32 %v1692_v33, %v11015_v30 }
 0x3eb   : > { %4725 = vmatpush2.msra.mxu1 %v4724_v60  ;;  %v11024_v60 = vsub.f32 %v1707_v48, %v10979_v56  ;;  %v11026_v21 = vand.u32 4294901760, %v1691_v1  ;;  %v14784_v48 = vand.u32 4294901760, %v10915_v4  ;;  %4430 = vmatprep.subr.mxu0 %v10543_v59  ;;  %v1667_v59 = vld [vmem:[%s12946_s10 + $0x420] sm:$0xff]  ;;  %v14786_v33 = vand.u32 4294901760, %v10990_v7 }
 0x3ec   : > { %4731 = vmatprep.subr.mxu1 %v4730_v58  ;;  %v4790_v58 = vand.u32 4294901760, %v10972_v18  ;;  %v11047_v43 = vsub.f32 %v1700_v50, %v10992_v27  ;;  %v1668_v50 = vld [vmem:[%s12946_s10 + $0x428] sm:$0xff]  ;;  %4432 = vmatpush2.msra.mxu0 %v10576_v6  ;;  %v11102_v6 = vsub.f32 %v1683_v47, %v11059_v25  ;;  %v14793_v47 = vand.u32 4294901760, %v10948_v36 }
 0x3ed   : > { %4737 = vmatpush2.msra.mxu1 %v4736_v2  ;;  %14783 = vst [vmem:[#allocation118_spill] sm:$0xff] %v11024_v60  ;;  %v6974_v2 = vld [vmem:[%s10963_s29 + $0x8] sm:$0xff]  ;;  %v11043_v18 = vsub.f32 %v10915_v4, %v14784_v48  ;;  %v11057_v48 = vsub.f32 %v1699_v62, %v11003_v11  ;;  %v7160_v4 = vpop.eup %7159  ;;  %v11072_v62 = vand.u32 4294901760, %v1676_v13  ;;  %4434 = vmatprep.subr.mxu0 %v10578_v28 }
 0x3ee   : > { %4743 = vmatprep.subr.mxu1 %v4742_v23  ;;  %v6981_v23 = vmul.f32 %v7158_v49, %v6973_v34  ;;  %v14785_v34 = vand.u32 4294901760, %v10951_v46  ;;  %4436 = vmatpush2.msra.mxu0 %v10611_v3  ;;  %14789 = vst [vmem:[#allocation120_spill] sm:$0xff] %v11102_v6 }
 0x3ef   : > { %4749 = vmatpush2.msra.mxu1 %v4748_v57  ;;  %v11083_v57 = vand.u32 4294901760, %v1675_v55  ;;  %4438 = vmatprep.subr.mxu0 %v10630_v39 }
 0x3f0   : > { %4755 = vmatprep.subr.mxu1 %v4754_v17  ;;  %v4807_v49 = vsub.f32 %v10951_v46, %v14785_v34  ;;  %6989 = vst [vmem:[%s11036_s25] sm:$0xff] %v6981_v23  ;;  %v6982_v17 = vmul.f32 %v7160_v4, %v6974_v2  ;;  %v11081_v34 = vsub.f32 %v1691_v1, %v11026_v21  ;;  %v14788_v1 = vand.u32 4294901760, %v11001_v19 }
 0x3f1   : > { %4761 = vmatpush2.msra.mxu1 %v4760_v61  ;;  %v4813_v46 = vsub.f32 %v10990_v7, %v14786_v33  ;;  %v11091_v4 = vsub.f32 %v1684_v31, %v11049_v35  ;;  %v11093_v61 = vand.u32 4294901760, %v1668_v50  ;;  %v11104_v33 = vand.u32 4294901760, %v1667_v59  ;;  %4440 = vmatpush2.msra.mxu0 %v10659_v10 }
 0x3f2   : > { %4767 = vmatprep.subr.mxu1 %v4766_v53  ;;  %6990 = vst [vmem:[%s11036_s25 + $0x8] sm:$0xff] %v6982_v17  ;;  %v4819_v53 = vsub.f32 %v11001_v19, %v14788_v1  ;;  %v14790_v31 = vand.u32 4294901760, %v10934_v0  ;;  %v14791_v17 = vand.u32 4294901760, %v11013_v54  ;;  %v11115_v2 = vsub.f32 %v1676_v13, %v11072_v62  ;;  %v14794_v19 = vld [vmem:[#allocation36_spill] sm:$0xff] }
 0x3f3   : > { %14787 = vst [vmem:[#allocation119_spill] sm:$0xff] %v11091_v4  ;;  %4773 = vmatpush2.msra.mxu1 %v4772_v44  ;;  %v4802_v44 = vand.u32 4294901760, %v11043_v18  ;;  %4442 = vmatprep.subr.mxu0 %v14794_v19  ;;  %v4808_v0 = vand.u32 4294901760, %v4807_v49  ;;  %v11125_v10 = vsub.f32 %v1675_v55, %v11083_v57  ;;  %v4814_v13 = vand.u32 4294901760, %v4813_v46 }
 0x3f4   : > { %4779 = vmatprep.subr.mxu1 %v14790_v31  ;;  %v4825_v23 = vsub.f32 %v11013_v54, %v14791_v17  ;;  %14792 = vst [vmem:[#allocation121_spill] sm:$0xff] %v11115_v2  ;;  %v14795_v31 = vand.u32 4294901760, %v11024_v60  ;;  %4444 = vmatpush2.msra.mxu0 %v10707_v8  ;;  %v14797_v17 = vand.u32 4294901760, %v11047_v43  ;;  %v11133_v49 = vsub.f32 %v1668_v50, %v11093_v61 }
 0x3f5   : > { %4785 = vmatpush2.msra.mxu1 %v14793_v47  ;;  %14796 = vst [vmem:[#allocation122_spill] sm:$0xff] %v11125_v10  ;;  %4446 = vmatprep.subr.mxu0 %v10719_v45  ;;  %v4820_v55 = vand.u32 4294901760, %v4819_v53  ;;  %v11143_v1 = vsub.f32 %v1667_v59, %v11104_v33  ;;  %v14803_v47 = vand.u32 4294901760, %v11070_v29 }
 0x3f6   : > { %v4831_v7 = vsub.f32 %v11024_v60, %v14795_v31  ;;  %4791 = vmatprep.subr.mxu1 %v4790_v58  ;;  %v4837_v36 = vsub.f32 %v11047_v43, %v14797_v17  ;;  %14798 = vst [vmem:[#allocation123_spill] sm:$0xff] %v11133_v49  ;;  %v14799_v31 = vand.u32 4294901760, %v10977_v63  ;;  %v14800_v58 = vand.u32 4294901760, %v11057_v48  ;;  %v14802_v17 = vld [vmem:[#allocation58_spill] sm:$0xff] }
 0x3f7   : > { %14801 = vst [vmem:[#allocation124_spill] sm:$0xff] %v11143_v1  ;;  %4448 = vmatpush2.msra.mxu0 %v14802_v17  ;;  %v4826_v50 = vand.u32 4294901760, %v4825_v23  ;;  %v4849_v63 = vsub.f32 %v11070_v29, %v14803_v47  ;;  %v13566_v59 = vand.u32 4294901760, %v11143_v1 }
 0x3f8   : > { %4797 = vmatpush2.msra.mxu1 %v14799_v31  ;;  %v4843_v18 = vsub.f32 %v11057_v48, %v14800_v58  ;;  %4450 = vmatprep.subr.mxu0 %v10755_v52  ;;  %v4832_v53 = vand.u32 4294901760, %v4831_v7  ;;  %v14804_v58 = vand.u32 4294901760, %v11081_v34  ;;  %v4838_v23 = vand.u32 4294901760, %v4837_v36 }
 0x3f9   : > { %4803 = vmatprep.subr.mxu1 %v4802_v44  ;;  %4452 = vmatpush2.msra.mxu0 %v10770_v37  ;;  %v14805_v44 = vand.u32 4294901760, %v11091_v4  ;;  %v14807_v36 = vand.u32 4294901760, %v11115_v2 }
 0x3fa   : > { %4809 = vmatpush2.msra.mxu1 %v4808_v0  ;;  %v4855_v46 = vsub.f32 %v11081_v34, %v14804_v58  ;;  %4454 = vmatprep.subr.mxu0 %v10772_v5  ;;  %v4844_v7 = vand.u32 4294901760, %v4843_v18  ;;  %v14806_v0 = vand.u32 4294901760, %v11102_v6  ;;  %v14808_v18 = vand.u32 4294901760, %v11125_v10 }
 0x3fb   : > { %4815 = vmatprep.subr.mxu1 %v4814_v13  ;;  %v4861_v47 = vsub.f32 %v11091_v4, %v14805_v44  ;;  %4456 = vmatpush2.msra.mxu0 %v10784_v38  ;;  %v4850_v13 = vand.u32 4294901760, %v4849_v63  ;;  %v4873_v44 = vsub.f32 %v11115_v2, %v14807_v36 }
 0x3fc   : > { %4821 = vmatpush2.msra.mxu1 %v4820_v55  ;;  %v4867_v58 = vsub.f32 %v11102_v6, %v14806_v0  ;;  %4458 = vmatprep.subr.mxu0 %v10795_v40  ;;  %v4856_v55 = vand.u32 4294901760, %v4855_v46  ;;  %v4879_v31 = vsub.f32 %v11125_v10, %v14808_v18  ;;  %v4891_v46 = vsub.f32 %v11143_v1, %v13566_v59  ;;  %v14815_v18 = vld [vmem:[#allocation11_spill] sm:$0xff]  ;;  %v14825_v59 = vld [vmem:[#allocation61_spill] sm:$0xff] }
 0x3fd   : > { %4827 = vmatprep.subr.mxu1 %v4826_v50  ;;  %4460 = vmatpush2.msra.mxu0 %v10797_v14  ;;  %v4862_v0 = vand.u32 4294901760, %v4861_v47  ;;  %v14809_v50 = vand.u32 4294901760, %v11133_v49  ;;  %v14828_v1 = vld [vmem:[#allocation39_spill] sm:$0xff] }
 0x3fe   : > { %4833 = vmatpush2.msra.mxu1 %v4832_v53  ;;  %4462 = vmatprep.subr.mxu0 %v10860_v51  ;;  %v4868_v36 = vand.u32 4294901760, %v4867_v58  ;;  %v4874_v53 = vand.u32 4294901760, %v4873_v44  ;;  %v14811_v58 = vld [vmem:[#allocation6_spill] sm:$0xff]  ;;  %v14813_v44 = vld [vmem:[#allocation99_spill] sm:$0xff] }
 0x3ff   : > { %4839 = vmatprep.subr.mxu1 %v4838_v23  ;;  %v4885_v63 = vsub.f32 %v11133_v49, %v14809_v50  ;;  %4464 = vmatpush2.msra.mxu0 %v10885_v24  ;;  %v4880_v23 = vand.u32 4294901760, %v4879_v31  ;;  %v14810_v31 = vld [vmem:[#allocation94_spill] sm:$0xff]  ;;  %v14817_v50 = vld [vmem:[#allocation44_spill] sm:$0xff] }
 0x400   : > { %4845 = vmatpush2.msra.mxu1 %v4844_v7  ;;  %4466 = vmatprep.subr.mxu0 %v10917_v15  ;;  %v4892_v7 = vand.u32 4294901760, %v4891_v46  ;;  %v14820_v46 = vld [vmem:[#allocation101_spill] sm:$0xff] }
 0x401   : > { %4851 = vmatprep.subr.mxu1 %v4850_v13  ;;  %4468 = vmatpush2.msra.mxu0 %v10936_v22  ;;  %v4886_v47 = vand.u32 4294901760, %v4885_v63  ;;  %v14812_v13 = vld [vmem:[#allocation8_spill] sm:$0xff]  ;;  %v14818_v63 = vld [vmem:[#allocation45_spill] sm:$0xff] }
 0x402   : > { %4857 = vmatpush2.msra.mxu1 %v4856_v55  ;;  %4470 = vmatprep.subr.mxu0 %v10953_v16  ;;  %v14814_v55 = vld [vmem:[#allocation10_spill] sm:$0xff] }
 0x403   : > { %4863 = vmatprep.subr.mxu1 %v4862_v0  ;;  %4472 = vmatpush2.msra.mxu0 %v10979_v56  ;;  %v14816_v0 = vld [vmem:[#allocation12_spill] sm:$0xff] }
 0x404   : > { %4869 = vmatpush2.msra.mxu1 %v4868_v36  ;;  %4474 = vmatprep.subr.mxu0 %v10992_v27  ;;  %v14819_v36 = vld [vmem:[#allocation53_spill] sm:$0xff] }
 0x405   : > { %4875 = vmatprep.subr.mxu1 %v4874_v53  ;;  %4476 = vmatpush2.msra.mxu0 %v11003_v11  ;;  %v14821_v53 = vld [vmem:[#allocation5_spill] sm:$0xff] }
 0x406   : > { %4881 = vmatpush2.msra.mxu1 %v4880_v23  ;;  %4478 = vmatprep.subr.mxu0 %v11015_v30  ;;  %v14822_v23 = vld [vmem:[#allocation47_spill] sm:$0xff] }
 0x407   : > { %4887 = vmatprep.subr.mxu1 %v4886_v47  ;;  %4480 = vmatpush2.msra.mxu0 %v11026_v21  ;;  %v14823_v47 = vld [vmem:[#allocation21_spill] sm:$0xff] }
 0x408   : > { %4893 = vmatpush2.msra.mxu1 %v4892_v7  ;;  %4482 = vmatprep.subr.mxu0 %v11049_v35  ;;  %v14824_v7 = vld [vmem:[#allocation97_spill] sm:$0xff] }
 0x409   : > { %4897 = vmatmul.mubr.f32.vlgmr.msra.gmra.mxu1 %v14810_v31  ;;  %5107 = vmatprep.subr.mxu1 %v14811_v58  ;;  %v14827_v31 = vld [vmem:[#allocation62_spill] sm:$0xff] }
 0x40a   : > { %5109 = vmatpush1.msra.mxu1 %v14812_v13  ;;  %5237 = vmatprep.mubr.f32.mxu1 %v14813_v44  ;;  %v14826_v44 = vld [vmem:[#allocation75_spill] sm:$0xff] }
 0x40b   : > { %5111 = vmatprep.subr.mxu1 %v14814_v55  ;;  %4484 = vmatpush2.msra.mxu0 %v11059_v25 }
 0x40c   : > { %5113 = vmatpush1.msra.mxu1 %v14815_v18  ;;  %4486 = vmatprep.subr.mxu0 %v11072_v62 }
 0x40d   : > { %5115 = vmatprep.subr.mxu1 %v14816_v0  ;;  %4488 = vmatpush2.msra.mxu0 %v11083_v57 }
 0x40e   : > { %5117 = vmatpush1.msra.mxu1 %v14817_v50  ;;  %4490 = vmatprep.subr.mxu0 %v11093_v61 }
 0x40f   : > { %5119 = vmatprep.subr.mxu1 %v14818_v63  ;;  %4492 = vmatpush2.msra.mxu0 %v11104_v33  ;;  %v14829_v63 = vld [vmem:[#allocation56_spill] sm:$0xff] }
 0x410   : > { %5121 = vmatpush1.msra.mxu1 %v14819_v36  ;;  %4504 = vmatmul.mubr.f32.vlgmr.msra.gmra.mxu0 %v14820_v46  ;;  %v14830_v36 = vld [vmem:[#allocation46_spill] sm:$0xff]  ;;  %v14831_v46 = vld [vmem:[#allocation57_spill] sm:$0xff] }
 0x411   : > { %4905 = vmatprep.subr.mxu0 %v14821_v53  ;;  %5123 = vmatprep.subr.mxu1 %v14822_v23  ;;  %v14832_v53 = vld [vmem:[#allocation48_spill] sm:$0xff]  ;;  %v14833_v23 = vld [vmem:[#allocation63_spill] sm:$0xff] }
 0x412   : > { %4908 = vmatpush1.msra.mxu0 %v14823_v47  ;;  %5097 = vmatprep.mubr.f32.mxu0 %v14824_v7  ;;  %v14834_v47 = vld [vmem:[#allocation38_spill] sm:$0xff]  ;;  %v14835_v7 = vld [vmem:[#allocation68_spill] sm:$0xff] }
 0x413   : > { %5125 = vmatpush1.msra.mxu1 %v14825_v59  ;;  %4911 = vmatprep.subr.mxu0 %v14826_v44  ;;  %v14836_v59 = vld [vmem:[#allocation54_spill] sm:$0xff] }
 0x414   : > { %5127 = vmatprep.subr.mxu1 %v14827_v31  ;;  %4914 = vmatpush1.msra.mxu0 %v14828_v1  ;;  %v14837_v31 = vld [vmem:[#allocation59_spill] sm:$0xff] }
 0x415   : > { %5129 = vmatpush1.msra.mxu1 %v14829_v63  ;;  %4917 = vmatprep.subr.mxu0 %v14830_v36  ;;  %v14838_v63 = vld [vmem:[#allocation65_spill] sm:$0xff] }
 0x416   : > { %5131 = vmatprep.subr.mxu1 %v14831_v46  ;;  %4920 = vmatpush1.msra.mxu0 %v14832_v53  ;;  %v14839_v46 = vld [vmem:[#allocation66_spill] sm:$0xff] }
 0x417   : > { %5133 = vmatpush1.msra.mxu1 %v14833_v23  ;;  %4923 = vmatprep.subr.mxu0 %v14834_v47  ;;  %v14840_v23 = vld [vmem:[#allocation83_spill] sm:$0xff] }
 0x418   : > { %5135 = vmatprep.subr.mxu1 %v14835_v7  ;;  %4926 = vmatpush1.msra.mxu0 %v14836_v59  ;;  %v14841_v7 = vld [vmem:[#allocation92_spill] sm:$0xff] }
 0x419   : > { %5137 = vmatpush1.msra.mxu1 %v10220_v9  ;;  %4929 = vmatprep.subr.mxu0 %v14837_v31  ;;  %v14842_v9 = vld [vmem:[#allocation109_spill] sm:$0xff] }
 0x41a   : > { %5139 = vmatprep.subr.mxu1 %v10222_v41  ;;  %4932 = vmatpush1.msra.mxu0 %v14838_v63  ;;  %v14843_v41 = vld [vmem:[#allocation110_spill] sm:$0xff]  ;;  %v14844_v63 = vld [vmem:[#allocation79_spill] sm:$0xff] }
 0x41b   : > { %5141 = vmatpush1.msra.mxu1 %v10235_v42  ;;  %4935 = vmatprep.subr.mxu0 %v14839_v46  ;;  %v14845_v42 = vld [vmem:[#allocation13_spill] sm:$0xff]  ;;  %v14846_v46 = vld [vmem:[#allocation84_spill] sm:$0xff] }
 0x41c   : > { %5143 = vmatprep.subr.mxu1 %v10237_v12  ;;  %4938 = vmatpush1.msra.mxu0 %v14840_v23  ;;  %v14847_v12 = vld [vmem:[#allocation9_spill] sm:$0xff] }
 0x41d   : > { %5145 = vmatpush1.msra.mxu1 %v10259_v20  ;;  %4941 = vmatprep.subr.mxu0 %v14841_v7  ;;  %v14848_v23 = vld [vmem:[#allocation81_spill] sm:$0xff]  ;;  %v14850_v7 = vld [vmem:[#allocation14_spill] sm:$0xff] }
 0x41e   : > { %5147 = vmatprep.subr.mxu1 %v10277_v32  ;;  %4944 = vmatpush1.msra.mxu0 %v14842_v9  ;;  %v14849_v20 = vld [vmem:[#allocation17_spill] sm:$0xff]  ;;  %v14852_v9 = vld [vmem:[#allocation82_spill] sm:$0xff] }
 0x41f   : > { %5149 = vmatpush1.msra.mxu1 %v10303_v26  ;;  %4947 = vmatprep.subr.mxu0 %v14843_v41  ;;  %v14851_v32 = vld [vmem:[#allocation73_spill] sm:$0xff]  ;;  %v14853_v26 = vld [vmem:[#allocation3_spill] sm:$0xff] }
 0x420   : > { %5151 = vmatprep.subr.mxu1 %v14844_v63  ;;  %4950 = vmatpush1.msra.mxu0 %v14845_v42  ;;  %v14854_v41 = vld [vmem:[#allocation25_spill] sm:$0xff]  ;;  %v14855_v63 = vld [vmem:[#allocation52_spill] sm:$0xff]  ;;  %v14856_v42 = vld [vmem:[#allocation27_spill] sm:$0xff] }
 0x421   : > { %5153 = vmatpush1.msra.mxu1 %v14846_v46  ;;  %4953 = vmatprep.subr.mxu0 %v14847_v12  ;;  %v14857_v46 = vld [vmem:[#allocation85_spill] sm:$0xff]  ;;  %v14858_v12 = vld [vmem:[#allocation16_spill] sm:$0xff] }
 0x422   : > { %5155 = vmatprep.subr.mxu1 %v14848_v23  ;;  %4956 = vmatpush1.msra.mxu0 %v14849_v20  ;;  %v14859_v23 = vld [vmem:[#allocation89_spill] sm:$0xff]  ;;  %v14860_v20 = vld [vmem:[#allocation91_spill] sm:$0xff] }
 0x423   : > { %5157 = vmatpush1.msra.mxu1 %v14850_v7  ;;  %4959 = vmatprep.subr.mxu0 %v14851_v32  ;;  %v14861_v7 = vld [vmem:[#allocation4_spill] sm:$0xff]  ;;  %v14862_v32 = vld [vmem:[#allocation18_spill] sm:$0xff] }
 0x424   : > { %5159 = vmatprep.subr.mxu1 %v14852_v9  ;;  %4962 = vmatpush1.msra.mxu0 %v14853_v26  ;;  %v14863_v9 = vld [vmem:[#allocation86_spill] sm:$0xff] }
 0x425   : > { %5161 = vmatpush1.msra.mxu1 %v14854_v41  ;;  %4965 = vmatprep.subr.mxu0 %v14855_v63  ;;  %v14864_v26 = vld [vmem:[#allocation22_spill] sm:$0xff]  ;;  %v14865_v41 = vld [vmem:[#allocation88_spill] sm:$0xff] }
 0x426   : > { %5163 = vmatprep.subr.mxu1 %v14856_v42  ;;  %4968 = vmatpush1.msra.mxu0 %v14857_v46  ;;  %v14866_v63 = vld [vmem:[#allocation26_spill] sm:$0xff]  ;;  %v14867_v42 = vld [vmem:[#allocation93_spill] sm:$0xff] }
 0x427   : > { %5165 = vmatpush1.msra.mxu1 %v14858_v12  ;;  %4971 = vmatprep.subr.mxu0 %v14859_v23  ;;  %v14868_v12 = vld [vmem:[#allocation20_spill] sm:$0xff] }
 0x428   : > { %5167 = vmatprep.subr.mxu1 %v14860_v20  ;;  %4974 = vmatpush1.msra.mxu0 %v14861_v7  ;;  %v14869_v20 = vld [vmem:[#allocation23_spill] sm:$0xff] }
 0x429   : > { %5169 = vmatpush1.msra.mxu1 %v14862_v32  ;;  %4977 = vmatprep.subr.mxu0 %v14863_v9  ;;  %v14870_v32 = vld [vmem:[#allocation15_spill] sm:$0xff]  ;;  %v14871_v9 = vld [vmem:[#allocation37_spill] sm:$0xff] }
 0x42a   : > { %5171 = vmatprep.subr.mxu1 %v14864_v26  ;;  %4980 = vmatpush1.msra.mxu0 %v14865_v41  ;;  %v14872_v26 = vld [vmem:[#allocation24_spill] sm:$0xff] }
 0x42b   : > { %5173 = vmatpush2.msra.mxu1 %v14866_v63  ;;  %4983 = vmatprep.subr.mxu0 %v14867_v42  ;;  %v14873_v63 = vld [vmem:[#allocation30_spill] sm:$0xff] }
 0x42c   : > { %5175 = vmatprep.subr.mxu1 %v10578_v28  ;;  %4986 = vmatpush1.msra.mxu0 %v14868_v12  ;;  %v14874_v28 = vld [vmem:[#allocation28_spill] sm:$0xff] }
 0x42d   : > { %5177 = vmatpush2.msra.mxu1 %v10611_v3  ;;  %4989 = vmatprep.subr.mxu0 %v14869_v20  ;;  %v14875_v3 = vld [vmem:[#allocation29_spill] sm:$0xff] }
 0x42e   : > { %5179 = vmatprep.subr.mxu1 %v10630_v39  ;;  %4992 = vmatpush1.msra.mxu0 %v14870_v32  ;;  %v14876_v39 = vld [vmem:[#allocation35_spill] sm:$0xff] }
 0x42f   : > { %5181 = vmatpush2.msra.mxu1 %v14871_v9  ;;  %4995 = vmatprep.subr.mxu0 %v14872_v26  ;;  %v14877_v9 = vld [vmem:[#allocation34_spill] sm:$0xff] }
 0x430   : > { %5183 = vmatprep.subr.mxu1 %v14794_v19  ;;  %4998 = vmatpush1.msra.mxu0 %v14873_v63  ;;  %v14878_v19 = vld [vmem:[#allocation42_spill] sm:$0xff] }
 0x431   : > { %5185 = vmatpush2.msra.mxu1 %v10707_v8  ;;  %5001 = vmatprep.subr.mxu0 %v14874_v28  ;;  %v14879_v8 = vld [vmem:[#allocation41_spill] sm:$0xff] }
 0x432   : > { %5187 = vmatprep.subr.mxu1 %v10719_v45  ;;  %5004 = vmatpush2.msra.mxu0 %v14875_v3  ;;  %v14880_v45 = vld [vmem:[#allocation60_spill] sm:$0xff] }
 0x433   : > { %5189 = vmatpush2.msra.mxu1 %v14802_v17  ;;  %5007 = vmatprep.subr.mxu0 %v14876_v39  ;;  %v14881_v17 = vld [vmem:[#allocation50_spill] sm:$0xff] }
 0x434   : > { %5191 = vmatprep.subr.mxu1 %v10755_v52  ;;  %5010 = vmatpush2.msra.mxu0 %v14877_v9  ;;  %v14882_v52 = vld [vmem:[#allocation69_spill] sm:$0xff] }
 0x435   : > { %5193 = vmatpush2.msra.mxu1 %v10770_v37  ;;  %5013 = vmatprep.subr.mxu0 %v14878_v19  ;;  %v14883_v37 = vld [vmem:[#allocation71_spill] sm:$0xff] }
 0x436   : > { %5195 = vmatprep.subr.mxu1 %v10772_v5  ;;  %5016 = vmatpush2.msra.mxu0 %v14879_v8  ;;  %v14884_v5 = vld [vmem:[#allocation78_spill] sm:$0xff] }
 0x437   : > { %5197 = vmatpush2.msra.mxu1 %v10784_v38  ;;  %5019 = vmatprep.subr.mxu0 %v14880_v45  ;;  %v14885_v38 = vld [vmem:[#allocation80_spill] sm:$0xff] }
 0x438   : > { %5199 = vmatprep.subr.mxu1 %v10795_v40  ;;  %5022 = vmatpush2.msra.mxu0 %v14881_v17  ;;  %v14886_v40 = vld [vmem:[#allocation87_spill] sm:$0xff] }
 0x439   : > { %5201 = vmatpush2.msra.mxu1 %v10797_v14  ;;  %5025 = vmatprep.subr.mxu0 %v14882_v52  ;;  %v14887_v14 = vld [vmem:[#allocation102_spill] sm:$0xff] }
 0x43a   : > { %5203 = vmatprep.subr.mxu1 %v10860_v51  ;;  %5028 = vmatpush2.msra.mxu0 %v14883_v37  ;;  %v14888_v51 = vld [vmem:[#allocation104_spill] sm:$0xff] }
 0x43b   : > { %5205 = vmatpush2.msra.mxu1 %v10885_v24  ;;  %5031 = vmatprep.subr.mxu0 %v14884_v5  ;;  %v14889_v24 = vld [vmem:[#allocation105_spill] sm:$0xff] }
 0x43c   : > { %5207 = vmatprep.subr.mxu1 %v10917_v15  ;;  %5034 = vmatpush2.msra.mxu0 %v14885_v38  ;;  %v14890_v15 = vld [vmem:[#allocation111_spill] sm:$0xff] }
 0x43d   : > { %5209 = vmatpush2.msra.mxu1 %v10936_v22  ;;  %5037 = vmatprep.subr.mxu0 %v14886_v40  ;;  %v14891_v22 = vld [vmem:[#allocation114_spill] sm:$0xff] }
 0x43e   : > { %5211 = vmatprep.subr.mxu1 %v10953_v16  ;;  %5040 = vmatpush2.msra.mxu0 %v14887_v14  ;;  %v14892_v16 = vld [vmem:[#allocation116_spill] sm:$0xff] }
 0x43f   : > { %5213 = vmatpush2.msra.mxu1 %v10979_v56  ;;  %5043 = vmatprep.subr.mxu0 %v14888_v51  ;;  %v14893_v56 = vld [vmem:[#allocation117_spill] sm:$0xff] }
 0x440   : > { %5215 = vmatprep.subr.mxu1 %v10992_v27  ;;  %5046 = vmatpush2.msra.mxu0 %v14889_v24 }
 0x441   : > { %5217 = vmatpush2.msra.mxu1 %v11003_v11  ;;  %5049 = vmatprep.subr.mxu0 %v14890_v15 }
 0x442   : > { %5219 = vmatprep.subr.mxu1 %v11015_v30  ;;  %5052 = vmatpush2.msra.mxu0 %v14891_v22 }
 0x443   : > { %5221 = vmatpush2.msra.mxu1 %v11026_v21  ;;  %5055 = vmatprep.subr.mxu0 %v14892_v16 }
 0x444   : > { %5223 = vmatprep.subr.mxu1 %v11049_v35  ;;  %5058 = vmatpush2.msra.mxu0 %v14893_v56  ;;  %v14894_v56 = vld [vmem:[#allocation98_spill] sm:$0xff] }
 0x445   : > { %5225 = vmatpush2.msra.mxu1 %v11059_v25  ;;  %5061 = vmatprep.subr.mxu0 %v11013_v54 }
 0x446   : > { %5227 = vmatprep.subr.mxu1 %v11072_v62  ;;  %5064 = vmatpush2.msra.mxu0 %v11024_v60  ;;  %v14895_v60 = vld [vmem:[#allocation95_spill] sm:$0xff] }
 0x447   : > { %5229 = vmatpush2.msra.mxu1 %v11083_v57  ;;  %5067 = vmatprep.subr.mxu0 %v11047_v43 }
 0x448   : > { %5231 = vmatprep.subr.mxu1 %v11093_v61  ;;  %5070 = vmatpush2.msra.mxu0 %v11057_v48 }
 0x449   : > { %5233 = vmatpush2.msra.mxu1 %v11104_v33  ;;  %5073 = vmatprep.subr.mxu0 %v11070_v29 }
 0x44a   : > { %5241 = vmatmul.mubr.f32.vlgmr.msra.gmra.mxu1 %v14894_v56  ;;  %5513 = vmatprep.subr.mxu1 %v14811_v58  ;;  %v14896_v58 = vld [vmem:[#allocation45_spill] sm:$0xff] }
 0x44b   : > { %5076 = vmatpush2.msra.mxu0 %v11081_v34  ;;  %5515 = vmatpush1.msra.mxu1 %v14812_v13  ;;  %v14897_v13 = vld [vmem:[#allocation124_spill] sm:$0xff]  ;;  %v14898_v56 = vld [vmem:[#allocation53_spill] sm:$0xff] }
 0x44c   : > { %5641 = vmatprep.mubr.f32.mxu1 %v14895_v60  ;;  %5079 = vmatprep.subr.mxu0 %v11091_v4 }
 0x44d   : > { %5517 = vmatprep.subr.mxu1 %v14814_v55  ;;  %5082 = vmatpush2.msra.mxu0 %v11102_v6  ;;  %v14899_v55 = vld [vmem:[#allocation96_spill] sm:$0xff]  ;;  %v14900_v6 = vld [vmem:[#allocation5_spill] sm:$0xff] }
 0x44e   : > { %5519 = vmatpush1.msra.mxu1 %v14815_v18  ;;  %5085 = vmatprep.subr.mxu0 %v11115_v2  ;;  %v14901_v18 = vand.u32 4294901760, %v14900_v6  ;;  %v14902_v2 = vld [vmem:[#allocation47_spill] sm:$0xff]  ;;  %v14910_v6 = vand.u32 4294901760, %v14830_v36  ;;  %v14918_v36 = vand.u32 4294901760, %v14837_v31 }
 0x44f   : > { %5521 = vmatprep.subr.mxu1 %v14816_v0  ;;  %5088 = vmatpush2.msra.mxu0 %v11125_v10  ;;  %v14903_v0 = vld [vmem:[#allocation21_spill] sm:$0xff]  ;;  %v15027_v10 = vand.u32 4294901760, %v14881_v17  ;;  %v15041_v17 = vld [vmem:[#allocation108_spill] sm:$0xff] }
 0x450   : > { %5523 = vmatpush1.msra.mxu1 %v14817_v50  ;;  %5091 = vmatprep.subr.mxu0 %v11133_v49  ;;  %v14904_v4 = vand.u32 4294901760, %v14903_v0  ;;  %v14905_v50 = vld [vmem:[#allocation61_spill] sm:$0xff]  ;;  %v14915_v0 = vld [vmem:[#allocation68_spill] sm:$0xff] }
 0x451   : > { %5525 = vmatprep.subr.mxu1 %v14896_v58  ;;  %5094 = vmatpush2.msra.mxu0 %v14897_v13  ;;  %v14906_v58 = vand.u32 4294901760, %v14826_v44  ;;  %v14907_v13 = vld [vmem:[#allocation62_spill] sm:$0xff]  ;;  %v14914_v44 = vand.u32 4294901760, %v14834_v47 }
 0x452   : > { %5527 = vmatpush1.msra.mxu1 %v14898_v56  ;;  %5100 = vmatmul.mubr.f32.vlgmr.msra.gmra.mxu0 %v14899_v55  ;;  %v14908_v56 = vand.u32 4294901760, %v14828_v1  ;;  %v14909_v55 = vld [vmem:[#allocation56_spill] sm:$0xff]  ;;  %v14916_v1 = vand.u32 4294901760, %v14836_v59 }
 0x453   : > { %5250 = vmatprep.subr.mxu0 %v14901_v18  ;;  %5529 = vmatprep.subr.mxu1 %v14902_v2  ;;  %v14911_v2 = vld [vmem:[#allocation57_spill] sm:$0xff]  ;;  %v14913_v18 = vld [vmem:[#allocation63_spill] sm:$0xff] }
 0x454   : > { %5254 = vmatpush1.msra.mxu0 %v14904_v4  ;;  %5504 = vmatprep.mubr.f32.mxu0 %v14895_v60  ;;  %v14912_v4 = vand.u32 4294901760, %v14832_v53 }
 0x455   : > { %5531 = vmatpush1.msra.mxu1 %v14905_v50  ;;  %5258 = vmatprep.subr.mxu0 %v14906_v58  ;;  %v14920_v50 = vld [vmem:[#allocation65_spill] sm:$0xff]  ;;  %v14922_v58 = vld [vmem:[#allocation103_spill] sm:$0xff] }
 0x456   : > { %5533 = vmatprep.subr.mxu1 %v14907_v13  ;;  %5262 = vmatpush1.msra.mxu0 %v14908_v56  ;;  %v14917_v13 = vld [vmem:[#allocation72_spill] sm:$0xff]  ;;  %v14921_v53 = vand.u32 4294901760, %v14920_v50  ;;  %v14923_v56 = vld [vmem:[#allocation66_spill] sm:$0xff]  ;;  %v14937_v50 = vld [vmem:[#allocation79_spill] sm:$0xff] }
 0x457   : > { %5535 = vmatpush1.msra.mxu1 %v14909_v55  ;;  %5266 = vmatprep.subr.mxu0 %v14910_v6  ;;  %v14919_v55 = vld [vmem:[#allocation90_spill] sm:$0xff]  ;;  %v14924_v47 = vand.u32 4294901760, %v14923_v56 }
 0x458   : > { %5537 = vmatprep.subr.mxu1 %v14911_v2  ;;  %5270 = vmatpush1.msra.mxu0 %v14912_v4  ;;  %v14925_v6 = vld [vmem:[#allocation106_spill] sm:$0xff]  ;;  %v14926_v2 = vld [vmem:[#allocation83_spill] sm:$0xff] }
 0x459   : > { %5539 = vmatpush1.msra.mxu1 %v14913_v18  ;;  %5274 = vmatprep.subr.mxu0 %v14914_v44  ;;  %v14927_v59 = vand.u32 4294901760, %v14926_v2  ;;  %v14928_v4 = vld [vmem:[#allocation7_spill] sm:$0xff]  ;;  %v14929_v18 = vld [vmem:[#allocation92_spill] sm:$0xff]  ;;  %v14931_v44 = vld [vmem:[#allocation70_spill] sm:$0xff] }
 0x45a   : > { %5541 = vmatprep.subr.mxu1 %v14915_v0  ;;  %5278 = vmatpush1.msra.mxu0 %v14916_v1  ;;  %v14930_v31 = vand.u32 4294901760, %v14929_v18  ;;  %v14932_v0 = vld [vmem:[#allocation109_spill] sm:$0xff] }
 0x45b   : > { %5543 = vmatpush1.msra.mxu1 %v14917_v13  ;;  %5282 = vmatprep.subr.mxu0 %v14918_v36  ;;  %v14933_v1 = vand.u32 4294901760, %v14932_v0  ;;  %v14934_v13 = vld [vmem:[#allocation19_spill] sm:$0xff]  ;;  %v14935_v36 = vld [vmem:[#allocation110_spill] sm:$0xff]  ;;  %v14941_v2 = vld [vmem:[#allocation9_spill] sm:$0xff] }
 0x45c   : > { %5545 = vmatprep.subr.mxu1 %v14919_v55  ;;  %5286 = vmatpush1.msra.mxu0 %v14921_v53  ;;  %v14936_v55 = vand.u32 4294901760, %v14935_v36  ;;  %v14938_v53 = vld [vmem:[#allocation13_spill] sm:$0xff] }
 0x45d   : > { %5547 = vmatpush1.msra.mxu1 %v14922_v58  ;;  %5290 = vmatprep.subr.mxu0 %v14924_v47  ;;  %v14939_v58 = vand.u32 4294901760, %v14938_v53  ;;  %v1662_v56 = vld [vmem:[%s12946_s10 + $0x3f8] sm:$0xff]  ;;  %v1661_v47 = vld [vmem:[%s12946_s10 + $0x3f0] sm:$0xff] }
 0x45e   : > { %5549 = vmatprep.subr.mxu1 %v14925_v6  ;;  %5294 = vmatpush1.msra.mxu0 %v14927_v59  ;;  %v14940_v6 = vld [vmem:[#allocation84_spill] sm:$0xff]  ;;  %v14942_v59 = vand.u32 4294901760, %v14941_v2  ;;  %v14943_v18 = vld [vmem:[#allocation81_spill] sm:$0xff]  ;;  %v14951_v53 = vld [vmem:[#allocation82_spill] sm:$0xff] }
 0x45f   : > { %5551 = vmatpush1.msra.mxu1 %v14928_v4  ;;  %5298 = vmatprep.subr.mxu0 %v14930_v31  ;;  %v1654_v4 = vld [vmem:[%s12946_s10 + $0x3b8] sm:$0xff]  ;;  %v1653_v0 = vld [vmem:[%s12946_s10 + $0x3b0] sm:$0xff] }
 0x460   : > { %5553 = vmatprep.subr.mxu1 %v14931_v44  ;;  %5302 = vmatpush1.msra.mxu0 %v14933_v1  ;;  %v14944_v31 = vld [vmem:[#allocation17_spill] sm:$0xff]  ;;  %v14946_v1 = vld [vmem:[#allocation14_spill] sm:$0xff]  ;;  %v11415_v2 = vand.u32 4294901760, %v1654_v4 }
 0x461   : > { %5555 = vmatpush1.msra.mxu1 %v14934_v13  ;;  %5306 = vmatprep.subr.mxu0 %v14936_v55  ;;  %v14945_v44 = vand.u32 4294901760, %v14944_v31  ;;  %v14947_v13 = vld [vmem:[#allocation73_spill] sm:$0xff]  ;;  %v11408_v55 = vand.u32 4294901760, %v1662_v56 }
 0x462   : > { %5557 = vmatprep.subr.mxu1 %v14937_v50  ;;  %5310 = vmatpush1.msra.mxu0 %v14939_v58  ;;  %v14948_v36 = vand.u32 4294901760, %v14947_v13  ;;  %v11410_v50 = vand.u32 4294901760, %v1661_v47  ;;  %v14952_v58 = vld [vmem:[#allocation3_spill] sm:$0xff]  ;;  %14954 = vst [vmem:[#allocation10_spill] sm:$0xff] %v11415_v2  ;;  %v14960_v13 = vand.u32 4294901760, %v14857_v46  ;;  %v14966_v46 = vand.u32 4294901760, %v14861_v7 }
 0x463   : > { %5559 = vmatpush1.msra.mxu1 %v14940_v6  ;;  %5314 = vmatprep.subr.mxu0 %v14942_v59  ;;  %14949 = vst [vmem:[#allocation6_spill] sm:$0xff] %v11408_v55  ;;  %v14953_v6 = vand.u32 4294901760, %v14952_v58  ;;  %v14955_v59 = vld [vmem:[#allocation25_spill] sm:$0xff]  ;;  %v14962_v58 = vand.u32 4294901760, %v14859_v23  ;;  %v14968_v23 = vld [vmem:[#allocation18_spill] sm:$0xff] }
 0x464   : > { %5561 = vmatprep.subr.mxu1 %v14943_v18  ;;  %5318 = vmatpush1.msra.mxu0 %v14945_v44  ;;  %14950 = vst [vmem:[#allocation8_spill] sm:$0xff] %v11410_v50  ;;  %v14956_v18 = vld [vmem:[#allocation52_spill] sm:$0xff]  ;;  %v11420_v44 = vand.u32 4294901760, %v1653_v0  ;;  %v1638_v7 = vld [vmem:[%s12946_s10 + $0x338] sm:$0xff] }
 0x465   : > { %5563 = vmatpush1.msra.mxu1 %v14946_v1  ;;  %5322 = vmatprep.subr.mxu0 %v14948_v36  ;;  %v14957_v31 = vand.u32 4294901760, %v14956_v18  ;;  %v14959_v1 = vld [vmem:[#allocation27_spill] sm:$0xff]  ;;  %v1646_v36 = vld [vmem:[%s12946_s10 + $0x378] sm:$0xff] }
 0x466   : > { %5565 = vmatprep.subr.mxu1 %v14951_v53  ;;  %5326 = vmatpush1.msra.mxu0 %v14953_v6  ;;  %14958 = vst [vmem:[#allocation11_spill] sm:$0xff] %v11420_v44  ;;  %v14961_v53 = vld [vmem:[#allocation16_spill] sm:$0xff]  ;;  %v11432_v6 = vsub.f32 %v1662_v56, %v11408_v55  ;;  %v14965_v18 = vld [vmem:[#allocation91_spill] sm:$0xff]  ;;  %v1590_v55 = vld [vmem:[%s12946_s10 + $0x1b8] sm:$0xff] }
 0x467   : > { %5567 = vmatpush1.msra.mxu1 %v14955_v59  ;;  %5330 = vmatprep.subr.mxu0 %v14957_v31  ;;  %v11435_v59 = vsub.f32 %v1661_v47, %v11410_v50  ;;  %v11441_v31 = vsub.f32 %v1654_v4, %v11415_v2  ;;  %v11450_v47 = vsub.f32 %v1653_v0, %v11420_v44  ;;  %v14973_v4 = vld [vmem:[#allocation22_spill] sm:$0xff]  ;;  %v14976_v0 = vand.u32 4294901760, %v14867_v42  ;;  %v3221_v44 = vpop.f32.mrf.mxu0 }
 0x468   : > { %5569 = vmatprep.subr.mxu1 %v14959_v1  ;;  %5334 = vmatpush1.msra.mxu0 %v14960_v13  ;;  %14963 = vst [vmem:[#allocation12_spill] sm:$0xff] %v11432_v6  ;;  %v1645_v1 = vld [vmem:[%s12946_s10 + $0x370] sm:$0xff]  ;;  %v14969_v13 = vld [vmem:[#allocation86_spill] sm:$0xff]  ;;  %v11474_v2 = vand.u32 4294901760, %v1638_v7  ;;  %v14982_v42 = vand.u32 4294901760, %v14869_v20  ;;  %v14989_v20 = vand.u32 4294901760, %v11432_v6 }
 0x469   : > { %5571 = vmatpush1.msra.mxu1 %v14961_v53  ;;  %5338 = vmatprep.subr.mxu0 %v14962_v58  ;;  %14964 = vst [vmem:[#allocation44_spill] sm:$0xff] %v11435_v59  ;;  %14967 = vst [vmem:[#allocation75_spill] sm:$0xff] %v11441_v31  ;;  %v14970_v56 = vand.u32 4294901760, %v14969_v13  ;;  %v11452_v53 = vand.u32 4294901760, %v1646_v36  ;;  %v14974_v58 = vand.u32 4294901760, %v14865_v41  ;;  %v14979_v41 = vand.u32 4294901760, %v14868_v12 }
 0x46a   : > { %5573 = vmatprep.subr.mxu1 %v14965_v18  ;;  %5342 = vmatpush1.msra.mxu0 %v14966_v46  ;;  %14971 = vst [vmem:[#allocation39_spill] sm:$0xff] %v11450_v47  ;;  %v1637_v18 = vld [vmem:[%s12946_s10 + $0x330] sm:$0xff]  ;;  %v14975_v46 = vld [vmem:[#allocation26_spill] sm:$0xff]  ;;  %14980 = vst [vmem:[#allocation38_spill] sm:$0xff] %v11474_v2  ;;  %v14986_v12 = vand.u32 4294901760, %v14870_v32 }
 0x46b   : > { %5575 = vmatpush1.msra.mxu1 %v14968_v23  ;;  %5346 = vmatprep.subr.mxu0 %v14970_v56  ;;  %14972 = vst [vmem:[#allocation46_spill] sm:$0xff] %v11452_v53  ;;  %v11468_v56 = vand.u32 4294901760, %v1645_v1  ;;  %v11481_v13 = vsub.f32 %v1646_v36, %v11452_v53  ;;  %v11483_v23 = vand.u32 4294901760, %v1637_v18  ;;  %v14990_v36 = vand.u32 4294901760, %v11435_v59  ;;  %v1630_v32 = vld [vmem:[%s12946_s10 + $0x2f8] sm:$0xff] }
 0x46c   : > { %5577 = vmatprep.subr.mxu1 %v14973_v4  ;;  %5350 = vmatpush1.msra.mxu0 %v14974_v58  ;;  %v14978_v4 = vld [vmem:[#allocation31_spill] sm:$0xff]  ;;  %v14988_v58 = vand.u32 4294901760, %v14872_v26  ;;  %v1629_v26 = vld [vmem:[%s12946_s10 + $0x2f0] sm:$0xff]  ;;  %v1598_v53 = vld [vmem:[%s12946_s10 + $0x1f8] sm:$0xff] }
 0x46d   : > { %5579 = vmatpush2.msra.mxu1 %v14975_v46  ;;  %5354 = vmatprep.subr.mxu0 %v14976_v0  ;;  %14977 = vst [vmem:[#allocation48_spill] sm:$0xff] %v11468_v56  ;;  %v14981_v46 = vld [vmem:[#allocation33_spill] sm:$0xff]  ;;  %14983 = vst [vmem:[#allocation54_spill] sm:$0xff] %v11481_v13  ;;  %v14994_v0 = vand.u32 4294901760, %v14873_v63  ;;  %v15006_v63 = vld [vmem:[#allocation58_spill] sm:$0xff] }
 0x46e   : > { %5581 = vmatprep.subr.mxu1 %v14978_v4  ;;  %5358 = vmatpush1.msra.mxu0 %v14979_v41  ;;  %14984 = vst [vmem:[#allocation59_spill] sm:$0xff] %v11483_v23  ;;  %v14985_v4 = vld [vmem:[#allocation32_spill] sm:$0xff]  ;;  %v14987_v41 = vld [vmem:[#allocation37_spill] sm:$0xff] }
 0x46f   : > { %5583 = vmatpush2.msra.mxu1 %v14981_v46  ;;  %5362 = vmatprep.subr.mxu0 %v14982_v42  ;;  %v11494_v46 = vsub.f32 %v11432_v6, %v14989_v20  ;;  %v11499_v42 = vsub.f32 %v11435_v59, %v14990_v36  ;;  %v14993_v20 = vld [vmem:[#allocation36_spill] sm:$0xff]  ;;  %v14995_v36 = vand.u32 4294901760, %v11441_v31  ;;  %v11520_v59 = vsub.f32 %v1638_v7, %v11474_v2  ;;  %v14997_v6 = vld [vmem:[#allocation51_spill] sm:$0xff]  ;;  %v1622_v7 = vld [vmem:[%s12946_s10 + $0x2b8] sm:$0xff] }
 0x470   : > { %5585 = vmatprep.subr.mxu1 %v14985_v4  ;;  %5366 = vmatpush1.msra.mxu0 %v14986_v12  ;;  %v11502_v4 = vsub.f32 %v1645_v1, %v11468_v56  ;;  %v14998_v56 = vand.u32 4294901760, %v14874_v28  ;;  %v15003_v28 = vand.u32 4294901760, %v14875_v3  ;;  %v1613_v2 = vld [vmem:[%s12946_s10 + $0x270] sm:$0xff] }
 0x471   : > { %5587 = vmatpush2.msra.mxu1 %v14987_v41  ;;  %5370 = vmatprep.subr.mxu0 %v14988_v58  ;;  %v14992_v58 = vld [vmem:[#allocation40_spill] sm:$0xff]  ;;  %v3223_v41 = vpop.f32.mrf.mxu0  ;;  %v11517_v1 = vsub.f32 %v11441_v31, %v14995_v36  ;;  %14996 = vst [vmem:[#allocation89_spill] sm:$0xff] %v11520_v59  ;;  %v3614_v36 = vpop.f32.mrf.mxu1  ;;  %v15002_v31 = vld [vmem:[#allocation43_spill] sm:$0xff]  ;;  %v11604_v50 = vand.u32 4294901760, %v1613_v2 }
 0x472   : > { %14991 = vst [vmem:[#allocation85_spill] sm:$0xff] %v11502_v4  ;;  %v3222_v12 = vadd.f32 %v3221_v44, %v14992_v58  ;;  %5589 = vmatprep.subr.mxu1 %v14993_v20  ;;  %5374 = vmatpush1.msra.mxu0 %v14994_v0  ;;  %v14999_v44 = vand.u32 4294901760, %v11450_v47  ;;  %v11532_v0 = vsub.f32 %v1637_v18, %v11483_v23  ;;  %v1614_v23 = vld [vmem:[%s12946_s10 + $0x278] sm:$0xff] }
 0x473   : > { %5591 = vmatpush2.msra.mxu1 %v14997_v6  ;;  %5378 = vmatprep.subr.mxu0 %v14998_v56  ;;  %v11540_v6 = vand.u32 4294901760, %v1630_v32  ;;  %v11542_v56 = vand.u32 4294901760, %v1629_v26  ;;  %v3224_v18 = vadd.f32 %v3223_v41, %v14992_v58  ;;  %15020 = vst [vmem:[#allocation29_spill] sm:$0xff] %v11604_v50 }
 0x474   : > { %v11528_v20 = vsub.f32 %v11450_v47, %v14999_v44  ;;  %15001 = vst [vmem:[#allocation88_spill] sm:$0xff] %v11532_v0  ;;  %5593 = vmatprep.subr.mxu1 %v15002_v31  ;;  %5382 = vmatpush2.msra.mxu0 %v15003_v28  ;;  %v1621_v44 = vld [vmem:[%s12946_s10 + $0x2b0] sm:$0xff]  ;;  %v15007_v47 = vand.u32 4294901760, %v14876_v39  ;;  %v11560_v41 = vadd.f32 %v3614_v36, %v3222_v12  ;;  %v15009_v39 = vand.u32 4294901760, %v14877_v9  ;;  %v1606_v28 = vld [vmem:[%s12946_s10 + $0x238] sm:$0xff] }
 0x475   : > { %15004 = vst [vmem:[#allocation93_spill] sm:$0xff] %v11540_v6  ;;  %15005 = vst [vmem:[#allocation20_spill] sm:$0xff] %v11542_v56  ;;  %5595 = vmatpush2.msra.mxu1 %v15006_v63  ;;  %v15008_v63 = vld [vmem:[#allocation49_spill] sm:$0xff]  ;;  %v11567_v31 = vand.u32 4294901760, %v1622_v7  ;;  %v15011_v36 = vld [vmem:[#allocation64_spill] sm:$0xff]  ;;  %v11585_v58 = vand.u32 4294901760, %v1621_v44  ;;  %v11600_v3 = vsub.f32 %v1629_v26, %v11542_v56 }
 0x476   : > { %15000 = vst [vmem:[#allocation4_spill] sm:$0xff] %v11528_v20  ;;  %5386 = vmatprep.subr.mxu0 %v15007_v47  ;;  %5597 = vmatprep.subr.mxu1 %v15008_v63  ;;  %v1605_v12 = vld [vmem:[%s12946_s10 + $0x230] sm:$0xff]  ;;  %v15012_v63 = vand.u32 4294901760, %v14878_v19  ;;  %v15016_v9 = vand.u32 4294901760, %v14879_v8  ;;  %v15022_v8 = vand.u32 4294901760, %v14880_v45  ;;  %v15038_v20 = vand.u32 4294901760, %v14883_v37 }
 0x477   : > { %5390 = vmatpush2.msra.mxu0 %v15009_v39  ;;  %15010 = vst [vmem:[#allocation23_spill] sm:$0xff] %v11567_v31  ;;  %5599 = vmatpush2.msra.mxu1 %v15011_v36  ;;  %v15013_v39 = vand.u32 4294901760, %v11481_v13  ;;  %15014 = vst [vmem:[#allocation15_spill] sm:$0xff] %v11585_v58  ;;  %v1597_v19 = vld [vmem:[%s12946_s10 + $0x1f0] sm:$0xff]  ;;  %v3616_v36 = vpop.f32.mrf.mxu1  ;;  %v11621_v56 = vand.u32 4294901760, %v1605_v12  ;;  %v11632_v45 = vsub.f32 %v1622_v7, %v11567_v31  ;;  %v15037_v31 = vld [vmem:[#allocation107_spill] sm:$0xff] }
 0x478   : > { %5394 = vmatprep.subr.mxu0 %v15012_v63  ;;  %v15015_v63 = vld [vmem:[#allocation67_spill] sm:$0xff]  ;;  %15018 = vst [vmem:[#allocation30_spill] sm:$0xff] %v11600_v3  ;;  %v11609_v49 = vadd.f32 %v3616_v36, %v3224_v18  ;;  %v15028_v18 = vand.u32 4294901760, %v11520_v59  ;;  %v15050_v37 = vld [vmem:[#allocation113_spill] sm:$0xff] }
 0x479   : > { %v11582_v47 = vsub.f32 %v11481_v13, %v15013_v39  ;;  %5601 = vmatprep.subr.mxu1 %v15015_v63  ;;  %5398 = vmatpush2.msra.mxu0 %v15016_v9  ;;  %v11597_v39 = vsub.f32 %v1630_v32, %v11540_v6  ;;  %v11602_v13 = vand.u32 4294901760, %v1614_v23  ;;  %v15021_v63 = vld [vmem:[#allocation74_spill] sm:$0xff]  ;;  %v15023_v32 = vand.u32 4294901760, %v11502_v4  ;;  %15025 = vst [vmem:[#allocation34_spill] sm:$0xff] %v11621_v56  ;;  %v15026_v6 = vld [vmem:[#allocation76_spill] sm:$0xff] }
 0x47a   : > { %5603 = vmatpush2.msra.mxu1 %v15021_v63  ;;  %5402 = vmatprep.subr.mxu0 %v15022_v8  ;;  %v11619_v9 = vand.u32 4294901760, %v1606_v28  ;;  %v11629_v36 = vsub.f32 %v11520_v59, %v15028_v18  ;;  %15029 = vst [vmem:[#allocation42_spill] sm:$0xff] %v11632_v45  ;;  %v11634_v63 = vand.u32 4294901760, %v1598_v53  ;;  %v11636_v8 = vand.u32 4294901760, %v1597_v19 }
 0x47b   : > { %15017 = vst [vmem:[#allocation24_spill] sm:$0xff] %v11597_v39  ;;  %15019 = vst [vmem:[#allocation28_spill] sm:$0xff] %v11602_v13  ;;  %v11617_v26 = vsub.f32 %v11502_v4, %v15023_v32  ;;  %5605 = vmatprep.subr.mxu1 %v15026_v6  ;;  %5406 = vmatpush2.msra.mxu0 %v15027_v10  ;;  %v1589_v32 = vld [vmem:[%s12946_s10 + $0x1b0] sm:$0xff]  ;;  %v15033_v10 = vand.u32 4294901760, %v14882_v52  ;;  %v15034_v18 = vand.u32 4294901760, %v11532_v0  ;;  %v11653_v4 = vand.u32 4294901760, %v1590_v55 }
 0x47c   : > { %15024 = vst [vmem:[#allocation35_spill] sm:$0xff] %v11619_v9  ;;  %15030 = vst [vmem:[#allocation41_spill] sm:$0xff] %v11634_v63  ;;  %v15032_v6 = vld [vmem:[#allocation77_spill] sm:$0xff]  ;;  %v11651_v59 = vsub.f32 %v1621_v44, %v11585_v58  ;;  %v15047_v52 = vand.u32 4294901760, %v14885_v38  ;;  %v15057_v38 = vand.u32 4294901760, %v11600_v3 }
 0x47d   : > { %15031 = vst [vmem:[#allocation60_spill] sm:$0xff] %v11636_v8  ;;  %5607 = vmatpush2.msra.mxu1 %v15032_v6  ;;  %5410 = vmatprep.subr.mxu0 %v15033_v10  ;;  %v11648_v7 = vsub.f32 %v11532_v0, %v15034_v18  ;;  %15036 = vst [vmem:[#allocation69_spill] sm:$0xff] %v11653_v4  ;;  %v11661_v10 = vsub.f32 %v1614_v23, %v11602_v13  ;;  %v1582_v44 = vld [vmem:[%s12946_s10 + $0x178] sm:$0xff]  ;;  %v11679_v6 = vand.u32 4294901760, %v1589_v32 }
 0x47e   : > { %15035 = vst [vmem:[#allocation50_spill] sm:$0xff] %v11651_v59  ;;  %5609 = vmatprep.subr.mxu1 %v15037_v31  ;;  %5414 = vmatpush2.msra.mxu0 %v15038_v20  ;;  %v11664_v18 = vsub.f32 %v1613_v2, %v11604_v50  ;;  %v15042_v31 = vand.u32 4294901760, %v14884_v5  ;;  %v11674_v20 = vsub.f32 %v1606_v28, %v11619_v9  ;;  %v15046_v2 = vld [vmem:[#allocation112_spill] sm:$0xff]  ;;  %v15054_v5 = vld [vmem:[#allocation55_spill] sm:$0xff]  ;;  %v15062_v0 = vand.u32 4294901760, %v14889_v24 }
 0x47f   : > { %15039 = vst [vmem:[#allocation71_spill] sm:$0xff] %v11661_v10  ;;  %5611 = vmatpush2.msra.mxu1 %v15041_v17  ;;  %v11677_v23 = vsub.f32 %v1605_v12, %v11621_v56  ;;  %15045 = vst [vmem:[#allocation102_spill] sm:$0xff] %v11679_v6  ;;  %v11690_v28 = vsub.f32 %v1597_v19, %v11636_v8  ;;  %v1581_v12 = vld [vmem:[%s12946_s10 + $0x170] sm:$0xff]  ;;  %v11701_v17 = vsub.f32 %v1590_v55, %v11653_v4  ;;  %v1574_v19 = vld [vmem:[%s12946_s10 + $0x138] sm:$0xff] }
 0x480   : > { %15040 = vst [vmem:[#allocation78_spill] sm:$0xff] %v11664_v18  ;;  %5418 = vmatprep.subr.mxu0 %v15042_v31  ;;  %15043 = vst [vmem:[#allocation80_spill] sm:$0xff] %v11674_v20  ;;  %5613 = vmatprep.subr.mxu1 %v15046_v2  ;;  %v11687_v31 = vsub.f32 %v1598_v53, %v11634_v63  ;;  %v15051_v2 = vand.u32 4294901760, %v14886_v40  ;;  %v11703_v53 = vand.u32 4294901760, %v1582_v44  ;;  %v15056_v40 = vand.u32 4294901760, %v11597_v39 }
 0x481   : > { %15044 = vst [vmem:[#allocation87_spill] sm:$0xff] %v11677_v23  ;;  %5422 = vmatpush2.msra.mxu0 %v15047_v52  ;;  %15049 = vst [vmem:[#allocation105_spill] sm:$0xff] %v11690_v28  ;;  %5615 = vmatpush2.msra.mxu1 %v15050_v37  ;;  %v15055_v37 = vand.u32 4294901760, %v14887_v14  ;;  %v11719_v55 = vsub.f32 %v11600_v3, %v15057_v38  ;;  %v15058_v14 = vld [vmem:[#allocation115_spill] sm:$0xff]  ;;  %v11732_v38 = vsub.f32 %v1589_v32, %v11679_v6 }
 0x482   : > { %15048 = vst [vmem:[#allocation104_spill] sm:$0xff] %v11687_v31  ;;  %5426 = vmatprep.subr.mxu0 %v15051_v2  ;;  %15052 = vst [vmem:[#allocation111_spill] sm:$0xff] %v11701_v17  ;;  %5617 = vmatprep.subr.mxu1 %v15054_v5  ;;  %v11714_v2 = vsub.f32 %v11597_v39, %v15056_v40  ;;  %v1573_v5 = vld [vmem:[%s12946_s10 + $0x130] sm:$0xff]  ;;  %v11734_v3 = vand.u32 4294901760, %v1581_v12  ;;  %v15063_v52 = vand.u32 4294901760, %v11632_v45  ;;  %v11746_v39 = vand.u32 4294901760, %v1574_v19 }
 0x483   : > { %15053 = vst [vmem:[#allocation114_spill] sm:$0xff] %v11703_v53  ;;  %5430 = vmatpush2.msra.mxu0 %v15055_v37  ;;  %5619 = vmatpush2.msra.mxu1 %v15058_v14  ;;  %v15059_v37 = vand.u32 4294901760, %v14888_v51  ;;  %15060 = vst [vmem:[#allocation116_spill] sm:$0xff] %v11732_v38  ;;  %v15065_v32 = vand.u32 4294901760, %v14890_v15  ;;  %v11760_v51 = vand.u32 4294901760, %v1573_v5  ;;  %v15078_v15 = vand.u32 4294901760, %v11687_v31 }
 0x484   : > { %15061 = vst [vmem:[#allocation45_spill] sm:$0xff] %v11734_v3  ;;  %5621 = vmatprep.subr.mxu1 %v10992_v27  ;;  %v11742_v14 = vsub.f32 %v11632_v45, %v15063_v52  ;;  %15064 = vst [vmem:[#allocation53_spill] sm:$0xff] %v11746_v39  ;;  %v15066_v27 = vand.u32 4294901760, %v11651_v59  ;;  %v11758_v52 = vsub.f32 %v1582_v44, %v11703_v53  ;;  %v15071_v44 = vand.u32 4294901760, %v11664_v18 }
 0x485   : > { %5434 = vmatprep.subr.mxu0 %v15059_v37  ;;  %5623 = vmatpush2.msra.mxu1 %v11003_v11  ;;  %15068 = vst [vmem:[#allocation47_spill] sm:$0xff] %v11760_v51  ;;  %v3817_v37 = vpop.f32.mrf.mxu0  ;;  %v15069_v11 = vand.u32 4294901760, %v14891_v22  ;;  %v15073_v22 = vand.u32 4294901760, %v11674_v20 }
 0x486   : > { %5438 = vmatpush2.msra.mxu0 %v15062_v0  ;;  %v11754_v24 = vsub.f32 %v11651_v59, %v15066_v27  ;;  %15067 = vst [vmem:[#allocation5_spill] sm:$0xff] %v11758_v52  ;;  %5625 = vmatprep.subr.mxu1 %v11015_v30  ;;  %v15070_v27 = vand.u32 4294901760, %v11661_v10  ;;  %v11775_v0 = vsub.f32 %v11664_v18, %v15071_v44  ;;  %v15072_v30 = vand.u32 4294901760, %v14892_v16  ;;  %v1566_v16 = vld [vmem:[%s12946_s10 + $0xf8] sm:$0xff]  ;;  %v15103_v59 = vld [vmem:[#allocation119_spill] sm:$0xff] }
 0x487   : > { %5442 = vmatprep.subr.mxu0 %v15065_v32  ;;  %5627 = vmatpush2.msra.mxu1 %v11026_v21  ;;  %v15074_v32 = vand.u32 4294901760, %v11677_v23  ;;  %v11792_v44 = vsub.f32 %v1581_v12, %v11734_v3  ;;  %v1565_v21 = vld [vmem:[%s12946_s10 + $0xf0] sm:$0xff]  ;;  %v11807_v12 = vsub.f32 %v11687_v31, %v15078_v15  ;;  %v11815_v18 = vsub.f32 %v1574_v19, %v11746_v39  ;;  %v3819_v19 = vpop.f32.mrf.mxu0 }
 0x488   : > { %5446 = vmatpush2.msra.mxu0 %v15069_v11  ;;  %v11770_v40 = vsub.f32 %v11661_v10, %v15070_v27  ;;  %v11783_v11 = vsub.f32 %v11674_v20, %v15073_v22  ;;  %5629 = vmatprep.subr.mxu1 %v11049_v35  ;;  %v15081_v35 = vand.u32 4294901760, %v11013_v54  ;;  %v1558_v54 = vld [vmem:[%s12946_s10 + $0xb8] sm:$0xff]  ;;  %v15104_v45 = vand.u32 4294901760, %v15103_v59 }
 0x489   : > { %5450 = vmatprep.subr.mxu0 %v15072_v30  ;;  %v11788_v27 = vsub.f32 %v11677_v23, %v15074_v32  ;;  %15075 = vst [vmem:[#allocation21_spill] sm:$0xff] %v11792_v44  ;;  %v15076_v30 = vld [vmem:[#allocation117_spill] sm:$0xff]  ;;  %v15079_v23 = vand.u32 4294901760, %v11690_v28  ;;  %15080 = vst [vmem:[#allocation61_spill] sm:$0xff] %v11815_v18  ;;  %5631 = vmatpush2.msra.mxu1 %v11059_v25  ;;  %v15084_v25 = vld [vmem:[#allocation118_spill] sm:$0xff]  ;;  %v3818_v32 = vadd.f32 %v3817_v37, %v11560_v41 }
 0x48a   : > { %v15077_v22 = vand.u32 4294901760, %v15076_v30  ;;  %5633 = vmatprep.subr.mxu1 %v11072_v62  ;;  %v15085_v31 = vand.u32 4294901760, %v15084_v25  ;;  %v11835_v30 = vand.u32 4294901760, %v1566_v16  ;;  %v15089_v25 = vand.u32 4294901760, %v11732_v38  ;;  %v1550_v62 = vld [vmem:[%s12946_s10 + $0x78] sm:$0xff]  ;;  %v1549_v41 = vld [vmem:[%s12946_s10 + $0x70] sm:$0xff] }
 0x48b   : > { %v11812_v20 = vsub.f32 %v11690_v28, %v15079_v23  ;;  %v11828_v23 = vsub.f32 %v1573_v5, %v11760_v51  ;;  %v3958_v28 = vpop.f32.mrf.mxu1  ;;  %5635 = vmatpush2.msra.mxu1 %v11083_v57  ;;  %v15088_v5 = vand.u32 4294901760, %v11047_v43  ;;  %v1557_v57 = vld [vmem:[%s12946_s10 + $0xb0] sm:$0xff]  ;;  %v15090_v43 = vand.u32 4294901760, %v11057_v48 }
 0x48c   : > { %5454 = vmatpush2.msra.mxu0 %v15077_v22  ;;  %v15082_v22 = vand.u32 4294901760, %v11701_v17  ;;  %15086 = vst [vmem:[#allocation56_spill] sm:$0xff] %v11835_v30  ;;  %5637 = vmatprep.subr.mxu1 %v11093_v61  ;;  %v15091_v61 = vand.u32 4294901760, %v11070_v29  ;;  %v1541_v29 = vld [vmem:[%s12946_s10 + $0x30] sm:$0xff] }
 0x48d   : > { %5458 = vmatprep.subr.mxu0 %v15081_v35  ;;  %15083 = vst [vmem:[#allocation62_spill] sm:$0xff] %v11828_v23  ;;  %v3820_v35 = vadd.f32 %v3819_v19, %v11609_v49  ;;  %5639 = vmatpush2.msra.mxu1 %v11104_v33  ;;  %v1542_v33 = vld [vmem:[%s12946_s10 + $0x38] sm:$0xff]  ;;  %v3960_v49 = vpop.f32.mrf.mxu1 }
 0x48e   : > { %v11824_v15 = vsub.f32 %v11701_v17, %v15082_v22  ;;  %5462 = vmatpush2.msra.mxu0 %v15085_v31  ;;  %v11837_v22 = vand.u32 4294901760, %v1565_v21  ;;  %v11847_v31 = vsub.f32 %v11732_v38, %v15089_v25  ;;  %v15093_v19 = vld [vmem:[#allocation94_spill] sm:$0xff]  ;;  %v11897_v25 = vand.u32 4294901760, %v1557_v57 }
 0x48f   : > { %5466 = vmatprep.subr.mxu0 %v15088_v5  ;;  %5643 = vmatmul.mubr.f32.vlgmr.msra.gmra.mxu1 %v15093_v19  ;;  %v11895_v5 = vand.u32 4294901760, %v1558_v54  ;;  %v15100_v38 = vand.u32 4294901760, %v11499_v42  ;;  %v3959_v17 = vadd.f32 %v3958_v28, %v3818_v32  ;;  %v4360_v10 = vpop.f32.mrf.mxu1  ;;  %v15105_v42 = vand.u32 4294901760, %v11815_v18 }
 0x490   : > { %15087 = vst [vmem:[#allocation57_spill] sm:$0xff] %v11837_v22  ;;  %5470 = vmatpush2.msra.mxu0 %v15090_v43  ;;  %v15092_v43 = vand.u32 4294901760, %v11758_v52  ;;  %v11893_v48 = vsub.f32 %v1565_v21, %v11837_v22  ;;  %15098 = vst [vmem:[#allocation90_spill] sm:$0xff] %v11897_v25  ;;  %v11909_v21 = vand.u32 4294901760, %v1550_v62  ;;  %6179 = vmatprep.mubr.f32.mxu1 %v14895_v60  ;;  %v11923_v32 = vand.u32 4294901760, %v1541_v29 }
 0x491   : > { %5474 = vmatprep.subr.mxu0 %v15091_v61  ;;  %v15094_v61 = vand.u32 4294901760, %v11494_v46  ;;  %15097 = vst [vmem:[#allocation72_spill] sm:$0xff] %v11895_v5  ;;  %v11917_v28 = vsub.f32 %v11815_v18, %v15105_v42  ;;  %v15110_v46 = vld [vmem:[#allocation120_spill] sm:$0xff]  ;;  %v15112_v22 = vand.u32 4294901760, %v11828_v23  ;;  %v1790_v18 = vld [vmem:[%s12946_s10 + $0x7f8] sm:$0xff] }
 0x492   : > { %v11874_v37 = vsub.f32 %v11758_v52, %v15092_v43  ;;  %v11890_v43 = vsub.f32 %v1566_v16, %v11835_v30  ;;  %15096 = vst [vmem:[#allocation68_spill] sm:$0xff] %v11893_v48  ;;  %v15099_v52 = vand.u32 4294901760, %v11081_v34  ;;  %15102 = vst [vmem:[#allocation65_spill] sm:$0xff] %v11909_v21  ;;  %v4223_v34 = vpop.f32.mrf.mxu0  ;;  %v15111_v60 = vand.u32 4294901760, %v15110_v46  ;;  %v15113_v30 = vld [vmem:[#allocation4_spill] sm:$0xff] }
 0x493   : > { %5799 = vmatprep.subr.mxu1 %v15094_v61  ;;  %v15101_v61 = vand.u32 4294901760, %v11792_v44  ;;  %15108 = vst [vmem:[#allocation106_spill] sm:$0xff] %v11923_v32  ;;  %v4224_v59 = vadd.f32 %v4223_v34, %v3959_v17  ;;  %v11933_v42 = vsub.f32 %v11828_v23, %v15112_v22  ;;  %v15114_v51 = vand.u32 4294901760, %v15113_v30  ;;  %v1789_v46 = vld [vmem:[%s12946_s10 + $0x7f0] sm:$0xff]  ;;  %v15120_v30 = vld [vmem:[#allocation122_spill] sm:$0xff] }
 0x494   : > { %15095 = vst [vmem:[#allocation63_spill] sm:$0xff] %v11890_v43  ;;  %5478 = vmatpush2.msra.mxu0 %v15099_v52  ;;  %5805 = vmatpush1.msra.mxu1 %v15100_v38  ;;  %v11919_v38 = vand.u32 4294901760, %v1549_v41  ;;  %v11921_v52 = vand.u32 4294901760, %v1542_v33  ;;  %v11948_v22 = vsub.f32 %v1557_v57, %v11897_v25  ;;  %v15121_v34 = vand.u32 4294901760, %v15120_v30  ;;  %v1782_v57 = vld [vmem:[%s12946_s10 + $0x7b8] sm:$0xff] }
 0x495   : > { %v11907_v16 = vsub.f32 %v11792_v44, %v15101_v61  ;;  %5482 = vmatprep.subr.mxu0 %v15104_v45  ;;  %v15109_v61 = vand.u32 4294901760, %v11517_v1  ;;  %v3961_v45 = vadd.f32 %v3960_v49, %v3820_v35  ;;  %v15115_v1 = vld [vmem:[#allocation121_spill] sm:$0xff]  ;;  %v11945_v49 = vsub.f32 %v1558_v54, %v11895_v5  ;;  %v4362_v35 = vpop.f32.mrf.mxu1  ;;  %v15140_v44 = vld [vmem:[#allocation8_spill] sm:$0xff] }
 0x496   : > { %15106 = vst [vmem:[#allocation103_spill] sm:$0xff] %v11919_v38  ;;  %15107 = vst [vmem:[#allocation66_spill] sm:$0xff] %v11921_v52  ;;  %5486 = vmatpush2.msra.mxu0 %v15111_v60  ;;  %v4225_v60 = vpop.f32.mrf.mxu0  ;;  %v11959_v54 = vsub.f32 %v1550_v62, %v11909_v21  ;;  %v15123_v17 = vand.u32 4294901760, %v11617_v26  ;;  %v11969_v30 = vsub.f32 %v1549_v41, %v11919_v38  ;;  %v11984_v41 = vand.u32 4294901760, %v1789_v46 }
 0x497   : > { %5811 = vmatprep.subr.mxu1 %v15109_v61  ;;  %v15116_v61 = vand.u32 4294901760, %v15115_v1  ;;  %15117 = vst [vmem:[#allocation83_spill] sm:$0xff] %v11945_v49  ;;  %15118 = vst [vmem:[#allocation7_spill] sm:$0xff] %v11948_v22  ;;  %v4361_v1 = vadd.f32 %v4360_v10, %v4224_v59  ;;  %v11972_v10 = vsub.f32 %v1542_v33, %v11921_v52  ;;  %v11977_v59 = vand.u32 4294901760, %v1790_v18 }
 0x498   : > { %5817 = vmatpush1.msra.mxu1 %v15114_v51  ;;  %v15119_v51 = vand.u32 4294901760, %v11582_v47  ;;  %15122 = vst [vmem:[#allocation92_spill] sm:$0xff] %v11959_v54  ;;  %v15124_v47 = vld [vmem:[#allocation123_spill] sm:$0xff]  ;;  %15126 = vst [vmem:[#allocation70_spill] sm:$0xff] %v11969_v30  ;;  %v11975_v62 = vsub.f32 %v1541_v29, %v11923_v32  ;;  %v15134_v33 = vand.u32 4294901760, %v11648_v7  ;;  %v15135_v29 = vand.u32 4294901760, %v11890_v43 }
 0x499   : > { %5490 = vmatprep.subr.mxu0 %v15116_v61  ;;  %v4226_v61 = vadd.f32 %v4225_v60, %v3961_v45  ;;  %15127 = vst [vmem:[#allocation109_spill] sm:$0xff] %v11972_v10  ;;  %15129 = vst [vmem:[#allocation110_spill] sm:$0xff] %v11977_v59  ;;  %v15130_v45 = vand.u32 4294901760, %v11629_v36  ;;  %v15131_v60 = vld [vmem:[#allocation124_spill] sm:$0xff]  ;;  %v15136_v36 = vand.u32 4294901760, %v11893_v48  ;;  %v15155_v23 = vand.u32 4294901760, %v11959_v54 }
 0x49a   : > { %5823 = vmatprep.subr.mxu1 %v15119_v51  ;;  %5494 = vmatpush2.msra.mxu0 %v15121_v34  ;;  %v15125_v51 = vand.u32 4294901760, %v15124_v47  ;;  %15128 = vst [vmem:[#allocation19_spill] sm:$0xff] %v11975_v62  ;;  %v15132_v26 = vand.u32 4294901760, %v15131_v60  ;;  %15133 = vst [vmem:[#allocation79_spill] sm:$0xff] %v11984_v41  ;;  %v1781_v7 = vld [vmem:[%s12946_s10 + $0x7b0] sm:$0xff]  ;;  %v15138_v60 = vld [vmem:[#allocation6_spill] sm:$0xff] }
 0x49b   : > { %5829 = vmatpush1.msra.mxu1 %v15123_v17  ;;  %v6935_v17 = vsub.f32 0.0, %v4361_v1  ;;  %v4363_v34 = vadd.f32 %v4362_v35, %v4226_v61  ;;  %v12000_v1 = vand.u32 4294901760, %v1782_v57  ;;  %v1774_v47 = vld [vmem:[%s12946_s10 + $0x778] sm:$0xff]  ;;  %v15141_v35 = vld [vmem:[#allocation100_spill] sm:$0xff] }
 0x49c   : > { %5498 = vmatprep.subr.mxu0 %v15125_v51  ;;  %5835 = vmatprep.subr.mxu1 %v15130_v45  ;;  %v11992_v51 = vsub.f32 %v11890_v43, %v15135_v29  ;;  %v11997_v45 = vsub.f32 %v11893_v48, %v15136_v36  ;;  %v15143_v36 = vand.u32 4294901760, %v11719_v55  ;;  %v15144_v43 = vld [vmem:[#allocation10_spill] sm:$0xff]  ;;  %v12030_v48 = vand.u32 4294901760, %v1781_v7 }
 0x49d   : > { %5502 = vmatpush2.msra.mxu0 %v15132_v26  ;;  %5841 = vmatpush1.msra.mxu1 %v15134_v33  ;;  %15137 = vst [vmem:[#allocation13_spill] sm:$0xff] %v12000_v1  ;;  %v6945_v61 = vmul.f32 1.442695, %v6935_v17  ;;  %v15139_v26 = vand.u32 4294901760, %v11714_v2  ;;  %v6936_v33 = vsub.f32 0.0, %v4363_v34  ;;  %v12019_v34 = vsub.f32 %v1790_v18, %v11977_v59  ;;  %v15148_v18 = vld [vmem:[#allocation11_spill] sm:$0xff] }
 0x49e   : > { %5506 = vmatmul.mubr.f32.vlgmr.msra.gmra.mxu0 %v15093_v19  ;;  %5650 = vmatprep.subr.mxu0 %v15138_v60  ;;  %15146 = vst [vmem:[#allocation81_spill] sm:$0xff] %v12030_v48  ;;  %v15147_v2 = vand.u32 4294901760, %v11742_v14  ;;  %v15153_v14 = vld [vmem:[#allocation46_spill] sm:$0xff]  ;;  %v1741_v19 = vld [vmem:[%s12946_s10 + $0x670] sm:$0xff] }
 0x49f   : > { %5847 = vmatprep.subr.mxu1 %v15139_v26  ;;  %5652 = vmatpush1.msra.mxu0 %v15140_v44  ;;  %15142 = vst [vmem:[#allocation84_spill] sm:$0xff] %v12019_v34  ;;  %v1773_v26 = vld [vmem:[%s12946_s10 + $0x770] sm:$0xff]  ;;  %7161 = vpow2.f32 %v6945_v61  ;;  %v6947_v29 = vmul.f32 1.442695, %v6936_v33  ;;  %v15149_v61 = vand.u32 4294901760, %v11945_v49  ;;  %v12042_v33 = vsub.f32 %v1782_v57, %v12000_v1 }
 0x4a0   : > { %5782 = vmatprep.mubr.f32.mxu0 %v15141_v35  ;;  %5853 = vmatpush1.msra.mxu1 %v15143_v36  ;;  %v12028_v35 = vsub.f32 %v1789_v46, %v11984_v41  ;;  %v12044_v36 = vand.u32 4294901760, %v1774_v47  ;;  %v15152_v46 = vand.u32 4294901760, %v11754_v24  ;;  %v12059_v57 = vand.u32 4294901760, %v1773_v26 }
 0x4a1   : > { %5654 = vmatprep.subr.mxu0 %v15144_v43  ;;  %5859 = vmatprep.subr.mxu1 %v15147_v2  ;;  %v12039_v55 = vsub.f32 %v11945_v49, %v15149_v61  ;;  %15150 = vst [vmem:[#allocation17_spill] sm:$0xff] %v12042_v33  ;;  %7163 = vpow2.f32 %v6947_v29  ;;  %v15154_v2 = vand.u32 4294901760, %v11948_v22  ;;  %v12057_v61 = vsub.f32 %v11959_v54, %v15155_v23  ;;  %v1766_v29 = vld [vmem:[%s12946_s10 + $0x738] sm:$0xff] }
 0x4a2   : > { %15145 = vst [vmem:[#allocation9_spill] sm:$0xff] %v12028_v35  ;;  %5656 = vmatpush1.msra.mxu0 %v15148_v18  ;;  %15151 = vst [vmem:[#allocation14_spill] sm:$0xff] %v12044_v36  ;;  %5865 = vmatpush1.msra.mxu1 %v15152_v46  ;;  %v15157_v24 = vand.u32 4294901760, %v11770_v40  ;;  %v15158_v46 = vld [vmem:[#allocation48_spill] sm:$0xff]  ;;  %v15160_v40 = vand.u32 4294901760, %v11775_v0  ;;  %v15162_v49 = vand.u32 4294901760, %v11972_v10 }
 0x4a3   : > { %5658 = vmatprep.subr.mxu0 %v15153_v14  ;;  %v12052_v17 = vsub.f32 %v11948_v22, %v15154_v2  ;;  %15156 = vst [vmem:[#allocation73_spill] sm:$0xff] %v12059_v57  ;;  %v15159_v22 = vand.u32 4294901760, %v11969_v30  ;;  %v1765_v14 = vld [vmem:[%s12946_s10 + $0x730] sm:$0xff]  ;;  %v1758_v0 = vld [vmem:[%s12946_s10 + $0x6f8] sm:$0xff]  ;;  %v15173_v54 = vand.u32 4294901760, %v11807_v12  ;;  %v15175_v43 = vand.u32 4294901760, %v12019_v34 }
 0x4a4   : > { %5871 = vmatprep.subr.mxu1 %v15157_v24  ;;  %5660 = vmatpush1.msra.mxu0 %v15158_v46  ;;  %v15161_v24 = vld [vmem:[#allocation38_spill] sm:$0xff]  ;;  %v12084_v2 = vsub.f32 %v11972_v10, %v15162_v49  ;;  %v15163_v46 = vand.u32 4294901760, %v11975_v62  ;;  %v15165_v49 = vand.u32 4294901760, %v11783_v11  ;;  %v15166_v10 = vld [vmem:[#allocation59_spill] sm:$0xff]  ;;  %v15170_v18 = vld [vmem:[#allocation93_spill] sm:$0xff] }
 0x4a5   : > { %v12072_v23 = vsub.f32 %v11969_v30, %v15159_v22  ;;  %5877 = vmatpush1.msra.mxu1 %v15160_v40  ;;  %5662 = vmatprep.subr.mxu0 %v15161_v24  ;;  %v12093_v30 = vsub.f32 %v1781_v7, %v12030_v48  ;;  %v1757_v40 = vld [vmem:[%s12946_s10 + $0x6f0] sm:$0xff]  ;;  %v12107_v7 = vsub.f32 %v1774_v47, %v12044_v36  ;;  %v15169_v24 = vand.u32 4294901760, %v11788_v27  ;;  %v1750_v47 = vld [vmem:[%s12946_s10 + $0x6b8] sm:$0xff] }
 0x4a6   : > { %v12089_v22 = vsub.f32 %v11975_v62, %v15163_v46  ;;  %5883 = vmatprep.subr.mxu1 %v15165_v49  ;;  %5664 = vmatpush1.msra.mxu0 %v15166_v10  ;;  %v12109_v62 = vand.u32 4294901760, %v1766_v29  ;;  %v12117_v49 = vsub.f32 %v1773_v26, %v12059_v57  ;;  %v12119_v46 = vand.u32 4294901760, %v1765_v14  ;;  %v15174_v27 = vld [vmem:[#allocation20_spill] sm:$0xff]  ;;  %v1742_v12 = vld [vmem:[%s12946_s10 + $0x678] sm:$0xff] }
 0x4a7   : > { %15164 = vst [vmem:[#allocation82_spill] sm:$0xff] %v12093_v30  ;;  %15167 = vst [vmem:[#allocation3_spill] sm:$0xff] %v12107_v7  ;;  %5889 = vmatpush1.msra.mxu1 %v15169_v24  ;;  %5666 = vmatprep.subr.mxu0 %v15170_v18  ;;  %v12131_v11 = vsub.f32 %v12019_v34, %v15175_v43  ;;  %v12133_v26 = vand.u32 4294901760, %v1758_v0  ;;  %v12135_v18 = vand.u32 4294901760, %v1757_v40  ;;  %v1749_v10 = vld [vmem:[%s12946_s10 + $0x6b0] sm:$0xff]  ;;  %v15179_v24 = vld [vmem:[#allocation23_spill] sm:$0xff] }
 0x4a8   : > { %15168 = vst [vmem:[#allocation25_spill] sm:$0xff] %v12109_v62  ;;  %15171 = vst [vmem:[#allocation52_spill] sm:$0xff] %v12117_v49  ;;  %5895 = vmatprep.subr.mxu1 %v15173_v54  ;;  %5668 = vmatpush1.msra.mxu0 %v15174_v27  ;;  %v15178_v54 = vand.u32 4294901760, %v11812_v20  ;;  %v15180_v27 = vand.u32 4294901760, %v12028_v35  ;;  %v15181_v20 = vand.u32 4294901760, %v11824_v15  ;;  %v12169_v60 = vand.u32 4294901760, %v1750_v47 }
 0x4a9   : > { %15172 = vst [vmem:[#allocation27_spill] sm:$0xff] %v12119_v46  ;;  %15176 = vst [vmem:[#allocation16_spill] sm:$0xff] %v12133_v26  ;;  %5670 = vmatprep.subr.mxu0 %v15179_v24  ;;  %v1733_v15 = vld [vmem:[%s12946_s10 + $0x630] sm:$0xff]  ;;  %v12184_v43 = vand.u32 4294901760, %v1749_v10 }
 0x4aa   : > { %15177 = vst [vmem:[#allocation91_spill] sm:$0xff] %v12135_v18  ;;  %5901 = vmatpush1.msra.mxu1 %v15178_v54  ;;  %v12151_v44 = vsub.f32 %v12028_v35, %v15180_v27  ;;  %5672 = vmatpush1.msra.mxu0 %v11585_v58  ;;  %v15182_v54 = vand.u32 4294901760, %v12042_v33  ;;  %v12167_v27 = vsub.f32 %v1766_v29, %v12109_v62  ;;  %15184 = vst [vmem:[#allocation86_spill] sm:$0xff] %v12169_v60  ;;  %v1734_v35 = vld [vmem:[%s12946_s10 + $0x638] sm:$0xff] }
 0x4ab   : > { %5907 = vmatprep.subr.mxu1 %v15181_v20  ;;  %v15185_v20 = vand.u32 4294901760, %v11847_v31  ;;  %5674 = vmatprep.subr.mxu0 %v11602_v13  ;;  %v12182_v29 = vsub.f32 %v1765_v14, %v12119_v46  ;;  %15187 = vst [vmem:[#allocation26_spill] sm:$0xff] %v12184_v43  ;;  %v15189_v58 = vand.u32 4294901760, %v11874_v37  ;;  %v12193_v31 = vsub.f32 %v1758_v0, %v12133_v26 }
 0x4ac   : > { %v12163_v34 = vsub.f32 %v12042_v33, %v15182_v54  ;;  %15183 = vst [vmem:[#allocation18_spill] sm:$0xff] %v12167_v27  ;;  %v12186_v33 = vand.u32 4294901760, %v1742_v12  ;;  %5676 = vmatpush1.msra.mxu0 %v11604_v50  ;;  %v12198_v54 = vand.u32 4294901760, %v1741_v19  ;;  %v15193_v14 = vand.u32 4294901760, %v11907_v16 }
 0x4ad   : > { %5913 = vmatpush1.msra.mxu1 %v15185_v20  ;;  %15186 = vst [vmem:[#allocation22_spill] sm:$0xff] %v12182_v29  ;;  %15190 = vst [vmem:[#allocation33_spill] sm:$0xff] %v12193_v31  ;;  %v12196_v20 = vsub.f32 %v1757_v40, %v12135_v18  ;;  %5678 = vmatprep.subr.mxu0 %v11619_v9  ;;  %v12209_v24 = vand.u32 4294901760, %v1734_v35  ;;  %v12211_v0 = vand.u32 4294901760, %v1733_v15  ;;  %v7162_v40 = vpop.eup %7161  ;;  %v15197_v13 = vand.u32 4294901760, %v11917_v28 }
 0x4ae   : > { %15188 = vst [vmem:[#allocation31_spill] sm:$0xff] %v12186_v33  ;;  %5919 = vmatprep.subr.mxu1 %v15189_v58  ;;  %15192 = vst [vmem:[#allocation37_spill] sm:$0xff] %v12198_v54  ;;  %v15194_v58 = vand.u32 4294901760, %v12093_v30  ;;  %5680 = vmatpush1.msra.mxu0 %v11621_v56  ;;  %v6959_v9 = vadd.f32 1.0, %v7162_v40  ;;  %v15200_v18 = vand.u32 4294901760, %v11933_v42  ;;  %v12231_v28 = vsub.f32 %v1749_v10, %v12184_v43 }
 0x4af   : > { %15191 = vst [vmem:[#allocation32_spill] sm:$0xff] %v12196_v20  ;;  %5925 = vmatpush1.msra.mxu1 %v15193_v14  ;;  %15195 = vst [vmem:[#allocation36_spill] sm:$0xff] %v12209_v24  ;;  %v15198_v14 = vand.u32 4294901760, %v12107_v7  ;;  %5682 = vmatprep.subr.mxu0 %v11634_v63  ;;  %v12234_v16 = vsub.f32 %v1742_v12, %v12186_v33  ;;  %v15203_v40 = vand.u32 4294901760, %v11992_v51  ;;  %v15204_v42 = vand.u32 4294901760, %v12117_v49 }
 0x4b0   : > { %v12207_v50 = vsub.f32 %v12093_v30, %v15194_v58  ;;  %15196 = vst [vmem:[#allocation51_spill] sm:$0xff] %v12211_v0  ;;  %5931 = vmatprep.subr.mxu1 %v15197_v13  ;;  %v12224_v30 = vsub.f32 %v1750_v47, %v12169_v60  ;;  %15201 = vst [vmem:[#allocation58_spill] sm:$0xff] %v12231_v28  ;;  %v7164_v47 = vpop.eup %7163  ;;  %5684 = vmatpush1.msra.mxu0 %v11636_v8  ;;  %v13717_v10 = vand.u32 4294901760, %v12193_v31 }
 0x4b1   : > { %v12220_v37 = vsub.f32 %v12107_v7, %v15198_v14  ;;  %5937 = vmatpush1.msra.mxu1 %v15200_v18  ;;  %15202 = vst [vmem:[#allocation49_spill] sm:$0xff] %v12234_v16  ;;  %v1726_v14 = vld [vmem:[%s12946_s10 + $0x5f8] sm:$0xff]  ;;  %v12245_v18 = vsub.f32 %v12117_v49, %v15204_v42  ;;  %v13722_v12 = vand.u32 4294901760, %v12196_v20  ;;  %v12250_v13 = vsub.f32 %v1741_v19, %v12198_v54  ;;  %v1725_v42 = vld [vmem:[%s12946_s10 + $0x5f0] sm:$0xff] }
 0x4b2   : > { %15199 = vst [vmem:[#allocation43_spill] sm:$0xff] %v12224_v30  ;;  %5943 = vmatprep.subr.mxu1 %v15203_v40  ;;  %7165 = vrcp.f32 %v6959_v9  ;;  %v6960_v58 = vadd.f32 1.0, %v7164_v47  ;;  %v15206_v7 = vand.u32 4294901760, %v11997_v45  ;;  %5686 = vmatprep.subr.mxu0 %v11653_v4  ;;  %v12256_v51 = vsub.f32 %v1734_v35, %v12209_v24  ;;  %v1718_v35 = vld [vmem:[%s12946_s10 + $0x5b8] sm:$0xff] }
 0x4b3   : > { %15205 = vst [vmem:[#allocation64_spill] sm:$0xff] %v12250_v13  ;;  %v12259_v40 = vsub.f32 %v1733_v15, %v12211_v0  ;;  %v15209_v19 = vand.u32 4294901760, %v12039_v55  ;;  %5688 = vmatpush1.msra.mxu0 %v11679_v6  ;;  %v6008_v9 = vand.u32 4294901760, %v12207_v50  ;;  %v15210_v45 = vand.u32 4294901760, %v12167_v27 }
 0x4b4   : > { %5949 = vmatpush1.msra.mxu1 %v15206_v7  ;;  %15207 = vst [vmem:[#allocation67_spill] sm:$0xff] %v12256_v51  ;;  %v12274_v15 = vand.u32 4294901760, %v1726_v14  ;;  %7167 = vrcp.f32 %v6960_v58  ;;  %v15212_v47 = vand.u32 4294901760, %v12052_v17  ;;  %5690 = vmatprep.subr.mxu0 %v11703_v53  ;;  %v15213_v55 = vand.u32 4294901760, %v12182_v29 }
 0x4b5   : > { %15208 = vst [vmem:[#allocation74_spill] sm:$0xff] %v12259_v40  ;;  %5955 = vmatprep.subr.mxu1 %v15209_v19  ;;  %v12271_v7 = vsub.f32 %v12167_v27, %v15210_v45  ;;  %v15214_v58 = vand.u32 4294901760, %v12057_v61  ;;  %5692 = vmatpush1.msra.mxu0 %v11734_v3  ;;  %v6014_v17 = vand.u32 4294901760, %v12220_v37  ;;  %v12299_v50 = vand.u32 4294901760, %v1725_v42  ;;  %v1717_v45 = vld [vmem:[%s12946_s10 + $0x5b0] sm:$0xff] }
 0x4b6   : > { %15211 = vst [vmem:[#allocation76_spill] sm:$0xff] %v12274_v15  ;;  %5961 = vmatpush1.msra.mxu1 %v15212_v47  ;;  %v12282_v19 = vsub.f32 %v12182_v29, %v15213_v55  ;;  %v12296_v47 = vsub.f32 %v12193_v31, %v13717_v10  ;;  %v15216_v61 = vand.u32 4294901760, %v12072_v23  ;;  %5694 = vmatprep.subr.mxu0 %v11746_v39  ;;  %v6020_v37 = vand.u32 4294901760, %v12245_v18  ;;  %v1710_v31 = vld [vmem:[%s12946_s10 + $0x578] sm:$0xff]  ;;  %v1677_v3 = vld [vmem:[%s12946_s10 + $0x470] sm:$0xff] }
 0x4b7   : > { %5967 = vmatprep.subr.mxu1 %v15214_v58  ;;  %15215 = vst [vmem:[#allocation77_spill] sm:$0xff] %v12299_v50  ;;  %v12311_v58 = vsub.f32 %v12196_v20, %v13722_v12  ;;  %v15217_v23 = vand.u32 4294901760, %v12084_v2  ;;  %v6026_v18 = vand.u32 4294901760, %v12271_v7  ;;  %v15219_v29 = vand.u32 4294901760, %v12224_v30  ;;  %v1709_v20 = vld [vmem:[%s12946_s10 + $0x570] sm:$0xff]  ;;  %v6976_v39 = vld [vmem:[%s10963_s29 + $0x18] sm:$0xff] }
 0x4b8   : > { %5973 = vmatpush1.msra.mxu1 %v15216_v61  ;;  %v15218_v61 = vld [vmem:[#allocation47_spill] sm:$0xff]  ;;  %v12328_v10 = vsub.f32 %v1726_v14, %v12274_v15  ;;  %v12330_v55 = vand.u32 4294901760, %v1718_v35  ;;  %v15222_v2 = vand.u32 4294901760, %v12089_v22  ;;  %v6032_v7 = vand.u32 4294901760, %v12282_v19  ;;  %v1702_v22 = vld [vmem:[%s12946_s10 + $0x538] sm:$0xff] }
 0x4b9   : > { %5979 = vmatprep.subr.mxu1 %v15217_v23  ;;  %5696 = vmatpush1.msra.mxu0 %v15218_v61  ;;  %v12325_v12 = vsub.f32 %v12224_v30, %v15219_v29  ;;  %v15223_v23 = vld [vmem:[#allocation56_spill] sm:$0xff]  ;;  %v15224_v27 = vand.u32 4294901760, %v12231_v28  ;;  %v15225_v14 = vand.u32 4294901760, %v12234_v16  ;;  %v12349_v49 = vand.u32 4294901760, %v1717_v45  ;;  %v15228_v19 = vld [vmem:[#allocation57_spill] sm:$0xff] }
 0x4ba   : > { %15220 = vst [vmem:[#allocation107_spill] sm:$0xff] %v12328_v10  ;;  %15221 = vst [vmem:[#allocation108_spill] sm:$0xff] %v12330_v55  ;;  %5985 = vmatpush1.msra.mxu1 %v15222_v2  ;;  %5698 = vmatprep.subr.mxu0 %v15223_v23  ;;  %v15227_v2 = vand.u32 4294901760, %v12131_v11  ;;  %v6038_v23 = vand.u32 4294901760, %v12296_v47  ;;  %v1701_v61 = vld [vmem:[%s12946_s10 + $0x530] sm:$0xff]  ;;  %v15231_v11 = vand.u32 4294901760, %v12151_v44 }
 0x4bb   : > { %v12342_v29 = vsub.f32 %v12231_v28, %v15224_v27  ;;  %v12347_v30 = vsub.f32 %v12234_v16, %v15225_v14  ;;  %15226 = vst [vmem:[#allocation112_spill] sm:$0xff] %v12349_v49  ;;  %5700 = vmatpush1.msra.mxu0 %v15228_v19  ;;  %v15229_v27 = vand.u32 4294901760, %v12250_v13  ;;  %v12364_v14 = vsub.f32 %v1725_v42, %v12299_v50  ;;  %v1694_v44 = vld [vmem:[%s12946_s10 + $0x4f8] sm:$0xff] }
 0x4bc   : > { %5991 = vmatprep.subr.mxu1 %v15227_v2  ;;  %v12366_v16 = vand.u32 4294901760, %v1710_v31  ;;  %5702 = vmatprep.subr.mxu0 %v11895_v5  ;;  %v6044_v47 = vand.u32 4294901760, %v12311_v58  ;;  %v15232_v2 = vand.u32 4294901760, %v12256_v51  ;;  %v15233_v42 = vand.u32 4294901760, %v12259_v40 }
 0x4bd   : > { %v12361_v28 = vsub.f32 %v12250_v13, %v15229_v27  ;;  %15230 = vst [vmem:[#allocation113_spill] sm:$0xff] %v12364_v14  ;;  %5997 = vmatpush2.msra.mxu1 %v15231_v11  ;;  %v12385_v19 = vand.u32 4294901760, %v1709_v20  ;;  %v15235_v11 = vand.u32 4294901760, %v12163_v34  ;;  %5704 = vmatpush1.msra.mxu0 %v11897_v25  ;;  %v6050_v58 = vand.u32 4294901760, %v12325_v12  ;;  %v6975_v25 = vld [vmem:[%s10963_s29 + $0x10] sm:$0xff] }
 0x4be   : > { %v12378_v27 = vsub.f32 %v12256_v51, %v15232_v2  ;;  %v12383_v13 = vsub.f32 %v12259_v40, %v15233_v42  ;;  %v12396_v51 = vsub.f32 %v1718_v35, %v12330_v55  ;;  %v12398_v42 = vand.u32 4294901760, %v1702_v22  ;;  %v1693_v40 = vld [vmem:[%s12946_s10 + $0x4f0] sm:$0xff]  ;;  %5706 = vmatprep.subr.mxu0 %v11909_v21  ;;  %v1686_v35 = vld [vmem:[%s12946_s10 + $0x4b8] sm:$0xff] }
 0x4bf   : > { %15234 = vst [vmem:[#allocation55_spill] sm:$0xff] %v12385_v19  ;;  %6003 = vmatprep.subr.mxu1 %v15235_v11  ;;  %v6056_v34 = vand.u32 4294901760, %v12342_v29  ;;  %v6062_v11 = vand.u32 4294901760, %v12347_v30  ;;  %v12407_v12 = vsub.f32 %v1717_v45, %v12349_v49  ;;  %v12409_v2 = vand.u32 4294901760, %v1701_v61  ;;  %5708 = vmatpush1.msra.mxu0 %v11919_v38  ;;  %v1685_v21 = vld [vmem:[%s12946_s10 + $0x4b0] sm:$0xff]  ;;  %v7166_v5 = vpop.eup %7165 }
 0x4c0   : > { %6009 = vmatpush2.msra.mxu1 %v6008_v9  ;;  %v6068_v9 = vand.u32 4294901760, %v12361_v28  ;;  %v12419_v30 = vsub.f32 %v1710_v31, %v12366_v16  ;;  %v12421_v45 = vand.u32 4294901760, %v1694_v44  ;;  %5710 = vmatprep.subr.mxu0 %v11921_v52  ;;  %v12430_v28 = vsub.f32 %v1709_v20, %v12385_v19  ;;  %v1678_v31 = vld [vmem:[%s12946_s10 + $0x478] sm:$0xff] }
 0x4c1   : > { %15236 = vst [vmem:[#allocation115_spill] sm:$0xff] %v12407_v12  ;;  %15237 = vst [vmem:[#allocation117_spill] sm:$0xff] %v12409_v2  ;;  %6015 = vmatprep.subr.mxu1 %v6014_v17  ;;  %v6074_v17 = vand.u32 4294901760, %v12378_v27  ;;  %v12432_v29 = vand.u32 4294901760, %v1693_v40  ;;  %5712 = vmatpush1.msra.mxu0 %v11923_v32  ;;  %v12446_v20 = vsub.f32 %v1702_v22, %v12398_v42  ;;  %v12448_v52 = vand.u32 4294901760, %v1686_v35  ;;  %v1670_v22 = vld [vmem:[%s12946_s10 + $0x438] sm:$0xff] }
 0x4c2   : > { %6021 = vmatpush2.msra.mxu1 %v6020_v37  ;;  %15238 = vst [vmem:[#allocation118_spill] sm:$0xff] %v12430_v28  ;;  %v15239_v37 = vand.u32 4294901760, %v12328_v10  ;;  %5714 = vmatprep.subr.mxu0 %v11977_v59  ;;  %v12458_v38 = vand.u32 4294901760, %v1685_v21  ;;  %v12469_v32 = vsub.f32 %v1694_v44, %v12421_v45  ;;  %v1669_v59 = vld [vmem:[%s12946_s10 + $0x430] sm:$0xff]  ;;  %v15241_v44 = vand.u32 4294901760, %v12396_v51 }
 0x4c3   : > { %6027 = vmatprep.subr.mxu1 %v6026_v18  ;;  %v6983_v18 = vmul.f32 %v7166_v5, %v6975_v25  ;;  %5716 = vmatpush2.msra.mxu0 %v11984_v41  ;;  %v15240_v5 = vand.u32 4294901760, %v12364_v14 }
 0x4c4   : > { %v12442_v27 = vsub.f32 %v12328_v10, %v15239_v37  ;;  %6033 = vmatpush2.msra.mxu1 %v6032_v7  ;;  %v12456_v37 = vsub.f32 %v1701_v61, %v12409_v2  ;;  %v7168_v10 = vpop.eup %7167  ;;  %v12471_v61 = vand.u32 4294901760, %v1678_v31  ;;  %5718 = vmatprep.subr.mxu0 %v12000_v1  ;;  %v12482_v7 = vand.u32 4294901760, %v1677_v3 }
 0x4c5   : > { %6039 = vmatprep.subr.mxu1 %v6038_v23  ;;  %v6091_v25 = vsub.f32 %v12364_v14, %v15240_v5  ;;  %6991 = vst [vmem:[%s11036_s25 + $0x10] sm:$0xff] %v6983_v18  ;;  %v6984_v23 = vmul.f32 %v7168_v10, %v6976_v39  ;;  %v12480_v5 = vsub.f32 %v1693_v40, %v12432_v29  ;;  %v12492_v10 = vand.u32 4294901760, %v1670_v22 }
 0x4c6   : > { %6045 = vmatpush2.msra.mxu1 %v6044_v47  ;;  %5720 = vmatpush2.msra.mxu0 %v12030_v48  ;;  %v6097_v14 = vsub.f32 %v12396_v51, %v15241_v44  ;;  %v12490_v39 = vsub.f32 %v1686_v35, %v12448_v52  ;;  %v15243_v40 = vand.u32 4294901760, %v12407_v12  ;;  %v12501_v41 = vsub.f32 %v1685_v21, %v12458_v38 }
 0x4c7   : > { %6051 = vmatprep.subr.mxu1 %v6050_v58  ;;  %6992 = vst [vmem:[%s11036_s25 + $0x18] sm:$0xff] %v6984_v23  ;;  %5722 = vmatprep.subr.mxu0 %v12044_v36  ;;  %v12503_v44 = vand.u32 4294901760, %v1669_v59  ;;  %v6086_v35 = vand.u32 4294901760, %v12442_v27  ;;  %v6092_v21 = vand.u32 4294901760, %v6091_v25  ;;  %v15247_v58 = vand.u32 4294901760, %v12430_v28 }
 0x4c8   : > { %15242 = vst [vmem:[#allocation119_spill] sm:$0xff] %v12490_v39  ;;  %6057 = vmatpush2.msra.mxu1 %v6056_v34  ;;  %v6103_v47 = vsub.f32 %v12407_v12, %v15243_v40  ;;  %15244 = vst [vmem:[#allocation120_spill] sm:$0xff] %v12501_v41  ;;  %5724 = vmatpush2.msra.mxu0 %v12059_v57  ;;  %v15245_v34 = vand.u32 4294901760, %v12419_v30  ;;  %v12512_v40 = vsub.f32 %v1678_v31, %v12471_v61 }
 0x4c9   : > { %6063 = vmatprep.subr.mxu1 %v6062_v11  ;;  %5726 = vmatprep.subr.mxu0 %v12109_v62  ;;  %v6115_v11 = vsub.f32 %v12430_v28, %v15247_v58  ;;  %v12520_v27 = vsub.f32 %v1677_v3, %v12482_v7  ;;  %v15248_v31 = vand.u32 4294901760, %v12446_v20  ;;  %v12528_v25 = vsub.f32 %v1670_v22, %v12492_v10 }
 0x4ca   : > { %v6109_v23 = vsub.f32 %v12419_v30, %v15245_v34  ;;  %15246 = vst [vmem:[#allocation4_spill] sm:$0xff] %v12512_v40  ;;  %6069 = vmatpush2.msra.mxu1 %v6068_v9  ;;  %5728 = vmatpush2.msra.mxu0 %v12119_v46  ;;  %v6098_v34 = vand.u32 4294901760, %v6097_v14  ;;  %v15249_v58 = vand.u32 4294901760, %v12383_v13  ;;  %v6104_v3 = vand.u32 4294901760, %v6103_v47 }
 0x4cb   : > { %6075 = vmatprep.subr.mxu1 %v6074_v17  ;;  %v6121_v9 = vsub.f32 %v12446_v20, %v15248_v31  ;;  %5730 = vmatprep.subr.mxu0 %v12133_v26  ;;  %v15250_v17 = vand.u32 4294901760, %v12456_v37  ;;  %v12538_v28 = vsub.f32 %v1669_v59, %v12503_v44  ;;  %v15252_v31 = vld [vmem:[#allocation91_spill] sm:$0xff]  ;;  %v15253_v18 = vand.u32 4294901760, %v12469_v32 }
 0x4cc   : > { %6081 = vmatpush2.msra.mxu1 %v15249_v58  ;;  %5732 = vmatpush2.msra.mxu0 %v15252_v31  ;;  %v6110_v22 = vand.u32 4294901760, %v6109_v23  ;;  %v6116_v47 = vand.u32 4294901760, %v6115_v11  ;;  %v15255_v23 = vand.u32 4294901760, %v12490_v39  ;;  %v15256_v11 = vand.u32 4294901760, %v12501_v41 }
 0x4cd   : > { %v6127_v12 = vsub.f32 %v12456_v37, %v15250_v17  ;;  %15251 = vst [vmem:[#allocation121_spill] sm:$0xff] %v12538_v28  ;;  %6087 = vmatprep.subr.mxu1 %v6086_v35  ;;  %v6133_v13 = vsub.f32 %v12469_v32, %v15253_v18  ;;  %5734 = vmatprep.subr.mxu0 %v12169_v60  ;;  %v15254_v17 = vand.u32 4294901760, %v12480_v5  ;;  %v6122_v35 = vand.u32 4294901760, %v6121_v9 }
 0x4ce   : > { %6093 = vmatpush2.msra.mxu1 %v6092_v21  ;;  %5736 = vmatpush2.msra.mxu0 %v12184_v43  ;;  %v6145_v18 = vsub.f32 %v12490_v39, %v15255_v23  ;;  %v13769_v59 = vand.u32 4294901760, %v12538_v28  ;;  %v15257_v9 = vand.u32 4294901760, %v12512_v40 }
 0x4cf   : > { %v6139_v14 = vsub.f32 %v12480_v5, %v15254_v17  ;;  %6099 = vmatprep.subr.mxu1 %v6098_v34  ;;  %5738 = vmatprep.subr.mxu0 %v12186_v33  ;;  %v6128_v21 = vand.u32 4294901760, %v6127_v12  ;;  %v6151_v17 = vsub.f32 %v12501_v41, %v15256_v11  ;;  %v6134_v34 = vand.u32 4294901760, %v6133_v13 }
 0x4d0   : > { %6105 = vmatpush2.msra.mxu1 %v6104_v3  ;;  %5740 = vmatpush2.msra.mxu0 %v12198_v54  ;;  %v6157_v23 = vsub.f32 %v12512_v40, %v15257_v9  ;;  %v15258_v12 = vand.u32 4294901760, %v12520_v27  ;;  %v6146_v11 = vand.u32 4294901760, %v6145_v18 }
 0x4d1   : > { %6111 = vmatprep.subr.mxu1 %v6110_v22  ;;  %5742 = vmatprep.subr.mxu0 %v12209_v24  ;;  %v6140_v3 = vand.u32 4294901760, %v6139_v14  ;;  %v15259_v22 = vand.u32 4294901760, %v12528_v25  ;;  %v6152_v9 = vand.u32 4294901760, %v6151_v17  ;;  %v6175_v14 = vsub.f32 %v12538_v28, %v13769_v59  ;;  %v15261_v17 = vld [vmem:[#allocation6_spill] sm:$0xff]  ;;  %v15276_v59 = vld [vmem:[#allocation75_spill] sm:$0xff] }
 0x4d2   : > { %6117 = vmatpush2.msra.mxu1 %v6116_v47  ;;  %v6163_v58 = vsub.f32 %v12520_v27, %v15258_v12  ;;  %5744 = vmatpush2.msra.mxu0 %v12211_v0  ;;  %v6158_v47 = vand.u32 4294901760, %v6157_v23  ;;  %v15263_v23 = vld [vmem:[#allocation99_spill] sm:$0xff] }
 0x4d3   : > { %6123 = vmatprep.subr.mxu1 %v6122_v35  ;;  %v6169_v13 = vsub.f32 %v12528_v25, %v15259_v22  ;;  %5746 = vmatprep.subr.mxu0 %v12274_v15  ;;  %v15265_v12 = vld [vmem:[#allocation11_spill] sm:$0xff]  ;;  %v15267_v22 = vld [vmem:[#allocation48_spill] sm:$0xff] }
 0x4d4   : > { %6129 = vmatpush2.msra.mxu1 %v6128_v21  ;;  %5748 = vmatpush2.msra.mxu0 %v12299_v50  ;;  %v6164_v35 = vand.u32 4294901760, %v6163_v58  ;;  %v6176_v21 = vand.u32 4294901760, %v6175_v14  ;;  %v15260_v58 = vld [vmem:[#allocation94_spill] sm:$0xff]  ;;  %v15270_v14 = vld [vmem:[#allocation101_spill] sm:$0xff]  ;;  %v15278_v28 = vld [vmem:[#allocation39_spill] sm:$0xff] }
 0x4d5   : > { %6135 = vmatprep.subr.mxu1 %v6134_v34  ;;  %5750 = vmatprep.subr.mxu0 %v12330_v55  ;;  %v6170_v18 = vand.u32 4294901760, %v6169_v13  ;;  %v15262_v34 = vld [vmem:[#allocation8_spill] sm:$0xff]  ;;  %v15268_v13 = vld [vmem:[#allocation38_spill] sm:$0xff] }
 0x4d6   : > { %6141 = vmatpush2.msra.mxu1 %v6140_v3  ;;  %5752 = vmatpush2.msra.mxu0 %v12349_v49  ;;  %v15264_v3 = vld [vmem:[#allocation10_spill] sm:$0xff] }
 0x4d7   : > { %6147 = vmatprep.subr.mxu1 %v6146_v11  ;;  %5754 = vmatprep.subr.mxu0 %v12366_v16  ;;  %v15266_v11 = vld [vmem:[#allocation46_spill] sm:$0xff] }
 0x4d8   : > { %6153 = vmatpush2.msra.mxu1 %v6152_v9  ;;  %5756 = vmatpush2.msra.mxu0 %v12385_v19  ;;  %v15269_v9 = vld [vmem:[#allocation59_spill] sm:$0xff] }
 0x4d9   : > { %6159 = vmatprep.subr.mxu1 %v6158_v47  ;;  %5758 = vmatprep.subr.mxu0 %v12398_v42  ;;  %v15271_v47 = vld [vmem:[#allocation12_spill] sm:$0xff] }
 0x4da   : > { %6165 = vmatpush2.msra.mxu1 %v6164_v35  ;;  %5760 = vmatpush2.msra.mxu0 %v12409_v2  ;;  %v15272_v35 = vld [vmem:[#allocation93_spill] sm:$0xff] }
 0x4db   : > { %6171 = vmatprep.subr.mxu1 %v6170_v18  ;;  %5762 = vmatprep.subr.mxu0 %v12421_v45  ;;  %v15273_v18 = vld [vmem:[#allocation44_spill] sm:$0xff] }
 0x4dc   : > { %6177 = vmatpush2.msra.mxu1 %v6176_v21  ;;  %5764 = vmatpush2.msra.mxu0 %v12432_v29  ;;  %v15274_v21 = vld [vmem:[#allocation97_spill] sm:$0xff] }
 0x4dd   : > { %6181 = vmatmul.mubr.f32.vlgmr.msra.gmra.mxu1 %v15260_v58  ;;  %6391 = vmatprep.subr.mxu1 %v15261_v17  ;;  %v15277_v58 = vld [vmem:[#allocation23_spill] sm:$0xff] }
 0x4de   : > { %6393 = vmatpush1.msra.mxu1 %v15262_v34  ;;  %6521 = vmatprep.mubr.f32.mxu1 %v15263_v23  ;;  %v15275_v23 = vld [vmem:[#allocation20_spill] sm:$0xff] }
 0x4df   : > { %5766 = vmatprep.subr.mxu0 %v12448_v52  ;;  %6395 = vmatprep.subr.mxu1 %v15264_v3 }
 0x4e0   : > { %5768 = vmatpush2.msra.mxu0 %v12458_v38  ;;  %6397 = vmatpush1.msra.mxu1 %v15265_v12 }
 0x4e1   : > { %5770 = vmatprep.subr.mxu0 %v12471_v61  ;;  %6399 = vmatprep.subr.mxu1 %v15266_v11 }
 0x4e2   : > { %5772 = vmatpush2.msra.mxu0 %v12482_v7  ;;  %6401 = vmatpush1.msra.mxu1 %v15267_v22 }
 0x4e3   : > { %5774 = vmatprep.subr.mxu0 %v12492_v10  ;;  %6403 = vmatprep.subr.mxu1 %v15268_v13  ;;  %v15279_v13 = vld [vmem:[#allocation15_spill] sm:$0xff] }
 0x4e4   : > { %5776 = vmatpush2.msra.mxu0 %v12503_v44  ;;  %6405 = vmatpush1.msra.mxu1 %v15269_v9  ;;  %v15280_v9 = vld [vmem:[#allocation54_spill] sm:$0xff] }
 0x4e5   : > { %5788 = vmatmul.mubr.f32.vlgmr.msra.gmra.mxu0 %v15270_v14  ;;  %6189 = vmatprep.subr.mxu0 %v15271_v47  ;;  %v15281_v14 = vld [vmem:[#allocation28_spill] sm:$0xff]  ;;  %v15282_v47 = vld [vmem:[#allocation85_spill] sm:$0xff] }
 0x4e6   : > { %6407 = vmatprep.subr.mxu1 %v15272_v35  ;;  %6192 = vmatpush1.msra.mxu0 %v15273_v18  ;;  %v15283_v35 = vld [vmem:[#allocation29_spill] sm:$0xff] }
 0x4e7   : > { %6381 = vmatprep.mubr.f32.mxu0 %v15274_v21  ;;  %6409 = vmatpush1.msra.mxu1 %v15275_v23  ;;  %v15284_v18 = vld [vmem:[#allocation89_spill] sm:$0xff]  ;;  %v15285_v21 = vld [vmem:[#allocation35_spill] sm:$0xff]  ;;  %v15286_v23 = vld [vmem:[#allocation88_spill] sm:$0xff] }
 0x4e8   : > { %6195 = vmatprep.subr.mxu0 %v15276_v59  ;;  %6411 = vmatprep.subr.mxu1 %v15277_v58  ;;  %v15287_v58 = vld [vmem:[#allocation24_spill] sm:$0xff] }
 0x4e9   : > { %6198 = vmatpush1.msra.mxu0 %v15278_v28  ;;  %6413 = vmatpush1.msra.mxu1 %v15279_v13  ;;  %v15288_v13 = vld [vmem:[#allocation30_spill] sm:$0xff] }
 0x4ea   : > { %6201 = vmatprep.subr.mxu0 %v15280_v9  ;;  %6415 = vmatprep.subr.mxu1 %v15281_v14  ;;  %v15289_v14 = vld [vmem:[#allocation42_spill] sm:$0xff] }
 0x4eb   : > { %6204 = vmatpush1.msra.mxu0 %v15282_v47  ;;  %6417 = vmatpush1.msra.mxu1 %v15283_v35  ;;  %v15290_v35 = vld [vmem:[#allocation50_spill] sm:$0xff] }
 0x4ec   : > { %6207 = vmatprep.subr.mxu0 %v15284_v18  ;;  %6419 = vmatprep.subr.mxu1 %v15285_v21  ;;  %v15291_v21 = vld [vmem:[#allocation71_spill] sm:$0xff] }
 0x4ed   : > { %6210 = vmatpush1.msra.mxu0 %v15286_v23  ;;  %6421 = vmatpush1.msra.mxu1 %v11621_v56  ;;  %v15292_v56 = vld [vmem:[#allocation78_spill] sm:$0xff] }
 0x4ee   : > { %6213 = vmatprep.subr.mxu0 %v15287_v58  ;;  %6423 = vmatprep.subr.mxu1 %v11634_v63  ;;  %v15293_v58 = vld [vmem:[#allocation45_spill] sm:$0xff]  ;;  %v15294_v63 = vld [vmem:[#allocation80_spill] sm:$0xff] }
 0x4ef   : > { %6216 = vmatpush1.msra.mxu0 %v15288_v13  ;;  %6425 = vmatpush1.msra.mxu1 %v11636_v8  ;;  %v15295_v13 = vld [vmem:[#allocation53_spill] sm:$0xff]  ;;  %v15296_v8 = vld [vmem:[#allocation87_spill] sm:$0xff] }
 0x4f0   : > { %6219 = vmatprep.subr.mxu0 %v15289_v14  ;;  %6427 = vmatprep.subr.mxu1 %v11653_v4  ;;  %v15297_v14 = vld [vmem:[#allocation47_spill] sm:$0xff]  ;;  %v15298_v4 = vld [vmem:[#allocation104_spill] sm:$0xff] }
 0x4f1   : > { %6222 = vmatpush1.msra.mxu0 %v15290_v35  ;;  %6429 = vmatpush1.msra.mxu1 %v11679_v6  ;;  %v15299_v35 = vld [vmem:[#allocation56_spill] sm:$0xff]  ;;  %v15300_v6 = vld [vmem:[#allocation105_spill] sm:$0xff] }
 0x4f2   : > { %6225 = vmatprep.subr.mxu0 %v15291_v21  ;;  %6431 = vmatprep.subr.mxu1 %v11703_v53  ;;  %v15301_v21 = vld [vmem:[#allocation57_spill] sm:$0xff]  ;;  %v15302_v53 = vld [vmem:[#allocation111_spill] sm:$0xff] }
 0x4f3   : > { %6228 = vmatpush1.msra.mxu0 %v15292_v56  ;;  %6433 = vmatpush1.msra.mxu1 %v15293_v58  ;;  %v15303_v56 = vld [vmem:[#allocation72_spill] sm:$0xff] }
 0x4f4   : > { %6231 = vmatprep.subr.mxu0 %v15294_v63  ;;  %6435 = vmatprep.subr.mxu1 %v15295_v13  ;;  %v15304_v58 = vld [vmem:[#allocation116_spill] sm:$0xff]  ;;  %v15305_v63 = vld [vmem:[#allocation90_spill] sm:$0xff]  ;;  %v15306_v13 = vld [vmem:[#allocation5_spill] sm:$0xff] }
 0x4f5   : > { %6234 = vmatpush1.msra.mxu0 %v15296_v8  ;;  %6437 = vmatpush1.msra.mxu1 %v15297_v14  ;;  %v15307_v8 = vld [vmem:[#allocation65_spill] sm:$0xff] }
 0x4f6   : > { %6237 = vmatprep.subr.mxu0 %v15298_v4  ;;  %6439 = vmatprep.subr.mxu1 %v15299_v35  ;;  %v15308_v14 = vld [vmem:[#allocation21_spill] sm:$0xff]  ;;  %v15309_v4 = vld [vmem:[#allocation103_spill] sm:$0xff] }
 0x4f7   : > { %6240 = vmatpush1.msra.mxu0 %v15300_v6  ;;  %6441 = vmatpush1.msra.mxu1 %v15301_v21  ;;  %v15310_v35 = vld [vmem:[#allocation61_spill] sm:$0xff]  ;;  %v15311_v6 = vld [vmem:[#allocation66_spill] sm:$0xff] }
 0x4f8   : > { %6243 = vmatprep.subr.mxu0 %v15302_v53  ;;  %6443 = vmatprep.subr.mxu1 %v15303_v56  ;;  %v15312_v21 = vld [vmem:[#allocation62_spill] sm:$0xff]  ;;  %v15314_v56 = vld [vmem:[#allocation63_spill] sm:$0xff] }
 0x4f9   : > { %6246 = vmatpush1.msra.mxu0 %v15304_v58  ;;  %6445 = vmatpush1.msra.mxu1 %v15305_v63  ;;  %v15313_v53 = vld [vmem:[#allocation106_spill] sm:$0xff]  ;;  %v15316_v63 = vld [vmem:[#allocation68_spill] sm:$0xff] }
 0x4fa   : > { %6249 = vmatprep.subr.mxu0 %v15306_v13  ;;  %6447 = vmatprep.subr.mxu1 %v15307_v8  ;;  %v15315_v58 = vld [vmem:[#allocation110_spill] sm:$0xff]  ;;  %v15317_v13 = vld [vmem:[#allocation79_spill] sm:$0xff] }
 0x4fb   : > { %6252 = vmatpush1.msra.mxu0 %v15308_v14  ;;  %6449 = vmatpush1.msra.mxu1 %v15309_v4  ;;  %v15318_v8 = vld [vmem:[#allocation83_spill] sm:$0xff] }
 0x4fc   : > { %6255 = vmatprep.subr.mxu0 %v15310_v35  ;;  %6451 = vmatprep.subr.mxu1 %v15311_v6  ;;  %v15319_v4 = vld [vmem:[#allocation7_spill] sm:$0xff]  ;;  %v15320_v6 = vld [vmem:[#allocation92_spill] sm:$0xff] }
 0x4fd   : > { %6258 = vmatpush1.msra.mxu0 %v15312_v21  ;;  %6453 = vmatpush1.msra.mxu1 %v15313_v53  ;;  %v15321_v53 = vld [vmem:[#allocation70_spill] sm:$0xff] }
 0x4fe   : > { %6261 = vmatprep.subr.mxu0 %v15314_v56  ;;  %6455 = vmatprep.subr.mxu1 %v15315_v58  ;;  %v15322_v58 = vld [vmem:[#allocation109_spill] sm:$0xff] }
 0x4ff   : > { %6264 = vmatpush1.msra.mxu0 %v15316_v63  ;;  %6457 = vmatpush2.msra.mxu1 %v15317_v13  ;;  %v15323_v13 = vld [vmem:[#allocation19_spill] sm:$0xff] }
 0x500   : > { %6267 = vmatprep.subr.mxu0 %v15318_v8  ;;  %6459 = vmatprep.subr.mxu1 %v12000_v1  ;;  %v15324_v1 = vld [vmem:[#allocation84_spill] sm:$0xff] }
 0x501   : > { %6270 = vmatpush1.msra.mxu0 %v15319_v4  ;;  %6461 = vmatpush2.msra.mxu1 %v12030_v48  ;;  %v15325_v48 = vld [vmem:[#allocation9_spill] sm:$0xff] }
 0x502   : > { %6273 = vmatprep.subr.mxu0 %v15320_v6  ;;  %6463 = vmatprep.subr.mxu1 %v12044_v36  ;;  %v15326_v36 = vld [vmem:[#allocation17_spill] sm:$0xff] }
 0x503   : > { %6276 = vmatpush1.msra.mxu0 %v15321_v53  ;;  %6465 = vmatpush2.msra.mxu1 %v12059_v57  ;;  %v15327_v57 = vld [vmem:[#allocation82_spill] sm:$0xff] }
 0x504   : > { %6279 = vmatprep.subr.mxu0 %v15322_v58  ;;  %6467 = vmatprep.subr.mxu1 %v12109_v62  ;;  %v15328_v62 = vld [vmem:[#allocation3_spill] sm:$0xff] }
 0x505   : > { %6282 = vmatpush1.msra.mxu0 %v15323_v13  ;;  %6469 = vmatpush2.msra.mxu1 %v12119_v46  ;;  %v15329_v46 = vld [vmem:[#allocation52_spill] sm:$0xff] }
 0x506   : > { %6285 = vmatprep.subr.mxu0 %v15324_v1  ;;  %6471 = vmatprep.subr.mxu1 %v12133_v26  ;;  %v15330_v26 = vld [vmem:[#allocation18_spill] sm:$0xff] }
 0x507   : > { %6288 = vmatpush2.msra.mxu0 %v15325_v48  ;;  %6473 = vmatpush2.msra.mxu1 %v15252_v31  ;;  %v15331_v31 = vld [vmem:[#allocation22_spill] sm:$0xff] }
 0x508   : > { %6291 = vmatprep.subr.mxu0 %v15326_v36  ;;  %6475 = vmatprep.subr.mxu1 %v12169_v60  ;;  %v15332_v60 = vld [vmem:[#allocation33_spill] sm:$0xff] }
 0x509   : > { %6294 = vmatpush2.msra.mxu0 %v15327_v57  ;;  %6477 = vmatpush2.msra.mxu1 %v12184_v43  ;;  %v15333_v43 = vld [vmem:[#allocation32_spill] sm:$0xff] }
 0x50a   : > { %6297 = vmatprep.subr.mxu0 %v15328_v62  ;;  %6479 = vmatprep.subr.mxu1 %v12186_v33  ;;  %v15334_v33 = vld [vmem:[#allocation43_spill] sm:$0xff] }
 0x50b   : > { %6300 = vmatpush2.msra.mxu0 %v15329_v46  ;;  %6481 = vmatpush2.msra.mxu1 %v12198_v54  ;;  %v15335_v54 = vld [vmem:[#allocation58_spill] sm:$0xff] }
 0x50c   : > { %6303 = vmatprep.subr.mxu0 %v15330_v26  ;;  %6483 = vmatprep.subr.mxu1 %v12209_v24  ;;  %v15336_v24 = vld [vmem:[#allocation49_spill] sm:$0xff] }
 0x50d   : > { %6306 = vmatpush2.msra.mxu0 %v15331_v31  ;;  %6485 = vmatpush2.msra.mxu1 %v12211_v0  ;;  %v15337_v0 = vld [vmem:[#allocation64_spill] sm:$0xff] }
 0x50e   : > { %6309 = vmatprep.subr.mxu0 %v15332_v60  ;;  %6487 = vmatprep.subr.mxu1 %v12274_v15  ;;  %v15338_v15 = vld [vmem:[#allocation67_spill] sm:$0xff] }
 0x50f   : > { %6312 = vmatpush2.msra.mxu0 %v15333_v43  ;;  %6489 = vmatpush2.msra.mxu1 %v12299_v50  ;;  %v15339_v50 = vld [vmem:[#allocation74_spill] sm:$0xff] }
 0x510   : > { %6315 = vmatprep.subr.mxu0 %v15334_v33  ;;  %6491 = vmatprep.subr.mxu1 %v12330_v55  ;;  %v15340_v55 = vld [vmem:[#allocation107_spill] sm:$0xff] }
 0x511   : > { %6318 = vmatpush2.msra.mxu0 %v15335_v54  ;;  %6493 = vmatpush2.msra.mxu1 %v12349_v49  ;;  %v15341_v49 = vld [vmem:[#allocation113_spill] sm:$0xff] }
 0x512   : > { %6321 = vmatprep.subr.mxu0 %v15336_v24  ;;  %6495 = vmatprep.subr.mxu1 %v12366_v16 }
 0x513   : > { %6324 = vmatpush2.msra.mxu0 %v15337_v0  ;;  %6497 = vmatpush2.msra.mxu1 %v12385_v19  ;;  %v15342_v19 = vld [vmem:[#allocation115_spill] sm:$0xff] }
 0x514   : > { %6327 = vmatprep.subr.mxu0 %v15338_v15  ;;  %6499 = vmatprep.subr.mxu1 %v12398_v42 }
 0x515   : > { %6330 = vmatpush2.msra.mxu0 %v15339_v50  ;;  %6501 = vmatpush2.msra.mxu1 %v12409_v2  ;;  %v15343_v2 = vld [vmem:[#allocation118_spill] sm:$0xff] }
 0x516   : > { %6333 = vmatprep.subr.mxu0 %v15340_v55  ;;  %6503 = vmatprep.subr.mxu1 %v12421_v45 }
 0x517   : > { %6336 = vmatpush2.msra.mxu0 %v15341_v49  ;;  %6505 = vmatpush2.msra.mxu1 %v12432_v29 }
 0x518   : > { %6339 = vmatprep.subr.mxu0 %v12396_v51  ;;  %6507 = vmatprep.subr.mxu1 %v12448_v52 }
 0x519   : > { %6342 = vmatpush2.msra.mxu0 %v15342_v19  ;;  %6509 = vmatpush2.msra.mxu1 %v12458_v38  ;;  %v15344_v19 = vld [vmem:[#allocation98_spill] sm:$0xff] }
 0x51a   : > { %6345 = vmatprep.subr.mxu0 %v12419_v30  ;;  %6511 = vmatprep.subr.mxu1 %v12471_v61 }
 0x51b   : > { %6348 = vmatpush2.msra.mxu0 %v15343_v2  ;;  %6513 = vmatpush2.msra.mxu1 %v12482_v7  ;;  %v15345_v2 = vld [vmem:[#allocation95_spill] sm:$0xff] }
 0x51c   : > { %6351 = vmatprep.subr.mxu0 %v12446_v20  ;;  %6515 = vmatprep.subr.mxu1 %v12492_v10 }
 0x51d   : > { %6354 = vmatpush2.msra.mxu0 %v12456_v37  ;;  %6517 = vmatpush2.msra.mxu1 %v12503_v44 }
 0x51e   : > { %6357 = vmatprep.subr.mxu0 %v12469_v32  ;;  %6525 = vmatmul.mubr.f32.vlgmr.msra.gmra.mxu1 %v15344_v19  ;;  %v15346_v19 = vld [vmem:[#allocation38_spill] sm:$0xff] }
 0x51f   : > { %6797 = vmatprep.subr.mxu1 %v15261_v17  ;;  %6360 = vmatpush2.msra.mxu0 %v12480_v5  ;;  %v15347_v17 = vld [vmem:[#allocation121_spill] sm:$0xff] }
 0x520   : > { %6799 = vmatpush1.msra.mxu1 %v15262_v34  ;;  %6925 = vmatprep.mubr.f32.mxu1 %v15345_v2  ;;  %v15348_v34 = vld [vmem:[#allocation59_spill] sm:$0xff] }
 0x521   : > { %6363 = vmatprep.subr.mxu0 %v12490_v39  ;;  %6801 = vmatprep.subr.mxu1 %v15264_v3  ;;  %v15349_v3 = vld [vmem:[#allocation96_spill] sm:$0xff] }
 0x522   : > { %6366 = vmatpush2.msra.mxu0 %v12501_v41  ;;  %6803 = vmatpush1.msra.mxu1 %v15265_v12  ;;  %v15350_v41 = vld [vmem:[#allocation12_spill] sm:$0xff] }
 0x523   : > { %6369 = vmatprep.subr.mxu0 %v12512_v40  ;;  %6805 = vmatprep.subr.mxu1 %v15266_v11  ;;  %v15351_v12 = vand.u32 4294901760, %v15350_v41  ;;  %v15352_v40 = vld [vmem:[#allocation93_spill] sm:$0xff]  ;;  %v15353_v11 = vld [vmem:[#allocation44_spill] sm:$0xff]  ;;  %v15360_v41 = vand.u32 4294901760, %v15280_v9 }
 0x524   : > { %6372 = vmatpush2.msra.mxu0 %v12520_v27  ;;  %6807 = vmatpush1.msra.mxu1 %v15267_v22  ;;  %v15354_v39 = vand.u32 4294901760, %v15353_v11  ;;  %v15355_v22 = vld [vmem:[#allocation20_spill] sm:$0xff] }
 0x525   : > { %6375 = vmatprep.subr.mxu0 %v12528_v25  ;;  %6809 = vmatprep.subr.mxu1 %v15346_v19  ;;  %v15356_v19 = vand.u32 4294901760, %v15276_v59  ;;  %v15364_v59 = vand.u32 4294901760, %v15284_v18  ;;  %v15368_v11 = vld [vmem:[#allocation24_spill] sm:$0xff] }
 0x526   : > { %6378 = vmatpush2.msra.mxu0 %v15347_v17  ;;  %6811 = vmatpush1.msra.mxu1 %v15348_v34  ;;  %v15357_v17 = vld [vmem:[#allocation23_spill] sm:$0xff]  ;;  %v15358_v34 = vand.u32 4294901760, %v15278_v28  ;;  %v15366_v28 = vand.u32 4294901760, %v15286_v23  ;;  %v15369_v9 = vand.u32 4294901760, %v15368_v11  ;;  %v15385_v11 = vld [vmem:[#allocation45_spill] sm:$0xff] }
 0x527   : > { %6384 = vmatmul.mubr.f32.vlgmr.msra.gmra.mxu0 %v15349_v3  ;;  %6534 = vmatprep.subr.mxu0 %v15351_v12  ;;  %v15359_v3 = vld [vmem:[#allocation15_spill] sm:$0xff] }
 0x528   : > { %6813 = vmatprep.subr.mxu1 %v15352_v40  ;;  %6538 = vmatpush1.msra.mxu0 %v15354_v39  ;;  %v15361_v40 = vld [vmem:[#allocation28_spill] sm:$0xff]  ;;  %v15362_v39 = vand.u32 4294901760, %v15282_v47  ;;  %v15365_v12 = vld [vmem:[#allocation35_spill] sm:$0xff] }
 0x529   : > { %6788 = vmatprep.mubr.f32.mxu0 %v15345_v2  ;;  %6815 = vmatpush1.msra.mxu1 %v15355_v22  ;;  %v15363_v2 = vld [vmem:[#allocation29_spill] sm:$0xff] }
 0x52a   : > { %6542 = vmatprep.subr.mxu0 %v15356_v19  ;;  %6817 = vmatprep.subr.mxu1 %v15357_v17  ;;  %v15367_v17 = vld [vmem:[#allocation34_spill] sm:$0xff]  ;;  %v15370_v22 = vld [vmem:[#allocation41_spill] sm:$0xff] }
 0x52b   : > { %6546 = vmatpush1.msra.mxu0 %v15358_v34  ;;  %6819 = vmatpush1.msra.mxu1 %v15359_v3  ;;  %v15371_v19 = vld [vmem:[#allocation30_spill] sm:$0xff]  ;;  %v15373_v34 = vld [vmem:[#allocation60_spill] sm:$0xff] }
 0x52c   : > { %6550 = vmatprep.subr.mxu0 %v15360_v41  ;;  %6821 = vmatprep.subr.mxu1 %v15361_v40  ;;  %v15372_v47 = vand.u32 4294901760, %v15371_v19  ;;  %v15374_v3 = vld [vmem:[#allocation42_spill] sm:$0xff]  ;;  %v15376_v41 = vld [vmem:[#allocation69_spill] sm:$0xff] }
 0x52d   : > { %6554 = vmatpush1.msra.mxu0 %v15362_v39  ;;  %6823 = vmatpush1.msra.mxu1 %v15363_v2  ;;  %v15375_v18 = vand.u32 4294901760, %v15374_v3  ;;  %v15377_v40 = vld [vmem:[#allocation50_spill] sm:$0xff]  ;;  %v15380_v2 = vld [vmem:[#allocation71_spill] sm:$0xff]  ;;  %v15388_v19 = vld [vmem:[#allocation53_spill] sm:$0xff] }
 0x52e   : > { %6558 = vmatprep.subr.mxu0 %v15364_v59  ;;  %6825 = vmatprep.subr.mxu1 %v15365_v12  ;;  %v15378_v23 = vand.u32 4294901760, %v15377_v40  ;;  %v15379_v39 = vld [vmem:[#allocation102_spill] sm:$0xff]  ;;  %v15381_v59 = vand.u32 4294901760, %v15380_v2  ;;  %v15391_v3 = vld [vmem:[#allocation47_spill] sm:$0xff]  ;;  %v15394_v40 = vld [vmem:[#allocation56_spill] sm:$0xff] }
 0x52f   : > { %6562 = vmatpush1.msra.mxu0 %v15366_v28  ;;  %6827 = vmatpush1.msra.mxu1 %v15367_v17  ;;  %v15382_v12 = vld [vmem:[#allocation114_spill] sm:$0xff]  ;;  %v15397_v2 = vld [vmem:[#allocation57_spill] sm:$0xff] }
 0x530   : > { %6566 = vmatprep.subr.mxu0 %v15369_v9  ;;  %6829 = vmatprep.subr.mxu1 %v15370_v22  ;;  %v15383_v28 = vld [vmem:[#allocation78_spill] sm:$0xff]  ;;  %v15386_v9 = vld [vmem:[#allocation80_spill] sm:$0xff] }
 0x531   : > { %6570 = vmatpush1.msra.mxu0 %v15372_v47  ;;  %6831 = vmatpush1.msra.mxu1 %v15373_v34  ;;  %v15384_v17 = vand.u32 4294901760, %v15383_v28  ;;  %v15387_v22 = vand.u32 4294901760, %v15386_v9  ;;  %v15389_v47 = vld [vmem:[#allocation87_spill] sm:$0xff]  ;;  %v15400_v28 = vld [vmem:[#allocation72_spill] sm:$0xff]  ;;  %v15403_v9 = vld [vmem:[#allocation90_spill] sm:$0xff] }
 0x532   : > { %6574 = vmatprep.subr.mxu0 %v15375_v18  ;;  %6833 = vmatprep.subr.mxu1 %v15376_v41  ;;  %v15390_v34 = vand.u32 4294901760, %v15389_v47  ;;  %v15392_v18 = vld [vmem:[#allocation104_spill] sm:$0xff]  ;;  %v15406_v47 = vld [vmem:[#allocation65_spill] sm:$0xff] }
 0x533   : > { %6578 = vmatpush1.msra.mxu0 %v15378_v23  ;;  %6835 = vmatpush1.msra.mxu1 %v15379_v39  ;;  %v15393_v41 = vand.u32 4294901760, %v15392_v18  ;;  %v15395_v23 = vld [vmem:[#allocation105_spill] sm:$0xff]  ;;  %v15409_v18 = vand.u32 4294901760, %v15310_v35  ;;  %v15417_v35 = vand.u32 4294901760, %v15318_v8  ;;  %v15425_v8 = vand.u32 4294901760, %v15322_v58 }
 0x534   : > { %6582 = vmatprep.subr.mxu0 %v15381_v59  ;;  %6837 = vmatprep.subr.mxu1 %v15382_v12  ;;  %v15396_v39 = vand.u32 4294901760, %v15395_v23  ;;  %v15398_v59 = vld [vmem:[#allocation111_spill] sm:$0xff]  ;;  %v15412_v23 = vld [vmem:[#allocation106_spill] sm:$0xff]  ;;  %v15433_v58 = vand.u32 4294901760, %v15326_v36  ;;  %v15441_v36 = vand.u32 4294901760, %v15330_v26  ;;  %v15449_v26 = vand.u32 4294901760, %v15334_v33 }
 0x535   : > { %6586 = vmatpush1.msra.mxu0 %v15384_v17  ;;  %6839 = vmatpush1.msra.mxu1 %v15385_v11  ;;  %v15399_v12 = vand.u32 4294901760, %v15398_v59  ;;  %v15401_v17 = vld [vmem:[#allocation116_spill] sm:$0xff]  ;;  %v15416_v59 = vld [vmem:[#allocation79_spill] sm:$0xff]  ;;  %v15456_v33 = vand.u32 4294901760, %v15338_v15  ;;  %v15461_v15 = vand.u32 4294901760, %v15341_v49 }
 0x536   : > { %6590 = vmatprep.subr.mxu0 %v15387_v22  ;;  %6841 = vmatprep.subr.mxu1 %v15388_v19  ;;  %v15402_v11 = vand.u32 4294901760, %v15401_v17  ;;  %v15404_v22 = vld [vmem:[#allocation5_spill] sm:$0xff]  ;;  %v15422_v17 = vld [vmem:[#allocation14_spill] sm:$0xff] }
 0x537   : > { %6594 = vmatpush1.msra.mxu0 %v15390_v34  ;;  %6843 = vmatpush1.msra.mxu1 %v15391_v3  ;;  %v15405_v19 = vand.u32 4294901760, %v15404_v22  ;;  %v15407_v34 = vand.u32 4294901760, %v15308_v14  ;;  %v15408_v3 = vld [vmem:[#allocation103_spill] sm:$0xff]  ;;  %v15415_v14 = vand.u32 4294901760, %v15316_v63  ;;  %v15423_v63 = vand.u32 4294901760, %v15321_v53 }
 0x538   : > { %6598 = vmatprep.subr.mxu0 %v15393_v41  ;;  %6845 = vmatprep.subr.mxu1 %v15394_v40  ;;  %v15410_v41 = vld [vmem:[#allocation66_spill] sm:$0xff]  ;;  %v15411_v40 = vand.u32 4294901760, %v15312_v21  ;;  %v15419_v21 = vand.u32 4294901760, %v15319_v4  ;;  %v15427_v4 = vand.u32 4294901760, %v15323_v13  ;;  %v15428_v22 = vld [vmem:[#allocation27_spill] sm:$0xff]  ;;  %v15431_v53 = vand.u32 4294901760, %v15325_v48 }
 0x539   : > { %6602 = vmatpush1.msra.mxu0 %v15396_v39  ;;  %6847 = vmatpush1.msra.mxu1 %v15397_v2  ;;  %v15413_v39 = vand.u32 4294901760, %v15314_v56  ;;  %v15414_v2 = vld [vmem:[#allocation110_spill] sm:$0xff]  ;;  %v15421_v56 = vand.u32 4294901760, %v15320_v6  ;;  %v15429_v6 = vand.u32 4294901760, %v15324_v1  ;;  %v15435_v13 = vand.u32 4294901760, %v15327_v57 }
 0x53a   : > { %6606 = vmatprep.subr.mxu0 %v15399_v12  ;;  %6849 = vmatprep.subr.mxu1 %v15400_v28  ;;  %v15418_v12 = vld [vmem:[#allocation13_spill] sm:$0xff]  ;;  %v15437_v1 = vand.u32 4294901760, %v15328_v62  ;;  %v15439_v48 = vand.u32 4294901760, %v15329_v46  ;;  %v15443_v57 = vand.u32 4294901760, %v15331_v31  ;;  %v15445_v62 = vand.u32 4294901760, %v15332_v60 }
 0x53b   : > { %6610 = vmatpush1.msra.mxu0 %v15402_v11  ;;  %6851 = vmatpush1.msra.mxu1 %v15403_v9  ;;  %v15420_v28 = vld [vmem:[#allocation81_spill] sm:$0xff]  ;;  %v15447_v46 = vand.u32 4294901760, %v15333_v43  ;;  %v15451_v31 = vand.u32 4294901760, %v15335_v54  ;;  %v15453_v60 = vand.u32 4294901760, %v15336_v24  ;;  %v15454_v43 = vand.u32 4294901760, %v15337_v0 }
 0x53c   : > { %6614 = vmatprep.subr.mxu0 %v15405_v19  ;;  %6853 = vmatprep.subr.mxu1 %v15406_v47  ;;  %v15424_v11 = vld [vmem:[#allocation73_spill] sm:$0xff]  ;;  %v15430_v19 = vld [vmem:[#allocation16_spill] sm:$0xff]  ;;  %v15432_v47 = vld [vmem:[#allocation91_spill] sm:$0xff]  ;;  %v15457_v54 = vand.u32 4294901760, %v15339_v50  ;;  %v15462_v50 = vand.u32 4294901760, %v12396_v51 }
 0x53d   : > { %6618 = vmatpush1.msra.mxu0 %v15407_v34  ;;  %6855 = vmatpush1.msra.mxu1 %v15408_v3  ;;  %v15426_v9 = vld [vmem:[#allocation25_spill] sm:$0xff]  ;;  %v15434_v34 = vld [vmem:[#allocation86_spill] sm:$0xff] }
 0x53e   : > { %6622 = vmatprep.subr.mxu0 %v15409_v18  ;;  %6857 = vmatprep.subr.mxu1 %v15410_v41  ;;  %v15436_v3 = vld [vmem:[#allocation26_spill] sm:$0xff]  ;;  %v15438_v18 = vld [vmem:[#allocation31_spill] sm:$0xff]  ;;  %v15440_v41 = vld [vmem:[#allocation37_spill] sm:$0xff] }
 0x53f   : > { %6626 = vmatpush1.msra.mxu0 %v15411_v40  ;;  %6859 = vmatpush1.msra.mxu1 %v15412_v23  ;;  %v15442_v40 = vld [vmem:[#allocation36_spill] sm:$0xff]  ;;  %v15444_v23 = vld [vmem:[#allocation51_spill] sm:$0xff] }
 0x540   : > { %6630 = vmatprep.subr.mxu0 %v15413_v39  ;;  %6861 = vmatprep.subr.mxu1 %v15414_v2  ;;  %v15446_v39 = vld [vmem:[#allocation76_spill] sm:$0xff]  ;;  %v15448_v2 = vld [vmem:[#allocation77_spill] sm:$0xff] }
 0x541   : > { %6634 = vmatpush1.msra.mxu0 %v15415_v14  ;;  %6863 = vmatpush2.msra.mxu1 %v15416_v59  ;;  %v4505_v14 = vpop.f32.mrf.mxu0  ;;  %v15450_v59 = vld [vmem:[#allocation108_spill] sm:$0xff] }
 0x542   : > { %6638 = vmatprep.subr.mxu0 %v15417_v35  ;;  %6865 = vmatprep.subr.mxu1 %v15418_v12  ;;  %v15452_v35 = vld [vmem:[#allocation112_spill] sm:$0xff]  ;;  %v15455_v12 = vld [vmem:[#allocation55_spill] sm:$0xff] }
 0x543   : > { %6642 = vmatpush1.msra.mxu0 %v15419_v21  ;;  %6867 = vmatpush2.msra.mxu1 %v15420_v28  ;;  %v4898_v21 = vpop.f32.mrf.mxu1  ;;  %v4507_v28 = vpop.f32.mrf.mxu0 }
 0x544   : > { %6646 = vmatprep.subr.mxu0 %v15421_v56  ;;  %6869 = vmatprep.subr.mxu1 %v15422_v17  ;;  %v15458_v56 = vld [vmem:[#allocation40_spill] sm:$0xff]  ;;  %v15459_v17 = vld [vmem:[#allocation117_spill] sm:$0xff] }
 0x545   : > { %6650 = vmatpush1.msra.mxu0 %v15423_v63  ;;  %6871 = vmatpush2.msra.mxu1 %v15424_v11  ;;  %v4506_v24 = vadd.f32 %v4505_v14, %v15458_v56  ;;  %v5101_v0 = vpop.f32.mrf.mxu0  ;;  %v4508_v63 = vadd.f32 %v4507_v28, %v15458_v56  ;;  %v15463_v11 = vld [vmem:[#allocation115_spill] sm:$0xff] }
 0x546   : > { %6654 = vmatprep.subr.mxu0 %v15425_v8  ;;  %6873 = vmatprep.subr.mxu1 %v15426_v9  ;;  %v15464_v8 = vand.u32 4294901760, %v15463_v11 }
 0x547   : > { %6658 = vmatpush1.msra.mxu0 %v15427_v4  ;;  %6875 = vmatpush2.msra.mxu1 %v15428_v22  ;;  %v5103_v9 = vpop.f32.mrf.mxu0 }
 0x548   : > { %6662 = vmatprep.subr.mxu0 %v15429_v6  ;;  %6877 = vmatprep.subr.mxu1 %v15430_v19  ;;  %v15471_v19 = vld [vmem:[#allocation94_spill] sm:$0xff] }
 0x549   : > { %6666 = vmatpush2.msra.mxu0 %v15431_v53  ;;  %6879 = vmatpush2.msra.mxu1 %v15432_v47  ;;  %v15472_v53 = vand.u32 4294901760, %v12480_v5  ;;  %v15480_v5 = vand.u32 4294901760, %v12528_v25 }
 0x54a   : > { %6670 = vmatprep.subr.mxu0 %v15433_v58  ;;  %6881 = vmatprep.subr.mxu1 %v15434_v34  ;;  %v15475_v58 = vld [vmem:[#allocation120_spill] sm:$0xff] }
 0x54b   : > { %6674 = vmatpush2.msra.mxu0 %v15435_v13  ;;  %6883 = vmatpush2.msra.mxu1 %v15436_v3  ;;  %v15477_v13 = vld [vmem:[#allocation4_spill] sm:$0xff] }
 0x54c   : > { %6678 = vmatprep.subr.mxu0 %v15437_v1  ;;  %6885 = vmatprep.subr.mxu1 %v15438_v18  ;;  %v15479_v1 = vand.u32 4294901760, %v12520_v27 }
 0x54d   : > { %6682 = vmatpush2.msra.mxu0 %v15439_v48  ;;  %6887 = vmatpush2.msra.mxu1 %v15440_v41 }
 0x54e   : > { %6686 = vmatprep.subr.mxu0 %v15441_v36  ;;  %6889 = vmatprep.subr.mxu1 %v15442_v40  ;;  %v15481_v40 = vld [vmem:[#allocation121_spill] sm:$0xff] }
 0x54f   : > { %6690 = vmatpush2.msra.mxu0 %v15443_v57  ;;  %6891 = vmatpush2.msra.mxu1 %v15444_v23  ;;  %v15482_v57 = vand.u32 4294901760, %v15481_v40 }
 0x550   : > { %6694 = vmatprep.subr.mxu0 %v15445_v62  ;;  %6893 = vmatprep.subr.mxu1 %v15446_v39 }
 0x551   : > { %6698 = vmatpush2.msra.mxu0 %v15447_v46  ;;  %6895 = vmatpush2.msra.mxu1 %v15448_v2 }
 0x552   : > { %6702 = vmatprep.subr.mxu0 %v15449_v26  ;;  %6897 = vmatprep.subr.mxu1 %v15450_v59  ;;  %v6977_v59 = vld [vmem:[%s10963_s29 + $0x20] sm:$0xff] }
 0x553   : > { %6706 = vmatpush2.msra.mxu0 %v15451_v31  ;;  %6899 = vmatpush2.msra.mxu1 %v15452_v35  ;;  %v6978_v35 = vld [vmem:[%s10963_s29 + $0x28] sm:$0xff] }
 0x554   : > { %6710 = vmatprep.subr.mxu0 %v15453_v60  ;;  %6901 = vmatprep.subr.mxu1 %v12366_v16  ;;  %v15460_v16 = vand.u32 4294901760, %v15340_v55  ;;  %v4899_v55 = vadd.f32 %v4898_v21, %v4506_v24 }
 0x555   : > { %6714 = vmatpush2.msra.mxu0 %v15454_v43  ;;  %6903 = vmatpush2.msra.mxu1 %v15455_v12 }
 0x556   : > { %6718 = vmatprep.subr.mxu0 %v15456_v33  ;;  %6905 = vmatprep.subr.mxu1 %v12398_v42  ;;  %v4900_v42 = vpop.f32.mrf.mxu1  ;;  %v5102_v51 = vadd.f32 %v5101_v0, %v4899_v55 }
 0x557   : > { %6722 = vmatpush2.msra.mxu0 %v15457_v54  ;;  %6907 = vmatpush2.msra.mxu1 %v15459_v17  ;;  %v4901_v22 = vadd.f32 %v4900_v42, %v4508_v63 }
 0x558   : > { %6726 = vmatprep.subr.mxu0 %v15460_v16  ;;  %6909 = vmatprep.subr.mxu1 %v12421_v45  ;;  %v15465_v45 = vand.u32 4294901760, %v12419_v30  ;;  %v5242_v49 = vpop.f32.mrf.mxu1 }
 0x559   : > { %6730 = vmatpush2.msra.mxu0 %v15461_v15  ;;  %6911 = vmatpush2.msra.mxu1 %v12432_v29  ;;  %v15466_v29 = vld [vmem:[#allocation118_spill] sm:$0xff]  ;;  %v5104_v30 = vadd.f32 %v5103_v9, %v4901_v22  ;;  %v5243_v47 = vadd.f32 %v5242_v49, %v5102_v51 }
 0x55a   : > { %6734 = vmatprep.subr.mxu0 %v15462_v50  ;;  %6913 = vmatprep.subr.mxu1 %v12448_v52  ;;  %v15467_v4 = vand.u32 4294901760, %v15466_v29  ;;  %v15468_v52 = vand.u32 4294901760, %v12446_v20  ;;  %v5244_v6 = vpop.f32.mrf.mxu1 }
 0x55b   : > { %6738 = vmatpush2.msra.mxu0 %v15464_v8  ;;  %6915 = vmatpush2.msra.mxu1 %v12458_v38  ;;  %v15469_v38 = vand.u32 4294901760, %v12456_v37  ;;  %v15476_v37 = vand.u32 4294901760, %v15475_v58  ;;  %v5245_v3 = vadd.f32 %v5244_v6, %v5104_v30  ;;  %v6980_v58 = vld [vmem:[%s10963_s29 + $0x38] sm:$0xff] }
 0x55c   : > { %6742 = vmatprep.subr.mxu0 %v15465_v45  ;;  %6917 = vmatprep.subr.mxu1 %v12471_v61  ;;  %v15470_v61 = vand.u32 4294901760, %v12469_v32 }
 0x55d   : > { %6746 = vmatpush2.msra.mxu0 %v15467_v4  ;;  %6919 = vmatpush2.msra.mxu1 %v12482_v7  ;;  %v15473_v7 = vld [vmem:[#allocation119_spill] sm:$0xff] }
 0x55e   : > { %6750 = vmatprep.subr.mxu0 %v15468_v52  ;;  %6921 = vmatprep.subr.mxu1 %v12492_v10  ;;  %v15474_v20 = vand.u32 4294901760, %v15473_v7  ;;  %v5644_v10 = vpop.f32.mrf.mxu1  ;;  %v5507_v34 = vpop.f32.mrf.mxu0 }
 0x55f   : > { %6754 = vmatpush2.msra.mxu0 %v15469_v38  ;;  %6923 = vmatpush2.msra.mxu1 %v12503_v44  ;;  %v15478_v44 = vand.u32 4294901760, %v15477_v13  ;;  %v5508_v32 = vadd.f32 %v5507_v34, %v5243_v47  ;;  %v6979_v47 = vld [vmem:[%s10963_s29 + $0x30] sm:$0xff] }
 0x560   : > { %6758 = vmatprep.subr.mxu0 %v15470_v61  ;;  %6927 = vmatmul.mubr.f32.vlgmr.msra.gmra.mxu1 %v15471_v19  ;;  %v5509_v18 = vpop.f32.mrf.mxu0  ;;  %v5646_v36 = vpop.f32.mrf.mxu1 }
 0x561   : > { %6762 = vmatpush2.msra.mxu0 %v15472_v53  ;;  %v5645_v48 = vadd.f32 %v5644_v10, %v5508_v32  ;;  %v5510_v41 = vadd.f32 %v5509_v18, %v5245_v3 }
 0x562   : > { %6766 = vmatprep.subr.mxu0 %v15474_v20 }
 0x563   : > { %6770 = vmatpush2.msra.mxu0 %v15476_v37  ;;  %v6937_v23 = vsub.f32 0.0, %v5645_v48  ;;  %v5647_v62 = vadd.f32 %v5646_v36, %v5510_v41 }
 0x564   : > { %6774 = vmatprep.subr.mxu0 %v15478_v44 }
 0x565   : > { %6778 = vmatpush2.msra.mxu0 %v15479_v1  ;;  %v6949_v39 = vmul.f32 1.442695, %v6937_v23  ;;  %v6938_v27 = vsub.f32 0.0, %v5647_v62 }
 0x566   : > { %6782 = vmatprep.subr.mxu0 %v15480_v5 }
 0x567   : > { %6786 = vmatpush2.msra.mxu0 %v15482_v57  ;;  %7169 = vpow2.f32 %v6949_v39  ;;  %v6951_v46 = vmul.f32 1.442695, %v6938_v27 }
 0x568   : > { %6790 = vmatmul.mubr.f32.vlgmr.msra.gmra.mxu0 %v15471_v19 }
 0x569   : > { %7171 = vpow2.f32 %v6951_v46 }
 0x574   : > { %v7170_v25 = vpop.eup %7169 }
 0x575   : > { %v6961_v2 = vadd.f32 1.0, %v7170_v25 }
 0x576   : > { %v7172_v26 = vpop.eup %7171 }
 0x577   : > { %7173 = vrcp.f32 %v6961_v2  ;;  %v6962_v14 = vadd.f32 1.0, %v7172_v26 }
 0x579   : > { %7175 = vrcp.f32 %v6962_v14 }
 0x584   : > { %v7174_v31 = vpop.eup %7173 }
 0x585   : > { %v6985_v60 = vmul.f32 %v7174_v31, %v6977_v59 }
 0x586   : > { %v7176_v43 = vpop.eup %7175 }
 0x587   : > { %6993 = vst [vmem:[%s11036_s25 + $0x20] sm:$0xff] %v6985_v60  ;;  %v6986_v12 = vmul.f32 %v7176_v43, %v6978_v35 }
 0x589   : > { %6994 = vst [vmem:[%s11036_s25 + $0x28] sm:$0xff] %v6986_v12 }
 0x59d   : > { %v6182_v21 = vpop.f32.mrf.mxu1 }
 0x59f   : > { %v6184_v16 = vpop.f32.mrf.mxu1 }
 0x5a5   : > { %v5789_v33 = vpop.f32.mrf.mxu0 }
 0x5a6   : > { %v5790_v54 = vadd.f32 %v5789_v33, %v15458_v56 }
 0x5a7   : > { %v5791_v28 = vpop.f32.mrf.mxu0 }
 0x5a8   : > { %v5792_v17 = vadd.f32 %v5791_v28, %v15458_v56  ;;  %v6183_v0 = vadd.f32 %v6182_v21, %v5790_v54 }
 0x5aa   : > { %v6185_v42 = vadd.f32 %v6184_v16, %v5792_v17 }
 0x5de   : > { %v6526_v15 = vpop.f32.mrf.mxu1 }
 0x5e0   : > { %v6528_v8 = vpop.f32.mrf.mxu1 }
 0x5e7   : > { %v6385_v24 = vpop.f32.mrf.mxu0 }
 0x5e8   : > { %v6386_v50 = vadd.f32 %v6385_v24, %v6183_v0 }
 0x5e9   : > { %v6387_v63 = vpop.f32.mrf.mxu0 }
 0x5ea   : > { %v6388_v11 = vadd.f32 %v6387_v63, %v6185_v42  ;;  %v6527_v55 = vadd.f32 %v6526_v15, %v6386_v50 }
 0x5ec   : > { %v6529_v29 = vadd.f32 %v6528_v8, %v6388_v11 }
 0x620   : > { %v6928_v45 = vpop.f32.mrf.mxu1 }
 0x622   : > { %v6930_v52 = vpop.f32.mrf.mxu1 }
 0x628   : > { %v6791_v49 = vpop.f32.mrf.mxu0 }
 0x629   : > { %v6792_v9 = vadd.f32 %v6791_v49, %v6527_v55 }
 0x62a   : > { %v6793_v4 = vpop.f32.mrf.mxu0 }
 0x62b   : > { %v6929_v51 = vadd.f32 %v6928_v45, %v6792_v9  ;;  %v6794_v22 = vadd.f32 %v6793_v4, %v6529_v29 }
 0x62d   : > { %v6939_v56 = vsub.f32 0.0, %v6929_v51  ;;  %v6931_v38 = vadd.f32 %v6930_v52, %v6794_v22 }
 0x62f   : > { %v6953_v30 = vmul.f32 1.442695, %v6939_v56  ;;  %v6940_v61 = vsub.f32 0.0, %v6931_v38 }
 0x631   : > { %7177 = vpow2.f32 %v6953_v30  ;;  %v6955_v6 = vmul.f32 1.442695, %v6940_v61 }
 0x633   : > { %7179 = vpow2.f32 %v6955_v6 }
 0x63e   : > { %v7178_v19 = vpop.eup %7177 }
 0x63f   : > { %v6963_v53 = vadd.f32 1.0, %v7178_v19 }
 0x640   : > { %v7180_v7 = vpop.eup %7179 }
 0x641   : > { %7181 = vrcp.f32 %v6963_v53  ;;  %v6964_v20 = vadd.f32 1.0, %v7180_v7 }
 0x643   : > { %7183 = vrcp.f32 %v6964_v20 }
 0x64e   : > { %v7182_v10 = vpop.eup %7181 }
 0x64f   : > { %v6987_v37 = vmul.f32 %v7182_v10, %v6979_v47 }
 0x650   : > { %v7184_v34 = vpop.eup %7183 }
 0x651   : > { %6995 = vst [vmem:[%s11036_s25 + $0x30] sm:$0xff] %v6987_v37  ;;  %v6988_v13 = vmul.f32 %v7184_v34, %v6980_v58 }
 0x653   : > { %6996 = vst [vmem:[%s11036_s25 + $0x38] sm:$0xff] %v6988_v13 }
 0x654 PF: > { %s23_s19 = sadd.s32 1, %s7191_s19  }
 0x655   : > { %p20_p4 = scmp.ge.s32.totalorder %s23_s19, 4  }
 0x657   :  { %22 = sbr.rel (!%p20_p4) target bundleno = 3 (0x3), region = 97 }

</bundles_post_ra>
